<compile_context>
chip_gen: v6e
topology: v6e:2x2x1
jax: 0.10.0
libtpu: 0.0.40
codegen_flags: <defaults>
</compile_context>

<pallas_src>
import functools
import math

import jax
import jax.numpy as jnp
from jax.experimental import pallas as pl
from jax.experimental.pallas import tpu as pltpu

_VMEM_LIMIT = 48 * 1024 * 1024  # stays under v7x's 64 MiB physical VMEM with headroom


# ---------------------------------------------------------------------------
# Pallas kernels
# ---------------------------------------------------------------------------
def _conv3x3_kernel(x_ref, w_ref, b_ref, o_ref, *, h, w, cout, pool):
    """Fused 3x3 conv (stride 1, pad 1) + bias + ReLU [+ 2x2 maxpool] for one image.

    x_ref: (1, h+2, w+2, cin) bf16  padded input image
    w_ref: (9, cin, cout)     bf16  tap-major weights (t = dy*3 + dx)
    b_ref: (1, cout)          f32
    o_ref: (1, ho, wo, cout)  bf16
    """
    cin = x_ref.shape[-1]
    acc = jnp.zeros((h * w, cout), jnp.float32)
    for t in range(9):  # static unroll: 9 accumulated MXU matmuls, no im2col in HBM
        dy, dx = divmod(t, 3)
        win = x_ref[0, dy:dy + h, dx:dx + w, :]          # shifted tap, (h, w, cin)
        acc = acc + jnp.dot(win.reshape(h * w, cin), w_ref[t],
                            preferred_element_type=jnp.float32)
    y = jnp.maximum(acc + b_ref[...], 0.0)               # bias + ReLU in f32

    if pool:                                             # fused 2x2/2 maxpool epilogue
        # max over W-pairs: rows of y are (hy, wx) row-major, W-neighbours are adjacent.
        y = y.reshape(h * w // 2, 2, cout)
        y = jnp.maximum(y[:, 0, :], y[:, 1, :])          # (h*w/2, cout)
        # max over H-pairs
        y = y.reshape(h // 2, 2, w // 2, cout)
        y = jnp.maximum(y[:, 0, :, :], y[:, 1, :, :])    # (h/2, w/2, cout)
        o_ref[...] = y.reshape(1, h // 2, w // 2, cout).astype(o_ref.dtype)
    else:
        o_ref[...] = y.reshape(1, h, w, cout).astype(o_ref.dtype)


def _classifier_kernel(x_ref, w1_ref, b1_ref, w2_ref, b2_ref, w3_ref, b3_ref, o_ref):
    """Fused classifier: Linear(512,512)+ReLU -> Linear(512,512)+ReLU -> Linear(512,Npad).

    Dropout layers are identity (eval mode). MXU operands bf16, math in f32.
    """
    h = jnp.dot(x_ref[...], w1_ref[...], preferred_element_type=jnp.float32)
    h = jnp.maximum(h + b1_ref[...], 0.0)
    h = jnp.dot(h.astype(w2_ref.dtype), w2_ref[...], preferred_element_type=jnp.float32)
    h = jnp.maximum(h + b2_ref[...], 0.0)
    h = jnp.dot(h.astype(w3_ref.dtype), w3_ref[...], preferred_element_type=jnp.float32)
    o_ref[...] = (h + b3_ref[...]).astype(o_ref.dtype)


# ---------------------------------------------------------------------------
# Wrappers around pallas_call
# ---------------------------------------------------------------------------
def conv3x3_bias_relu(x_padded, w9, b, *, pool):
    """x_padded: (N, H+2, W+2, Cin) NHWC bf16; w9: (9, Cin, Cout) bf16; b: (Cout,) f32."""
    n, hp, wp, cin = x_padded.shape
    h, w = hp - 2, wp - 2
    cout = w9.shape[-1]
    if pool:
        assert h % 2 == 0 and w % 2 == 0, "2x2 maxpool needs even spatial dims"
    ho, wo = (h // 2, w // 2) if pool else (h, w)

    kernel = functools.partial(_conv3x3_kernel, h=h, w=w, cout=cout, pool=pool)
    return pl.pallas_call(
        kernel,
        grid=(n,),  # stream images; independent -> "parallel" (v7x 2-TC sharding)
        out_shape=jax.ShapeDtypeStruct((n, ho, wo, cout), jnp.bfloat16),
        in_specs=[
            pl.BlockSpec((1, hp, wp, cin), lambda i: (i, 0, 0, 0)),   # activation stream
            pl.BlockSpec((9, cin, cout), lambda i: (0, 0, 0)),         # weights VMEM-resident
            pl.BlockSpec((1, cout), lambda i: (0, 0)),                 # bias VMEM-resident
        ],
        out_specs=pl.BlockSpec((1, ho, wo, cout), lambda i: (i, 0, 0, 0)),
        compiler_params=pltpu.CompilerParams(
            dimension_semantics=("parallel",),
            vmem_limit_bytes=_VMEM_LIMIT,
        ),
    )(x_padded, w9, b.reshape(1, cout))


def classifier(x, fcs, class_num):
    """x: (N, 512) bf16. Three fused Linear layers; last output padded to 128 lanes."""
    n, k = x.shape
    (w1, b1), (w2, b2), (w3, b3) = fcs
    npad = ((class_num + 127) // 128) * 128              # lane-dense output (>=128)
    w3p = jnp.pad(w3, ((0, 0), (0, npad - class_num)))
    b3p = jnp.pad(b3, (0, npad - class_num))

    tm = n if n <= 256 else 256
    out = pl.pallas_call(
        _classifier_kernel,
        grid=(pl.cdiv(n, tm),),
        out_shape=jax.ShapeDtypeStruct((n, npad), jnp.float32),
        in_specs=[
            pl.BlockSpec((tm, k), lambda i: (i, 0)),
            pl.BlockSpec(w1.shape, lambda i: (0, 0)),
            pl.BlockSpec((1, b1.shape[0]), lambda i: (0, 0)),
            pl.BlockSpec(w2.shape, lambda i: (0, 0)),
            pl.BlockSpec((1, b2.shape[0]), lambda i: (0, 0)),
            pl.BlockSpec(w3p.shape, lambda i: (0, 0)),
            pl.BlockSpec((1, npad), lambda i: (0, 0)),
        ],
        out_specs=pl.BlockSpec((tm, npad), lambda i: (i, 0)),
        compiler_params=pltpu.CompilerParams(
            dimension_semantics=("parallel",),
            vmem_limit_bytes=_VMEM_LIMIT,
        ),
    )(x, w1, b1.reshape(1, -1), w2, b2.reshape(1, -1), w3p, b3p.reshape(1, -1))
    return out[:, :class_num]


# ---------------------------------------------------------------------------
# Parameters (deterministic, mirroring the module's __init__ shapes/init)
# ---------------------------------------------------------------------------
def init_params(key, cfg, in_ch=3, class_num=10):
    params = {"convs": [], "fcs": []}
    c = in_ch
    for v in cfg:
        if v == "M":
            continue
        key, kw = jax.random.split(key)
        fan = 3 * 3 * v  # n = k*k*out_channels, as in the PyTorch __init__
        w = jax.random.normal(kw, (3, 3, c, v), jnp.float32) * math.sqrt(2.0 / fan)
        w9 = w.reshape(9, c, v).astype(jnp.bfloat16)      # tap-major (dy*3+dx, cin, cout)
        b = jnp.zeros((v,), jnp.float32)
        params["convs"].append((w9, b))
        c = v
    # classifier: Linear(512,512), Linear(512,512), Linear(512,class_num)
    for fin, fout in [(512, 512), (512, 512), (512, class_num)]:
        key, kw, kb = jax.random.split(key, 3)
        bound = 1.0 / math.sqrt(fin)  # PyTorch nn.Linear default init range
        w = jax.random.uniform(kw, (fin, fout), jnp.float32, -bound, bound)
        b = jax.random.uniform(kb, (fout,), jnp.float32, -bound, bound)
        params["fcs"].append((w.astype(jnp.bfloat16), b))
    return params


# ---------------------------------------------------------------------------
# Forward pass
# ---------------------------------------------------------------------------
def vgg_forward(params, x_nchw, *, cfg, class_num=10):
    # NCHW f32 -> NHWC bf16 (channels on the 128-lane axis; bf16 MXU operands)
    x = jnp.transpose(x_nchw, (0, 2, 3, 1)).astype(jnp.bfloat16)

    ci = 0
    idx = 0
    while idx < len(cfg):
        v = cfg[idx]
        if v == "M":
            raise ValueError("maxpool without a preceding conv is not supported")
        pool = idx + 1 < len(cfg) and cfg[idx + 1] == "M"   # fuse pool into conv epilogue
        w9, b = params["convs"][ci]
        xp = jnp.pad(x, ((0, 0), (1, 1), (1, 1), (0, 0)))   # pad=1 (cheap XLA-side copy)
        x = conv3x3_bias_relu(xp, w9, b, pool=pool)
        ci += 1
        idx += 2 if pool else 1

    # PyTorch flatten is x.view(N, -1) on the NCHW tensor -> transpose back, then reshape.
    n = x.shape[0]
    x = jnp.transpose(x, (0, 3, 1, 2)).reshape(n, -1)

    # TODO(synk): nn.Dropout is treated as identity (eval mode); stochastic training
    #             dropout is not implemented.
    return classifier(x, params["fcs"], class_num)


if __name__ == "__main__":
    # Small VGG-style feature config; channel counts are multiples of 128 so every Pallas
    # output is lane-dense. 8x8 input + 3 maxpools -> 1x1x512 = 512 flattened features,
    # matching the classifier's Linear(512, 512).
    cfg = (128, "M", 256, "M", 512, "M")

    key = jax.random.PRNGKey(0)
    key, kx = jax.random.split(key)
    x = jax.random.normal(kx, (2, 3, 8, 8), jnp.float32)  # NCHW, like the PyTorch input
    params = init_params(key, cfg)

    fwd = jax.jit(functools.partial(vgg_forward, cfg=cfg))
    out = fwd(params, x)
    jax.block_until_ready(out)
    assert out.shape == (2, 10), out.shape
    print("KERNEL_OK")
</pallas_src>

<mosaic_0001>
module attributes {stable_mosaic.version = 11 : i64} {
  func.func @_conv3x3_kernel(%arg0: i32, %arg1: memref<1x10x10x3xbf16, #tpu.memory_space<vmem>>, %arg2: memref<9x3x128xbf16, #tpu.memory_space<vmem>>, %arg3: memref<1x128xf32, #tpu.memory_space<vmem>>, %arg4: memref<1x4x4x128xbf16, #tpu.memory_space<vmem>>) attributes {dimension_semantics = [#tpu.dimension_semantics<parallel>], iteration_bounds = array<i64: 2>, scalar_prefetch = 0 : i64, scratch_operands = 0 : i64, tpu.core_type = #tpu.core_type<tc>, window_params = [{transform_indices = @transform_0, window_bounds = array<i64: 1, 10, 10, 3>}, {pipeline_mode = #tpu.pipeline_mode<synchronous>, transform_indices = @transform_1, window_bounds = array<i64: 9, 3, 128>}, {pipeline_mode = #tpu.pipeline_mode<synchronous>, transform_indices = @transform_2, window_bounds = array<i64: 1, 128>}, {transform_indices = @transform_3, window_bounds = array<i64: 1, 4, 4, 128>}]} {
    %cst = arith.constant 0.000000e+00 : f32
    %0 = vector.broadcast %cst : f32 to vector<64x128xf32>
    %c0 = arith.constant 0 : index
    %c0_0 = arith.constant 0 : index
    %c0_1 = arith.constant 0 : index
    %c0_2 = arith.constant 0 : index
    %1 = vector.load %arg1[%c0, %c0_0, %c0_1, %c0_2] : memref<1x10x10x3xbf16, #tpu.memory_space<vmem>>, vector<1x8x8x3xbf16>
    %2 = vector.shape_cast %1 : vector<1x8x8x3xbf16> to vector<8x8x3xbf16>
    %3 = vector.shape_cast %2 : vector<8x8x3xbf16> to vector<64x3xbf16>
    %c0_3 = arith.constant 0 : index
    %c0_4 = arith.constant 0 : index
    %c0_5 = arith.constant 0 : index
    %4 = vector.load %arg2[%c0_3, %c0_4, %c0_5] : memref<9x3x128xbf16, #tpu.memory_space<vmem>>, vector<1x3x128xbf16>
    %5 = vector.shape_cast %4 : vector<1x3x128xbf16> to vector<3x128xbf16>
    %cst_6 = arith.constant dense<0.000000e+00> : vector<64x128xf32>
    %6 = tpu.matmul %3, %5, %cst_6 {dimension_numbers = #tpu.dot_dimension_numbers<[1], [0], [0], [1], [0, 0, 1, 1], [], []>} : vector<64x3xbf16>, vector<3x128xbf16>, vector<64x128xf32> -> vector<64x128xf32>
    %7 = arith.addf %0, %6 : vector<64x128xf32>
    %c0_7 = arith.constant 0 : index
    %c0_8 = arith.constant 0 : index
    %c1 = arith.constant 1 : index
    %c0_9 = arith.constant 0 : index
    %8 = vector.load %arg1[%c0_7, %c0_8, %c1, %c0_9] : memref<1x10x10x3xbf16, #tpu.memory_space<vmem>>, vector<1x8x8x3xbf16>
    %9 = vector.shape_cast %8 : vector<1x8x8x3xbf16> to vector<8x8x3xbf16>
    %10 = vector.shape_cast %9 : vector<8x8x3xbf16> to vector<64x3xbf16>
    %c1_10 = arith.constant 1 : index
    %c0_11 = arith.constant 0 : index
    %c0_12 = arith.constant 0 : index
    %11 = vector.load %arg2[%c1_10, %c0_11, %c0_12] : memref<9x3x128xbf16, #tpu.memory_space<vmem>>, vector<1x3x128xbf16>
    %12 = vector.shape_cast %11 : vector<1x3x128xbf16> to vector<3x128xbf16>
    %cst_13 = arith.constant dense<0.000000e+00> : vector<64x128xf32>
    %13 = tpu.matmul %10, %12, %cst_13 {dimension_numbers = #tpu.dot_dimension_numbers<[1], [0], [0], [1], [0, 0, 1, 1], [], []>} : vector<64x3xbf16>, vector<3x128xbf16>, vector<64x128xf32> -> vector<64x128xf32>
    %14 = arith.addf %7, %13 : vector<64x128xf32>
    %c0_14 = arith.constant 0 : index
    %c0_15 = arith.constant 0 : index
    %c2 = arith.constant 2 : index
    %c0_16 = arith.constant 0 : index
    %15 = vector.load %arg1[%c0_14, %c0_15, %c2, %c0_16] : memref<1x10x10x3xbf16, #tpu.memory_space<vmem>>, vector<1x8x8x3xbf16>
    %16 = vector.shape_cast %15 : vector<1x8x8x3xbf16> to vector<8x8x3xbf16>
    %17 = vector.shape_cast %16 : vector<8x8x3xbf16> to vector<64x3xbf16>
    %c2_17 = arith.constant 2 : index
    %c0_18 = arith.constant 0 : index
    %c0_19 = arith.constant 0 : index
    %18 = vector.load %arg2[%c2_17, %c0_18, %c0_19] : memref<9x3x128xbf16, #tpu.memory_space<vmem>>, vector<1x3x128xbf16>
    %19 = vector.shape_cast %18 : vector<1x3x128xbf16> to vector<3x128xbf16>
    %cst_20 = arith.constant dense<0.000000e+00> : vector<64x128xf32>
    %20 = tpu.matmul %17, %19, %cst_20 {dimension_numbers = #tpu.dot_dimension_numbers<[1], [0], [0], [1], [0, 0, 1, 1], [], []>} : vector<64x3xbf16>, vector<3x128xbf16>, vector<64x128xf32> -> vector<64x128xf32>
    %21 = arith.addf %14, %20 : vector<64x128xf32>
    %c0_21 = arith.constant 0 : index
    %c1_22 = arith.constant 1 : index
    %c0_23 = arith.constant 0 : index
    %c0_24 = arith.constant 0 : index
    %22 = vector.load %arg1[%c0_21, %c1_22, %c0_23, %c0_24] : memref<1x10x10x3xbf16, #tpu.memory_space<vmem>>, vector<1x8x8x3xbf16>
    %23 = vector.shape_cast %22 : vector<1x8x8x3xbf16> to vector<8x8x3xbf16>
    %24 = vector.shape_cast %23 : vector<8x8x3xbf16> to vector<64x3xbf16>
    %c3 = arith.constant 3 : index
    %c0_25 = arith.constant 0 : index
    %c0_26 = arith.constant 0 : index
    %25 = vector.load %arg2[%c3, %c0_25, %c0_26] : memref<9x3x128xbf16, #tpu.memory_space<vmem>>, vector<1x3x128xbf16>
    %26 = vector.shape_cast %25 : vector<1x3x128xbf16> to vector<3x128xbf16>
    %cst_27 = arith.constant dense<0.000000e+00> : vector<64x128xf32>
    %27 = tpu.matmul %24, %26, %cst_27 {dimension_numbers = #tpu.dot_dimension_numbers<[1], [0], [0], [1], [0, 0, 1, 1], [], []>} : vector<64x3xbf16>, vector<3x128xbf16>, vector<64x128xf32> -> vector<64x128xf32>
    %28 = arith.addf %21, %27 : vector<64x128xf32>
    %c0_28 = arith.constant 0 : index
    %c1_29 = arith.constant 1 : index
    %c1_30 = arith.constant 1 : index
    %c0_31 = arith.constant 0 : index
    %29 = vector.load %arg1[%c0_28, %c1_29, %c1_30, %c0_31] : memref<1x10x10x3xbf16, #tpu.memory_space<vmem>>, vector<1x8x8x3xbf16>
    %30 = vector.shape_cast %29 : vector<1x8x8x3xbf16> to vector<8x8x3xbf16>
    %31 = vector.shape_cast %30 : vector<8x8x3xbf16> to vector<64x3xbf16>
    %c4 = arith.constant 4 : index
    %c0_32 = arith.constant 0 : index
    %c0_33 = arith.constant 0 : index
    %32 = vector.load %arg2[%c4, %c0_32, %c0_33] : memref<9x3x128xbf16, #tpu.memory_space<vmem>>, vector<1x3x128xbf16>
    %33 = vector.shape_cast %32 : vector<1x3x128xbf16> to vector<3x128xbf16>
    %cst_34 = arith.constant dense<0.000000e+00> : vector<64x128xf32>
    %34 = tpu.matmul %31, %33, %cst_34 {dimension_numbers = #tpu.dot_dimension_numbers<[1], [0], [0], [1], [0, 0, 1, 1], [], []>} : vector<64x3xbf16>, vector<3x128xbf16>, vector<64x128xf32> -> vector<64x128xf32>
    %35 = arith.addf %28, %34 : vector<64x128xf32>
    %c0_35 = arith.constant 0 : index
    %c1_36 = arith.constant 1 : index
    %c2_37 = arith.constant 2 : index
    %c0_38 = arith.constant 0 : index
    %36 = vector.load %arg1[%c0_35, %c1_36, %c2_37, %c0_38] : memref<1x10x10x3xbf16, #tpu.memory_space<vmem>>, vector<1x8x8x3xbf16>
    %37 = vector.shape_cast %36 : vector<1x8x8x3xbf16> to vector<8x8x3xbf16>
    %38 = vector.shape_cast %37 : vector<8x8x3xbf16> to vector<64x3xbf16>
    %c5 = arith.constant 5 : index
    %c0_39 = arith.constant 0 : index
    %c0_40 = arith.constant 0 : index
    %39 = vector.load %arg2[%c5, %c0_39, %c0_40] : memref<9x3x128xbf16, #tpu.memory_space<vmem>>, vector<1x3x128xbf16>
    %40 = vector.shape_cast %39 : vector<1x3x128xbf16> to vector<3x128xbf16>
    %cst_41 = arith.constant dense<0.000000e+00> : vector<64x128xf32>
    %41 = tpu.matmul %38, %40, %cst_41 {dimension_numbers = #tpu.dot_dimension_numbers<[1], [0], [0], [1], [0, 0, 1, 1], [], []>} : vector<64x3xbf16>, vector<3x128xbf16>, vector<64x128xf32> -> vector<64x128xf32>
    %42 = arith.addf %35, %41 : vector<64x128xf32>
    %c0_42 = arith.constant 0 : index
    %c2_43 = arith.constant 2 : index
    %c0_44 = arith.constant 0 : index
    %c0_45 = arith.constant 0 : index
    %43 = vector.load %arg1[%c0_42, %c2_43, %c0_44, %c0_45] : memref<1x10x10x3xbf16, #tpu.memory_space<vmem>>, vector<1x8x8x3xbf16>
    %44 = vector.shape_cast %43 : vector<1x8x8x3xbf16> to vector<8x8x3xbf16>
    %45 = vector.shape_cast %44 : vector<8x8x3xbf16> to vector<64x3xbf16>
    %c6 = arith.constant 6 : index
    %c0_46 = arith.constant 0 : index
    %c0_47 = arith.constant 0 : index
    %46 = vector.load %arg2[%c6, %c0_46, %c0_47] : memref<9x3x128xbf16, #tpu.memory_space<vmem>>, vector<1x3x128xbf16>
    %47 = vector.shape_cast %46 : vector<1x3x128xbf16> to vector<3x128xbf16>
    %cst_48 = arith.constant dense<0.000000e+00> : vector<64x128xf32>
    %48 = tpu.matmul %45, %47, %cst_48 {dimension_numbers = #tpu.dot_dimension_numbers<[1], [0], [0], [1], [0, 0, 1, 1], [], []>} : vector<64x3xbf16>, vector<3x128xbf16>, vector<64x128xf32> -> vector<64x128xf32>
    %49 = arith.addf %42, %48 : vector<64x128xf32>
    %c0_49 = arith.constant 0 : index
    %c2_50 = arith.constant 2 : index
    %c1_51 = arith.constant 1 : index
    %c0_52 = arith.constant 0 : index
    %50 = vector.load %arg1[%c0_49, %c2_50, %c1_51, %c0_52] : memref<1x10x10x3xbf16, #tpu.memory_space<vmem>>, vector<1x8x8x3xbf16>
    %51 = vector.shape_cast %50 : vector<1x8x8x3xbf16> to vector<8x8x3xbf16>
    %52 = vector.shape_cast %51 : vector<8x8x3xbf16> to vector<64x3xbf16>
    %c7 = arith.constant 7 : index
    %c0_53 = arith.constant 0 : index
    %c0_54 = arith.constant 0 : index
    %53 = vector.load %arg2[%c7, %c0_53, %c0_54] : memref<9x3x128xbf16, #tpu.memory_space<vmem>>, vector<1x3x128xbf16>
    %54 = vector.shape_cast %53 : vector<1x3x128xbf16> to vector<3x128xbf16>
    %cst_55 = arith.constant dense<0.000000e+00> : vector<64x128xf32>
    %55 = tpu.matmul %52, %54, %cst_55 {dimension_numbers = #tpu.dot_dimension_numbers<[1], [0], [0], [1], [0, 0, 1, 1], [], []>} : vector<64x3xbf16>, vector<3x128xbf16>, vector<64x128xf32> -> vector<64x128xf32>
    %56 = arith.addf %49, %55 : vector<64x128xf32>
    %c0_56 = arith.constant 0 : index
    %c2_57 = arith.constant 2 : index
    %c2_58 = arith.constant 2 : index
    %c0_59 = arith.constant 0 : index
    %57 = vector.load %arg1[%c0_56, %c2_57, %c2_58, %c0_59] : memref<1x10x10x3xbf16, #tpu.memory_space<vmem>>, vector<1x8x8x3xbf16>
    %58 = vector.shape_cast %57 : vector<1x8x8x3xbf16> to vector<8x8x3xbf16>
    %59 = vector.shape_cast %58 : vector<8x8x3xbf16> to vector<64x3xbf16>
    %c8 = arith.constant 8 : index
    %c0_60 = arith.constant 0 : index
    %c0_61 = arith.constant 0 : index
    %60 = vector.load %arg2[%c8, %c0_60, %c0_61] : memref<9x3x128xbf16, #tpu.memory_space<vmem>>, vector<1x3x128xbf16>
    %61 = vector.shape_cast %60 : vector<1x3x128xbf16> to vector<3x128xbf16>
    %cst_62 = arith.constant dense<0.000000e+00> : vector<64x128xf32>
    %62 = tpu.matmul %59, %61, %cst_62 {dimension_numbers = #tpu.dot_dimension_numbers<[1], [0], [0], [1], [0, 0, 1, 1], [], []>} : vector<64x3xbf16>, vector<3x128xbf16>, vector<64x128xf32> -> vector<64x128xf32>
    %63 = arith.addf %56, %62 : vector<64x128xf32>
    %c0_63 = arith.constant 0 : index
    %c0_64 = arith.constant 0 : index
    %64 = vector.load %arg3[%c0_63, %c0_64] : memref<1x128xf32, #tpu.memory_space<vmem>>, vector<1x128xf32>
    %65 = vector.broadcast %64 : vector<1x128xf32> to vector<64x128xf32>
    %66 = arith.addf %63, %65 : vector<64x128xf32>
    %cst_65 = arith.constant 0.000000e+00 : f32
    %67 = vector.broadcast %cst_65 : f32 to vector<64x128xf32>
    %68 = arith.maximumf %66, %67 : vector<64x128xf32>
    %69 = vector.shape_cast %68 : vector<64x128xf32> to vector<32x2x128xf32>
    %70 = vector.extract_strided_slice %69 {offsets = [0, 0, 0], sizes = [32, 1, 128], strides = [1, 1, 1]} : vector<32x2x128xf32> to vector<32x1x128xf32>
    %71 = vector.shape_cast %70 : vector<32x1x128xf32> to vector<32x128xf32>
    %72 = vector.extract_strided_slice %69 {offsets = [0, 1, 0], sizes = [32, 1, 128], strides = [1, 1, 1]} : vector<32x2x128xf32> to vector<32x1x128xf32>
    %73 = vector.shape_cast %72 : vector<32x1x128xf32> to vector<32x128xf32>
    %74 = arith.maximumf %71, %73 : vector<32x128xf32>
    %75 = vector.shape_cast %74 : vector<32x128xf32> to vector<4x2x4x128xf32>
    %76 = vector.extract_strided_slice %75 {offsets = [0, 0, 0, 0], sizes = [4, 1, 4, 128], strides = [1, 1, 1, 1]} : vector<4x2x4x128xf32> to vector<4x1x4x128xf32>
    %77 = vector.shape_cast %76 : vector<4x1x4x128xf32> to vector<4x4x128xf32>
    %78 = vector.extract_strided_slice %75 {offsets = [0, 1, 0, 0], sizes = [4, 1, 4, 128], strides = [1, 1, 1, 1]} : vector<4x2x4x128xf32> to vector<4x1x4x128xf32>
    %79 = vector.shape_cast %78 : vector<4x1x4x128xf32> to vector<4x4x128xf32>
    %80 = arith.maximumf %77, %79 : vector<4x4x128xf32>
    %81 = vector.shape_cast %80 : vector<4x4x128xf32> to vector<1x4x4x128xf32>
    %82 = arith.truncf %81 : vector<1x4x4x128xf32> to vector<1x4x4x128xbf16>
    %c0_66 = arith.constant 0 : index
    %c0_67 = arith.constant 0 : index
    %c0_68 = arith.constant 0 : index
    %c0_69 = arith.constant 0 : index
    %83 = vector.load %arg4[%c0_66, %c0_67, %c0_68, %c0_69] : memref<1x4x4x128xbf16, #tpu.memory_space<vmem>>, vector<1x4x4x128xbf16>
    tpu.vector_store %arg4[%c0_66, %c0_67, %c0_68, %c0_69], %82 {strides = array<i32>} : memref<1x4x4x128xbf16, #tpu.memory_space<vmem>>, vector<1x4x4x128xbf16>,
    return
  }
  func.func @transform_0(%arg0: i32) -> (i32, i32, i32, i32) {
    %c0_i32 = arith.constant 0 : i32
    %c0_i32_0 = arith.constant 0 : i32
    %c0_i32_1 = arith.constant 0 : i32
    %c0_i32_2 = arith.constant 0 : i32
    return %arg0, %c0_i32, %c0_i32_0, %c0_i32_1 : i32, i32, i32, i32
  }
  func.func @transform_1(%arg0: i32) -> (i32, i32, i32) {
    %c0_i32 = arith.constant 0 : i32
    %c0_i32_0 = arith.constant 0 : i32
    %c0_i32_1 = arith.constant 0 : i32
    %c0_i32_2 = arith.constant 0 : i32
    return %c0_i32, %c0_i32_0, %c0_i32_1 : i32, i32, i32
  }
  func.func @transform_2(%arg0: i32) -> (i32, i32) {
    %c0_i32 = arith.constant 0 : i32
    %c0_i32_0 = arith.constant 0 : i32
    %c0_i32_1 = arith.constant 0 : i32
    return %c0_i32, %c0_i32_0 : i32, i32
  }
  func.func @transform_3(%arg0: i32) -> (i32, i32, i32, i32) {
    %c0_i32 = arith.constant 0 : i32
    %c0_i32_0 = arith.constant 0 : i32
    %c0_i32_1 = arith.constant 0 : i32
    %c0_i32_2 = arith.constant 0 : i32
    return %arg0, %c0_i32, %c0_i32_0, %c0_i32_1 : i32, i32, i32, i32
  }
}

module attributes {stable_mosaic.version = 11 : i64} {
  func.func @_conv3x3_kernel(%arg0: i32, %arg1: memref<1x6x6x128xbf16, #tpu.memory_space<vmem>>, %arg2: memref<9x128x256xbf16, #tpu.memory_space<vmem>>, %arg3: memref<1x256xf32, #tpu.memory_space<vmem>>, %arg4: memref<1x2x2x256xbf16, #tpu.memory_space<vmem>>) attributes {dimension_semantics = [#tpu.dimension_semantics<parallel>], iteration_bounds = array<i64: 2>, scalar_prefetch = 0 : i64, scratch_operands = 0 : i64, tpu.core_type = #tpu.core_type<tc>, window_params = [{transform_indices = @transform_0, window_bounds = array<i64: 1, 6, 6, 128>}, {pipeline_mode = #tpu.pipeline_mode<synchronous>, transform_indices = @transform_1, window_bounds = array<i64: 9, 128, 256>}, {pipeline_mode = #tpu.pipeline_mode<synchronous>, transform_indices = @transform_2, window_bounds = array<i64: 1, 256>}, {transform_indices = @transform_3, window_bounds = array<i64: 1, 2, 2, 256>}]} {
    %cst = arith.constant 0.000000e+00 : f32
    %0 = vector.broadcast %cst : f32 to vector<16x256xf32>
    %c0 = arith.constant 0 : index
    %c0_0 = arith.constant 0 : index
    %c0_1 = arith.constant 0 : index
    %c0_2 = arith.constant 0 : index
    %1 = vector.load %arg1[%c0, %c0_0, %c0_1, %c0_2] : memref<1x6x6x128xbf16, #tpu.memory_space<vmem>>, vector<1x4x4x128xbf16>
    %2 = vector.shape_cast %1 : vector<1x4x4x128xbf16> to vector<4x4x128xbf16>
    %3 = vector.shape_cast %2 : vector<4x4x128xbf16> to vector<16x128xbf16>
    %c0_3 = arith.constant 0 : index
    %c0_4 = arith.constant 0 : index
    %c0_5 = arith.constant 0 : index
    %4 = vector.load %arg2[%c0_3, %c0_4, %c0_5] : memref<9x128x256xbf16, #tpu.memory_space<vmem>>, vector<1x128x256xbf16>
    %5 = vector.shape_cast %4 : vector<1x128x256xbf16> to vector<128x256xbf16>
    %cst_6 = arith.constant dense<0.000000e+00> : vector<16x256xf32>
    %6 = tpu.matmul %3, %5, %cst_6 {dimension_numbers = #tpu.dot_dimension_numbers<[1], [0], [0], [1], [0, 0, 1, 1], [], []>} : vector<16x128xbf16>, vector<128x256xbf16>, vector<16x256xf32> -> vector<16x256xf32>
    %7 = arith.addf %0, %6 : vector<16x256xf32>
    %c0_7 = arith.constant 0 : index
    %c0_8 = arith.constant 0 : index
    %c1 = arith.constant 1 : index
    %c0_9 = arith.constant 0 : index
    %8 = vector.load %arg1[%c0_7, %c0_8, %c1, %c0_9] : memref<1x6x6x128xbf16, #tpu.memory_space<vmem>>, vector<1x4x4x128xbf16>
    %9 = vector.shape_cast %8 : vector<1x4x4x128xbf16> to vector<4x4x128xbf16>
    %10 = vector.shape_cast %9 : vector<4x4x128xbf16> to vector<16x128xbf16>
    %c1_10 = arith.constant 1 : index
    %c0_11 = arith.constant 0 : index
    %c0_12 = arith.constant 0 : index
    %11 = vector.load %arg2[%c1_10, %c0_11, %c0_12] : memref<9x128x256xbf16, #tpu.memory_space<vmem>>, vector<1x128x256xbf16>
    %12 = vector.shape_cast %11 : vector<1x128x256xbf16> to vector<128x256xbf16>
    %cst_13 = arith.constant dense<0.000000e+00> : vector<16x256xf32>
    %13 = tpu.matmul %10, %12, %cst_13 {dimension_numbers = #tpu.dot_dimension_numbers<[1], [0], [0], [1], [0, 0, 1, 1], [], []>} : vector<16x128xbf16>, vector<128x256xbf16>, vector<16x256xf32> -> vector<16x256xf32>
    %14 = arith.addf %7, %13 : vector<16x256xf32>
    %c0_14 = arith.constant 0 : index
    %c0_15 = arith.constant 0 : index
    %c2 = arith.constant 2 : index
    %c0_16 = arith.constant 0 : index
    %15 = vector.load %arg1[%c0_14, %c0_15, %c2, %c0_16] : memref<1x6x6x128xbf16, #tpu.memory_space<vmem>>, vector<1x4x4x128xbf16>
    %16 = vector.shape_cast %15 : vector<1x4x4x128xbf16> to vector<4x4x128xbf16>
    %17 = vector.shape_cast %16 : vector<4x4x128xbf16> to vector<16x128xbf16>
    %c2_17 = arith.constant 2 : index
    %c0_18 = arith.constant 0 : index
    %c0_19 = arith.constant 0 : index
    %18 = vector.load %arg2[%c2_17, %c0_18, %c0_19] : memref<9x128x256xbf16, #tpu.memory_space<vmem>>, vector<1x128x256xbf16>
    %19 = vector.shape_cast %18 : vector<1x128x256xbf16> to vector<128x256xbf16>
    %cst_20 = arith.constant dense<0.000000e+00> : vector<16x256xf32>
    %20 = tpu.matmul %17, %19, %cst_20 {dimension_numbers = #tpu.dot_dimension_numbers<[1], [0], [0], [1], [0, 0, 1, 1], [], []>} : vector<16x128xbf16>, vector<128x256xbf16>, vector<16x256xf32> -> vector<16x256xf32>
    %21 = arith.addf %14, %20 : vector<16x256xf32>
    %c0_21 = arith.constant 0 : index
    %c1_22 = arith.constant 1 : index
    %c0_23 = arith.constant 0 : index
    %c0_24 = arith.constant 0 : index
    %22 = vector.load %arg1[%c0_21, %c1_22, %c0_23, %c0_24] : memref<1x6x6x128xbf16, #tpu.memory_space<vmem>>, vector<1x4x4x128xbf16>
    %23 = vector.shape_cast %22 : vector<1x4x4x128xbf16> to vector<4x4x128xbf16>
    %24 = vector.shape_cast %23 : vector<4x4x128xbf16> to vector<16x128xbf16>
    %c3 = arith.constant 3 : index
    %c0_25 = arith.constant 0 : index
    %c0_26 = arith.constant 0 : index
    %25 = vector.load %arg2[%c3, %c0_25, %c0_26] : memref<9x128x256xbf16, #tpu.memory_space<vmem>>, vector<1x128x256xbf16>
    %26 = vector.shape_cast %25 : vector<1x128x256xbf16> to vector<128x256xbf16>
    %cst_27 = arith.constant dense<0.000000e+00> : vector<16x256xf32>
    %27 = tpu.matmul %24, %26, %cst_27 {dimension_numbers = #tpu.dot_dimension_numbers<[1], [0], [0], [1], [0, 0, 1, 1], [], []>} : vector<16x128xbf16>, vector<128x256xbf16>, vector<16x256xf32> -> vector<16x256xf32>
    %28 = arith.addf %21, %27 : vector<16x256xf32>
    %c0_28 = arith.constant 0 : index
    %c1_29 = arith.constant 1 : index
    %c1_30 = arith.constant 1 : index
    %c0_31 = arith.constant 0 : index
    %29 = vector.load %arg1[%c0_28, %c1_29, %c1_30, %c0_31] : memref<1x6x6x128xbf16, #tpu.memory_space<vmem>>, vector<1x4x4x128xbf16>
    %30 = vector.shape_cast %29 : vector<1x4x4x128xbf16> to vector<4x4x128xbf16>
    %31 = vector.shape_cast %30 : vector<4x4x128xbf16> to vector<16x128xbf16>
    %c4 = arith.constant 4 : index
    %c0_32 = arith.constant 0 : index
    %c0_33 = arith.constant 0 : index
    %32 = vector.load %arg2[%c4, %c0_32, %c0_33] : memref<9x128x256xbf16, #tpu.memory_space<vmem>>, vector<1x128x256xbf16>
    %33 = vector.shape_cast %32 : vector<1x128x256xbf16> to vector<128x256xbf16>
    %cst_34 = arith.constant dense<0.000000e+00> : vector<16x256xf32>
    %34 = tpu.matmul %31, %33, %cst_34 {dimension_numbers = #tpu.dot_dimension_numbers<[1], [0], [0], [1], [0, 0, 1, 1], [], []>} : vector<16x128xbf16>, vector<128x256xbf16>, vector<16x256xf32> -> vector<16x256xf32>
    %35 = arith.addf %28, %34 : vector<16x256xf32>
    %c0_35 = arith.constant 0 : index
    %c1_36 = arith.constant 1 : index
    %c2_37 = arith.constant 2 : index
    %c0_38 = arith.constant 0 : index
    %36 = vector.load %arg1[%c0_35, %c1_36, %c2_37, %c0_38] : memref<1x6x6x128xbf16, #tpu.memory_space<vmem>>, vector<1x4x4x128xbf16>
    %37 = vector.shape_cast %36 : vector<1x4x4x128xbf16> to vector<4x4x128xbf16>
    %38 = vector.shape_cast %37 : vector<4x4x128xbf16> to vector<16x128xbf16>
    %c5 = arith.constant 5 : index
    %c0_39 = arith.constant 0 : index
    %c0_40 = arith.constant 0 : index
    %39 = vector.load %arg2[%c5, %c0_39, %c0_40] : memref<9x128x256xbf16, #tpu.memory_space<vmem>>, vector<1x128x256xbf16>
    %40 = vector.shape_cast %39 : vector<1x128x256xbf16> to vector<128x256xbf16>
    %cst_41 = arith.constant dense<0.000000e+00> : vector<16x256xf32>
    %41 = tpu.matmul %38, %40, %cst_41 {dimension_numbers = #tpu.dot_dimension_numbers<[1], [0], [0], [1], [0, 0, 1, 1], [], []>} : vector<16x128xbf16>, vector<128x256xbf16>, vector<16x256xf32> -> vector<16x256xf32>
    %42 = arith.addf %35, %41 : vector<16x256xf32>
    %c0_42 = arith.constant 0 : index
    %c2_43 = arith.constant 2 : index
    %c0_44 = arith.constant 0 : index
    %c0_45 = arith.constant 0 : index
    %43 = vector.load %arg1[%c0_42, %c2_43, %c0_44, %c0_45] : memref<1x6x6x128xbf16, #tpu.memory_space<vmem>>, vector<1x4x4x128xbf16>
    %44 = vector.shape_cast %43 : vector<1x4x4x128xbf16> to vector<4x4x128xbf16>
    %45 = vector.shape_cast %44 : vector<4x4x128xbf16> to vector<16x128xbf16>
    %c6 = arith.constant 6 : index
    %c0_46 = arith.constant 0 : index
    %c0_47 = arith.constant 0 : index
    %46 = vector.load %arg2[%c6, %c0_46, %c0_47] : memref<9x128x256xbf16, #tpu.memory_space<vmem>>, vector<1x128x256xbf16>
    %47 = vector.shape_cast %46 : vector<1x128x256xbf16> to vector<128x256xbf16>
    %cst_48 = arith.constant dense<0.000000e+00> : vector<16x256xf32>
    %48 = tpu.matmul %45, %47, %cst_48 {dimension_numbers = #tpu.dot_dimension_numbers<[1], [0], [0], [1], [0, 0, 1, 1], [], []>} : vector<16x128xbf16>, vector<128x256xbf16>, vector<16x256xf32> -> vector<16x256xf32>
    %49 = arith.addf %42, %48 : vector<16x256xf32>
    %c0_49 = arith.constant 0 : index
    %c2_50 = arith.constant 2 : index
    %c1_51 = arith.constant 1 : index
    %c0_52 = arith.constant 0 : index
    %50 = vector.load %arg1[%c0_49, %c2_50, %c1_51, %c0_52] : memref<1x6x6x128xbf16, #tpu.memory_space<vmem>>, vector<1x4x4x128xbf16>
    %51 = vector.shape_cast %50 : vector<1x4x4x128xbf16> to vector<4x4x128xbf16>
    %52 = vector.shape_cast %51 : vector<4x4x128xbf16> to vector<16x128xbf16>
    %c7 = arith.constant 7 : index
    %c0_53 = arith.constant 0 : index
    %c0_54 = arith.constant 0 : index
    %53 = vector.load %arg2[%c7, %c0_53, %c0_54] : memref<9x128x256xbf16, #tpu.memory_space<vmem>>, vector<1x128x256xbf16>
    %54 = vector.shape_cast %53 : vector<1x128x256xbf16> to vector<128x256xbf16>
    %cst_55 = arith.constant dense<0.000000e+00> : vector<16x256xf32>
    %55 = tpu.matmul %52, %54, %cst_55 {dimension_numbers = #tpu.dot_dimension_numbers<[1], [0], [0], [1], [0, 0, 1, 1], [], []>} : vector<16x128xbf16>, vector<128x256xbf16>, vector<16x256xf32> -> vector<16x256xf32>
    %56 = arith.addf %49, %55 : vector<16x256xf32>
    %c0_56 = arith.constant 0 : index
    %c2_57 = arith.constant 2 : index
    %c2_58 = arith.constant 2 : index
    %c0_59 = arith.constant 0 : index
    %57 = vector.load %arg1[%c0_56, %c2_57, %c2_58, %c0_59] : memref<1x6x6x128xbf16, #tpu.memory_space<vmem>>, vector<1x4x4x128xbf16>
    %58 = vector.shape_cast %57 : vector<1x4x4x128xbf16> to vector<4x4x128xbf16>
    %59 = vector.shape_cast %58 : vector<4x4x128xbf16> to vector<16x128xbf16>
    %c8 = arith.constant 8 : index
    %c0_60 = arith.constant 0 : index
    %c0_61 = arith.constant 0 : index
    %60 = vector.load %arg2[%c8, %c0_60, %c0_61] : memref<9x128x256xbf16, #tpu.memory_space<vmem>>, vector<1x128x256xbf16>
    %61 = vector.shape_cast %60 : vector<1x128x256xbf16> to vector<128x256xbf16>
    %cst_62 = arith.constant dense<0.000000e+00> : vector<16x256xf32>
    %62 = tpu.matmul %59, %61, %cst_62 {dimension_numbers = #tpu.dot_dimension_numbers<[1], [0], [0], [1], [0, 0, 1, 1], [], []>} : vector<16x128xbf16>, vector<128x256xbf16>, vector<16x256xf32> -> vector<16x256xf32>
    %63 = arith.addf %56, %62 : vector<16x256xf32>
    %c0_63 = arith.constant 0 : index
    %c0_64 = arith.constant 0 : index
    %64 = vector.load %arg3[%c0_63, %c0_64] : memref<1x256xf32, #tpu.memory_space<vmem>>, vector<1x256xf32>
    %65 = vector.broadcast %64 : vector<1x256xf32> to vector<16x256xf32>
    %66 = arith.addf %63, %65 : vector<16x256xf32>
    %cst_65 = arith.constant 0.000000e+00 : f32
    %67 = vector.broadcast %cst_65 : f32 to vector<16x256xf32>
    %68 = arith.maximumf %66, %67 : vector<16x256xf32>
    %69 = vector.shape_cast %68 : vector<16x256xf32> to vector<8x2x256xf32>
    %70 = vector.extract_strided_slice %69 {offsets = [0, 0, 0], sizes = [8, 1, 256], strides = [1, 1, 1]} : vector<8x2x256xf32> to vector<8x1x256xf32>
    %71 = vector.shape_cast %70 : vector<8x1x256xf32> to vector<8x256xf32>
    %72 = vector.extract_strided_slice %69 {offsets = [0, 1, 0], sizes = [8, 1, 256], strides = [1, 1, 1]} : vector<8x2x256xf32> to vector<8x1x256xf32>
    %73 = vector.shape_cast %72 : vector<8x1x256xf32> to vector<8x256xf32>
    %74 = arith.maximumf %71, %73 : vector<8x256xf32>
    %75 = vector.shape_cast %74 : vector<8x256xf32> to vector<2x2x2x256xf32>
    %76 = vector.extract_strided_slice %75 {offsets = [0, 0, 0, 0], sizes = [2, 1, 2, 256], strides = [1, 1, 1, 1]} : vector<2x2x2x256xf32> to vector<2x1x2x256xf32>
    %77 = vector.shape_cast %76 : vector<2x1x2x256xf32> to vector<2x2x256xf32>
    %78 = vector.extract_strided_slice %75 {offsets = [0, 1, 0, 0], sizes = [2, 1, 2, 256], strides = [1, 1, 1, 1]} : vector<2x2x2x256xf32> to vector<2x1x2x256xf32>
    %79 = vector.shape_cast %78 : vector<2x1x2x256xf32> to vector<2x2x256xf32>
    %80 = arith.maximumf %77, %79 : vector<2x2x256xf32>
    %81 = vector.shape_cast %80 : vector<2x2x256xf32> to vector<1x2x2x256xf32>
    %82 = arith.truncf %81 : vector<1x2x2x256xf32> to vector<1x2x2x256xbf16>
    %c0_66 = arith.constant 0 : index
    %c0_67 = arith.constant 0 : index
    %c0_68 = arith.constant 0 : index
    %c0_69 = arith.constant 0 : index
    %83 = vector.load %arg4[%c0_66, %c0_67, %c0_68, %c0_69] : memref<1x2x2x256xbf16, #tpu.memory_space<vmem>>, vector<1x2x2x256xbf16>
    tpu.vector_store %arg4[%c0_66, %c0_67, %c0_68, %c0_69], %82 {strides = array<i32>} : memref<1x2x2x256xbf16, #tpu.memory_space<vmem>>, vector<1x2x2x256xbf16>,
    return
  }
  func.func @transform_0(%arg0: i32) -> (i32, i32, i32, i32) {
    %c0_i32 = arith.constant 0 : i32
    %c0_i32_0 = arith.constant 0 : i32
    %c0_i32_1 = arith.constant 0 : i32
    %c0_i32_2 = arith.constant 0 : i32
    return %arg0, %c0_i32, %c0_i32_0, %c0_i32_1 : i32, i32, i32, i32
  }
  func.func @transform_1(%arg0: i32) -> (i32, i32, i32) {
    %c0_i32 = arith.constant 0 : i32
    %c0_i32_0 = arith.constant 0 : i32
    %c0_i32_1 = arith.constant 0 : i32
    %c0_i32_2 = arith.constant 0 : i32
    return %c0_i32, %c0_i32_0, %c0_i32_1 : i32, i32, i32
  }
  func.func @transform_2(%arg0: i32) -> (i32, i32) {
    %c0_i32 = arith.constant 0 : i32
    %c0_i32_0 = arith.constant 0 : i32
    %c0_i32_1 = arith.constant 0 : i32
    return %c0_i32, %c0_i32_0 : i32, i32
  }
  func.func @transform_3(%arg0: i32) -> (i32, i32, i32, i32) {
    %c0_i32 = arith.constant 0 : i32
    %c0_i32_0 = arith.constant 0 : i32
    %c0_i32_1 = arith.constant 0 : i32
    %c0_i32_2 = arith.constant 0 : i32
    return %arg0, %c0_i32, %c0_i32_0, %c0_i32_1 : i32, i32, i32, i32
  }
}

module attributes {stable_mosaic.version = 11 : i64} {
  func.func @_conv3x3_kernel(%arg0: i32, %arg1: memref<1x4x4x256xbf16, #tpu.memory_space<vmem>>, %arg2: memref<9x256x512xbf16, #tpu.memory_space<vmem>>, %arg3: memref<1x512xf32, #tpu.memory_space<vmem>>, %arg4: memref<1x1x1x512xbf16, #tpu.memory_space<vmem>>) attributes {dimension_semantics = [#tpu.dimension_semantics<parallel>], iteration_bounds = array<i64: 2>, scalar_prefetch = 0 : i64, scratch_operands = 0 : i64, tpu.core_type = #tpu.core_type<tc>, window_params = [{transform_indices = @transform_0, window_bounds = array<i64: 1, 4, 4, 256>}, {pipeline_mode = #tpu.pipeline_mode<synchronous>, transform_indices = @transform_1, window_bounds = array<i64: 9, 256, 512>}, {pipeline_mode = #tpu.pipeline_mode<synchronous>, transform_indices = @transform_2, window_bounds = array<i64: 1, 512>}, {transform_indices = @transform_3, window_bounds = array<i64: 1, 1, 1, 512>}]} {
    %cst = arith.constant 0.000000e+00 : f32
    %0 = vector.broadcast %cst : f32 to vector<4x512xf32>
    %c0 = arith.constant 0 : index
    %c0_0 = arith.constant 0 : index
    %c0_1 = arith.constant 0 : index
    %c0_2 = arith.constant 0 : index
    %1 = vector.load %arg1[%c0, %c0_0, %c0_1, %c0_2] : memref<1x4x4x256xbf16, #tpu.memory_space<vmem>>, vector<1x2x2x256xbf16>
    %2 = vector.shape_cast %1 : vector<1x2x2x256xbf16> to vector<2x2x256xbf16>
    %3 = vector.shape_cast %2 : vector<2x2x256xbf16> to vector<4x256xbf16>
    %c0_3 = arith.constant 0 : index
    %c0_4 = arith.constant 0 : index
    %c0_5 = arith.constant 0 : index
    %4 = vector.load %arg2[%c0_3, %c0_4, %c0_5] : memref<9x256x512xbf16, #tpu.memory_space<vmem>>, vector<1x256x512xbf16>
    %5 = vector.shape_cast %4 : vector<1x256x512xbf16> to vector<256x512xbf16>
    %cst_6 = arith.constant dense<0.000000e+00> : vector<4x512xf32>
    %6 = tpu.matmul %3, %5, %cst_6 {dimension_numbers = #tpu.dot_dimension_numbers<[1], [0], [0], [1], [0, 0, 1, 1], [], []>} : vector<4x256xbf16>, vector<256x512xbf16>, vector<4x512xf32> -> vector<4x512xf32>
    %7 = arith.addf %0, %6 : vector<4x512xf32>
    %c0_7 = arith.constant 0 : index
    %c0_8 = arith.constant 0 : index
    %c1 = arith.constant 1 : index
    %c0_9 = arith.constant 0 : index
    %8 = vector.load %arg1[%c0_7, %c0_8, %c1, %c0_9] : memref<1x4x4x256xbf16, #tpu.memory_space<vmem>>, vector<1x2x2x256xbf16>
    %9 = vector.shape_cast %8 : vector<1x2x2x256xbf16> to vector<2x2x256xbf16>
    %10 = vector.shape_cast %9 : vector<2x2x256xbf16> to vector<4x256xbf16>
    %c1_10 = arith.constant 1 : index
    %c0_11 = arith.constant 0 : index
    %c0_12 = arith.constant 0 : index
    %11 = vector.load %arg2[%c1_10, %c0_11, %c0_12] : memref<9x256x512xbf16, #tpu.memory_space<vmem>>, vector<1x256x512xbf16>
    %12 = vector.shape_cast %11 : vector<1x256x512xbf16> to vector<256x512xbf16>
    %cst_13 = arith.constant dense<0.000000e+00> : vector<4x512xf32>
    %13 = tpu.matmul %10, %12, %cst_13 {dimension_numbers = #tpu.dot_dimension_numbers<[1], [0], [0], [1], [0, 0, 1, 1], [], []>} : vector<4x256xbf16>, vector<256x512xbf16>, vector<4x512xf32> -> vector<4x512xf32>
    %14 = arith.addf %7, %13 : vector<4x512xf32>
    %c0_14 = arith.constant 0 : index
    %c0_15 = arith.constant 0 : index
    %c2 = arith.constant 2 : index
    %c0_16 = arith.constant 0 : index
    %15 = vector.load %arg1[%c0_14, %c0_15, %c2, %c0_16] : memref<1x4x4x256xbf16, #tpu.memory_space<vmem>>, vector<1x2x2x256xbf16>
    %16 = vector.shape_cast %15 : vector<1x2x2x256xbf16> to vector<2x2x256xbf16>
    %17 = vector.shape_cast %16 : vector<2x2x256xbf16> to vector<4x256xbf16>
    %c2_17 = arith.constant 2 : index
    %c0_18 = arith.constant 0 : index
    %c0_19 = arith.constant 0 : index
    %18 = vector.load %arg2[%c2_17, %c0_18, %c0_19] : memref<9x256x512xbf16, #tpu.memory_space<vmem>>, vector<1x256x512xbf16>
    %19 = vector.shape_cast %18 : vector<1x256x512xbf16> to vector<256x512xbf16>
    %cst_20 = arith.constant dense<0.000000e+00> : vector<4x512xf32>
    %20 = tpu.matmul %17, %19, %cst_20 {dimension_numbers = #tpu.dot_dimension_numbers<[1], [0], [0], [1], [0, 0, 1, 1], [], []>} : vector<4x256xbf16>, vector<256x512xbf16>, vector<4x512xf32> -> vector<4x512xf32>
    %21 = arith.addf %14, %20 : vector<4x512xf32>
    %c0_21 = arith.constant 0 : index
    %c1_22 = arith.constant 1 : index
    %c0_23 = arith.constant 0 : index
    %c0_24 = arith.constant 0 : index
    %22 = vector.load %arg1[%c0_21, %c1_22, %c0_23, %c0_24] : memref<1x4x4x256xbf16, #tpu.memory_space<vmem>>, vector<1x2x2x256xbf16>
    %23 = vector.shape_cast %22 : vector<1x2x2x256xbf16> to vector<2x2x256xbf16>
    %24 = vector.shape_cast %23 : vector<2x2x256xbf16> to vector<4x256xbf16>
    %c3 = arith.constant 3 : index
    %c0_25 = arith.constant 0 : index
    %c0_26 = arith.constant 0 : index
    %25 = vector.load %arg2[%c3, %c0_25, %c0_26] : memref<9x256x512xbf16, #tpu.memory_space<vmem>>, vector<1x256x512xbf16>
    %26 = vector.shape_cast %25 : vector<1x256x512xbf16> to vector<256x512xbf16>
    %cst_27 = arith.constant dense<0.000000e+00> : vector<4x512xf32>
    %27 = tpu.matmul %24, %26, %cst_27 {dimension_numbers = #tpu.dot_dimension_numbers<[1], [0], [0], [1], [0, 0, 1, 1], [], []>} : vector<4x256xbf16>, vector<256x512xbf16>, vector<4x512xf32> -> vector<4x512xf32>
    %28 = arith.addf %21, %27 : vector<4x512xf32>
    %c0_28 = arith.constant 0 : index
    %c1_29 = arith.constant 1 : index
    %c1_30 = arith.constant 1 : index
    %c0_31 = arith.constant 0 : index
    %29 = vector.load %arg1[%c0_28, %c1_29, %c1_30, %c0_31] : memref<1x4x4x256xbf16, #tpu.memory_space<vmem>>, vector<1x2x2x256xbf16>
    %30 = vector.shape_cast %29 : vector<1x2x2x256xbf16> to vector<2x2x256xbf16>
    %31 = vector.shape_cast %30 : vector<2x2x256xbf16> to vector<4x256xbf16>
    %c4 = arith.constant 4 : index
    %c0_32 = arith.constant 0 : index
    %c0_33 = arith.constant 0 : index
    %32 = vector.load %arg2[%c4, %c0_32, %c0_33] : memref<9x256x512xbf16, #tpu.memory_space<vmem>>, vector<1x256x512xbf16>
    %33 = vector.shape_cast %32 : vector<1x256x512xbf16> to vector<256x512xbf16>
    %cst_34 = arith.constant dense<0.000000e+00> : vector<4x512xf32>
    %34 = tpu.matmul %31, %33, %cst_34 {dimension_numbers = #tpu.dot_dimension_numbers<[1], [0], [0], [1], [0, 0, 1, 1], [], []>} : vector<4x256xbf16>, vector<256x512xbf16>, vector<4x512xf32> -> vector<4x512xf32>
    %35 = arith.addf %28, %34 : vector<4x512xf32>
    %c0_35 = arith.constant 0 : index
    %c1_36 = arith.constant 1 : index
    %c2_37 = arith.constant 2 : index
    %c0_38 = arith.constant 0 : index
    %36 = vector.load %arg1[%c0_35, %c1_36, %c2_37, %c0_38] : memref<1x4x4x256xbf16, #tpu.memory_space<vmem>>, vector<1x2x2x256xbf16>
    %37 = vector.shape_cast %36 : vector<1x2x2x256xbf16> to vector<2x2x256xbf16>
    %38 = vector.shape_cast %37 : vector<2x2x256xbf16> to vector<4x256xbf16>
    %c5 = arith.constant 5 : index
    %c0_39 = arith.constant 0 : index
    %c0_40 = arith.constant 0 : index
    %39 = vector.load %arg2[%c5, %c0_39, %c0_40] : memref<9x256x512xbf16, #tpu.memory_space<vmem>>, vector<1x256x512xbf16>
    %40 = vector.shape_cast %39 : vector<1x256x512xbf16> to vector<256x512xbf16>
    %cst_41 = arith.constant dense<0.000000e+00> : vector<4x512xf32>
    %41 = tpu.matmul %38, %40, %cst_41 {dimension_numbers = #tpu.dot_dimension_numbers<[1], [0], [0], [1], [0, 0, 1, 1], [], []>} : vector<4x256xbf16>, vector<256x512xbf16>, vector<4x512xf32> -> vector<4x512xf32>
    %42 = arith.addf %35, %41 : vector<4x512xf32>
    %c0_42 = arith.constant 0 : index
    %c2_43 = arith.constant 2 : index
    %c0_44 = arith.constant 0 : index
    %c0_45 = arith.constant 0 : index
    %43 = vector.load %arg1[%c0_42, %c2_43, %c0_44, %c0_45] : memref<1x4x4x256xbf16, #tpu.memory_space<vmem>>, vector<1x2x2x256xbf16>
    %44 = vector.shape_cast %43 : vector<1x2x2x256xbf16> to vector<2x2x256xbf16>
    %45 = vector.shape_cast %44 : vector<2x2x256xbf16> to vector<4x256xbf16>
    %c6 = arith.constant 6 : index
    %c0_46 = arith.constant 0 : index
    %c0_47 = arith.constant 0 : index
    %46 = vector.load %arg2[%c6, %c0_46, %c0_47] : memref<9x256x512xbf16, #tpu.memory_space<vmem>>, vector<1x256x512xbf16>
    %47 = vector.shape_cast %46 : vector<1x256x512xbf16> to vector<256x512xbf16>
    %cst_48 = arith.constant dense<0.000000e+00> : vector<4x512xf32>
    %48 = tpu.matmul %45, %47, %cst_48 {dimension_numbers = #tpu.dot_dimension_numbers<[1], [0], [0], [1], [0, 0, 1, 1], [], []>} : vector<4x256xbf16>, vector<256x512xbf16>, vector<4x512xf32> -> vector<4x512xf32>
    %49 = arith.addf %42, %48 : vector<4x512xf32>
    %c0_49 = arith.constant 0 : index
    %c2_50 = arith.constant 2 : index
    %c1_51 = arith.constant 1 : index
    %c0_52 = arith.constant 0 : index
    %50 = vector.load %arg1[%c0_49, %c2_50, %c1_51, %c0_52] : memref<1x4x4x256xbf16, #tpu.memory_space<vmem>>, vector<1x2x2x256xbf16>
    %51 = vector.shape_cast %50 : vector<1x2x2x256xbf16> to vector<2x2x256xbf16>
    %52 = vector.shape_cast %51 : vector<2x2x256xbf16> to vector<4x256xbf16>
    %c7 = arith.constant 7 : index
    %c0_53 = arith.constant 0 : index
    %c0_54 = arith.constant 0 : index
    %53 = vector.load %arg2[%c7, %c0_53, %c0_54] : memref<9x256x512xbf16, #tpu.memory_space<vmem>>, vector<1x256x512xbf16>
    %54 = vector.shape_cast %53 : vector<1x256x512xbf16> to vector<256x512xbf16>
    %cst_55 = arith.constant dense<0.000000e+00> : vector<4x512xf32>
    %55 = tpu.matmul %52, %54, %cst_55 {dimension_numbers = #tpu.dot_dimension_numbers<[1], [0], [0], [1], [0, 0, 1, 1], [], []>} : vector<4x256xbf16>, vector<256x512xbf16>, vector<4x512xf32> -> vector<4x512xf32>
    %56 = arith.addf %49, %55 : vector<4x512xf32>
    %c0_56 = arith.constant 0 : index
    %c2_57 = arith.constant 2 : index
    %c2_58 = arith.constant 2 : index
    %c0_59 = arith.constant 0 : index
    %57 = vector.load %arg1[%c0_56, %c2_57, %c2_58, %c0_59] : memref<1x4x4x256xbf16, #tpu.memory_space<vmem>>, vector<1x2x2x256xbf16>
    %58 = vector.shape_cast %57 : vector<1x2x2x256xbf16> to vector<2x2x256xbf16>
    %59 = vector.shape_cast %58 : vector<2x2x256xbf16> to vector<4x256xbf16>
    %c8 = arith.constant 8 : index
    %c0_60 = arith.constant 0 : index
    %c0_61 = arith.constant 0 : index
    %60 = vector.load %arg2[%c8, %c0_60, %c0_61] : memref<9x256x512xbf16, #tpu.memory_space<vmem>>, vector<1x256x512xbf16>
    %61 = vector.shape_cast %60 : vector<1x256x512xbf16> to vector<256x512xbf16>
    %cst_62 = arith.constant dense<0.000000e+00> : vector<4x512xf32>
    %62 = tpu.matmul %59, %61, %cst_62 {dimension_numbers = #tpu.dot_dimension_numbers<[1], [0], [0], [1], [0, 0, 1, 1], [], []>} : vector<4x256xbf16>, vector<256x512xbf16>, vector<4x512xf32> -> vector<4x512xf32>
    %63 = arith.addf %56, %62 : vector<4x512xf32>
    %c0_63 = arith.constant 0 : index
    %c0_64 = arith.constant 0 : index
    %64 = vector.load %arg3[%c0_63, %c0_64] : memref<1x512xf32, #tpu.memory_space<vmem>>, vector<1x512xf32>
    %65 = vector.broadcast %64 : vector<1x512xf32> to vector<4x512xf32>
    %66 = arith.addf %63, %65 : vector<4x512xf32>
    %cst_65 = arith.constant 0.000000e+00 : f32
    %67 = vector.broadcast %cst_65 : f32 to vector<4x512xf32>
    %68 = arith.maximumf %66, %67 : vector<4x512xf32>
    %69 = vector.shape_cast %68 : vector<4x512xf32> to vector<2x2x512xf32>
    %70 = vector.extract_strided_slice %69 {offsets = [0, 0, 0], sizes = [2, 1, 512], strides = [1, 1, 1]} : vector<2x2x512xf32> to vector<2x1x512xf32>
    %71 = vector.shape_cast %70 : vector<2x1x512xf32> to vector<2x512xf32>
    %72 = vector.extract_strided_slice %69 {offsets = [0, 1, 0], sizes = [2, 1, 512], strides = [1, 1, 1]} : vector<2x2x512xf32> to vector<2x1x512xf32>
    %73 = vector.shape_cast %72 : vector<2x1x512xf32> to vector<2x512xf32>
    %74 = arith.maximumf %71, %73 : vector<2x512xf32>
    %75 = vector.shape_cast %74 : vector<2x512xf32> to vector<1x2x1x512xf32>
    %76 = vector.extract_strided_slice %75 {offsets = [0, 0, 0, 0], sizes = [1, 1, 1, 512], strides = [1, 1, 1, 1]} : vector<1x2x1x512xf32> to vector<1x1x1x512xf32>
    %77 = vector.shape_cast %76 : vector<1x1x1x512xf32> to vector<1x1x512xf32>
    %78 = vector.extract_strided_slice %75 {offsets = [0, 1, 0, 0], sizes = [1, 1, 1, 512], strides = [1, 1, 1, 1]} : vector<1x2x1x512xf32> to vector<1x1x1x512xf32>
    %79 = vector.shape_cast %78 : vector<1x1x1x512xf32> to vector<1x1x512xf32>
    %80 = arith.maximumf %77, %79 : vector<1x1x512xf32>
    %81 = vector.shape_cast %80 : vector<1x1x512xf32> to vector<1x1x1x512xf32>
    %82 = arith.truncf %81 : vector<1x1x1x512xf32> to vector<1x1x1x512xbf16>
    %c0_66 = arith.constant 0 : index
    %c0_67 = arith.constant 0 : index
    %c0_68 = arith.constant 0 : index
    %c0_69 = arith.constant 0 : index
    %83 = vector.load %arg4[%c0_66, %c0_67, %c0_68, %c0_69] : memref<1x1x1x512xbf16, #tpu.memory_space<vmem>>, vector<1x1x1x512xbf16>
    tpu.vector_store %arg4[%c0_66, %c0_67, %c0_68, %c0_69], %82 {strides = array<i32>} : memref<1x1x1x512xbf16, #tpu.memory_space<vmem>>, vector<1x1x1x512xbf16>,
    return
  }
  func.func @transform_0(%arg0: i32) -> (i32, i32, i32, i32) {
    %c0_i32 = arith.constant 0 : i32
    %c0_i32_0 = arith.constant 0 : i32
    %c0_i32_1 = arith.constant 0 : i32
    %c0_i32_2 = arith.constant 0 : i32
    return %arg0, %c0_i32, %c0_i32_0, %c0_i32_1 : i32, i32, i32, i32
  }
  func.func @transform_1(%arg0: i32) -> (i32, i32, i32) {
    %c0_i32 = arith.constant 0 : i32
    %c0_i32_0 = arith.constant 0 : i32
    %c0_i32_1 = arith.constant 0 : i32
    %c0_i32_2 = arith.constant 0 : i32
    return %c0_i32, %c0_i32_0, %c0_i32_1 : i32, i32, i32
  }
  func.func @transform_2(%arg0: i32) -> (i32, i32) {
    %c0_i32 = arith.constant 0 : i32
    %c0_i32_0 = arith.constant 0 : i32
    %c0_i32_1 = arith.constant 0 : i32
    return %c0_i32, %c0_i32_0 : i32, i32
  }
  func.func @transform_3(%arg0: i32) -> (i32, i32, i32, i32) {
    %c0_i32 = arith.constant 0 : i32
    %c0_i32_0 = arith.constant 0 : i32
    %c0_i32_1 = arith.constant 0 : i32
    %c0_i32_2 = arith.constant 0 : i32
    return %arg0, %c0_i32, %c0_i32_0, %c0_i32_1 : i32, i32, i32, i32
  }
}

module attributes {stable_mosaic.version = 11 : i64} {
  func.func @_classifier_kernel(%arg0: i32, %arg1: memref<2x512xbf16, #tpu.memory_space<vmem>>, %arg2: memref<512x512xbf16, #tpu.memory_space<vmem>>, %arg3: memref<1x512xf32, #tpu.memory_space<vmem>>, %arg4: memref<512x512xbf16, #tpu.memory_space<vmem>>, %arg5: memref<1x512xf32, #tpu.memory_space<vmem>>, %arg6: memref<512x128xbf16, #tpu.memory_space<vmem>>, %arg7: memref<1x128xf32, #tpu.memory_space<vmem>>, %arg8: memref<2x128xf32, #tpu.memory_space<vmem>>) attributes {dimension_semantics = [#tpu.dimension_semantics<parallel>], iteration_bounds = array<i64: 1>, scalar_prefetch = 0 : i64, scratch_operands = 0 : i64, tpu.core_type = #tpu.core_type<tc>, window_params = [{transform_indices = @transform_0, window_bounds = array<i64: 2, 512>}, {pipeline_mode = #tpu.pipeline_mode<synchronous>, transform_indices = @transform_1, window_bounds = array<i64: 512, 512>}, {pipeline_mode = #tpu.pipeline_mode<synchronous>, transform_indices = @transform_2, window_bounds = array<i64: 1, 512>}, {pipeline_mode = #tpu.pipeline_mode<synchronous>, transform_indices = @transform_3, window_bounds = array<i64: 512, 512>}, {pipeline_mode = #tpu.pipeline_mode<synchronous>, transform_indices = @transform_4, window_bounds = array<i64: 1, 512>}, {pipeline_mode = #tpu.pipeline_mode<synchronous>, transform_indices = @transform_5, window_bounds = array<i64: 512, 128>}, {pipeline_mode = #tpu.pipeline_mode<synchronous>, transform_indices = @transform_6, window_bounds = array<i64: 1, 128>}, {transform_indices = @transform_7, window_bounds = array<i64: 2, 128>}]} {
    %c0 = arith.constant 0 : index
    %c0_0 = arith.constant 0 : index
    %0 = vector.load %arg1[%c0, %c0_0] : memref<2x512xbf16, #tpu.memory_space<vmem>>, vector<2x512xbf16>
    %c0_1 = arith.constant 0 : index
    %c0_2 = arith.constant 0 : index
    %1 = vector.load %arg2[%c0_1, %c0_2] : memref<512x512xbf16, #tpu.memory_space<vmem>>, vector<512x512xbf16>
    %cst = arith.constant dense<0.000000e+00> : vector<2x512xf32>
    %2 = tpu.matmul %0, %1, %cst {dimension_numbers = #tpu.dot_dimension_numbers<[1], [0], [0], [1], [0, 0, 1, 1], [], []>} : vector<2x512xbf16>, vector<512x512xbf16>, vector<2x512xf32> -> vector<2x512xf32>
    %c0_3 = arith.constant 0 : index
    %c0_4 = arith.constant 0 : index
    %3 = vector.load %arg3[%c0_3, %c0_4] : memref<1x512xf32, #tpu.memory_space<vmem>>, vector<1x512xf32>
    %4 = vector.broadcast %3 : vector<1x512xf32> to vector<2x512xf32>
    %5 = arith.addf %2, %4 : vector<2x512xf32>
    %cst_5 = arith.constant 0.000000e+00 : f32
    %6 = vector.broadcast %cst_5 : f32 to vector<2x512xf32>
    %7 = arith.maximumf %5, %6 : vector<2x512xf32>
    %8 = arith.truncf %7 : vector<2x512xf32> to vector<2x512xbf16>
    %c0_6 = arith.constant 0 : index
    %c0_7 = arith.constant 0 : index
    %9 = vector.load %arg4[%c0_6, %c0_7] : memref<512x512xbf16, #tpu.memory_space<vmem>>, vector<512x512xbf16>
    %cst_8 = arith.constant dense<0.000000e+00> : vector<2x512xf32>
    %10 = tpu.matmul %8, %9, %cst_8 {dimension_numbers = #tpu.dot_dimension_numbers<[1], [0], [0], [1], [0, 0, 1, 1], [], []>} : vector<2x512xbf16>, vector<512x512xbf16>, vector<2x512xf32> -> vector<2x512xf32>
    %c0_9 = arith.constant 0 : index
    %c0_10 = arith.constant 0 : index
    %11 = vector.load %arg5[%c0_9, %c0_10] : memref<1x512xf32, #tpu.memory_space<vmem>>, vector<1x512xf32>
    %12 = vector.broadcast %11 : vector<1x512xf32> to vector<2x512xf32>
    %13 = arith.addf %10, %12 : vector<2x512xf32>
    %cst_11 = arith.constant 0.000000e+00 : f32
    %14 = vector.broadcast %cst_11 : f32 to vector<2x512xf32>
    %15 = arith.maximumf %13, %14 : vector<2x512xf32>
    %16 = arith.truncf %15 : vector<2x512xf32> to vector<2x512xbf16>
    %c0_12 = arith.constant 0 : index
    %c0_13 = arith.constant 0 : index
    %17 = vector.load %arg6[%c0_12, %c0_13] : memref<512x128xbf16, #tpu.memory_space<vmem>>, vector<512x128xbf16>
    %cst_14 = arith.constant dense<0.000000e+00> : vector<2x128xf32>
    %18 = tpu.matmul %16, %17, %cst_14 {dimension_numbers = #tpu.dot_dimension_numbers<[1], [0], [0], [1], [0, 0, 1, 1], [], []>} : vector<2x512xbf16>, vector<512x128xbf16>, vector<2x128xf32> -> vector<2x128xf32>
    %c0_15 = arith.constant 0 : index
    %c0_16 = arith.constant 0 : index
    %19 = vector.load %arg7[%c0_15, %c0_16] : memref<1x128xf32, #tpu.memory_space<vmem>>, vector<1x128xf32>
    %20 = vector.broadcast %19 : vector<1x128xf32> to vector<2x128xf32>
    %21 = arith.addf %18, %20 : vector<2x128xf32>
    %c0_17 = arith.constant 0 : index
    %c0_18 = arith.constant 0 : index
    %22 = vector.load %arg8[%c0_17, %c0_18] : memref<2x128xf32, #tpu.memory_space<vmem>>, vector<2x128xf32>
    tpu.vector_store %arg8[%c0_17, %c0_18], %21 {strides = array<i32>} : memref<2x128xf32, #tpu.memory_space<vmem>>, vector<2x128xf32>,
    return
  }
  func.func @transform_0(%arg0: i32) -> (i32, i32) {
    %c0_i32 = arith.constant 0 : i32
    %c0_i32_0 = arith.constant 0 : i32
    return %arg0, %c0_i32 : i32, i32
  }
  func.func @transform_1(%arg0: i32) -> (i32, i32) {
    %c0_i32 = arith.constant 0 : i32
    %c0_i32_0 = arith.constant 0 : i32
    %c0_i32_1 = arith.constant 0 : i32
    return %c0_i32, %c0_i32_0 : i32, i32
  }
  func.func @transform_2(%arg0: i32) -> (i32, i32) {
    %c0_i32 = arith.constant 0 : i32
    %c0_i32_0 = arith.constant 0 : i32
    %c0_i32_1 = arith.constant 0 : i32
    return %c0_i32, %c0_i32_0 : i32, i32
  }
  func.func @transform_3(%arg0: i32) -> (i32, i32) {
    %c0_i32 = arith.constant 0 : i32
    %c0_i32_0 = arith.constant 0 : i32
    %c0_i32_1 = arith.constant 0 : i32
    return %c0_i32, %c0_i32_0 : i32, i32
  }
  func.func @transform_4(%arg0: i32) -> (i32, i32) {
    %c0_i32 = arith.constant 0 : i32
    %c0_i32_0 = arith.constant 0 : i32
    %c0_i32_1 = arith.constant 0 : i32
    return %c0_i32, %c0_i32_0 : i32, i32
  }
  func.func @transform_5(%arg0: i32) -> (i32, i32) {
    %c0_i32 = arith.constant 0 : i32
    %c0_i32_0 = arith.constant 0 : i32
    %c0_i32_1 = arith.constant 0 : i32
    return %c0_i32, %c0_i32_0 : i32, i32
  }
  func.func @transform_6(%arg0: i32) -> (i32, i32) {
    %c0_i32 = arith.constant 0 : i32
    %c0_i32_0 = arith.constant 0 : i32
    %c0_i32_1 = arith.constant 0 : i32
    return %c0_i32, %c0_i32_0 : i32, i32
  }
  func.func @transform_7(%arg0: i32) -> (i32, i32) {
    %c0_i32 = arith.constant 0 : i32
    %c0_i32_0 = arith.constant 0 : i32
    return %arg0, %c0_i32 : i32, i32
  }
}

</mosaic_0001>

<bundles_post_ra>
// kernel: vgg_forward.4
= control target key start
LH: loop header
LB: loop body
LE: loop exit
PB: predicated region body
PF: predicated region fallthrough
CT: control target
= control target key end

     0   :  { %8 = vsyncpa [#allocation3], 0  ;;  %s3581_s0 = inlined_call_operand.vmem [shape: bf16[2,10,10,3], index: 0, kind: input, shape index: {}]   ;;  %s3582_s1 = inlined_call_operand.hbm [shape: bf16[9,3,128], index: 1, kind: input, shape index: {}]   ;;  %s3583_s2 = inlined_call_operand.hbm [shape: f32[1,128], index: 2, kind: input, shape index: {}]   ;;  %s3584_s3 = inlined_call_operand.vmem [shape: bf16[2,4,4,128], index: 3, kind: output, shape index: {}]  }
   0x1   :  { %9 = vsyncpa [#allocation5], 0  ;;  %s2954_s12 = smov 0  }
   0x2 LB: > { %s2960_s13 = sadd.s32 4294967295, %s2926_s12   ;;  %p2467_p0 = scmp.ge.s32.totalorder %s2926_s12, 1  ;;  %s2926_s12 = sphi %s2954_s12, %s15_s12  }
   0x3   : > { %p114_p1 = scmp.lt.s32.totalorder %s2926_s12, 3  ;;  %s2928_s14 = smov [#allocation2]  }
   0x4   : > { %s126_s15 = sshll.u32 %s2928_s14, 4  ;;  %p2830_p3 = scmp.eq.s32.totalorder %s2960_s13, 0  ;;  %s127_s15 = int_to_ptr.vmem [resolvable:$true] %s126_s15 }
   0x5   : > { %p2964_p2 = pnand %p2467_p0, %p114_p1  ;;  %s2929_s17 = smov [#allocation4]  }
   0x6   : > { %s140_s18 = sshll.u32 %s2929_s17, 4  ;;  %s2871_s20 = scalar_lea.vmem %s127_s15, 288  ;;  %s141_s18 = int_to_ptr.vmem [resolvable:$true] %s140_s18 }
   0x7   : > { %p2823_p4 = pneg %p2964_p2  ;;  %p2872_p7 = scmp.ne.s32.totalorder %s127_s15, %s2871_s20 }
   0x8   : > { %p2879_p10 = scmp.lt.s32.totalorder %s127_s15, %s127_s15  ;;  %p2880_p11 = scmp.lt.s32.totalorder %s2871_s20, %s2871_s20 }
   0x9   : > { %p2973_p5 = pnand %p2830_p3, %p2823_p4 }
   0xa   : > { %p2881_p12 = por %p2880_p11, %p2879_p10 }
   0xb   : > { %p2862_p6 = pneg %p2973_p5 }
   0xd   : > { %p2874_p8 = pnand %p2872_p7, %p2862_p6 }
   0xf   : > { %p2875_p9 = pneg %p2874_p8 }
  0x11   : > { %p2882_p13 = pnand %p2881_p12, %p2875_p9 }
  0x13   : > { %2885 = shalt.err (!%p2882_p13)
}
  0x14   : > { %s2930_s21 = smov 32   ;;  %s2931_s22 = smov 2  }
  0x15   : > { %2826 = dma.hbm_to_vmem [thread:$0]  (!%p2973_p5), %s3582_s1, 288, %s127_s15, [#allocation3], %s2930_s21, %s2930_s21, %s2931_s22  }
  0x16   : > { %s2897_s25 = scalar_lea.vmem %s141_s18, 16  ;;  %s2904_s26 = scalar_lea.vmem %s141_s18, 32 }
  0x17   : > { %p2898_p0 = scmp.ne.s32.totalorder %s141_s18, %s2897_s25  ;;  %p2905_p7 = scmp.lt.s32.totalorder %s141_s18, %s141_s18 }
  0x18   : > { %p2906_p8 = scmp.lt.s32.totalorder %s2904_s26, %s2897_s25 }
  0x19   : > { %p2900_p1 = pnand %p2898_p0, %p2862_p6 }
  0x1a   : > { %p2907_p9 = por %p2906_p8, %p2905_p7 }
  0x1b   : > { %p2901_p4 = pneg %p2900_p1 }
  0x1d   : > { %p2908_p10 = pnand %p2907_p9, %p2901_p4 }
  0x1f   : > { %2911 = shalt.err (!%p2908_p10)
}
  0x20   : > { %2829 = dma.hbm_to_vmem [thread:$0]  (!%p2973_p5), %s3583_s2, 16, %s141_s18, [#allocation5]  }
  0x21   : > { %161 = sbr.rel (%p2964_p2) target bundleno = 401 (0x191), region = 32 }
  0x26   : > { %2917 = dma.done.wait (%p2830_p3), [#allocation3], 288  }
  0x27   : > { %2919 = vsyncadd (%p2830_p3), [#allocation3], 4294967008 }
  0x28   : > { %2921 = dma.done.wait (%p2830_p3), [#allocation5], 16  }
  0x29   : > { %2923 = vsyncadd (%p2830_p3), [#allocation5], 4294967280  ;;  %vm359_vm0 = vcmask 1040384   ;;  %p189_p6 = scmp.lt.s32.totalorder %s2960_s13, 1  ;;  %vm360_vm1 = vcmask 1041408   ;;  %v2932_v0 = vmov 65535  }
  0x2a   : > { %v361_v1 = vsel %vm359_vm0, 4294967295, %v2932_v0  ;;  %vm217_vm2 = vsmask.f32 3328  ;;  %vm218_vm3 = vsmask.f32 7440  ;;  %vm346_vm4 = vcmask 23552  }
  0x2b   : > { %s3592_s13 = smov (!%p189_p6, %s2960_s13), 1  ;;  %v3010_v2 = vsel %vm360_vm1, %v361_v1, 0  ;;  %v333_v3 = vld [vmem:[#allocation2 + $0x2] sm:$0x3]  ;;  %vm3057_vm5 = vmor %vm217_vm2, %vm218_vm3  ;;  %v208_v37 = vld [vmem:[#allocation2] sm:$0x3] }
  0x2c   : > { %s2814_s29 = smul.u32 80, %s3592_s13  ;;  %v364_v6 = vand.u32 %v3010_v2, %v333_v3  ;;  %vm555_vm6 = vcmask 1042432   ;;  %vm556_vm7 = vcmask 1046532   ;;  %v3080_v55 = vand.u32 %v3010_v2, %v208_v37  ;;  %s2676_s6 = sshll.u32 %s3592_s13, 3 }
  0x2d   : > { %vm3124_vm8 = vmor %vm555_vm6, %vm556_vm7  ;;  %vm2322_vm9 = vcmask 1041409   ;;  %vm2325_vm10 = vcmask 1042434   ;;  %vm2328_vm11 = vcmask 1043459   ;;  %s3535_s9 = scalar_lea.vmem %s3584_s3, %s2676_s6 }
  0x2e   : > { %s3015_s5 = scalar_lea.vmem %s3581_s0, %s2814_s29  ;;  %2812 = vmatprep.subr.bf16.mxu1 %v364_v6  ;;  %2722 = vmatprep.subr.bf16.mxu0 %v364_v6 }
  0x2f   : > { %v3018_v4 = vld [vmem:[%s3015_s5] sm:$0xf]  ;;  %v3021_v5 = vld [vmem:[%s3015_s5 + $0x8] sm:$0xf]  ;;  %v3025_v7 = vld [vmem:[%s3015_s5 + $0x4] sm:$0x1]  ;;  %2813 = vmatpush3.bf16.msra.mxu1 %v364_v6  ;;  %2723 = vmatpush3.bf16.msra.mxu0 %v364_v6 }
  0x30   : > { %v3028_v8 = vld [vmem:[%s3015_s5 + $0xc] sm:$0x1]  ;;  %v221_v9 = vshrl.u32 %v3018_v4, 16  ;;  %v224_v10 = vshll.u32 %v3018_v4, 16  ;;  %v2485_v11 = vcombine.low %v3018_v4, %v3021_v5  ;;  %v230_v12 = vshll.u32 %v3025_v7, 16  ;;  %2732 = vmatprep.subr.bf16.mxu1 %v3080_v55 }
  0x31   : > { %v235_v13 = vshrl.u32 %v3021_v5, 16  ;;  %v238_v14 = vshll.u32 %v3021_v5, 16  ;;  %v244_v15 = vshll.u32 %v3028_v8, 16  ;;  %v3039_v16 = vld [vmem:[%s3015_s5 + $0x20] sm:$0xf]  ;;  %v560_v19 = vrot.slane %v3025_v7, 5 }
  0x32   : > { %v223_v17 = vrot.slane %v221_v9, 4  ;;  %v226_v18 = vrot.slane %v224_v10, 5  ;;  %v564_v20 = vrot.slane %v3028_v8, 5  ;;  %v3044_v21 = vld [vmem:[%s3015_s5 + $0x28] sm:$0xf]  ;;  %v232_v22 = vrot.slane %v230_v12, 5 }
  0x33   : > { %v237_v23 = vrot.slane %v235_v13, 4  ;;  %v240_v24 = vrot.slane %v238_v14, 5  ;;  %v246_v25 = vrot.slane %v244_v15, 5  ;;  %v3047_v26 = vld [vmem:[%s3015_s5 + $0x24] sm:$0x1]  ;;  %v277_v29 = vshrl.u32 %v3039_v16, 16 }
  0x34   : > { %v227_v27 = vor.u32 %v226_v18, %v223_v17  ;;  %v3050_v28 = vld [vmem:[%s3015_s5 + $0x2c] sm:$0x1]  ;;  %v280_v30 = vshll.u32 %v3039_v16, 16  ;;  %v286_v31 = vshll.u32 %v3047_v26, 16  ;;  %v291_v34 = vshrl.u32 %v3044_v21, 16 }
  0x35   : > { %v241_v33 = vor.u32 %v240_v24, %v237_v23  ;;  %v294_v35 = vshll.u32 %v3044_v21, 16  ;;  %v300_v36 = vshll.u32 %v3050_v28, 16  ;;  %v279_v39 = vrot.slane %v277_v29, 4  ;;  %v3065_v42 = vld [vmem:[%s3015_s5 + $0x10] sm:$0xf] }
  0x36   : > { %v228_v38 = vrot.slane %v227_v27, 4  ;;  %v282_v40 = vrot.slane %v280_v30, 5  ;;  %v288_v41 = vrot.slane %v286_v31, 5  ;;  %v293_v44 = vrot.slane %v291_v34, 4  ;;  %v3072_v51 = vld [vmem:[%s3015_s5 + $0x18] sm:$0xf] }
  0x37   : > { %v242_v43 = vrot.slane %v241_v33, 4  ;;  %v296_v45 = vrot.slane %v294_v35, 5  ;;  %v302_v46 = vrot.slane %v300_v36, 5  ;;  %v576_v49 = vrot.slane %v3047_v26, 5  ;;  %v3075_v52 = vld [vmem:[%s3015_s5 + $0x14] sm:$0x1] }
  0x38   : > { %v233_v47 = vsel %vm3057_vm5, %v228_v38, %v232_v22  ;;  %v283_v48 = vor.u32 %v282_v40, %v279_v39  ;;  %v580_v50 = vrot.slane %v3050_v28, 5  ;;  %v3083_v56 = vld [vmem:[%s3015_s5 + $0x1c] sm:$0x1]  ;;  %v249_v57 = vshrl.u32 %v3065_v42, 16  ;;  %v3089_v62 = vld [vmem:[%s3015_s5 + $0x30] sm:$0xf] }
  0x39   : > { %v247_v53 = vsel %vm3057_vm5, %v242_v43, %v246_v25  ;;  %v297_v54 = vor.u32 %v296_v45, %v293_v44  ;;  %v252_v60 = vshll.u32 %v3065_v42, 16  ;;  %v258_v61 = vshll.u32 %v3075_v52, 16  ;;  %v3095_v6 = vld [vmem:[%s3015_s5 + $0x38] sm:$0xf]  ;;  %v3102_v14 = vld [vmem:[%s3015_s5 + $0x34] sm:$0x1] }
  0x3a   : > { %v2477_v58 = vcombine.low %v233_v47, %v247_v53  ;;  %v284_v59 = vrot.slane %v283_v48, 4  ;;  %v251_v0 = vrot.slane %v249_v57, 4  ;;  %v263_v1 = vshrl.u32 %v3072_v51, 16  ;;  %v3108_v23 = vld [vmem:[%s3015_s5 + $0x3c] sm:$0x1] }
  0x3b   : > { %v298_v63 = vrot.slane %v297_v54, 4  ;;  %v266_v3 = vshll.u32 %v3072_v51, 16  ;;  %v254_v10 = vrot.slane %v252_v60, 5  ;;  %v260_v12 = vrot.slane %v258_v61, 5  ;;  %v591_v30 = vld [vmem:[#allocation2 + $0x4] sm:$0x3] }
  0x3c   : > { %2724 = vmatprep.mubr.msk.bf16.mxu0 %vm346_vm4, %v2477_v58  ;;  %v289_v9 = vsel %vm3057_vm5, %v284_v59, %v288_v41  ;;  %v272_v13 = vshll.u32 %v3083_v56, 16  ;;  %v265_v17 = vrot.slane %v263_v1, 4  ;;  %v568_v22 = vrot.slane %v3075_v52, 5  ;;  %v531_v36 = vld [vmem:[%s3015_s5] sm:$0xe] }
  0x3d   : > { %v303_v15 = vsel %vm3057_vm5, %v298_v63, %v302_v46  ;;  %v268_v18 = vrot.slane %v266_v3, 5  ;;  %v255_v25 = vor.u32 %v254_v10, %v251_v0  ;;  %v572_v29 = vrot.slane %v3083_v56, 5  ;;  %v532_v41 = vld [vmem:[%s3015_s5 + $0x8] sm:$0xe]  ;;  %v702_v47 = vld [vmem:[#allocation2 + $0x6] sm:$0x3] }
  0x3e   : > { %v2479_v24 = vcombine.low %v289_v9, %v303_v15  ;;  %v274_v27 = vrot.slane %v272_v13, 5  ;;  %v305_v33 = vshrl.u32 %v3089_v62, 16  ;;  %v308_v34 = vshll.u32 %v3089_v62, 16  ;;  %v533_v57 = vld [vmem:[%s3015_s5 + $0x10] sm:$0xe] }
  0x3f   : > { %v269_v31 = vor.u32 %v268_v18, %v265_v17  ;;  %v314_v35 = vshll.u32 %v3102_v14, 16  ;;  %v256_v37 = vrot.slane %v255_v25, 4  ;;  %v319_v38 = vshrl.u32 %v3095_v6, 16  ;;  %v534_v63 = vld [vmem:[%s3015_s5 + $0x18] sm:$0xe] }
  0x40   : > { %2728 = vmatprep.mubr.msk.bf16.mxu1 %vm346_vm4, %v2479_v24  ;;  %v322_v39 = vshll.u32 %v3095_v6, 16  ;;  %v328_v40 = vshll.u32 %v3108_v23, 16  ;;  %v307_v44 = vrot.slane %v305_v33, 4  ;;  %v310_v45 = vrot.slane %v308_v34, 5  ;;  %v940_v0 = vld [vmem:[#allocation2 + $0x8] sm:$0x3] }
  0x41   : > { %v270_v43 = vrot.slane %v269_v31, 4  ;;  %v316_v46 = vrot.slane %v314_v35, 5  ;;  %v261_v48 = vsel %vm3057_vm5, %v256_v37, %v260_v12  ;;  %v321_v52 = vrot.slane %v319_v38, 4  ;;  %v535_v12 = vld [vmem:[%s3015_s5 + $0x20] sm:$0xe] }
  0x42   : > { %v324_v53 = vrot.slane %v322_v39, 5  ;;  %v330_v54 = vrot.slane %v328_v40, 5  ;;  %v311_v59 = vor.u32 %v310_v45, %v307_v44  ;;  %v617_v60 = vand.u32 %v591_v30, %v3010_v2  ;;  %v536_v24 = vld [vmem:[%s3015_s5 + $0x28] sm:$0xe]  ;;  %v537_v31 = vld [vmem:[%s3015_s5 + $0x30] sm:$0xe] }
  0x43   : > { %v275_v58 = vsel %vm3057_vm5, %v270_v43, %v274_v27  ;;  %v2493_v61 = vrot.slane %v531_v36, 9  ;;  %v2494_v9 = vrot.slane %v532_v41, 9  ;;  %v3134_v10 = vand.u32 %v702_v47, %v3010_v2  ;;  %v538_v35 = vld [vmem:[%s3015_s5 + $0x38] sm:$0xe]  ;;  %v2525_v36 = vld [vmem:[%s3015_s5 + $0x8] sm:$0xf] }
  0x44   : > { %v2478_v1 = vcombine.low %v261_v48, %v275_v58  ;;  %v325_v3 = vor.u32 %v324_v53, %v321_v52  ;;  %v312_v13 = vrot.slane %v311_v59, 4  ;;  %2742 = vmatprep.subr.bf16.mxu0 %v617_v60  ;;  %v2486_v17 = vcombine.low %v3065_v42, %v3072_v51  ;;  %v2527_v45 = vld [vmem:[%s3015_s5 + $0x10] sm:$0xf]  ;;  %v1098_v53 = vld [vmem:[#allocation2 + $0xa] sm:$0x3] }
  0x45   : > { %v561_v15 = vsel %vm3124_vm8, %v2493_v61, %v560_v19  ;;  %v2495_v18 = vrot.slane %v533_v57, 9  ;;  %v565_v27 = vsel %vm3124_vm8, %v2494_v9, %v564_v20  ;;  %v2496_v7 = vrot.slane %v534_v63, 9  ;;  %v3160_v20 = vld [vmem:[%s3015_s5 + $0xc] sm:$0x1] }
  0x46   : > { %2725 = vmatmul.mubr.msk.bf16.vlgmr.msra.gmra.mxu0 %vm346_vm4, %v2478_v1  ;;  %v326_v25 = vrot.slane %v325_v3, 4  ;;  %v966_v30 = vand.u32 %v940_v0, %v3010_v2  ;;  %v317_v19 = vsel %vm3057_vm5, %v312_v13, %v316_v46  ;;  %v2501_v33 = vcombine.low %v561_v15, %v565_v27  ;;  %v3171_v46 = vld [vmem:[%s3015_s5 + $0x14] sm:$0x1] }
  0x47   : > { %2743 = vmatpush3.bf16.msra.mxu0 %v617_v60  ;;  %v569_v34 = vsel %vm3124_vm8, %v2495_v18, %v568_v22  ;;  %v2487_v8 = vcombine.low %v3039_v16, %v3044_v21  ;;  %v573_v38 = vsel %vm3124_vm8, %v2496_v7, %v572_v29  ;;  %v2497_v39 = vrot.slane %v535_v12, 9  ;;  %v3186_v60 = vld [vmem:[%s3015_s5 + $0x1c] sm:$0x1]  ;;  %v1209_v18 = vld [vmem:[#allocation2 + $0xc] sm:$0x3] }
  0x48   : > { %v331_v37 = vsel %vm3057_vm5, %v326_v25, %v330_v54  ;;  %2762 = vmatprep.subr.bf16.mxu0 %v966_v30  ;;  %v2498_v40 = vrot.slane %v536_v24, 9  ;;  %2744 = vmatprep.mubr.msk.bf16.mxu0 %vm346_vm4, %v2501_v33  ;;  %v2502_v22 = vcombine.low %v569_v34, %v573_v38  ;;  %v2488_v43 = vcombine.low %v3089_v62, %v3095_v6  ;;  %v2529_v54 = vld [vmem:[%s3015_s5 + $0x18] sm:$0xf] }
  0x49   : > { %v2480_v41 = vcombine.low %v317_v19, %v331_v37  ;;  %v2499_v44 = vrot.slane %v537_v31, 9  ;;  %v577_v29 = vsel %vm3124_vm8, %v2497_v39, %v576_v49  ;;  %v584_v48 = vrot.slane %v3102_v14, 5  ;;  %v2531_v49 = vld [vmem:[%s3015_s5 + $0x20] sm:$0xf]  ;;  %v2533_v31 = vld [vmem:[%s3015_s5 + $0x28] sm:$0xf] }
  0x4a   : > { %v581_v47 = vsel %vm3124_vm8, %v2498_v40, %v580_v50  ;;  %v2500_v52 = vrot.slane %v538_v35, 9  ;;  %v588_v58 = vrot.slane %v3108_v23, 5  ;;  %v828_v26 = vshrl.u32 %v2525_v36, 16  ;;  %v3198_v23 = vld [vmem:[%s3015_s5 + $0x24] sm:$0x1] }
  0x4b   : > { %2729 = vmatmul.mubr.msk.bf16.vlgmr.msra.gmra.mxu1 %vm346_vm4, %v2480_v41  ;;  %v2503_v57 = vcombine.low %v577_v29, %v581_v47  ;;  %v831_v59 = vshll.u32 %v2525_v36, 16  ;;  %v585_v28 = vsel %vm3124_vm8, %v2499_v44, %v584_v48  ;;  %v837_v50 = vshll.u32 %v3160_v20, 16  ;;  %v3213_v35 = vld [vmem:[%s3015_s5 + $0x2c] sm:$0x1]  ;;  %v2535_v40 = vld [vmem:[%s3015_s5 + $0x30] sm:$0xf] }
  0x4c   : > { %2733 = vmatpush3.bf16.msra.mxu1 %v3080_v55  ;;  %2734 = vmatprep.mubr.msk.bf16.mxu1 %vm346_vm4, %v2485_v11  ;;  %v842_v14 = vshrl.u32 %v2527_v45, 16  ;;  %v845_v61 = vshll.u32 %v2527_v45, 16  ;;  %v589_v63 = vsel %vm3124_vm8, %v2500_v52, %v588_v58  ;;  %v830_v55 = vrot.slane %v828_v26, 4  ;;  %v2551_v62 = vld [vmem:[%s3015_s5 + $0x18] sm:$0xe] }
  0x4d   : > { %2752 = vmatprep.subr.bf16.mxu1 %v3134_v10  ;;  %v833_v0 = vrot.slane %v831_v59, 5  ;;  %v851_v4 = vshll.u32 %v3171_v46, 16  ;;  %v2504_v5 = vcombine.low %v585_v28, %v589_v63  ;;  %v839_v11 = vrot.slane %v837_v50, 5  ;;  %v2539_v59 = vld [vmem:[%s3015_s5 + $0x40] sm:$0xf] }
  0x4e   : > { %2745 = vmatmul.mubr.msk.bf16.vlgmr.msra.gmra.mxu0 %vm346_vm4, %v2502_v22  ;;  %v844_v1 = vrot.slane %v842_v14, 4  ;;  %v847_v3 = vrot.slane %v845_v61, 5  ;;  %v3207_v13 = vand.u32 %v1098_v53, %v3010_v2  ;;  %v856_v15 = vshrl.u32 %v2529_v54, 16  ;;  %v2852_v53 = vld [vmem:[%s3015_s5 + $0x8] ss:$8 sps:$4 sm:$0xff]  }
  0x4f   : > { %2763 = vmatpush3.bf16.msra.mxu0 %v966_v30  ;;  %2748 = vmatprep.mubr.msk.bf16.mxu0 %vm346_vm4, %v2503_v57  ;;  %v834_v9 = vor.u32 %v833_v0, %v830_v55  ;;  %v853_v12 = vrot.slane %v851_v4, 5  ;;  %v859_v25 = vshll.u32 %v2529_v54, 16  ;;  %v865_v27 = vshll.u32 %v3186_v60, 16  ;;  %v3248_v61 = vld [vmem:[%s3015_s5 + $0x44] sm:$0x1] }
  0x50   : > { %v848_v24 = vor.u32 %v847_v3, %v844_v1  ;;  %v870_v7 = vshrl.u32 %v2531_v49, 16  ;;  %v858_v33 = vrot.slane %v856_v15, 4  ;;  %v873_v30 = vshll.u32 %v2531_v49, 16  ;;  %v2853_v6 = vld [vmem:[%s3015_s5 + $0x18] ss:$8 sps:$4 sm:$0xff]  }
  0x51   : > { %v835_v19 = vrot.slane %v834_v9, 4  ;;  %v879_v34 = vshll.u32 %v3198_v23, 16  ;;  %v861_v37 = vrot.slane %v859_v25, 5  ;;  %v867_v38 = vrot.slane %v865_v27, 5 }
  0x52   : > { %v849_v36 = vrot.slane %v848_v24, 4  ;;  %v872_v39 = vrot.slane %v870_v7, 4  ;;  %v875_v22 = vrot.slane %v873_v30, 5  ;;  %v3223_v45 = vand.u32 %v1209_v18, %v3010_v2 }
  0x53   : > { %2735 = vmatmul.mubr.msk.bf16.vlgmr.msra.gmra.mxu1 %vm346_vm4, %v2486_v17  ;;  %v840_v41 = vsel %vm3057_vm5, %v835_v19, %v839_v11  ;;  %v881_v44 = vrot.slane %v879_v34, 5  ;;  %v862_v51 = vor.u32 %v861_v37, %v858_v33  ;;  %v3233_v17 = vld [vmem:[%s3015_s5 + $0x34] sm:$0x1]  ;;  %v884_v29 = vshrl.u32 %v2533_v31, 16  ;;  %v2550_v19 = vld [vmem:[%s3015_s5 + $0x10] sm:$0xe] }
  0x54   : > { %2753 = vmatpush3.bf16.msra.mxu1 %v3134_v10  ;;  %2738 = vmatprep.mubr.msk.bf16.mxu1 %vm346_vm4, %v2487_v8  ;;  %v854_v42 = vsel %vm3057_vm5, %v849_v36, %v853_v12  ;;  %v887_v47 = vshll.u32 %v2533_v31, 16  ;;  %v876_v52 = vor.u32 %v875_v22, %v872_v39  ;;  %v893_v16 = vshll.u32 %v3213_v35, 16  ;;  %v2537_v10 = vld [vmem:[%s3015_s5 + $0x38] sm:$0xf]  ;;  %v3240_v8 = vld [vmem:[%s3015_s5 + $0x3c] sm:$0x1] }
  0x55   : > { %v2541_v48 = vcombine.low %v840_v41, %v854_v42  ;;  %2772 = vmatprep.subr.bf16.mxu1 %v3207_v13  ;;  %2782 = vmatprep.subr.bf16.mxu0 %v3223_v45  ;;  %v898_v21 = vshrl.u32 %v2535_v40, 16  ;;  %v863_v54 = vrot.slane %v862_v51, 4  ;;  %v886_v57 = vrot.slane %v884_v29, 4  ;;  %v1447_v37 = vld [vmem:[#allocation2 + $0xe] sm:$0x3] }
  0x56   : > { %2749 = vmatmul.mubr.msk.bf16.gmra.mxu0 %vm346_vm4, %v2504_v5  ;;  %v889_v58 = vrot.slane %v887_v47, 5  ;;  %v901_v26 = vshll.u32 %v2535_v40, 16  ;;  %v877_v49 = vrot.slane %v876_v52, 4  ;;  %v895_v28 = vrot.slane %v893_v16, 5  ;;  %v2549_v5 = vld [vmem:[%s3015_s5 + $0x8] sm:$0xe] }
  0x57   : > { %2764 = vmatprep.mubr.msk.bf16.mxu0 %vm346_vm4, %v2541_v48  ;;  %v900_v50 = vrot.slane %v898_v21, 4  ;;  %v907_v14 = vshll.u32 %v3233_v17, 16  ;;  %v868_v63 = vsel %vm3057_vm5, %v863_v54, %v867_v38  ;;  %v912_v4 = vshrl.u32 %v2537_v10, 16  ;;  %v2552_v42 = vld [vmem:[%s3015_s5 + $0x20] sm:$0xe] }
  0x58   : > { %v890_v55 = vor.u32 %v889_v58, %v886_v57  ;;  %v903_v0 = vrot.slane %v901_v26, 5  ;;  %v882_v11 = vsel %vm3057_vm5, %v877_v49, %v881_v44  ;;  %v915_v3 = vshll.u32 %v2537_v10, 16  ;;  %v2854_v51 = vld [vmem:[%s3015_s5 + $0x28] ss:$8 sps:$4 sm:$0xff]  }
  0x59   : > { %v909_v1 = vrot.slane %v907_v14, 5  ;;  %v921_v9 = vshll.u32 %v3240_v8, 16  ;;  %v2542_v12 = vcombine.low %v868_v63, %v882_v11  ;;  %v914_v24 = vrot.slane %v912_v4, 4  ;;  %v2556_v4 = vld [vmem:[%s3015_s5 + $0x40] sm:$0xe] }
  0x5a   : > { %v891_v15 = vrot.slane %v890_v55, 4  ;;  %v904_v18 = vor.u32 %v903_v0, %v900_v50  ;;  %v917_v25 = vrot.slane %v915_v3, 5  ;;  %v926_v7 = vshrl.u32 %v2539_v59, 16  ;;  %v2555_v50 = vld [vmem:[%s3015_s5 + $0x38] sm:$0xe] }
  0x5b   : > { %2739 = vmatmul.mubr.msk.bf16.gmra.mxu1 %vm346_vm4, %v2488_v43  ;;  %v923_v27 = vrot.slane %v921_v9, 5  ;;  %v929_v31 = vshll.u32 %v2539_v59, 16  ;;  %v935_v34 = vshll.u32 %v3248_v61, 16  ;;  %v2557_v36 = vrot.slane %v2549_v5, 9  ;;  %v2856_v59 = vld [vmem:[%s3015_s5 + $0x10] ss:$8 sps:$4 sm:$0xff]  }
  0x5c   : > { %2754 = vmatprep.mubr.msk.bf16.mxu1 %vm346_vm4, %v2852_v53  ;;  %v896_v33 = vsel %vm3057_vm5, %v891_v15, %v895_v28  ;;  %v905_v30 = vrot.slane %v904_v18, 4  ;;  %v918_v43 = vor.u32 %v917_v25, %v914_v24  ;;  %v928_v38 = vrot.slane %v926_v7, 4  ;;  %v2553_v53 = vld [vmem:[%s3015_s5 + $0x28] sm:$0xe]  ;;  %v2855_v11 = vld [vmem:[%s3015_s5 + $0x38] ss:$8 sps:$4 sm:$0xff]  }
  0x5d   : > { %v931_v39 = vrot.slane %v929_v31, 5  ;;  %v1067_v40 = vrot.slane %v3160_v20, 5  ;;  %v2558_v22 = vrot.slane %v2550_v19, 9  ;;  %v1071_v44 = vrot.slane %v3171_v46, 5  ;;  %v1605_v20 = vld [vmem:[#allocation2 + $0x10] sm:$0x3] }
  0x5e   : > { %2765 = vmatmul.mubr.msk.bf16.vlgmr.msra.gmra.mxu0 %vm346_vm4, %v2542_v12  ;;  %v910_v41 = vsel %vm3057_vm5, %v905_v30, %v909_v1  ;;  %v919_v47 = vrot.slane %v918_v43, 4  ;;  %v937_v52 = vrot.slane %v935_v34, 5  ;;  %v2559_v21 = vrot.slane %v2551_v62, 9  ;;  %v2554_v46 = vld [vmem:[%s3015_s5 + $0x30] sm:$0xe] }
  0x5f   : > { %2783 = vmatpush3.bf16.msra.mxu0 %v3223_v45  ;;  %v2543_v29 = vcombine.low %v896_v33, %v910_v41  ;;  %v932_v48 = vor.u32 %v931_v39, %v928_v38  ;;  %v3277_v16 = vsel %vm3124_vm8, %v2557_v36, %v1067_v40  ;;  %v1075_v10 = vrot.slane %v3186_v60, 5  ;;  %v2589_v9 = vld [vmem:[%s3015_s5 + $0x10] sm:$0xf]  ;;  %v2590_v15 = vld [vmem:[%s3015_s5 + $0x14] sm:$0x1] }
  0x60   : > { %v924_v45 = vsel %vm3057_vm5, %v919_v47, %v923_v27  ;;  %v3286_v57 = vand.u32 %v1447_v37, %v3010_v2  ;;  %v2560_v58 = vrot.slane %v2552_v42, 9  ;;  %v1072_v26 = vsel %vm3124_vm8, %v2558_v22, %v1071_v44  ;;  %v2591_v18 = vld [vmem:[%s3015_s5 + $0x18] sm:$0xf]  ;;  %v2592_v25 = vld [vmem:[%s3015_s5 + $0x1c] sm:$0x1] }
  0x61   : > { %2768 = vmatprep.mubr.msk.bf16.mxu0 %vm346_vm4, %v2543_v29  ;;  %v933_v54 = vrot.slane %v932_v48, 4  ;;  %v1079_v49 = vrot.slane %v3198_v23, 5  ;;  %v3293_v60 = vand.u32 %v1605_v20, %v3010_v2  ;;  %v2561_v28 = vrot.slane %v2553_v53, 9  ;;  %v2613_v36 = vld [vmem:[%s3015_s5 + $0x10] sm:$0xe] }
  0x62   : > { %v1083_v63 = vrot.slane %v3213_v35, 5  ;;  %v2562_v55 = vrot.slane %v2554_v46, 9  ;;  %v1087_v0 = vrot.slane %v3233_v17, 5  ;;  %v3306_v23 = vsel %vm3124_vm8, %v2559_v21, %v1075_v10  ;;  %v2614_v37 = vld [vmem:[%s3015_s5 + $0x18] sm:$0xe] }
  0x63   : > { %2755 = vmatmul.mubr.msk.bf16.vlgmr.msra.gmra.mxu1 %vm346_vm4, %v2853_v6  ;;  %v938_v14 = vsel %vm3057_vm5, %v933_v54, %v937_v52  ;;  %v3310_v5 = vsel %vm3124_vm8, %v2560_v58, %v1079_v49  ;;  %v2563_v35 = vrot.slane %v2555_v50, 9  ;;  %2802 = vmatprep.subr.bf16.mxu0 %v3293_v60  ;;  %v1091_v1 = vrot.slane %v3240_v8, 5  ;;  %v2858_v62 = vld [vmem:[%s3015_s5 + $0x30] ss:$8 sps:$4 sm:$0xff]   ;;  %v2593_v40 = vld [vmem:[%s3015_s5 + $0x20] sm:$0xf] }
  0x64   : > { %2773 = vmatpush3.bf16.msra.mxu1 %v3207_v13  ;;  %2758 = vmatprep.mubr.msk.bf16.mxu1 %vm346_vm4, %v2854_v51  ;;  %v2544_v2 = vcombine.low %v924_v45, %v938_v14  ;;  %v3317_v13 = vsel %vm3124_vm8, %v2561_v28, %v1083_v63  ;;  %v3321_v17 = vsel %vm3124_vm8, %v2562_v55, %v1087_v0  ;;  %v2564_v3 = vrot.slane %v2556_v4, 9  ;;  %v2594_v51 = vld [vmem:[%s3015_s5 + $0x24] sm:$0x1]  ;;  %v2595_v20 = vld [vmem:[%s3015_s5 + $0x28] sm:$0xf] }
  0x65   : > { %2792 = vmatprep.subr.bf16.mxu1 %v3286_v57  ;;  %v1095_v12 = vrot.slane %v3248_v61, 5  ;;  %v1335_v24 = vshrl.u32 %v2589_v9, 16  ;;  %v1338_v27 = vshll.u32 %v2589_v9, 16  ;;  %v1344_v7 = vshll.u32 %v2590_v15, 16  ;;  %v2857_v61 = vld [vmem:[%s3015_s5 + $0x20] ss:$8 sps:$4 sm:$0xff]  }
  0x66   : > { %2769 = vmatmul.mubr.msk.bf16.gmra.mxu0 %vm346_vm4, %v2544_v2  ;;  %v1349_v8 = vshrl.u32 %v2591_v18, 16  ;;  %v1352_v31 = vshll.u32 %v2591_v18, 16  ;;  %v2565_v19 = vcombine.low %v3277_v16, %v1072_v26  ;;  %v2566_v33 = vcombine.low %v3306_v23, %v3310_v5  ;;  %v2596_v10 = vld [vmem:[%s3015_s5 + $0x2c] sm:$0x1]  ;;  %v2616_v63 = vld [vmem:[%s3015_s5 + $0x28] sm:$0xe] }
  0x67   : > { %2784 = vmatprep.mubr.msk.bf16.mxu0 %vm346_vm4, %v2856_v59  ;;  %v2567_v30 = vcombine.low %v3317_v13, %v3321_v17  ;;  %v1337_v34 = vrot.slane %v1335_v24, 4  ;;  %v3342_v6 = vsel %vm3124_vm8, %v2563_v35, %v1091_v1  ;;  %v3346_v43 = vsel %vm3124_vm8, %v2564_v3, %v1095_v12  ;;  %v2615_v59 = vld [vmem:[%s3015_s5 + $0x20] sm:$0xe]  ;;  %v2597_v23 = vld [vmem:[%s3015_s5 + $0x30] sm:$0xf] }
  0x68   : > { %v1340_v38 = vrot.slane %v1338_v27, 5  ;;  %v1351_v39 = vrot.slane %v1349_v8, 4  ;;  %v1354_v41 = vrot.slane %v1352_v31, 5  ;;  %v1358_v22 = vshll.u32 %v2592_v25, 16  ;;  %v2598_v3 = vld [vmem:[%s3015_s5 + $0x34] sm:$0x1] }
  0x69   : > { %v2621_v44 = vrot.slane %v2613_v36, 9  ;;  %v1574_v42 = vrot.slane %v2590_v15, 5  ;;  %v1346_v47 = vrot.slane %v1344_v7, 5  ;;  %v2622_v48 = vrot.slane %v2614_v37, 9  ;;  %v2599_v18 = vld [vmem:[%s3015_s5 + $0x38] sm:$0xf] }
  0x6a   : > { %v1341_v29 = vor.u32 %v1340_v38, %v1337_v34  ;;  %v1578_v52 = vrot.slane %v2592_v25, 5  ;;  %v1355_v16 = vor.u32 %v1354_v41, %v1351_v39  ;;  %v1363_v53 = vshrl.u32 %v2593_v40, 16  ;;  %v2859_v24 = vld [vmem:[%s3015_s5 + $0x40] ss:$8 sps:$4 sm:$0xff]   ;;  %v2600_v34 = vld [vmem:[%s3015_s5 + $0x3c] sm:$0x1] }
  0x6b   : > { %2759 = vmatmul.mubr.msk.bf16.gmra.mxu1 %vm346_vm4, %v2855_v11  ;;  %v1575_v21 = vsel %vm3124_vm8, %v2621_v44, %v1574_v42  ;;  %v1366_v46 = vshll.u32 %v2593_v40, 16  ;;  %v1372_v58 = vshll.u32 %v2594_v51, 16  ;;  %v1377_v26 = vshrl.u32 %v2595_v20, 16  ;;  %v2617_v37 = vld [vmem:[%s3015_s5 + $0x30] sm:$0xe] }
  0x6c   : > { %2774 = vmatprep.mubr.msk.bf16.mxu1 %vm346_vm4, %v2565_v19  ;;  %v1342_v45 = vrot.slane %v1341_v29, 4  ;;  %v1579_v54 = vsel %vm3124_vm8, %v2622_v48, %v1578_v52  ;;  %v1356_v49 = vrot.slane %v1355_v16, 4  ;;  %v1360_v28 = vrot.slane %v1358_v22, 5  ;;  %v2618_v40 = vld [vmem:[%s3015_s5 + $0x38] sm:$0xe] }
  0x6d   : > { %v1365_v50 = vrot.slane %v1363_v53, 4  ;;  %v1368_v14 = vrot.slane %v1366_v46, 5  ;;  %v2568_v55 = vcombine.low %v3342_v6, %v3346_v43  ;;  %v2629_v0 = vcombine.low %v1575_v21, %v1579_v54  ;;  %v2602_v46 = vld [vmem:[%s3015_s5 + $0x44] sm:$0x1] }
  0x6e   : > { %2785 = vmatmul.mubr.msk.bf16.vlgmr.msra.gmra.mxu0 %vm346_vm4, %v2857_v61  ;;  %v1379_v4 = vrot.slane %v1377_v26, 4  ;;  %v1380_v2 = vshll.u32 %v2595_v20, 16  ;;  %v1347_v5 = vsel %vm3057_vm5, %v1342_v45, %v1346_v47  ;;  %v1386_v11 = vshll.u32 %v2596_v10, 16  ;;  %v2603_v20 = vld [vmem:[%s3015_s5 + $0x48] sm:$0xf] }
  0x6f   : > { %2803 = vmatpush3.bf16.msra.mxu0 %v3293_v60  ;;  %2788 = vmatprep.mubr.msk.bf16.mxu0 %vm346_vm4, %v2858_v62  ;;  %v1369_v35 = vor.u32 %v1368_v14, %v1365_v50  ;;  %v2623_v1 = vrot.slane %v2615_v59, 9  ;;  %v3369_v60 = vrot.slane %v1372_v58, 5  ;;  %v1582_v12 = vrot.slane %v2594_v51, 5  ;;  %v2601_v51 = vld [vmem:[%s3015_s5 + $0x40] sm:$0xf] }
  0x70   : > { %v1382_v9 = vrot.slane %v1380_v2, 5  ;;  %v2624_v15 = vrot.slane %v2616_v63, 9  ;;  %v1361_v25 = vsel %vm3057_vm5, %v1356_v49, %v1360_v28  ;;  %v1586_v7 = vrot.slane %v2596_v10, 5  ;;  %v2604_v50 = vld [vmem:[%s3015_s5 + $0x4c] sm:$0x1] }
  0x71   : > { %v3375_v27 = vrot.slane %v1369_v35, 4  ;;  %v1391_v8 = vshrl.u32 %v2597_v23, 16  ;;  %v3378_v19 = vrot.slane %v1386_v11, 5  ;;  %v1583_v61 = vsel %vm3124_vm8, %v2623_v1, %v1582_v12  ;;  %v2619_v63 = vld [vmem:[%s3015_s5 + $0x40] sm:$0xe] }
  0x72   : > { %v1383_v31 = vor.u32 %v1382_v9, %v1379_v4  ;;  %v1394_v36 = vshll.u32 %v2597_v23, 16  ;;  %v1400_v38 = vshll.u32 %v2598_v3, 16  ;;  %v1405_v39 = vshrl.u32 %v2599_v18, 16 }
  0x73   : > { %2775 = vmatmul.mubr.msk.bf16.vlgmr.msra.gmra.mxu1 %vm346_vm4, %v2566_v33  ;;  %v1587_v33 = vsel %vm3124_vm8, %v2624_v15, %v1586_v7  ;;  %v1393_v62 = vrot.slane %v1391_v8, 4  ;;  %v2605_v41 = vcombine.low %v1347_v5, %v1361_v25  ;;  %v1408_v17 = vshll.u32 %v2599_v18, 16  ;;  %v2620_v5 = vld [vmem:[%s3015_s5 + $0x48] sm:$0xe] }
  0x74   : > { %2793 = vmatpush3.bf16.msra.mxu1 %v3286_v57  ;;  %2778 = vmatprep.mubr.msk.bf16.mxu1 %vm346_vm4, %v2567_v30  ;;  %v1375_v57 = vsel %vm3057_vm5, %v3375_v27, %v3369_v60  ;;  %v1384_v22 = vrot.slane %v1383_v31, 4  ;;  %v1396_v44 = vrot.slane %v1394_v36, 5  ;;  %v1407_v13 = vrot.slane %v1405_v39, 4 }
  0x75   : > { %v1414_v30 = vshll.u32 %v2600_v34, 16  ;;  %v2625_v42 = vrot.slane %v2617_v37, 9  ;;  %v2630_v29 = vcombine.low %v1583_v61, %v1587_v33  ;;  %v1590_v48 = vrot.slane %v2598_v3, 5 }
  0x76   : > { %2789 = vmatmul.mubr.msk.bf16.gmra.mxu0 %vm346_vm4, %v2859_v24  ;;  %v1397_v47 = vor.u32 %v1396_v44, %v1393_v62  ;;  %v2626_v52 = vrot.slane %v2618_v40, 9  ;;  %v1389_v16 = vsel %vm3057_vm5, %v1384_v22, %v3378_v19  ;;  %v1402_v21 = vrot.slane %v1400_v38, 5 }
  0x77   : > { %2804 = vmatprep.mubr.msk.bf16.mxu0 %vm346_vm4, %v2629_v0  ;;  %v1410_v10 = vrot.slane %v1408_v17, 5  ;;  %v1594_v53 = vrot.slane %v2600_v34, 5  ;;  %v1591_v54 = vsel %vm3124_vm8, %v2625_v42, %v1590_v48  ;;  %v1419_v58 = vshrl.u32 %v2601_v51, 16 }
  0x78   : > { %v1398_v45 = vrot.slane %v1397_v47, 4  ;;  %v1422_v26 = vshll.u32 %v2601_v51, 16  ;;  %v1416_v49 = vrot.slane %v1414_v30, 5  ;;  %v1433_v14 = vshrl.u32 %v2603_v20, 16 }
  0x79   : > { %v1411_v59 = vor.u32 %v1410_v10, %v1407_v13  ;;  %v1595_v28 = vsel %vm3124_vm8, %v2626_v52, %v1594_v53  ;;  %v1421_v4 = vrot.slane %v1419_v58, 4  ;;  %v1428_v23 = vshll.u32 %v2602_v46, 16 }
  0x7a   : > { %v2631_v0 = vcombine.low %v1591_v54, %v1595_v28  ;;  %v1424_v2 = vrot.slane %v1422_v26, 5  ;;  %v1403_v35 = vsel %vm3057_vm5, %v1398_v45, %v1402_v21  ;;  %v1435_v1 = vrot.slane %v1433_v14, 4 }
  0x7b   : > { %2779 = vmatmul.mubr.msk.bf16.gmra.mxu1 %vm346_vm4, %v2568_v55  ;;  %v1412_v11 = vrot.slane %v1411_v59, 4  ;;  %v1436_v3 = vshll.u32 %v2603_v20, 16  ;;  %v1442_v9 = vshll.u32 %v2604_v50, 16  ;;  %v2627_v12 = vrot.slane %v2619_v63, 9 }
  0x7c   : > { %2794 = vmatprep.mubr.msk.bf16.mxu1 %vm346_vm4, %v2605_v41  ;;  %v1425_v60 = vor.u32 %v1424_v2, %v1421_v4  ;;  %v1598_v15 = vrot.slane %v2602_v46, 5  ;;  %v2628_v55 = vrot.slane %v2620_v5, 9  ;;  %v1602_v18 = vrot.slane %v2604_v50, 5 }
  0x7d   : > { %v1417_v6 = vsel %vm3057_vm5, %v1412_v11, %v1416_v49  ;;  %v1438_v43 = vrot.slane %v1436_v3, 5  ;;  %v2606_v24 = vcombine.low %v1375_v57, %v1389_v16  ;;  %v1430_v27 = vrot.slane %v1428_v23, 5 }
  0x7e   : > { %2805 = vmatmul.mubr.msk.bf16.vlgmr.msra.gmra.mxu0 %vm346_vm4, %v2630_v29  ;;  %v2607_v25 = vcombine.low %v1403_v35, %v1417_v6  ;;  %v1599_v7 = vsel %vm3124_vm8, %v2627_v12, %v1598_v15  ;;  %v1426_v8 = vrot.slane %v1425_v60, 4  ;;  %v1444_v19 = vrot.slane %v1442_v9, 5 }
  0x7f   : > { %2808 = vmatprep.mubr.msk.bf16.mxu0 %vm346_vm4, %v2631_v0  ;;  %v1439_v31 = vor.u32 %v1438_v43, %v1435_v1  ;;  %v1603_v61 = vsel %vm3124_vm8, %v2628_v55, %v1602_v18 }
  0x80   : > { %v2632_v36 = vcombine.low %v1599_v7, %v1603_v61  ;;  %v1431_v37 = vsel %vm3057_vm5, %v1426_v8, %v1430_v27 }
  0x81   : > { %v1440_v34 = vrot.slane %v1439_v31, 4 }
  0x83   : > { %2795 = vmatmul.mubr.msk.bf16.vlgmr.msra.gmra.mxu1 %vm346_vm4, %v2606_v24  ;;  %v1445_v33 = vsel %vm3057_vm5, %v1440_v34, %v1444_v19 }
  0x84   : > { %2798 = vmatprep.mubr.msk.bf16.mxu1 %vm346_vm4, %v2607_v25  ;;  %v2608_v62 = vcombine.low %v1431_v37, %v1445_v33 }
  0x86   : > { %2809 = vmatmul.mubr.msk.bf16.gmra.mxu0 %vm346_vm4, %v2632_v36 }
  0x8b   : > { %2799 = vmatmul.mubr.msk.bf16.gmra.mxu1 %vm346_vm4, %v2608_v62 }
 0x106   : > { %v2726_v38 = vpop.f32.mrf.mxu0 }
 0x108   : > { %v400_v56 = vpop.f32.mrf.mxu0 }
 0x10a   : > { %v2727_v39 = vpop.f32.mrf.mxu0 }
 0x10b   : > { %v2730_v40 = vpop.f32.mrf.mxu1 }
 0x10c   : > { %v403_v41 = vpop.f32.mrf.mxu0 }
 0x10d   : > { %v416_v57 = vpop.f32.mrf.mxu1 }
 0x10e   : > { %v2746_v22 = vpop.f32.mrf.mxu0 }
 0x10f   : > { %v3434_v44 = vpop.f32.mrf.mxu1 }
 0x110   : > { %v653_v13 = vpop.f32.mrf.mxu0 }
 0x111   : > { %v3436_v17 = vpop.f32.mrf.mxu1 }
 0x112   : > { %v2747_v30 = vpop.f32.mrf.mxu0 }
 0x113   : > { %v2736_v32 = vpop.f32.mrf.mxu1 }
 0x114   : > { %v656_v42 = vpop.f32.mrf.mxu0  ;;  %v509_v15 = vadd.f32 %v2736_v32, %v2726_v38 }
 0x115   : > { %v500_v51 = vpop.f32.mrf.mxu1 }
 0x116   : > { %v2750_v29 = vpop.f32.mrf.mxu0  ;;  %v501_v55 = vadd.f32 %v500_v51, %v400_v56  ;;  %v686_v25 = vadd.f32 %v2746_v22, %v509_v15  ;;  %v2933_v22 = vmov 1983009808  }
 0x117   : > { %v2737_v47 = vpop.f32.mrf.mxu1  ;;  %v1739_v51 = vunpack.c.l.s4 %v2933_v22 }
 0x118   : > { %v669_v48 = vpop.f32.mrf.mxu0  ;;  %v512_v27 = vadd.f32 %v2737_v47, %v2727_v39  ;;  %v684_v31 = vadd.f32 %v653_v13, %v501_v55 }
 0x119   : > { %v503_v52 = vpop.f32.mrf.mxu1 }
 0x11a   : > { %v3438_v20 = vpop.f32.mrf.mxu0  ;;  %v504_v19 = vadd.f32 %v503_v52, %v403_v41  ;;  %v687_v37 = vadd.f32 %v2747_v30, %v512_v27  ;;  %v3469_v27 = vld [vmem:[#allocation4] ss:$0 sm:$0xff] }
 0x11b   : > { %v2740_v16 = vpop.f32.mrf.mxu1 }
 0x11c   : > { %v525_v21 = vadd.f32 %v2740_v16, %v2730_v40  ;;  %v3440_v10 = vpop.f32.mrf.mxu0  ;;  %v685_v40 = vadd.f32 %v656_v42, %v504_v19 }
 0x11d   : > { %v516_v53 = vpop.f32.mrf.mxu1 }
 0x11e   : > { %v690_v46 = vadd.f32 %v2750_v29, %v525_v21  ;;  %v517_v45 = vadd.f32 %v516_v53, %v416_v57  ;;  %v2766_v54 = vpop.f32.mrf.mxu0 }
 0x11f   : > { %v2741_v58 = vpop.f32.mrf.mxu1 }
 0x120   : > { %v3442_v26 = vadd.f32 %v669_v48, %v517_v45  ;;  %v1002_v59 = vpop.f32.mrf.mxu0  ;;  %v1741_v48 = vlaneseq  ;;  %v528_v21 = vadd.f32 %v2741_v58, %v3434_v44  ;;  %v1740_v45 = vunpack.c.0.s8 %v1739_v51 }
 0x121   : > { %v519_v49 = vpop.f32.mrf.mxu1 }
 0x122   : > { %v2767_v28 = vpop.f32.mrf.mxu0 }
 0x123   : > { %v2756_v50 = vpop.f32.mrf.mxu1 }
 0x124   : > { %v1005_v14 = vpop.f32.mrf.mxu0  ;;  %v805_v61 = vadd.f32 %v2756_v50, %v686_v25 }
 0x125   : > { %v772_v63 = vpop.f32.mrf.mxu1 }
 0x126   : > { %v2770_v0 = vpop.f32.mrf.mxu0  ;;  %v803_v33 = vadd.f32 %v772_v63, %v684_v31  ;;  %v1035_v56 = vadd.f32 %v2766_v54, %v805_v61 }
 0x127   : > { %v2757_v4 = vpop.f32.mrf.mxu1 }
 0x128   : > { %v3444_v2 = vpop.f32.mrf.mxu0  ;;  %v806_v57 = vadd.f32 %v2757_v4, %v687_v37  ;;  %v1033_v29 = vadd.f32 %v1002_v59, %v803_v33  ;;  %v1742_v4 = vshrl.u32 %v1741_v48, 7  ;;  %v520_v59 = vadd.f32 %v519_v49, %v3436_v17 }
 0x129   : > { %v775_v23 = vpop.f32.mrf.mxu1 }
 0x12a   : > { %v3446_v5 = vpop.f32.mrf.mxu0  ;;  %v804_v13 = vadd.f32 %v775_v23, %v685_v40  ;;  %v1036_v30 = vadd.f32 %v2767_v28, %v806_v57  ;;  %v691_v28 = vadd.f32 %v3438_v20, %v528_v21 }
 0x12b   : > { %v2760_v35 = vpop.f32.mrf.mxu1 }
 0x12c   : > { %v3448_v11 = vpop.f32.mrf.mxu0  ;;  %v809_v53 = vadd.f32 %v2760_v35, %v690_v46  ;;  %v1034_v54 = vadd.f32 %v1005_v14, %v804_v13  ;;  %v3471_v35 = vsub.s32 %v1740_v45, %v1742_v4 }
 0x12d   : > { %v3450_v1 = vpop.f32.mrf.mxu1 }
 0x12e   : > { %v2786_v3 = vpop.f32.mrf.mxu0  ;;  %v807_v17 = vadd.f32 %v3450_v1, %v3442_v26 }
 0x12f   : > { %v2761_v60 = vpop.f32.mrf.mxu1 }
 0x130   : > { %v1279_v9 = vpop.f32.mrf.mxu0  ;;  %v810_v49 = vadd.f32 %v2761_v60, %v691_v28  ;;  %v1037_v57 = vadd.f32 %v3444_v2, %v807_v17 }
 0x131   : > { %v3452_v12 = vpop.f32.mrf.mxu1 }
 0x132   : > { %v2787_v6 = vpop.f32.mrf.mxu0  ;;  %v3481_v26 = vadd.f32 %v3446_v5, %v810_v49 }
 0x133   : > { %v2776_v43 = vpop.f32.mrf.mxu1 }
 0x134   : > { %v1282_v18 = vpop.f32.mrf.mxu0  ;;  %v1193_v41 = vadd.f32 %v2776_v43, %v1035_v56 }
 0x135   : > { %v1160_v24 = vpop.f32.mrf.mxu1 }
 0x136   : > { %v3454_v7 = vpop.f32.mrf.mxu0  ;;  %v1191_v16 = vadd.f32 %v1160_v24, %v1033_v29  ;;  %v1312_v50 = vadd.f32 %v2786_v3, %v1193_v41  ;;  %v1039_v24 = vadd.f32 %v2770_v0, %v809_v53 }
 0x137   : > { %v2777_v8 = vpop.f32.mrf.mxu1 }
 0x138   : > { %v3456_v34 = vpop.f32.mrf.mxu0  ;;  %v1194_v63 = vadd.f32 %v2777_v8, %v1036_v30  ;;  %v1310_v43 = vadd.f32 %v1279_v9, %v1191_v16  ;;  %v689_v8 = vadd.f32 %v3440_v10, %v520_v59 }
 0x139   : > { %v1163_v36 = vpop.f32.mrf.mxu1 }
 0x13a   : > { %v3458_v62 = vpop.f32.mrf.mxu0  ;;  %v1192_v55 = vadd.f32 %v1163_v36, %v1034_v54  ;;  %v1313_v46 = vadd.f32 %v2787_v6, %v1194_v63  ;;  %v808_v6 = vadd.f32 %v3452_v12, %v689_v8 }
 0x13b   : > { %v2780_v38 = vpop.f32.mrf.mxu1 }
 0x13c   : > { %v3460_v32 = vpop.f32.mrf.mxu0  ;;  %v1197_v9 = vadd.f32 %v2780_v38, %v1039_v24  ;;  %v1311_v19 = vadd.f32 %v1282_v18, %v1192_v55  ;;  %v3487_v51 = vadd.f32 %v3448_v11, %v808_v6 }
 0x13d   : > { %v1176_v39 = vpop.f32.mrf.mxu1 }
 0x13e   : > { %v2806_v47 = vpop.f32.mrf.mxu0  ;;  %v1316_v1 = vadd.f32 %v3454_v7, %v1197_v9  ;;  %v3489_v29 = vadd.f32 %v1176_v39, %v1037_v57 }
 0x13f   : > { %v3462_v52 = vpop.f32.mrf.mxu1 }
 0x140   : > { %v1667_v15 = vpop.f32.mrf.mxu0 }
 0x141   : > { %v3465_v42 = vpop.f32.mrf.mxu1 }
 0x142   : > { %v2807_v3 = vpop.f32.mrf.mxu0 }
 0x143   : > { %v2796_v23 = vpop.f32.mrf.mxu1 }
 0x144   : > { %v1542_v25 = vadd.f32 %v2796_v23, %v1312_v50  ;;  %v1670_v10 = vpop.f32.mrf.mxu0 }
 0x145   : > { %v1509_v44 = vpop.f32.mrf.mxu1 }
 0x146   : > { %v1700_v58 = vadd.f32 %v2806_v47, %v1542_v25  ;;  %v1540_v14 = vadd.f32 %v1509_v44, %v1310_v43  ;;  %v2810_v7 = vpop.f32.mrf.mxu0 }
 0x147   : > { %v2797_v31 = vpop.f32.mrf.mxu1 }
 0x148   : > { %v1715_v20 = vadd.f32 %v3469_v27, %v1700_v58  ;;  %v1698_v0 = vadd.f32 %v1667_v15, %v1540_v14  ;;  %v1543_v61 = vadd.f32 %v2797_v31, %v1313_v46 }
 0x149   : > { %v1512_v36 = vpop.f32.mrf.mxu1 }
 0x14a   : > { %v1723_v37 = vmax.f32 %v1715_v20, 0.0  ;;  %v1713_v33 = vadd.f32 %v3469_v27, %v1698_v0  ;;  %v1701_v40 = vadd.f32 %v2807_v3, %v1543_v61  ;;  %v1541_v56 = vadd.f32 %v1512_v36, %v1311_v19 }
 0x14b   : > { %v2800_v60 = vpop.f32.mrf.mxu1 }
 0x14c   : > { %v1771_v18 = vcombine.high %v1723_v37, %v1723_v37  ;;  %v1778_v38 = vrot.slane %v1723_v37, %v3471_v35  ;;  %v1721_v22 = vmax.f32 %v1713_v33, 0.0  ;;  %v1716_v12 = vadd.f32 %v3469_v27, %v1701_v40 }
 0x14d   : > { %v1699_v13 = vadd.f32 %v1670_v10, %v1541_v56  ;;  %v1546_v41 = vadd.f32 %v2800_v60, %v1316_v1 }
 0x14e   : > { %v1785_v2 = vrot.slane %v1771_v18, %v3471_v35  ;;  %v1786_v5 = vcombine.high %v1778_v38, %v1778_v38  ;;  %v2646_v47 = vrot.slane %v1778_v38, 9  ;;  %v1737_v48 = vcombine.high %v1721_v22, %v1721_v22 }
 0x14f   : > { %v1744_v30 = vrot.slane %v1721_v22, %v3471_v35  ;;  %v1724_v16 = vmax.f32 %v1716_v12, 0.0  ;;  %v1714_v21 = vadd.f32 %v3469_v27, %v1699_v13  ;;  %v1704_v53 = vadd.f32 %v2810_v7, %v1546_v41 }
 0x150   : > { %v1787_v45 = vcombine.high %v1785_v2, %v1785_v2  ;;  %v2647_v54 = vrot.slane %v1786_v5, 9  ;;  %v2648_v11 = vrot.slane %v1785_v2, 9  ;;  %v2009_v50 = vmax.f32 %v1778_v38, %v2646_v47 }
 0x151   : > { %v1751_v39 = vrot.slane %v1737_v48, %v3471_v35  ;;  %v1752_v63 = vcombine.high %v1744_v30, %v1744_v30  ;;  %v2638_v4 = vrot.slane %v1744_v30, 9  ;;  %v1788_v15 = vcombine.high %v1724_v16, %v1724_v16 }
 0x152   : > { %v2649_v59 = vrot.slane %v1787_v45, 9  ;;  %v2010_v23 = vmax.f32 %v1786_v5, %v2647_v54  ;;  %v2011_v43 = vmax.f32 %v1785_v2, %v2648_v11  ;;  %v1795_v55 = vrot.slane %v1724_v16, %v3471_v35 }
 0x153   : > { %v1753_v25 = vcombine.high %v1751_v39, %v1751_v39  ;;  %v2639_v28 = vrot.slane %v1752_v63, 9  ;;  %v2640_v24 = vrot.slane %v1751_v39, 9  ;;  %v2001_v44 = vmax.f32 %v1744_v30, %v2638_v4 }
 0x154   : > { %v2012_v46 = vmax.f32 %v1787_v45, %v2649_v59  ;;  %v1802_v58 = vrot.slane %v1788_v15, %v3471_v35  ;;  %v1803_v14 = vcombine.high %v1795_v55, %v1795_v55  ;;  %v2650_v3 = vrot.slane %v1795_v55, 9 }
 0x155   : > { %v2641_v8 = vrot.slane %v1753_v25, 9  ;;  %v2002_v17 = vmax.f32 %v1752_v63, %v2639_v28  ;;  %v2003_v49 = vmax.f32 %v1751_v39, %v2640_v24  ;;  %v1722_v9 = vmax.f32 %v1714_v21, 0.0 }
 0x156   : > { %v1804_v31 = vcombine.high %v1802_v58, %v1802_v58  ;;  %v2651_v19 = vrot.slane %v1803_v14, 9  ;;  %v2652_v20 = vrot.slane %v1802_v58, 9  ;;  %v2013_v0 = vmax.f32 %v1795_v55, %v2650_v3 }
 0x157   : > { %v2004_v61 = vmax.f32 %v1753_v25, %v2641_v8  ;;  %v1754_v6 = vcombine.high %v1722_v9, %v1722_v9  ;;  %v1761_v36 = vrot.slane %v1722_v9, %v3471_v35  ;;  %v1719_v37 = vadd.f32 %v3469_v27, %v1704_v53 }
 0x158   : > { %v2653_v33 = vrot.slane %v1804_v31, 9  ;;  %v2014_v40 = vmax.f32 %v1803_v14, %v2651_v19  ;;  %v2015_v56 = vmax.f32 %v1802_v58, %v2652_v20  ;;  %v2037_v10 = vmax.f32 %v2009_v50, %v2013_v0  ;;  %v1525_v14 = vpop.f32.mrf.mxu1 }
 0x159   : > { %v1768_v57 = vrot.slane %v1754_v6, %v3471_v35  ;;  %v1769_v1 = vcombine.high %v1761_v36, %v1761_v36  ;;  %v2642_v60 = vrot.slane %v1761_v36, 9  ;;  %v3500_v18 = vmax.f32 %v1719_v37, 0.0 }
 0x15a   : > { %v2016_v38 = vmax.f32 %v1804_v31, %v2653_v33  ;;  %v2038_v22 = vmax.f32 %v2010_v23, %v2014_v40  ;;  %v2039_v12 = vmax.f32 %v2011_v43, %v2015_v56  ;;  %v2053_v13 = vpack.c.bf16 %v2037_v10, %v2037_v10  ;;  %v1683_v40 = vpop.f32.mrf.mxu0  ;;  %v2801_v56 = vpop.f32.mrf.mxu1 }
 0x15b   : > { %v1770_v41 = vcombine.high %v1768_v57, %v1768_v57  ;;  %v2643_v2 = vrot.slane %v1769_v1, 9  ;;  %v2644_v5 = vrot.slane %v1768_v57, 9  ;;  %v2005_v47 = vmax.f32 %v1761_v36, %v2642_v60 }
 0x15c   : > { %v2040_v48 = vmax.f32 %v2012_v46, %v2016_v38  ;;  %v2054_v7 = vpack.c.bf16 %v2038_v22, %v2038_v22  ;;  %v2055_v30 = vpack.c.bf16 %v2039_v12, %v2039_v12  ;;  %v2115_v16 = vrot.slane %v2053_v13, %v3471_v35 }
 0x15d   : > { %v2645_v21 = vrot.slane %v1770_v41, 9  ;;  %v2006_v53 = vmax.f32 %v1769_v1, %v2643_v2  ;;  %v2007_v45 = vmax.f32 %v1768_v57, %v2644_v5  ;;  %v2033_v54 = vmax.f32 %v2001_v44, %v2005_v47  ;;  %v2811_v47 = vpop.f32.mrf.mxu0 }
 0x15e   : > { %v2056_v11 = vpack.c.bf16 %v2040_v48, %v2040_v48  ;;  %v2122_v50 = vrot.slane %v2054_v7, %v3471_v35  ;;  %v2129_v39 = vrot.slane %v2055_v30, %v3471_v35  ;;  %v2227_v63 = vrot.slane %v2115_v16, %v3471_v35  ;;  %v1528_v48 = vpop.f32.mrf.mxu1 }
 0x15f   : > { %v2008_v4 = vmax.f32 %v1770_v41, %v2645_v21  ;;  %v2034_v15 = vmax.f32 %v2002_v17, %v2006_v53  ;;  %v2035_v59 = vmax.f32 %v2003_v49, %v2007_v45  ;;  %v2049_v23 = vpack.c.bf16 %v2033_v54, %v2033_v54 }
 0x160   : > { %v1198_v43 = vadd.f32 %v3462_v52, %v3481_v26  ;;  %v2136_v55 = vrot.slane %v2056_v11, %v3471_v35  ;;  %v2234_v25 = vrot.slane %v2122_v50, %v3471_v35  ;;  %v2241_v28 = vrot.slane %v2129_v39, %v3471_v35 }
 0x161   : > { %v2036_v24 = vmax.f32 %v2004_v61, %v2008_v4  ;;  %v2050_v44 = vpack.c.bf16 %v2034_v15, %v2034_v15  ;;  %v2051_v46 = vpack.c.bf16 %v2035_v59, %v2035_v59  ;;  %v2087_v58 = vrot.slane %v2049_v23, %v3471_v35  ;;  %v1686_v4 = vpop.f32.mrf.mxu0 }
 0x162   : > { %v2248_v3 = vrot.slane %v2136_v55, %v3471_v35  ;;  %v2309_v8 = vunpack.c.l.b16 %v2227_v63  ;;  %v2310_v17 = vunpack.c.l.b16 %v2234_v25  ;;  %v2311_v49 = vunpack.c.l.b16 %v2241_v28 }
 0x163   : > { %v2052_v9 = vpack.c.bf16 %v2036_v24, %v2036_v24  ;;  %v2094_v52 = vrot.slane %v2050_v44, %v3471_v35  ;;  %v2101_v26 = vrot.slane %v2051_v46, %v3471_v35  ;;  %v1839_v31 = vcombine.high %v3500_v18, %v3500_v18 }
 0x164   : > { %v2312_v19 = vunpack.c.l.b16 %v2248_v3  ;;  %v2330_v20 = vrot.slane %v2310_v17, 7  ;;  %v2332_v0 = vrot.slane %v2311_v49, 6  ;;  %v2199_v61 = vrot.slane %v2087_v58, %v3471_v35 }
 0x165   : > { %v1314_v6 = vadd.f32 %v3456_v34, %v3489_v29  ;;  %v2108_v36 = vrot.slane %v2052_v9, %v3471_v35  ;;  %v2206_v37 = vrot.slane %v2094_v52, %v3471_v35  ;;  %v2213_v33 = vrot.slane %v2101_v26, %v3471_v35 }
 0x166   : > { %v1196_v10 = vadd.f32 %v3465_v42, %v3487_v51  ;;  %v2331_v57 = vsel %vm2322_vm9, %v2330_v20, %v2309_v8  ;;  %v2334_v1 = vrot.slane %v2312_v19, 5  ;;  %v1846_v60 = vrot.slane %v3500_v18, %v3471_v35 }
 0x167   : > { %v2333_v34 = vsel %vm2325_vm10, %v2332_v0, %v2331_v57  ;;  %v2220_v29 = vrot.slane %v2108_v36, %v3471_v35  ;;  %v2306_v38 = vunpack.c.l.b16 %v2206_v37  ;;  %v2307_v22 = vunpack.c.l.b16 %v2213_v33 }
 0x168   : > { %v1317_v12 = vadd.f32 %v3458_v62, %v1198_v43  ;;  %v2335_v42 = vsel %vm2328_vm11, %v2334_v1, %v2333_v34  ;;  %v2305_v51 = vunpack.c.l.b16 %v2199_v61  ;;  %v1853_v13 = vrot.slane %v1839_v31, %v3471_v35 }
 0x169   : > { %v2349_v18 = vpack.c.b16 %v2335_v42, %v2335_v42  ;;  %v2308_v41 = vunpack.c.l.b16 %v2220_v29  ;;  %v2321_v2 = vrot.slane %v2306_v38, 7  ;;  %v2324_v5 = vrot.slane %v2307_v22, 6 }
 0x16a   : > { %v1315_v7 = vadd.f32 %v3460_v32, %v1196_v10  ;;  %v1854_v62 = vcombine.high %v1846_v60, %v1846_v60  ;;  %v1544_v21 = vadd.f32 %v1525_v14, %v1314_v6  ;;  %v1547_v53 = vadd.f32 %v2801_v56, %v1317_v12 }
 0x16b   : > { %2671 = vst.sshfl [vmem:[%s3535_s9 + $0x2] sm:$0x3 pattern:$0x76325410] %v2349_v18  ;;  %v2323_v30 = vsel %vm2322_vm9, %v2321_v2, %v2305_v51  ;;  %v2327_v16 = vrot.slane %v2308_v41, 5  ;;  %v1855_v54 = vcombine.high %v1853_v13, %v1853_v13  ;;  %v2662_v59 = vrot.slane %v1846_v60, 9 }
 0x16c   : > { %v2326_v45 = vsel %vm2325_vm10, %v2324_v5, %v2323_v30  ;;  %v1545_v11 = vadd.f32 %v1528_v48, %v1315_v7  ;;  %v1702_v39 = vadd.f32 %v1683_v40, %v1544_v21  ;;  %v1705_v63 = vadd.f32 %v2811_v47, %v1547_v53 }
 0x16d   : > { %v2329_v50 = vsel %vm2328_vm11, %v2327_v16, %v2326_v45  ;;  %v2663_v32 = vrot.slane %v1854_v62, 9  ;;  %v2664_v25 = vrot.slane %v1853_v13, 9  ;;  %v2665_v28 = vrot.slane %v1855_v54, 9 }
 0x16e   : > { %v2348_v15 = vpack.c.b16 %v2329_v50, %v2329_v50  ;;  %v1703_v23 = vadd.f32 %v1686_v4, %v1545_v11  ;;  %v1717_v43 = vadd.f32 %v3469_v27, %v1702_v39  ;;  %v1720_v55 = vadd.f32 %v3469_v27, %v1705_v63 }
 0x16f   : > { %v2025_v58 = vmax.f32 %v1846_v60, %v2662_v59  ;;  %v2026_v14 = vmax.f32 %v1854_v62, %v2663_v32  ;;  %v2027_v52 = vmax.f32 %v1853_v13, %v2664_v25  ;;  %v2028_v26 = vmax.f32 %v1855_v54, %v2665_v28 }
 0x170   : > { %2670 = vst.sshfl [vmem:[%s3535_s9] sm:$0x3 pattern:$0x76325410] %v2348_v15  ;;  %v1718_v24 = vadd.f32 %v3469_v27, %v1703_v23  ;;  %v1725_v44 = vmax.f32 %v1717_v43, 0.0  ;;  %v1728_v46 = vmax.f32 %v1720_v55, 0.0 }
 0x172   : > { %v1726_v3 = vmax.f32 %v1718_v24, 0.0  ;;  %v1805_v8 = vcombine.high %v1725_v44, %v1725_v44  ;;  %v1812_v17 = vrot.slane %v1725_v44, %v3471_v35  ;;  %v1856_v49 = vcombine.high %v1728_v46, %v1728_v46 }
 0x173   : > { %v1863_v9 = vrot.slane %v1728_v46, %v3471_v35 }
 0x174   : > { %v1822_v31 = vcombine.high %v1726_v3, %v1726_v3  ;;  %v1829_v19 = vrot.slane %v1726_v3, %v3471_v35  ;;  %v1819_v20 = vrot.slane %v1805_v8, %v3471_v35  ;;  %v1820_v0 = vcombine.high %v1812_v17, %v1812_v17 }
 0x175   : > { %v2654_v27 = vrot.slane %v1812_v17, 9  ;;  %v1870_v61 = vrot.slane %v1856_v49, %v3471_v35  ;;  %v1871_v6 = vcombine.high %v1863_v9, %v1863_v9  ;;  %v2666_v36 = vrot.slane %v1863_v9, 9 }
 0x176   : > { %v1836_v37 = vrot.slane %v1822_v31, %v3471_v35  ;;  %v1837_v33 = vcombine.high %v1829_v19, %v1829_v19  ;;  %v1821_v40 = vcombine.high %v1819_v20, %v1819_v20  ;;  %v2655_v56 = vrot.slane %v1820_v0, 9 }
 0x177   : > { %v2656_v10 = vrot.slane %v1819_v20, 9  ;;  %v2017_v57 = vmax.f32 %v1812_v17, %v2654_v27  ;;  %v1872_v1 = vcombine.high %v1870_v61, %v1870_v61  ;;  %v2667_v60 = vrot.slane %v1871_v6, 9 }
 0x178   : > { %v2668_v34 = vrot.slane %v1870_v61, 9  ;;  %v2029_v29 = vmax.f32 %v1863_v9, %v2666_v36  ;;  %v2657_v38 = vrot.slane %v1821_v40, 9  ;;  %v2018_v22 = vmax.f32 %v1820_v0, %v2655_v56 }
 0x179   : > { %v2019_v12 = vmax.f32 %v1819_v20, %v2656_v10  ;;  %v1838_v42 = vcombine.high %v1836_v37, %v1836_v37  ;;  %v2669_v51 = vrot.slane %v1872_v1, 9  ;;  %v2030_v13 = vmax.f32 %v1871_v6, %v2667_v60 }
 0x17a   : > { %v2031_v18 = vmax.f32 %v1870_v61, %v2668_v34  ;;  %v2045_v41 = vmax.f32 %v2025_v58, %v2029_v29  ;;  %v2020_v2 = vmax.f32 %v1821_v40, %v2657_v38  ;;  %v2658_v5 = vrot.slane %v1829_v19, 9 }
 0x17b   : > { %v2659_v47 = vrot.slane %v1837_v33, 9  ;;  %v2660_v48 = vrot.slane %v1836_v37, 9  ;;  %v2032_v7 = vmax.f32 %v1872_v1, %v2669_v51  ;;  %v2046_v62 = vmax.f32 %v2026_v14, %v2030_v13 }
 0x17c   : > { %v2047_v30 = vmax.f32 %v2027_v52, %v2031_v18  ;;  %v2061_v16 = vpack.c.bf16 %v2045_v41, %v2045_v41  ;;  %v2661_v21 = vrot.slane %v1838_v42, 9  ;;  %v2021_v53 = vmax.f32 %v1829_v19, %v2658_v5 }
 0x17d   : > { %v2022_v45 = vmax.f32 %v1837_v33, %v2659_v47  ;;  %v2023_v54 = vmax.f32 %v1836_v37, %v2660_v48  ;;  %v2048_v11 = vmax.f32 %v2028_v26, %v2032_v7  ;;  %v2062_v50 = vpack.c.bf16 %v2046_v62, %v2046_v62 }
 0x17e   : > { %v2063_v39 = vpack.c.bf16 %v2047_v30, %v2047_v30  ;;  %v2171_v63 = vrot.slane %v2061_v16, %v3471_v35  ;;  %v2024_v4 = vmax.f32 %v1838_v42, %v2661_v21  ;;  %v2041_v15 = vmax.f32 %v2017_v57, %v2021_v53 }
 0x17f   : > { %v2042_v59 = vmax.f32 %v2018_v22, %v2022_v45  ;;  %v2043_v32 = vmax.f32 %v2019_v12, %v2023_v54  ;;  %v2064_v23 = vpack.c.bf16 %v2048_v11, %v2048_v11  ;;  %v2178_v43 = vrot.slane %v2062_v50, %v3471_v35 }
 0x180   : > { %v2185_v55 = vrot.slane %v2063_v39, %v3471_v35  ;;  %v2044_v25 = vmax.f32 %v2020_v2, %v2024_v4  ;;  %v2057_v28 = vpack.c.bf16 %v2041_v15, %v2041_v15  ;;  %v2283_v58 = vrot.slane %v2171_v63, %v3471_v35 }
 0x181   : > { %v2058_v24 = vpack.c.bf16 %v2042_v59, %v2042_v59  ;;  %v2059_v44 = vpack.c.bf16 %v2043_v32, %v2043_v32  ;;  %v2192_v46 = vrot.slane %v2064_v23, %v3471_v35  ;;  %v2290_v14 = vrot.slane %v2178_v43, %v3471_v35 }
 0x182   : > { %v2297_v3 = vrot.slane %v2185_v55, %v3471_v35  ;;  %v2060_v8 = vpack.c.bf16 %v2044_v25, %v2044_v25  ;;  %v2143_v17 = vrot.slane %v2057_v28, %v3471_v35  ;;  %v2317_v61 = vunpack.c.l.b16 %v2283_v58 }
 0x183   : > { %v2150_v49 = vrot.slane %v2058_v24, %v3471_v35  ;;  %v2157_v9 = vrot.slane %v2059_v44, %v3471_v35  ;;  %v2304_v52 = vrot.slane %v2192_v46, %v3471_v35  ;;  %v2318_v26 = vunpack.c.l.b16 %v2290_v14 }
 0x184   : > { %v2319_v31 = vunpack.c.l.b16 %v2297_v3  ;;  %v2164_v19 = vrot.slane %v2060_v8, %v3471_v35  ;;  %v2255_v20 = vrot.slane %v2143_v17, %v3471_v35 }
 0x185   : > { %v2262_v0 = vrot.slane %v2150_v49, %v3471_v35  ;;  %v2269_v27 = vrot.slane %v2157_v9, %v3471_v35  ;;  %v2320_v6 = vunpack.c.l.b16 %v2304_v52  ;;  %v2342_v36 = vrot.slane %v2318_v26, 7 }
 0x186   : > { %v2344_v37 = vrot.slane %v2319_v31, 6  ;;  %v2276_v33 = vrot.slane %v2164_v19, %v3471_v35  ;;  %v2313_v1 = vunpack.c.l.b16 %v2255_v20 }
 0x187   : > { %v2314_v40 = vunpack.c.l.b16 %v2262_v0  ;;  %v2315_v56 = vunpack.c.l.b16 %v2269_v27  ;;  %v2343_v10 = vsel %vm2322_vm9, %v2342_v36, %v2317_v61  ;;  %v2346_v57 = vrot.slane %v2320_v6, 5 }
 0x188   : > { %v2345_v60 = vsel %vm2325_vm10, %v2344_v37, %v2343_v10  ;;  %v2316_v34 = vunpack.c.l.b16 %v2276_v33 }
 0x189   : > { %v2336_v29 = vrot.slane %v2314_v40, 7  ;;  %v2338_v38 = vrot.slane %v2315_v56, 6  ;;  %v2347_v22 = vsel %vm2328_vm11, %v2346_v57, %v2345_v60 }
 0x18a   : > { %v2351_v12 = vpack.c.b16 %v2347_v22, %v2347_v22  ;;  %v2340_v51 = vrot.slane %v2316_v34, 5 }
 0x18b   : > { %v2337_v42 = vsel %vm2322_vm9, %v2336_v29, %v2313_v1 }
 0x18c   : > { %v2339_v35 = vsel %vm2325_vm10, %v2338_v38, %v2337_v42  ;;  %2673 = vst.sshfl [vmem:[%s3535_s9 + $0x6] sm:$0x3 pattern:$0x76325410] %v2351_v12 }
 0x18d   : > { %v2341_v13 = vsel %vm2328_vm11, %v2340_v51, %v2339_v35 }
 0x18e   : > { %v2350_v18 = vpack.c.b16 %v2341_v13, %v2341_v13 }
 0x190   : > { %2672 = vst.sshfl [vmem:[%s3535_s9 + $0x4] sm:$0x3 pattern:$0x76325410] %v2350_v18 }
 0x191 PF: > { %s15_s12 = sadd.s32 1, %s2926_s12  }
 0x192   : > { %p12_p2 = scmp.ge.s32.totalorder %s15_s12, 4  }
 0x194   :  { %14 = sbr.rel (!%p12_p2) target bundleno = 2 (0x2), region = 81 }
 0x199   :  { %2409 = vsyncpa [#allocation3], 1 }
 0x19a   :  { %2411 = vsyncpa [#allocation3 + $0x1], 1 }
 0x19b   :  { %2412 = vsyncpa [#allocation5], 1 }

// kernel: vgg_forward.5
= control target key start
LH: loop header
LB: loop body
LE: loop exit
PB: predicated region body
PF: predicated region fallthrough
CT: control target
= control target key end

     0   :  { %8 = vsyncpa [#allocation3], 0  ;;  %s3386_s0 = inlined_call_operand.vmem [shape: bf16[2,6,6,128], index: 0, kind: input, shape index: {}]   ;;  %s3387_s1 = inlined_call_operand.hbm [shape: bf16[9,128,256], index: 1, kind: input, shape index: {}]   ;;  %s3388_s2 = inlined_call_operand.hbm [shape: f32[1,256], index: 2, kind: input, shape index: {}]   ;;  %s3389_s3 = inlined_call_operand.vmem [shape: bf16[2,2,2,256], index: 3, kind: output, shape index: {}]  }
   0x1   :  { %9 = vsyncpa [#allocation5], 0  ;;  %s3140_s12 = smov 0  }
   0x2 LB: > { %s3146_s13 = sadd.s32 4294967295, %s3110_s12   ;;  %p2551_p0 = scmp.ge.s32.totalorder %s3110_s12, 1  ;;  %s3110_s12 = sphi %s3140_s12, %s15_s12  }
   0x3   : > { %p114_p1 = scmp.lt.s32.totalorder %s3110_s12, 3  ;;  %s3112_s14 = smov [#allocation2]  }
   0x4   : > { %s126_s15 = sshll.u32 %s3112_s14, 4  ;;  %p2796_p3 = scmp.eq.s32.totalorder %s3146_s13, 0  ;;  %s127_s15 = int_to_ptr.vmem [resolvable:$true] %s126_s15 }
   0x5   : > { %p3150_p2 = pnand %p2551_p0, %p114_p1  ;;  %s3113_s17 = smov [#allocation4]  }
   0x6   : > { %s140_s18 = sshll.u32 %s3113_s17, 4  ;;  %s3055_s20 = scalar_lea.vmem %s127_s15, 18432  ;;  %s141_s18 = int_to_ptr.vmem [resolvable:$true] %s140_s18 }
   0x7   : > { %p2789_p4 = pneg %p3150_p2  ;;  %p3056_p7 = scmp.ne.s32.totalorder %s127_s15, %s3055_s20 }
   0x8   : > { %p3063_p10 = scmp.lt.s32.totalorder %s127_s15, %s127_s15  ;;  %p3064_p11 = scmp.lt.s32.totalorder %s3055_s20, %s3055_s20 }
   0x9   : > { %p3159_p5 = pnand %p2796_p3, %p2789_p4 }
   0xa   : > { %p3065_p12 = por %p3064_p11, %p3063_p10 }
   0xb   : > { %p3046_p6 = pneg %p3159_p5 }
   0xd   : > { %p3058_p8 = pnand %p3056_p7, %p3046_p6 }
   0xf   : > { %p3059_p9 = pneg %p3058_p8 }
  0x11   : > { %p3066_p13 = pnand %p3065_p12, %p3059_p9 }
  0x13   : > { %3069 = shalt.err (!%p3066_p13)
}
  0x14   : > { %s3114_s21 = smov 128   ;;  %s3115_s22 = smov 8  }
  0x15   : > { %2792 = dma.hbm_to_vmem [thread:$0]  (!%p3159_p5), %s3387_s1, 18432, %s127_s15, [#allocation3], %s3114_s21, %s3114_s21, %s3115_s22  }
  0x16   : > { %s3081_s25 = scalar_lea.vmem %s141_s18, 32  ;;  %p3089_p7 = scmp.lt.s32.totalorder %s141_s18, %s141_s18 }
  0x17   : > { %p3082_p0 = scmp.ne.s32.totalorder %s141_s18, %s3081_s25  ;;  %p3090_p8 = scmp.lt.s32.totalorder %s3081_s25, %s3081_s25 }
  0x19   : > { %p3084_p1 = pnand %p3082_p0, %p3046_p6  ;;  %p3091_p10 = por %p3090_p8, %p3089_p7 }
  0x1b   : > { %p3085_p4 = pneg %p3084_p1 }
  0x1d   : > { %p3092_p9 = pnand %p3091_p10, %p3085_p4 }
  0x1f   : > { %3095 = shalt.err (!%p3092_p9)
}
  0x20   : > { %2795 = dma.hbm_to_vmem [thread:$0]  (!%p3159_p5), %s3388_s2, 32, %s141_s18, [#allocation5]  }
  0x21   : > { %161 = sbr.rel (%p3150_p2) target bundleno = 445 (0x1bd), region = 32 }
  0x26   : > { %3101 = dma.done.wait (%p2796_p3), [#allocation3], 18432  }
  0x27   : > { %3103 = vsyncadd (%p2796_p3), [#allocation3], 4294948864 }
  0x28   : > { %3105 = dma.done.wait (%p2796_p3), [#allocation5], 32  }
  0x29   : > { %3107 = vsyncadd (%p2796_p3), [#allocation5], 4294967264  ;;  %v3116_v0 = vmov 0   ;;  %v2816_v1 = vld [vmem:[#allocation2 + $0xf4] ss:$8 sps:$4 sm:$0xff]   ;;  %p188_p2 = scmp.lt.s32.totalorder %s3146_s13, 1  ;;  %v343_v24 = vlaneseq }
  0x2a   : > { %468 = vmatprep.mubr.bf16.mxu0 %v3116_v0  ;;  %613 = vmatprep.mubr.bf16.mxu1 %v3116_v0  ;;  %v2818_v2 = vld [vmem:[#allocation2 + $0x74] ss:$8 sps:$4 sm:$0xff]   ;;  %v2820_v3 = vld [vmem:[#allocation2 + $0xf0] ss:$8 sps:$4 sm:$0xff]   ;;  %v2822_v5 = vld [vmem:[#allocation2 + $0xe4] ss:$8 sps:$4 sm:$0xff]  }
  0x2b   : > { %436 = vmatprep.subr.bf16.mxu0 %v2816_v1  ;;  %v2821_v4 = vld [vmem:[#allocation2 + $0x70] ss:$8 sps:$4 sm:$0xff]   ;;  %581 = vmatprep.subr.bf16.mxu1 %v2818_v2  ;;  %v2824_v6 = vld [vmem:[#allocation2 + $0x64] ss:$8 sps:$4 sm:$0xff]   ;;  %v2826_v7 = vld [vmem:[#allocation2 + $0xe0] ss:$8 sps:$4 sm:$0xff]  }
  0x2c   : > { %437 = vmatpush1.bf16.msra.mxu0 %v2820_v3  ;;  %582 = vmatpush1.bf16.msra.mxu1 %v2821_v4  ;;  %v2827_v8 = vld [vmem:[#allocation2 + $0x60] ss:$8 sps:$4 sm:$0xff]   ;;  %v2828_v9 = vld [vmem:[#allocation2 + $0xd4] ss:$8 sps:$4 sm:$0xff]   ;;  %v2832_v11 = vld [vmem:[#allocation2 + $0xd0] ss:$8 sps:$4 sm:$0xff]  }
  0x2d   : > { %438 = vmatprep.subr.bf16.mxu0 %v2822_v5  ;;  %583 = vmatprep.subr.bf16.mxu1 %v2824_v6  ;;  %v2830_v10 = vld [vmem:[#allocation2 + $0x54] ss:$8 sps:$4 sm:$0xff]   ;;  %v2833_v12 = vld [vmem:[#allocation2 + $0x50] ss:$8 sps:$4 sm:$0xff]   ;;  %v2834_v13 = vld [vmem:[#allocation2 + $0xc4] ss:$8 sps:$4 sm:$0xff]  }
  0x2e   : > { %v2836_v14 = vld [vmem:[#allocation2 + $0x44] ss:$8 sps:$4 sm:$0xff]   ;;  %s3405_s13 = smov (!%p188_p2, %s3146_s13), 1  ;;  %v2838_v15 = vld [vmem:[#allocation2 + $0xc0] ss:$8 sps:$4 sm:$0xff]   ;;  %v3203_v30 = vshrl.u32 %v343_v24, 7 }
  0x2f   : > { %v2839_v16 = vld [vmem:[#allocation2 + $0x40] ss:$8 sps:$4 sm:$0xff]   ;;  %v2840_v17 = vld [vmem:[#allocation2 + $0xb4] ss:$8 sps:$4 sm:$0xff]   ;;  %s2780_s28 = smul.u32 24, %s3405_s13  ;;  %vm664_vm7 = vcmask 1040384  }
  0x30   : > { %439 = vmatpush1.bf16.msra.mxu0 %v2826_v7  ;;  %584 = vmatpush1.bf16.msra.mxu1 %v2827_v8  ;;  %v2842_v18 = vld [vmem:[#allocation2 + $0x34] ss:$8 sps:$4 sm:$0xff]   ;;  %v2844_v19 = vld [vmem:[#allocation2 + $0xb0] ss:$8 sps:$4 sm:$0xff]   ;;  %v2846_v21 = vld [vmem:[#allocation2 + $0xa4] ss:$8 sps:$4 sm:$0xff]  }
  0x31   : > { %440 = vmatprep.subr.bf16.mxu0 %v2828_v9  ;;  %585 = vmatprep.subr.bf16.mxu1 %v2830_v10  ;;  %v2845_v20 = vld [vmem:[#allocation2 + $0x30] ss:$8 sps:$4 sm:$0xff]   ;;  %v3117_v22 = vmov 1983009808   ;;  %v2848_v25 = vld [vmem:[#allocation2 + $0x24] ss:$8 sps:$4 sm:$0xff]   ;;  %s3201_s4 = scalar_lea.vmem %s3386_s0, %s2780_s28 }
  0x32   : > { %v341_v23 = vunpack.c.l.s4 %v3117_v22  ;;  %vm258_vm0 = vsmask.f32 1280  ;;  %vm259_vm1 = vsmask.f32 3336  ;;  %vm261_vm2 = vsmask.f32 5392 }
  0x33   : > { %v2850_v26 = vld [vmem:[#allocation2 + $0xa0] ss:$8 sps:$4 sm:$0xff]   ;;  %vm263_vm3 = vsmask.f32 7448  ;;  %v2852_v28 = vld [vmem:[#allocation2 + $0x94] ss:$8 sps:$4 sm:$0xff]   ;;  %vm3209_vm4 = vmor %vm258_vm0, %vm259_vm1 }
  0x34   : > { %441 = vmatpush1.bf16.msra.mxu0 %v2832_v11  ;;  %586 = vmatpush1.bf16.msra.mxu1 %v2833_v12  ;;  %v2851_v27 = vld [vmem:[#allocation2 + $0x20] ss:$8 sps:$4 sm:$0xff]   ;;  %v342_v29 = vunpack.c.0.s8 %v341_v23  ;;  %v2854_v31 = vld [vmem:[#allocation2 + $0x14] ss:$8 sps:$4 sm:$0xff]   ;;  %v2856_v33 = vld [vmem:[#allocation2 + $0x90] ss:$8 sps:$4 sm:$0xff]  }
  0x35   : > { %442 = vmatprep.subr.bf16.mxu0 %v2834_v13  ;;  %587 = vmatprep.subr.bf16.mxu1 %v2836_v14  ;;  %v2560_v32 = vld.sshfl [vmem:[%s3201_s4] sm:$0x13 pattern:$0x76325410]  ;;  %v2857_v34 = vld [vmem:[#allocation2 + $0x10] ss:$8 sps:$4 sm:$0xff]   ;;  %vm3221_vm5 = vmor %vm3209_vm4, %vm261_vm2 }
  0x36   : > { %v2561_v35 = vld.sshfl [vmem:[%s3201_s4 + $0x4] sm:$0x13 pattern:$0x76325410]  ;;  %v233_v36 = vcombine.high %v2560_v32, %v2560_v32  ;;  %v266_v38 = vshrl.u32 %v2560_v32, 16  ;;  %v269_v39 = vshll.u32 %v2560_v32, 16  ;;  %v3216_v50 = vsub.s32 %v342_v29, %v3203_v30  ;;  %vm3228_vm6 = vmor %vm3221_vm5, %vm263_vm3 }
  0x37   : > { %v2858_v40 = vld [vmem:[#allocation2 + $0x84] ss:$8 sps:$4 sm:$0xff]   ;;  %v2562_v42 = vld.sshfl [vmem:[%s3201_s4 + $0x8] sm:$0x13 pattern:$0x76325410]  ;;  %v241_v43 = vcombine.high %v2561_v35, %v2561_v35 }
  0x38   : > { %443 = vmatpush1.bf16.msra.mxu0 %v2838_v15  ;;  %588 = vmatpush1.bf16.msra.mxu1 %v2839_v16  ;;  %v2860_v41 = vld [vmem:[#allocation2 + $0x4] ss:$8 sps:$4 sm:$0xff]   ;;  %v280_v44 = vshrl.u32 %v2561_v35, 16  ;;  %v283_v45 = vshll.u32 %v2561_v35, 16  ;;  %v249_v47 = vcombine.high %v2562_v42, %v2562_v42  ;;  %v268_v48 = vrot.slane %v266_v38, 6  ;;  %s2559_s5 = sshll.u32 %s3405_s13, 2 }
  0x39   : > { %444 = vmatprep.subr.bf16.mxu0 %v2840_v17  ;;  %589 = vmatprep.subr.bf16.mxu1 %v2842_v18  ;;  %v2563_v46 = vld.sshfl [vmem:[%s3201_s4 + $0xc] sm:$0x13 pattern:$0x76325410]  ;;  %v271_v49 = vrot.slane %v269_v39, 7  ;;  %v275_v53 = vshll.u32 %v233_v36, 16  ;;  %s196_s8 = scalar_lea.vmem %s3389_s3, %s2559_s5 }
  0x3a   : > { %v257_v51 = vcombine.high %v2563_v46, %v2563_v46  ;;  %v282_v54 = vrot.slane %v280_v44, 6  ;;  %v285_v55 = vrot.slane %v283_v45, 7  ;;  %v2862_v56 = vld [vmem:[#allocation2 + $0x80] ss:$8 sps:$4 sm:$0xff]   ;;  %v289_v59 = vshll.u32 %v241_v43, 16 }
  0x3b   : > { %v2863_v57 = vld [vmem:[#allocation2] ss:$8 sps:$4 sm:$0xff]   ;;  %v272_v58 = vor.u32 %v271_v49, %v268_v48  ;;  %v294_v60 = vshrl.u32 %v2562_v42, 16  ;;  %v297_v61 = vshll.u32 %v2562_v42, 16  ;;  %v277_v62 = vrot.slane %v275_v53, 7 }
  0x3c   : > { %445 = vmatpush1.bf16.msra.mxu0 %v2844_v19  ;;  %590 = vmatpush1.bf16.msra.mxu1 %v2845_v20  ;;  %v286_v63 = vor.u32 %v285_v55, %v282_v54  ;;  %v303_v1 = vshll.u32 %v249_v47, 16  ;;  %v308_v2 = vshrl.u32 %v2563_v46, 16  ;;  %v291_v5 = vrot.slane %v289_v59, 7  ;;  %v2868_v19 = vld [vmem:[#allocation2 + $0x174] ss:$8 sps:$4 sm:$0xff]  }
  0x3d   : > { %446 = vmatprep.subr.bf16.mxu0 %v2846_v21  ;;  %591 = vmatprep.subr.bf16.mxu1 %v2848_v25  ;;  %v273_v4 = vrot.slane %v272_v58, 2  ;;  %v296_v6 = vrot.slane %v294_v60, 6  ;;  %v299_v7 = vrot.slane %v297_v61, 7  ;;  %v311_v10 = vshll.u32 %v2563_v46, 16  ;;  %v2871_v21 = vld [vmem:[#allocation2 + $0x1f4] ss:$8 sps:$4 sm:$0xff]  }
  0x3e   : > { %v287_v8 = vrot.slane %v286_v63, 2  ;;  %v310_v9 = vrot.slane %v308_v2, 6  ;;  %v3038_v11 = vld.sshfl [vmem:[%s3201_s4] sm:$0xf pattern:$0x76325410] }
  0x3f   : > { %v300_v12 = vor.u32 %v299_v7, %v296_v6  ;;  %v305_v13 = vrot.slane %v303_v1, 7  ;;  %v317_v14 = vshll.u32 %v257_v51, 16  ;;  %v3039_v15 = vld.sshfl [vmem:[%s3201_s4 + $0x8] sm:$0xf pattern:$0x76325410]  ;;  %v278_v16 = vsel %vm3228_vm6, %v273_v4, %v277_v62 }
  0x40   : > { %447 = vmatpush1.bf16.msra.mxu0 %v2850_v26  ;;  %592 = vmatpush1.bf16.msra.mxu1 %v2851_v27  ;;  %v3238_v17 = vsel %vm3228_vm6, %v287_v8, %v291_v5  ;;  %v313_v18 = vrot.slane %v311_v10, 7  ;;  %v2869_v24 = vld [vmem:[#allocation2 + $0x1f0] ss:$8 sps:$4 sm:$0xff]   ;;  %v499_v27 = vcombine.low %v3038_v11, %v3039_v15  ;;  %v2883_v36 = vld [vmem:[#allocation2 + $0x1d4] ss:$8 sps:$4 sm:$0xff]   ;;  %vm665_vm8 = vcmask 1042434  }
  0x41   : > { %448 = vmatprep.subr.bf16.mxu0 %v2852_v28  ;;  %593 = vmatprep.subr.bf16.mxu1 %v2854_v31  ;;  %v301_v20 = vrot.slane %v300_v12, 2  ;;  %v319_v23 = vrot.slane %v317_v14, 7  ;;  %v338_v26 = vcombine.low %v278_v16, %v3238_v17  ;;  %v2877_v28 = vld [vmem:[#allocation2 + $0x1e4] ss:$8 sps:$4 sm:$0xff]   ;;  %v2866_v38 = vld [vmem:[#allocation2 + $0x170] ss:$8 sps:$4 sm:$0xff]   ;;  %vm3260_vm9 = vmor %vm664_vm7, %vm665_vm8 }
  0x42   : > { %v314_v22 = vor.u32 %v313_v18, %v310_v9  ;;  %v2881_v39 = vld [vmem:[#allocation2 + $0x1d0] ss:$8 sps:$4 sm:$0xff]   ;;  %v2889_v42 = vld [vmem:[#allocation2 + $0x1c4] ss:$8 sps:$4 sm:$0xff]   ;;  %v2872_v43 = vld [vmem:[#allocation2 + $0x160] ss:$8 sps:$4 sm:$0xff]  }
  0x43   : > { %v3242_v25 = vsel %vm3228_vm6, %v301_v20, %v305_v13  ;;  %v346_v35 = vrot.slane %v338_v26, %v3216_v50  ;;  %v2887_v44 = vld [vmem:[#allocation2 + $0x1c0] ss:$8 sps:$4 sm:$0xff]   ;;  %v2880_v45 = vld [vmem:[#allocation2 + $0x154] ss:$8 sps:$4 sm:$0xff]   ;;  %v2878_v48 = vld [vmem:[#allocation2 + $0x150] ss:$8 sps:$4 sm:$0xff]  }
  0x44   : > { %449 = vmatpush1.bf16.msra.mxu0 %v2856_v33  ;;  %594 = vmatpush1.bf16.msra.mxu1 %v2857_v34  ;;  %v315_v29 = vrot.slane %v314_v22, 2  ;;  %v1133_v31 = vcombine.low %v3238_v17, %v3242_v25  ;;  %v2875_v33 = vld [vmem:[#allocation2 + $0x1e0] ss:$8 sps:$4 sm:$0xff]   ;;  %v2895_v46 = vld [vmem:[#allocation2 + $0x1b4] ss:$8 sps:$4 sm:$0xff]   ;;  %vm667_vm10 = vcmask 1044484  }
  0x45   : > { %450 = vmatprep.subr.bf16.mxu0 %v2858_v40  ;;  %595 = vmatprep.subr.bf16.mxu1 %v2860_v41  ;;  %v2874_v41 = vld [vmem:[#allocation2 + $0x164] ss:$8 sps:$4 sm:$0xff]   ;;  %v2893_v49 = vld [vmem:[#allocation2 + $0x1b0] ss:$8 sps:$4 sm:$0xff]   ;;  %v2884_v53 = vld [vmem:[#allocation2 + $0x140] ss:$8 sps:$4 sm:$0xff]  }
  0x46   : > { %v3249_v32 = vsel %vm3228_vm6, %v315_v29, %v319_v23  ;;  %v2886_v51 = vld [vmem:[#allocation2 + $0x144] ss:$8 sps:$4 sm:$0xff]   ;;  %v2899_v54 = vld [vmem:[#allocation2 + $0x1a0] ss:$8 sps:$4 sm:$0xff]   ;;  %vm3268_vm11 = vmor %vm3260_vm9, %vm667_vm10  ;;  %vm669_vm12 = vcmask 1046534   ;;  %vm2432_vm14 = vcmask 1041409  }
  0x47   : > { %v339_v34 = vcombine.low %v3242_v25, %v3249_v32  ;;  %v2901_v52 = vld [vmem:[#allocation2 + $0x1a4] ss:$8 sps:$4 sm:$0xff]   ;;  %v2596_v55 = vld.sshfl [vmem:[%s3201_s4] sm:$0x12 pattern:$0x76325410]  ;;  %vm3277_vm13 = vmor %vm3268_vm11, %vm669_vm12 }
  0x48   : > { %451 = vmatpush1.bf16.msra.mxu0 %v2862_v56  ;;  %596 = vmatpush1.bf16.msra.mxu1 %v2863_v57  ;;  %v2892_v56 = vld [vmem:[#allocation2 + $0x134] ss:$8 sps:$4 sm:$0xff]   ;;  %v2597_v58 = vld.sshfl [vmem:[%s3201_s4 + $0x4] sm:$0x12 pattern:$0x76325410]  ;;  %v639_v59 = vcombine.high %v2596_v55, %v2596_v55 }
  0x49   : > { %802 = vmatprep.subr.bf16.mxu0 %v2868_v19  ;;  %973 = vmatprep.subr.bf16.mxu1 %v2871_v21  ;;  %v3256_v37 = vrot.slane %v339_v34, %v3216_v50  ;;  %v2907_v57 = vld [vmem:[#allocation2 + $0x194] ss:$8 sps:$4 sm:$0xff]   ;;  %v2598_v61 = vld.sshfl [vmem:[%s3201_s4 + $0x8] sm:$0x12 pattern:$0x76325410]  ;;  %v647_v62 = vcombine.high %v2597_v58, %v2597_v58 }
  0x4a   : > { %v2600_v63 = vrot.slane %v2596_v55, 9  ;;  %v2599_v1 = vld.sshfl [vmem:[%s3201_s4 + $0xc] sm:$0x12 pattern:$0x76325410]  ;;  %v655_v2 = vcombine.high %v2598_v61, %v2598_v61  ;;  %v673_v4 = vrot.slane %v639_v59, 7 }
  0x4b   : > { %614 = vmatmul.mubr.bf16.vlgmr.msra.gmra.mxu1 %v499_v27  ;;  %v354_v40 = vcombine.low %v346_v35, %v3256_v37  ;;  %v2601_v5 = vrot.slane %v2597_v58, 9  ;;  %v2890_v6 = vld [vmem:[#allocation2 + $0x130] ss:$8 sps:$4 sm:$0xff]   ;;  %v663_v8 = vcombine.high %v2599_v1, %v2599_v1  ;;  %v677_v10 = vrot.slane %v647_v62, 7  ;;  %v2898_v13 = vld [vmem:[#allocation2 + $0x124] ss:$8 sps:$4 sm:$0xff]  }
  0x4c   : > { %974 = vmatpush1.bf16.msra.mxu1 %v2869_v24  ;;  %1005 = vmatprep.mubr.bf16.mxu1 %v3116_v0  ;;  %v2905_v7 = vld [vmem:[#allocation2 + $0x190] ss:$8 sps:$4 sm:$0xff]   ;;  %v2602_v11 = vrot.slane %v2598_v61, 9  ;;  %v2603_v12 = vrot.slane %v2599_v1, 9  ;;  %v681_v14 = vrot.slane %v655_v2, 7  ;;  %v674_v22 = vsel %vm3277_vm13, %v2600_v63, %v673_v4 }
  0x4d   : > { %975 = vmatprep.subr.bf16.mxu1 %v2877_v28  ;;  %469 = vmatmul.mubr.bf16.vlgmr.msra.gmra.mxu0 %v354_v40  ;;  %v685_v15 = vrot.slane %v663_v8, 7  ;;  %v2913_v16 = vld [vmem:[#allocation2 + $0x184] ss:$8 sps:$4 sm:$0xff]   ;;  %v2896_v20 = vld [vmem:[#allocation2 + $0x120] ss:$8 sps:$4 sm:$0xff]   ;;  %v3287_v24 = vsel %vm3277_vm13, %v2601_v5, %v677_v10 }
  0x4e   : > { %803 = vmatpush1.bf16.msra.mxu0 %v2866_v38  ;;  %834 = vmatprep.mubr.bf16.mxu0 %v3116_v0  ;;  %v3040_v18 = vld.sshfl [vmem:[%s3201_s4 + $0x4] sm:$0xf pattern:$0x76325410]  ;;  %v2904_v21 = vld [vmem:[#allocation2 + $0x114] ss:$8 sps:$4 sm:$0xff]   ;;  %v3291_v26 = vsel %vm3277_vm13, %v2602_v11, %v681_v14  ;;  %v704_v34 = vcombine.low %v674_v22, %v3287_v24 }
  0x4f   : > { %804 = vmatprep.subr.bf16.mxu0 %v2874_v41  ;;  %v3041_v19 = vld.sshfl [vmem:[%s3201_s4 + $0xc] sm:$0xf pattern:$0x76325410]  ;;  %v2911_v23 = vld [vmem:[#allocation2 + $0x180] ss:$8 sps:$4 sm:$0xff]   ;;  %v3295_v27 = vsel %vm3277_vm13, %v2603_v12, %v685_v15 }
  0x50   : > { %976 = vmatpush1.bf16.msra.mxu1 %v2875_v33  ;;  %v2921_v28 = vld [vmem:[#allocation2 + $0x2f4] ss:$8 sps:$4 sm:$0xff]   ;;  %v2902_v29 = vld [vmem:[#allocation2 + $0x110] ss:$8 sps:$4 sm:$0xff]   ;;  %v2910_v33 = vld [vmem:[#allocation2 + $0x104] ss:$8 sps:$4 sm:$0xff]   ;;  %v705_v35 = vcombine.low %v3291_v26, %v3295_v27  ;;  %v712_v41 = vrot.slane %v704_v34, %v3216_v50 }
  0x51   : > { %977 = vmatprep.subr.bf16.mxu1 %v2883_v36  ;;  %v891_v36 = vcombine.low %v3040_v18, %v3041_v19  ;;  %v2919_v38 = vld [vmem:[#allocation2 + $0x2f0] ss:$8 sps:$4 sm:$0xff]   ;;  %v2908_v40 = vld [vmem:[#allocation2 + $0x100] ss:$8 sps:$4 sm:$0xff]   ;;  %v2930_v55 = vld [vmem:[#allocation2 + $0x254] ss:$8 sps:$4 sm:$0xff]  }
  0x52   : > { %805 = vmatpush1.bf16.msra.mxu0 %v2872_v43  ;;  %v2916_v43 = vld [vmem:[#allocation2 + $0x274] ss:$8 sps:$4 sm:$0xff]   ;;  %v2914_v47 = vld [vmem:[#allocation2 + $0x270] ss:$8 sps:$4 sm:$0xff]   ;;  %v2936_v4 = vld [vmem:[#allocation2 + $0x244] ss:$8 sps:$4 sm:$0xff]  }
  0x53   : > { %806 = vmatprep.subr.bf16.mxu0 %v2880_v45  ;;  %v2933_v45 = vld [vmem:[#allocation2 + $0x2d4] ss:$8 sps:$4 sm:$0xff]   ;;  %v2671_v60 = vld.sshfl [vmem:[%s3201_s4 + $0x10] sm:$0x12 pattern:$0x76325410] }
  0x54   : > { %978 = vmatpush1.bf16.msra.mxu1 %v2881_v39  ;;  %v2927_v39 = vld [vmem:[#allocation2 + $0x2e4] ss:$8 sps:$4 sm:$0xff]   ;;  %v2928_v61 = vld [vmem:[#allocation2 + $0x250] ss:$8 sps:$4 sm:$0xff]   ;;  %v1317_v2 = vcombine.high %v2671_v60, %v2671_v60  ;;  %v2934_v12 = vld [vmem:[#allocation2 + $0x240] ss:$8 sps:$4 sm:$0xff]  }
  0x55   : > { %979 = vmatprep.subr.bf16.mxu1 %v2889_v42  ;;  %v3302_v42 = vrot.slane %v705_v35, %v3216_v50  ;;  %v2943_v5 = vld [vmem:[#allocation2 + $0x2b0] ss:$8 sps:$4 sm:$0xff]   ;;  %v2949_v15 = vld [vmem:[#allocation2 + $0x2a0] ss:$8 sps:$4 sm:$0xff]   ;;  %v2957_v18 = vld [vmem:[#allocation2 + $0x294] ss:$8 sps:$4 sm:$0xff]  }
  0x56   : > { %807 = vmatpush1.bf16.msra.mxu0 %v2878_v48  ;;  %v2924_v48 = vld [vmem:[#allocation2 + $0x264] ss:$8 sps:$4 sm:$0xff]   ;;  %v1332_v11 = vrot.slane %v1317_v2, 7  ;;  %v2940_v22 = vld [vmem:[#allocation2 + $0x230] ss:$8 sps:$4 sm:$0xff]  }
  0x57   : > { %808 = vmatprep.subr.bf16.mxu0 %v2886_v51  ;;  %v2939_v51 = vld [vmem:[#allocation2 + $0x2c4] ss:$8 sps:$4 sm:$0xff]   ;;  %v2954_v17 = vld [vmem:[#allocation2 + $0x214] ss:$8 sps:$4 sm:$0xff]   ;;  %v2991_v2 = vld [vmem:[#allocation2 + $0x3b0] ss:$8 sps:$4 sm:$0xff]  }
  0x58   : > { %980 = vmatpush1.bf16.msra.mxu1 %v2887_v44  ;;  %v2925_v44 = vld [vmem:[#allocation2 + $0x2e0] ss:$8 sps:$4 sm:$0xff]  }
  0x59   : > { %981 = vmatprep.subr.bf16.mxu1 %v2895_v46  ;;  %v720_v46 = vcombine.low %v712_v41, %v3302_v42  ;;  %v2975_v41 = vld [vmem:[#allocation2 + $0x3e4] ss:$8 sps:$4 sm:$0xff]  }
  0x5a   : > { %809 = vmatpush1.bf16.msra.mxu0 %v2884_v53  ;;  %v2937_v53 = vld [vmem:[#allocation2 + $0x2c0] ss:$8 sps:$4 sm:$0xff]  }
  0x5b   : > { %810 = vmatprep.subr.bf16.mxu0 %v2892_v56  ;;  %v2945_v56 = vld [vmem:[#allocation2 + $0x2b4] ss:$8 sps:$4 sm:$0xff]  }
  0x5c   : > { %982 = vmatpush1.bf16.msra.mxu1 %v2893_v49  ;;  %v2931_v49 = vld [vmem:[#allocation2 + $0x2d0] ss:$8 sps:$4 sm:$0xff]  }
  0x5d   : > { %983 = vmatprep.subr.bf16.mxu1 %v2901_v52  ;;  %v2922_v52 = vld [vmem:[#allocation2 + $0x260] ss:$8 sps:$4 sm:$0xff]  }
  0x5e   : > { %811 = vmatpush1.bf16.msra.mxu0 %v2890_v6  ;;  %v2675_v6 = vrot.slane %v2671_v60, 9 }
  0x5f   : > { %812 = vmatprep.subr.bf16.mxu0 %v2898_v13  ;;  %v2942_v13 = vld [vmem:[#allocation2 + $0x234] ss:$8 sps:$4 sm:$0xff]  }
  0x60   : > { %984 = vmatpush1.bf16.msra.mxu1 %v2899_v54  ;;  %v2647_v54 = vld.sshfl [vmem:[%s3201_s4 + $0x10] sm:$0x13 pattern:$0x76325410] }
  0x61   : > { %985 = vmatprep.subr.bf16.mxu1 %v2907_v57  ;;  %v1059_v57 = vcombine.high %v2647_v54, %v2647_v54  ;;  %v1103_v58 = vshrl.u32 %v2647_v54, 16  ;;  %v1106_v59 = vshll.u32 %v2647_v54, 16 }
  0x62   : > { %813 = vmatpush1.bf16.msra.mxu0 %v2896_v20 }
  0x63   : > { %814 = vmatprep.subr.bf16.mxu0 %v2904_v21  ;;  %v1105_v62 = vrot.slane %v1103_v58, 6  ;;  %v1108_v63 = vrot.slane %v1106_v59, 7  ;;  %v1112_v1 = vshll.u32 %v1059_v57, 16  ;;  %v1141_v21 = vrot.slane %v1133_v31, %v3216_v50  ;;  %v2970_v58 = vld [vmem:[#allocation2 + $0x360] ss:$8 sps:$4 sm:$0xff]  }
  0x64   : > { %986 = vmatpush1.bf16.msra.mxu1 %v2905_v7  ;;  %v2951_v7 = vld [vmem:[#allocation2 + $0x2a4] ss:$8 sps:$4 sm:$0xff]   ;;  %v2985_v59 = vld [vmem:[#allocation2 + $0x3c0] ss:$8 sps:$4 sm:$0xff]  }
  0x65   : > { %987 = vmatprep.subr.bf16.mxu1 %v2913_v16  ;;  %v1109_v8 = vor.u32 %v1108_v63, %v1105_v62  ;;  %v1114_v10 = vrot.slane %v1112_v1, 7  ;;  %v3311_v16 = vsel %vm3277_vm13, %v2675_v6, %v1332_v11  ;;  %v2978_v62 = vld [vmem:[#allocation2 + $0x354] ss:$8 sps:$4 sm:$0xff]   ;;  %v2976_v1 = vld [vmem:[#allocation2 + $0x350] ss:$8 sps:$4 sm:$0xff]  }
  0x66   : > { %815 = vmatpush1.bf16.msra.mxu0 %v2902_v29  ;;  %v1352_v29 = vcombine.low %v3295_v27, %v3311_v16  ;;  %v2952_v27 = vld [vmem:[#allocation2 + $0x210] ss:$8 sps:$4 sm:$0xff]   ;;  %v2993_v63 = vld [vmem:[#allocation2 + $0x3b4] ss:$8 sps:$4 sm:$0xff]  }
  0x67   : > { %816 = vmatprep.subr.bf16.mxu0 %v2910_v33  ;;  %v1110_v14 = vrot.slane %v1109_v8, 2  ;;  %v2955_v33 = vld [vmem:[#allocation2 + $0x290] ss:$8 sps:$4 sm:$0xff]   ;;  %v2999_v8 = vld [vmem:[#allocation2 + $0x3a4] ss:$8 sps:$4 sm:$0xff]  }
  0x68   : > { %988 = vmatpush1.bf16.msra.mxu1 %v2911_v23  ;;  %v2948_v23 = vld [vmem:[#allocation2 + $0x224] ss:$8 sps:$4 sm:$0xff]   ;;  %v1366_v31 = vrot.slane %v1352_v29, %v3216_v50  ;;  %v2743_v6 = vld.sshfl [vmem:[%s3201_s4 + $0x14] sm:$0x12 pattern:$0x76325410] }
  0x69   : > { %1449 = vmatprep.subr.bf16.mxu1 %v2921_v28  ;;  %v3315_v19 = vsel %vm3228_vm6, %v1110_v14, %v1114_v10  ;;  %v1351_v28 = vcombine.low %v3287_v24, %v3291_v26  ;;  %v2961_v24 = vld [vmem:[#allocation2 + $0x280] ss:$8 sps:$4 sm:$0xff]   ;;  %v2969_v26 = vld [vmem:[#allocation2 + $0x3f4] ss:$8 sps:$4 sm:$0xff]   ;;  %v1964_v10 = vcombine.high %v2743_v6, %v2743_v6  ;;  %v2747_v11 = vrot.slane %v2743_v6, 9 }
  0x6a   : > { %817 = vmatpush1.bf16.msra.mxu0 %v2908_v40  ;;  %v1134_v20 = vcombine.low %v3249_v32, %v3315_v19  ;;  %v2963_v32 = vld [vmem:[#allocation2 + $0x284] ss:$8 sps:$4 sm:$0xff]   ;;  %v2967_v40 = vld [vmem:[#allocation2 + $0x3f0] ss:$8 sps:$4 sm:$0xff]   ;;  %v2997_v14 = vld [vmem:[#allocation2 + $0x3a0] ss:$8 sps:$4 sm:$0xff]  }
  0x6b   : > { %1006 = vmatmul.mubr.bf16.vlgmr.msra.gmra.mxu1 %v891_v36  ;;  %1231 = vmatprep.subr.bf16.mxu0 %v2916_v43  ;;  %v2946_v36 = vld [vmem:[#allocation2 + $0x220] ss:$8 sps:$4 sm:$0xff]   ;;  %v1359_v25 = vrot.slane %v1351_v28, %v3216_v50  ;;  %v2988_v28 = vld [vmem:[#allocation2 + $0x330] ss:$8 sps:$4 sm:$0xff]  }
  0x6c   : > { %1450 = vmatpush1.bf16.msra.mxu1 %v2919_v38  ;;  %1481 = vmatprep.mubr.bf16.mxu1 %v3116_v0  ;;  %v1148_v34 = vrot.slane %v1134_v20, %v3216_v50  ;;  %v2960_v38 = vld [vmem:[#allocation2 + $0x204] ss:$8 sps:$4 sm:$0xff]   ;;  %v2958_v43 = vld [vmem:[#allocation2 + $0x200] ss:$8 sps:$4 sm:$0xff]   ;;  %v3005_v20 = vld [vmem:[#allocation2 + $0x394] ss:$8 sps:$4 sm:$0xff]  }
  0x6d   : > { %1451 = vmatprep.subr.bf16.mxu1 %v2927_v39  ;;  %835 = vmatmul.mubr.bf16.vlgmr.msra.gmra.mxu0 %v720_v46  ;;  %v1367_v39 = vcombine.low %v1359_v25, %v1366_v31  ;;  %v2981_v46 = vld [vmem:[#allocation2 + $0x3d4] ss:$8 sps:$4 sm:$0xff]   ;;  %v3003_v29 = vld [vmem:[#allocation2 + $0x390] ss:$8 sps:$4 sm:$0xff]  }
  0x6e   : > { %1232 = vmatpush1.bf16.msra.mxu0 %v2914_v47  ;;  %1263 = vmatprep.mubr.bf16.mxu0 %v3116_v0  ;;  %v1149_v35 = vcombine.low %v1141_v21, %v1148_v34  ;;  %v2719_v47 = vld.sshfl [vmem:[%s3201_s4 + $0x14] sm:$0x13 pattern:$0x76325410]  ;;  %v3011_v34 = vld [vmem:[#allocation2 + $0x384] ss:$8 sps:$4 sm:$0xff]  }
  0x6f   : > { %1233 = vmatprep.subr.bf16.mxu0 %v2924_v48  ;;  %v2964_v48 = vld [vmem:[#allocation2 + $0x370] ss:$8 sps:$4 sm:$0xff]   ;;  %v1706_v54 = vcombine.high %v2719_v47, %v2719_v47 }
  0x70   : > { %1452 = vmatpush1.bf16.msra.mxu1 %v2925_v44  ;;  %v2973_v44 = vld [vmem:[#allocation2 + $0x3e0] ss:$8 sps:$4 sm:$0xff]   ;;  %v3000_v31 = vld [vmem:[#allocation2 + $0x310] ss:$8 sps:$4 sm:$0xff]  }
  0x71   : > { %1453 = vmatprep.subr.bf16.mxu1 %v2933_v45  ;;  %v2966_v45 = vld [vmem:[#allocation2 + $0x374] ss:$8 sps:$4 sm:$0xff]  }
  0x72   : > { %1234 = vmatpush1.bf16.msra.mxu0 %v2922_v52  ;;  %v1753_v52 = vshll.u32 %v2719_v47, 16 }
  0x73   : > { %1235 = vmatprep.subr.bf16.mxu0 %v2930_v55  ;;  %v2987_v55 = vld [vmem:[#allocation2 + $0x3c4] ss:$8 sps:$4 sm:$0xff]  }
  0x74   : > { %1454 = vmatpush1.bf16.msra.mxu1 %v2931_v49  ;;  %v2972_v49 = vld [vmem:[#allocation2 + $0x364] ss:$8 sps:$4 sm:$0xff]   ;;  %v1755_v57 = vrot.slane %v1753_v52, 7  ;;  %v3035_v52 = vld [vmem:[#allocation2 + $0x400] ss:$8 sps:$4 sm:$0xff]  }
  0x75   : > { %1455 = vmatprep.subr.bf16.mxu1 %v2939_v51  ;;  %v1750_v51 = vshrl.u32 %v2719_v47, 16  ;;  %v3031_v47 = vld [vmem:[#allocation2 + $0x424] ss:$8 sps:$4 sm:$0xff]  }
  0x76   : > { %1236 = vmatpush1.bf16.msra.mxu0 %v2928_v61  ;;  %v1759_v61 = vshll.u32 %v1706_v54, 16 }
  0x77   : > { %1237 = vmatprep.subr.bf16.mxu0 %v2936_v4 }
  0x78   : > { %1456 = vmatpush1.bf16.msra.mxu1 %v2937_v53  ;;  %v2979_v53 = vld [vmem:[#allocation2 + $0x3d0] ss:$8 sps:$4 sm:$0xff]  }
  0x79   : > { %1457 = vmatprep.subr.bf16.mxu1 %v2945_v56  ;;  %v1752_v56 = vrot.slane %v1750_v51, 6  ;;  %v3037_v51 = vld [vmem:[#allocation2 + $0x404] ss:$8 sps:$4 sm:$0xff]  }
  0x7a   : > { %1238 = vmatpush1.bf16.msra.mxu0 %v2934_v12  ;;  %v1979_v12 = vrot.slane %v1964_v10, 7 }
  0x7b   : > { %1239 = vmatprep.subr.bf16.mxu0 %v2942_v13  ;;  %v1756_v60 = vor.u32 %v1755_v57, %v1752_v56  ;;  %v2982_v13 = vld [vmem:[#allocation2 + $0x340] ss:$8 sps:$4 sm:$0xff]  }
  0x7c   : > { %1458 = vmatpush1.bf16.msra.mxu1 %v2943_v5  ;;  %v1761_v5 = vrot.slane %v1759_v61, 7  ;;  %v1980_v21 = vsel %vm3277_vm13, %v2747_v11, %v1979_v12 }
  0x7d   : > { %1459 = vmatprep.subr.bf16.mxu1 %v2951_v7  ;;  %v1757_v4 = vrot.slane %v1756_v60, 2  ;;  %v2984_v7 = vld [vmem:[#allocation2 + $0x344] ss:$8 sps:$4 sm:$0xff]  }
  0x7e   : > { %1240 = vmatpush1.bf16.msra.mxu0 %v2940_v22  ;;  %v1999_v22 = vcombine.low %v3311_v16, %v1980_v21  ;;  %v2994_v16 = vld [vmem:[#allocation2 + $0x320] ss:$8 sps:$4 sm:$0xff]  }
  0x7f   : > { %1241 = vmatprep.subr.bf16.mxu0 %v2948_v23 }
  0x80   : > { %1460 = vmatpush1.bf16.msra.mxu1 %v2949_v15  ;;  %v1762_v15 = vsel %vm3228_vm6, %v1757_v4, %v1761_v5  ;;  %v2013_v3 = vrot.slane %v1999_v22, %v3216_v50 }
  0x81   : > { %1461 = vmatprep.subr.bf16.mxu1 %v2957_v18  ;;  %v2990_v18 = vld [vmem:[#allocation2 + $0x334] ss:$8 sps:$4 sm:$0xff]   ;;  %v1781_v23 = vcombine.low %v3315_v19, %v1762_v15  ;;  %v3009_v19 = vld [vmem:[#allocation2 + $0x380] ss:$8 sps:$4 sm:$0xff]  }
  0x82   : > { %1242 = vmatpush1.bf16.msra.mxu0 %v2946_v36  ;;  %v3042_v36 = vld.sshfl [vmem:[%s3201_s4 + $0x8] sm:$0xf pattern:$0x76325410] }
  0x83   : > { %1243 = vmatprep.subr.bf16.mxu0 %v2954_v17  ;;  %v1795_v9 = vrot.slane %v1781_v23, %v3216_v50  ;;  %v3043_v17 = vld.sshfl [vmem:[%s3201_s4 + $0x10] sm:$0xf pattern:$0x76325410] }
  0x84   : > { %1462 = vmatpush1.bf16.msra.mxu1 %v2955_v33  ;;  %v2996_v33 = vld [vmem:[#allocation2 + $0x324] ss:$8 sps:$4 sm:$0xff]  }
  0x85   : > { %1463 = vmatprep.subr.bf16.mxu1 %v2963_v32  ;;  %v2014_v32 = vcombine.low %v3302_v42, %v2013_v3  ;;  %v1796_v25 = vcombine.low %v3256_v37, %v1795_v9  ;;  %v3006_v42 = vld [vmem:[#allocation2 + $0x300] ss:$8 sps:$4 sm:$0xff]   ;;  %v3022_v37 = vld [vmem:[#allocation2 + $0x454] ss:$8 sps:$4 sm:$0xff]  }
  0x86   : > { %1244 = vmatpush1.bf16.msra.mxu0 %v2952_v27  ;;  %v1538_v27 = vcombine.low %v3042_v36, %v3043_v17 }
  0x87   : > { %1245 = vmatprep.subr.bf16.mxu0 %v2960_v38  ;;  %v3014_v38 = vld [vmem:[#allocation2 + $0x470] ss:$8 sps:$4 sm:$0xff]  }
  0x88   : > { %1464 = vmatpush1.bf16.msra.mxu1 %v2961_v24  ;;  %v3008_v24 = vld [vmem:[#allocation2 + $0x304] ss:$8 sps:$4 sm:$0xff]  }
  0x89   : > { %1878 = vmatprep.subr.bf16.mxu1 %v2969_v26  ;;  %v3016_v26 = vld [vmem:[#allocation2 + $0x474] ss:$8 sps:$4 sm:$0xff]  }
  0x8a   : > { %1246 = vmatpush1.bf16.msra.mxu0 %v2958_v43  ;;  %v3025_v43 = vld [vmem:[#allocation2 + $0x444] ss:$8 sps:$4 sm:$0xff]  }
  0x8b   : > { %1482 = vmatmul.mubr.bf16.vlgmr.msra.gmra.mxu1 %v1367_v39  ;;  %1620 = vmatprep.subr.bf16.mxu0 %v2966_v45  ;;  %v3019_v39 = vld [vmem:[#allocation2 + $0x464] ss:$8 sps:$4 sm:$0xff]   ;;  %v3028_v45 = vld [vmem:[#allocation2 + $0x434] ss:$8 sps:$4 sm:$0xff]  }
  0x8c   : > { %1879 = vmatpush1.bf16.msra.mxu1 %v2967_v40  ;;  %1910 = vmatprep.mubr.bf16.mxu1 %v3116_v0  ;;  %v3017_v40 = vld [vmem:[#allocation2 + $0x460] ss:$8 sps:$4 sm:$0xff]  }
  0x8d   : > { %1880 = vmatprep.subr.bf16.mxu1 %v2975_v41  ;;  %1264 = vmatmul.mubr.bf16.vlgmr.msra.gmra.mxu0 %v1149_v35  ;;  %v3002_v35 = vld [vmem:[#allocation2 + $0x314] ss:$8 sps:$4 sm:$0xff]   ;;  %v3020_v41 = vld [vmem:[#allocation2 + $0x450] ss:$8 sps:$4 sm:$0xff]  }
  0x8e   : > { %1621 = vmatpush1.bf16.msra.mxu0 %v2964_v48  ;;  %1652 = vmatprep.mubr.bf16.mxu0 %v3116_v0  ;;  %v3029_v48 = vld [vmem:[#allocation2 + $0x420] ss:$8 sps:$4 sm:$0xff]  }
  0x8f   : > { %1622 = vmatprep.subr.bf16.mxu0 %v2972_v49  ;;  %v3034_v49 = vld [vmem:[#allocation2 + $0x414] ss:$8 sps:$4 sm:$0xff]  }
  0x90   : > { %1881 = vmatpush1.bf16.msra.mxu1 %v2973_v44  ;;  %v3023_v44 = vld [vmem:[#allocation2 + $0x440] ss:$8 sps:$4 sm:$0xff]  }
  0x91   : > { %1882 = vmatprep.subr.bf16.mxu1 %v2981_v46  ;;  %v3026_v46 = vld [vmem:[#allocation2 + $0x430] ss:$8 sps:$4 sm:$0xff]  }
  0x92   : > { %1623 = vmatpush1.bf16.msra.mxu0 %v2970_v58 }
  0x93   : > { %1624 = vmatprep.subr.bf16.mxu0 %v2978_v62 }
  0x94   : > { %1883 = vmatpush1.bf16.msra.mxu1 %v2979_v53 }
  0x95   : > { %1884 = vmatprep.subr.bf16.mxu1 %v2987_v55 }
  0x96   : > { %1625 = vmatpush1.bf16.msra.mxu0 %v2976_v1 }
  0x97   : > { %1626 = vmatprep.subr.bf16.mxu0 %v2984_v7 }
  0x98   : > { %1885 = vmatpush1.bf16.msra.mxu1 %v2985_v59 }
  0x99   : > { %1886 = vmatprep.subr.bf16.mxu1 %v2993_v63 }
  0x9a   : > { %1627 = vmatpush1.bf16.msra.mxu0 %v2982_v13 }
  0x9b   : > { %1628 = vmatprep.subr.bf16.mxu0 %v2990_v18 }
  0x9c   : > { %1887 = vmatpush1.bf16.msra.mxu1 %v2991_v2 }
  0x9d   : > { %1888 = vmatprep.subr.bf16.mxu1 %v2999_v8 }
  0x9e   : > { %1629 = vmatpush1.bf16.msra.mxu0 %v2988_v28 }
  0x9f   : > { %1630 = vmatprep.subr.bf16.mxu0 %v2996_v33 }
  0xa0   : > { %1889 = vmatpush1.bf16.msra.mxu1 %v2997_v14 }
  0xa1   : > { %1890 = vmatprep.subr.bf16.mxu1 %v3005_v20 }
  0xa2   : > { %1631 = vmatpush1.bf16.msra.mxu0 %v2994_v16 }
  0xa3   : > { %1632 = vmatprep.subr.bf16.mxu0 %v3002_v35 }
  0xa4   : > { %1891 = vmatpush1.bf16.msra.mxu1 %v3003_v29 }
  0xa5   : > { %1892 = vmatprep.subr.bf16.mxu1 %v3011_v34 }
  0xa6   : > { %1633 = vmatpush1.bf16.msra.mxu0 %v3000_v31 }
  0xa7   : > { %1634 = vmatprep.subr.bf16.mxu0 %v3008_v24 }
  0xa8   : > { %1893 = vmatpush1.bf16.msra.mxu1 %v3009_v19 }
  0xaa   : > { %1635 = vmatpush1.bf16.msra.mxu0 %v3006_v42 }
  0xab   : > { %1911 = vmatmul.mubr.bf16.vlgmr.msra.gmra.mxu1 %v1796_v25  ;;  %2096 = vmatprep.subr.bf16.mxu0 %v3016_v26 }
  0xad   : > { %1653 = vmatmul.mubr.bf16.vlgmr.msra.gmra.mxu0 %v1538_v27 }
  0xae   : > { %2097 = vmatpush1.bf16.msra.mxu0 %v3014_v38  ;;  %2128 = vmatprep.mubr.bf16.mxu0 %v3116_v0  ;;  %v3032_v0 = vld [vmem:[#allocation2 + $0x410] ss:$8 sps:$4 sm:$0xff]  }
  0xaf   : > { %2098 = vmatprep.subr.bf16.mxu0 %v3019_v39  ;;  %v3348_v39 = vsub.s32 0, %v3203_v30 }
  0xb2   : > { %2099 = vmatpush1.bf16.msra.mxu0 %v3017_v40  ;;  %v2143_v40 = vld [vmem:[#allocation4] sm:$0x3] }
  0xb3   : > { %2100 = vmatprep.subr.bf16.mxu0 %v3022_v37 }
  0xb6   : > { %2101 = vmatpush1.bf16.msra.mxu0 %v3020_v41 }
  0xb7   : > { %2102 = vmatprep.subr.bf16.mxu0 %v3025_v43  ;;  %v2151_v43 = vsub.s32 1, %v3203_v30 }
  0xba   : > { %2103 = vmatpush1.bf16.msra.mxu0 %v3023_v44 }
  0xbb   : > { %2104 = vmatprep.subr.bf16.mxu0 %v3028_v45 }
  0xbe   : > { %2105 = vmatpush1.bf16.msra.mxu0 %v3026_v46 }
  0xbf   : > { %2106 = vmatprep.subr.bf16.mxu0 %v3031_v47 }
  0xc2   : > { %2107 = vmatpush1.bf16.msra.mxu0 %v3029_v48 }
  0xc3   : > { %2108 = vmatprep.subr.bf16.mxu0 %v3034_v49  ;;  %v2148_v49 = vrot.slane %v2143_v40, %v3348_v39 }
  0xc6   : > { %2109 = vmatpush1.bf16.msra.mxu0 %v3032_v0 }
  0xc7   : > { %2110 = vmatprep.subr.bf16.mxu0 %v3037_v51 }
  0xca   : > { %2111 = vmatpush1.bf16.msra.mxu0 %v3035_v52 }
  0xcd   : > { %2129 = vmatmul.mubr.bf16.vlgmr.msra.gmra.mxu0 %v2014_v32 }
 0x10b   : > { %v615_v54 = vpop.f32.mrf.mxu1 }
 0x10d   : > { %v470_v53 = vpop.f32.mrf.mxu0  ;;  %v617_v56 = vpop.f32.mrf.mxu1 }
 0x10e   : > { %v616_v13 = vadd.f32 %v615_v54, %v470_v53  ;;  %v2152_v54 = vrot.slane %v2143_v40, %v2151_v43 }
 0x10f   : > { %v472_v55 = vpop.f32.mrf.mxu0  ;;  %v619_v58 = vpop.f32.mrf.mxu1 }
 0x110   : > { %v618_v14 = vadd.f32 %v617_v56, %v472_v55 }
 0x111   : > { %v474_v57 = vpop.f32.mrf.mxu0  ;;  %v621_v61 = vpop.f32.mrf.mxu1 }
 0x112   : > { %v620_v21 = vadd.f32 %v619_v58, %v474_v57 }
 0x113   : > { %v476_v59 = vpop.f32.mrf.mxu0 }
 0x114   : > { %v622_v28 = vadd.f32 %v621_v61, %v476_v59 }
 0x12b   : > { %v1007_v63 = vpop.f32.mrf.mxu1 }
 0x12d   : > { %v836_v60 = vpop.f32.mrf.mxu0  ;;  %v1009_v2 = vpop.f32.mrf.mxu1 }
 0x12e   : > { %v845_v15 = vadd.f32 %v836_v60, %v616_v13 }
 0x12f   : > { %v838_v62 = vpop.f32.mrf.mxu0  ;;  %v1011_v5 = vpop.f32.mrf.mxu1 }
 0x130   : > { %v846_v22 = vadd.f32 %v838_v62, %v618_v14  ;;  %v1016_v29 = vadd.f32 %v1007_v63, %v845_v15 }
 0x131   : > { %v840_v1 = vpop.f32.mrf.mxu0  ;;  %v1013_v7 = vpop.f32.mrf.mxu1 }
 0x132   : > { %v847_v3 = vadd.f32 %v840_v1, %v620_v21  ;;  %v1017_v34 = vadd.f32 %v1009_v2, %v846_v22 }
 0x133   : > { %v842_v4 = vpop.f32.mrf.mxu0 }
 0x134   : > { %v848_v32 = vadd.f32 %v842_v4, %v622_v28  ;;  %v1018_v35 = vadd.f32 %v1011_v5, %v847_v3  ;;  %v3119_v3 = vmov 1935823168  }
 0x136   : > { %v1019_v17 = vadd.f32 %v1013_v7, %v848_v32 }
 0x14b   : > { %v1483_v10 = vpop.f32.mrf.mxu1 }
 0x14d   : > { %v1265_v6 = vpop.f32.mrf.mxu0  ;;  %v1485_v12 = vpop.f32.mrf.mxu1 }
 0x14e   : > { %v1274_v9 = vadd.f32 %v1265_v6, %v1016_v29  ;;  %v3118_v6 = vmov 1966171168   ;;  %v2257_v29 = vsub.s32 2, %v3203_v30 }
 0x14f   : > { %v1267_v8 = vpop.f32.mrf.mxu0  ;;  %v1487_v20 = vpop.f32.mrf.mxu1  ;;  %v2309_v7 = vunpack.c.l.s4 %v3118_v6 }
 0x150   : > { %v1275_v36 = vadd.f32 %v1267_v8, %v1017_v34  ;;  %v1492_v25 = vadd.f32 %v1483_v10, %v1274_v9 }
 0x151   : > { %v1269_v11 = vpop.f32.mrf.mxu0  ;;  %v1489_v33 = vpop.f32.mrf.mxu1 }
 0x152   : > { %v1276_v31 = vadd.f32 %v1269_v11, %v1018_v35  ;;  %v1493_v26 = vadd.f32 %v1485_v12, %v1275_v36 }
 0x153   : > { %v1271_v18 = vpop.f32.mrf.mxu0 }
 0x154   : > { %v1277_v27 = vadd.f32 %v1271_v18, %v1019_v17  ;;  %v1494_v37 = vadd.f32 %v1487_v20, %v1276_v31  ;;  %v2310_v18 = vunpack.c.0.s8 %v2309_v7 }
 0x156   : > { %v1495_v46 = vadd.f32 %v1489_v33, %v1277_v27  ;;  %v2368_v33 = vunpack.c.l.s4 %v3119_v3 }
 0x16b   : > { %v1912_v19 = vpop.f32.mrf.mxu1 }
 0x16d   : > { %v1654_v23 = vpop.f32.mrf.mxu0  ;;  %v1914_v42 = vpop.f32.mrf.mxu1 }
 0x16e   : > { %v1663_v38 = vadd.f32 %v1654_v23, %v1492_v25 }
 0x16f   : > { %v1656_v16 = vpop.f32.mrf.mxu0  ;;  %v1916_v45 = vpop.f32.mrf.mxu1 }
 0x170   : > { %v1664_v41 = vadd.f32 %v1656_v16, %v1493_v26  ;;  %v1921_v47 = vadd.f32 %v1912_v19, %v1663_v38 }
 0x171   : > { %v1658_v24 = vpop.f32.mrf.mxu0  ;;  %v1918_v55 = vpop.f32.mrf.mxu1 }
 0x172   : > { %v1665_v48 = vadd.f32 %v1658_v24, %v1494_v37  ;;  %v1922_v51 = vadd.f32 %v1914_v42, %v1664_v41  ;;  %v3358_v42 = vsub.s32 %v2310_v18, %v3203_v30 }
 0x173   : > { %v1660_v44 = vpop.f32.mrf.mxu0 }
 0x174   : > { %v1666_v52 = vadd.f32 %v1660_v44, %v1495_v46  ;;  %v1923_v57 = vadd.f32 %v1916_v45, %v1665_v48  ;;  %v2369_v44 = vunpack.c.0.s8 %v2368_v33 }
 0x176   : > { %v1924_v61 = vadd.f32 %v1918_v55, %v1666_v52 }
 0x18d   : > { %v2130_v0 = vpop.f32.mrf.mxu0 }
 0x18e   : > { %v2139_v53 = vadd.f32 %v2130_v0, %v1921_v47 }
 0x18f   : > { %v2132_v56 = vpop.f32.mrf.mxu0 }
 0x190   : > { %v2155_v58 = vadd.f32 %v2148_v49, %v2139_v53  ;;  %v2140_v59 = vadd.f32 %v2132_v56, %v1922_v51  ;;  %v2372_v56 = vsub.s32 %v2369_v44, %v3203_v30 }
 0x191   : > { %v2134_v60 = vpop.f32.mrf.mxu0 }
 0x192   : > { %v2156_v62 = vadd.f32 %v2152_v54, %v2140_v59  ;;  %v2141_v63 = vadd.f32 %v2134_v60, %v1923_v57  ;;  %v2159_v2 = vmax.f32 %v2155_v58, 0.0 }
 0x193   : > { %v2136_v1 = vpop.f32.mrf.mxu0 }
 0x194   : > { %v2160_v4 = vmax.f32 %v2156_v62, 0.0  ;;  %v2142_v5 = vadd.f32 %v2136_v1, %v1924_v61  ;;  %v2157_v8 = vadd.f32 %v2148_v49, %v2141_v63 }
 0x196   : > { %v2167_v10 = vcombine.low %v2159_v2, %v2160_v4  ;;  %v2168_v11 = vcombine.high %v2159_v2, %v2160_v4  ;;  %v2158_v12 = vadd.f32 %v2152_v54, %v2142_v5  ;;  %v2161_v20 = vmax.f32 %v2157_v8, 0.0 }
 0x198   : > { %v2175_v13 = vrot.slane %v2167_v10, %v3216_v50  ;;  %v2182_v14 = vrot.slane %v2168_v11, %v3216_v50  ;;  %v2162_v15 = vmax.f32 %v2158_v12, 0.0 }
 0x19a   : > { %v2183_v21 = vcombine.high %v2175_v13, %v2175_v13  ;;  %v2184_v22 = vcombine.high %v2182_v14, %v2182_v14  ;;  %v2764_v23 = vrot.slane %v2175_v13, 9  ;;  %v2766_v28 = vrot.slane %v2182_v14, 9 }
 0x19b   : > { %v2185_v34 = vcombine.low %v2161_v20, %v2162_v15  ;;  %v2186_v32 = vcombine.high %v2161_v20, %v2162_v15 }
 0x19c   : > { %v2765_v9 = vrot.slane %v2183_v21, 9  ;;  %v2767_v16 = vrot.slane %v2184_v22, 9  ;;  %v2235_v19 = vmax.f32 %v2175_v13, %v2764_v23  ;;  %v2237_v35 = vmax.f32 %v2182_v14, %v2766_v28 }
 0x19d   : > { %v2193_v36 = vrot.slane %v2185_v34, %v3216_v50  ;;  %v2200_v17 = vrot.slane %v2186_v32, %v3216_v50 }
 0x19e   : > { %v2236_v25 = vmax.f32 %v2183_v21, %v2765_v9  ;;  %v2238_v31 = vmax.f32 %v2184_v22, %v2767_v16  ;;  %v2243_v24 = vmax.f32 %v2235_v19, %v2237_v35 }
 0x19f   : > { %v2201_v26 = vcombine.high %v2193_v36, %v2193_v36  ;;  %v2202_v27 = vcombine.high %v2200_v17, %v2200_v17  ;;  %v2768_v38 = vrot.slane %v2193_v36, 9  ;;  %v2770_v40 = vrot.slane %v2200_v17, 9 }
 0x1a0   : > { %v2244_v37 = vmax.f32 %v2236_v25, %v2238_v31  ;;  %v2254_v41 = vrot.slane %v2243_v24, %v3348_v39  ;;  %v2258_v43 = vrot.slane %v2243_v24, %v2257_v29 }
 0x1a1   : > { %v2769_v45 = vrot.slane %v2201_v26, 9  ;;  %v2771_v46 = vrot.slane %v2202_v27, 9  ;;  %v2239_v47 = vmax.f32 %v2193_v36, %v2768_v38  ;;  %v2241_v48 = vmax.f32 %v2200_v17, %v2770_v40 }
 0x1a2   : > { %v2262_v50 = vrot.slane %v2244_v37, %v3348_v39  ;;  %v2266_v49 = vrot.slane %v2244_v37, %v2257_v29  ;;  %v2772_v0 = vpack.c.bf16 %v2258_v43, %v2254_v41 }
 0x1a3   : > { %v2240_v51 = vmax.f32 %v2201_v26, %v2769_v45  ;;  %v2242_v52 = vmax.f32 %v2202_v27, %v2771_v46  ;;  %v2245_v53 = vmax.f32 %v2239_v47, %v2241_v48 }
 0x1a4   : > { %v2314_v54 = vrot.slane %v2772_v0, %v3358_v42  ;;  %v2773_v55 = vpack.c.bf16 %v2266_v49, %v2262_v50 }
 0x1a5   : > { %v2246_v57 = vmax.f32 %v2240_v51, %v2242_v52  ;;  %v2270_v58 = vrot.slane %v2245_v53, %v3348_v39  ;;  %v2274_v59 = vrot.slane %v2245_v53, %v2257_v29 }
 0x1a6   : > { %v2321_v60 = vrot.slane %v2314_v54, %v3358_v42  ;;  %v2329_v61 = vrot.slane %v2773_v55, %v3358_v42 }
 0x1a7   : > { %v2278_v62 = vrot.slane %v2246_v57, %v3348_v39  ;;  %v2282_v63 = vrot.slane %v2246_v57, %v2257_v29  ;;  %v2774_v1 = vpack.c.bf16 %v2274_v59, %v2270_v58 }
 0x1a8   : > { %v2336_v2 = vrot.slane %v2329_v61, %v3358_v42  ;;  %v2373_v4 = vrot.slane %v2321_v60, %v2372_v56 }
 0x1a9   : > { %v2344_v5 = vrot.slane %v2774_v1, %v3358_v42  ;;  %v2775_v6 = vpack.c.bf16 %v2282_v63, %v2278_v62 }
 0x1aa   : > { %v2387_v7 = vrot.slane %v2336_v2, %v2372_v56  ;;  %v2380_v30 = vrot.slane %v2373_v4, %v2372_v56 }
 0x1ab   : > { %v2351_v8 = vrot.slane %v2344_v5, %v3358_v42  ;;  %v2359_v10 = vrot.slane %v2775_v6, %v3358_v42 }
 0x1ac   : > { %v2394_v11 = vrot.slane %v2387_v7, %v2372_v56  ;;  %v2423_v15 = vunpack.c.l.b16 %v2380_v30  ;;  %v2424_v20 = vunpack.c.h.b16 %v2380_v30 }
 0x1ad   : > { %v2366_v12 = vrot.slane %v2359_v10, %v3358_v42  ;;  %v2401_v13 = vrot.slane %v2351_v8, %v2372_v56 }
 0x1ae   : > { %v2425_v39 = vunpack.c.l.b16 %v2394_v11  ;;  %v2426_v14 = vunpack.c.h.b16 %v2394_v11 }
 0x1af   : > { %v2415_v18 = vrot.slane %v2366_v12, %v2372_v56  ;;  %v2408_v23 = vrot.slane %v2401_v13, %v2372_v56 }
 0x1b0   : > { %v2431_v21 = vrot.slane %v2425_v39, 7  ;;  %v2434_v22 = vrot.slane %v2426_v14, 7 }
 0x1b1   : > { %v2422_v28 = vrot.slane %v2415_v18, %v2372_v56  ;;  %v2427_v9 = vunpack.c.l.b16 %v2408_v23  ;;  %v2428_v19 = vunpack.c.h.b16 %v2408_v23 }
 0x1b2   : > { %v2433_v29 = vsel %vm2432_vm14, %v2431_v21, %v2423_v15  ;;  %v2435_v3 = vsel %vm2432_vm14, %v2434_v22, %v2424_v20 }
 0x1b3   : > { %v2440_v33 = vpack.c.b16 %v2435_v3, %v2433_v29  ;;  %v2429_v34 = vunpack.c.l.b16 %v2422_v28  ;;  %v2430_v32 = vunpack.c.h.b16 %v2422_v28 }
 0x1b5   : > { %v2448_v16 = vrot.slane %v2440_v33, %v3358_v42  ;;  %v2436_v35 = vrot.slane %v2429_v34, 7  ;;  %v2438_v36 = vrot.slane %v2430_v32, 7 }
 0x1b7   : > { %2776 = vst.sshfl [vmem:[%s196_s8] sm:$0x5 pattern:$0x73625140] %v2448_v16  ;;  %v2437_v17 = vsel %vm2432_vm14, %v2436_v35, %v2427_v9  ;;  %v2439_v25 = vsel %vm2432_vm14, %v2438_v36, %v2428_v19 }
 0x1b8   : > { %v2441_v31 = vpack.c.b16 %v2439_v25, %v2437_v17 }
 0x1ba   : > { %v2462_v24 = vrot.slane %v2441_v31, %v3358_v42 }
 0x1bc   : > { %2777 = vst.sshfl [vmem:[%s196_s8 + $0x2] sm:$0x5 pattern:$0x73625140] %v2462_v24 }
 0x1bd PF: > { %s15_s12 = sadd.s32 1, %s3110_s12  }
 0x1be   : > { %p12_p3 = scmp.ge.s32.totalorder %s15_s12, 4  }
 0x1c0   :  { %14 = sbr.rel (!%p12_p3) target bundleno = 2 (0x2), region = 81 }
 0x1c5   :  { %2493 = vsyncpa [#allocation3], 1 }
 0x1c6   :  { %2495 = vsyncpa [#allocation3 + $0x1], 1 }
 0x1c7   :  { %2496 = vsyncpa [#allocation5], 1 }

// kernel: vgg_forward.7
= control target key start
LH: loop header
LB: loop body
LE: loop exit
PB: predicated region body
PF: predicated region fallthrough
CT: control target
= control target key end

     0   :  { %v159_v38 = vlaneseq  ;;  %v3114_v39 = vmov 1966171168   ;;  %s4082_s0 = inlined_call_operand.vmem [shape: bf16[2,512], index: 0, kind: input, shape index: {}]   ;;  %s4083_s1 = inlined_call_operand.vmem [shape: bf16[512,512], index: 1, kind: input, shape index: {}]   ;;  %s4084_s2 = inlined_call_operand.vmem [shape: f32[1,512], index: 2, kind: input, shape index: {}]   ;;  %s4085_s3 = inlined_call_operand.vmem [shape: bf16[512,512], index: 3, kind: input, shape index: {}]   ;;  %s4086_s4 = inlined_call_operand.vmem [shape: f32[1,512], index: 4, kind: input, shape index: {}]   ;;  %s4087_s5 = inlined_call_operand.vmem [shape: bf16[512,128], index: 5, kind: input, shape index: {}]   ;;  %s4088_s6 = inlined_call_operand.vmem [shape: f32[1,128], index: 6, kind: input, shape index: {}]   ;;  %s4089_s7 = inlined_call_operand.hbm [shape: f32[2,128], index: 7, kind: output, shape index: {}]  }
   0x1   :  { %v2676_v0 = vld [vmem:[%s4083_s1 + $0xe4] ss:$16 sps:$4 sm:$0xff]   ;;  %v2680_v2 = vld [vmem:[%s4083_s1 + $0xe0] ss:$16 sps:$4 sm:$0xff]   ;;  %v189_v40 = vunpack.c.l.s4 %v3114_v39  ;;  %v2811_v39 = vld [vmem:[%s4083_s1 + $0x228] ss:$16 sps:$4 sm:$0xff]  }
   0x2   :  { %v2678_v1 = vld [vmem:[%s4083_s1 + $0x2e4] ss:$16 sps:$4 sm:$0xff]   ;;  %848 = vmatprep.subr.bf16.mxu0 %v2676_v0  ;;  %v2681_v3 = vld [vmem:[%s4083_s1 + $0x2e0] ss:$16 sps:$4 sm:$0xff]   ;;  %v3282_v45 = vshrl.u32 %v159_v38, 7 }
   0x3   :  { %889 = vmatprep.subr.bf16.mxu1 %v2678_v1  ;;  %v2682_v4 = vld [vmem:[%s4083_s1 + $0xc4] ss:$16 sps:$4 sm:$0xff]   ;;  %849 = vmatpush1.bf16.msra.mxu0 %v2680_v2  ;;  %v2686_v6 = vld [vmem:[%s4083_s1 + $0xc0] ss:$16 sps:$4 sm:$0xff]   ;;  %v190_v46 = vunpack.c.0.s8 %v189_v40  ;;  %v2808_v38 = vld [vmem:[%s4083_s1 + $0x28] ss:$16 sps:$4 sm:$0xff]  }
   0x4   :  { %890 = vmatpush1.bf16.msra.mxu1 %v2681_v3  ;;  %v2684_v5 = vld [vmem:[%s4083_s1 + $0x2c4] ss:$16 sps:$4 sm:$0xff]   ;;  %850 = vmatprep.subr.bf16.mxu0 %v2682_v4  ;;  %v2687_v7 = vld [vmem:[%s4083_s1 + $0x2c0] ss:$16 sps:$4 sm:$0xff]   ;;  %v2816_v40 = vld [vmem:[%s4083_s1 + $0xc] ss:$16 sps:$4 sm:$0xff]  }
   0x5   :  { %891 = vmatprep.subr.bf16.mxu1 %v2684_v5  ;;  %v2688_v8 = vld [vmem:[%s4083_s1 + $0xa4] ss:$16 sps:$4 sm:$0xff]   ;;  %v2692_v10 = vld [vmem:[%s4083_s1 + $0xa0] ss:$16 sps:$4 sm:$0xff]   ;;  %v193_v51 = vsub.s32 %v190_v46, %v3282_v45  ;;  %v2825_v46 = vld [vmem:[%s4083_s1 + $0x3ec] ss:$16 sps:$4 sm:$0xff]  }
   0x6   :  { %v2690_v9 = vld [vmem:[%s4083_s1 + $0x2a4] ss:$16 sps:$4 sm:$0xff]   ;;  %v2693_v11 = vld [vmem:[%s4083_s1 + $0x2a0] ss:$16 sps:$4 sm:$0xff]  }
   0x7   :  { %851 = vmatpush1.bf16.msra.mxu0 %v2686_v6  ;;  %v2694_v12 = vld [vmem:[%s4083_s1 + $0x84] ss:$16 sps:$4 sm:$0xff]   ;;  %v2698_v14 = vld [vmem:[%s4083_s1 + $0x80] ss:$16 sps:$4 sm:$0xff]  }
   0x8   :  { %892 = vmatpush1.bf16.msra.mxu1 %v2687_v7  ;;  %852 = vmatprep.subr.bf16.mxu0 %v2688_v8  ;;  %v2696_v13 = vld [vmem:[%s4083_s1 + $0x284] ss:$16 sps:$4 sm:$0xff]   ;;  %v2699_v15 = vld [vmem:[%s4083_s1 + $0x280] ss:$16 sps:$4 sm:$0xff]  }
   0x9   :  { %893 = vmatprep.subr.bf16.mxu1 %v2690_v9  ;;  %v2700_v16 = vld [vmem:[%s4083_s1 + $0x64] ss:$16 sps:$4 sm:$0xff]   ;;  %v2704_v18 = vld [vmem:[%s4083_s1 + $0x60] ss:$16 sps:$4 sm:$0xff]  }
   0xa   :  { %v2702_v17 = vld [vmem:[%s4083_s1 + $0x264] ss:$16 sps:$4 sm:$0xff]   ;;  %v2705_v19 = vld [vmem:[%s4083_s1 + $0x260] ss:$16 sps:$4 sm:$0xff]  }
   0xb   :  { %853 = vmatpush1.bf16.msra.mxu0 %v2692_v10  ;;  %v2706_v20 = vld [vmem:[%s4083_s1 + $0x44] ss:$16 sps:$4 sm:$0xff]   ;;  %v2710_v22 = vld [vmem:[%s4083_s1 + $0x40] ss:$16 sps:$4 sm:$0xff]  }
   0xc   :  { %894 = vmatpush1.bf16.msra.mxu1 %v2693_v11  ;;  %854 = vmatprep.subr.bf16.mxu0 %v2694_v12  ;;  %v2708_v21 = vld [vmem:[%s4083_s1 + $0x244] ss:$16 sps:$4 sm:$0xff]   ;;  %v2711_v23 = vld [vmem:[%s4083_s1 + $0x240] ss:$16 sps:$4 sm:$0xff]   ;;  %v2774_v11 = vld [vmem:[%s4083_s1 + $0xec] ss:$16 sps:$4 sm:$0xff]  }
   0xd   :  { %895 = vmatprep.subr.bf16.mxu1 %v2696_v13  ;;  %v2712_v24 = vld [vmem:[%s4083_s1 + $0x24] ss:$16 sps:$4 sm:$0xff]   ;;  %v2716_v26 = vld [vmem:[%s4083_s1 + $0x20] ss:$16 sps:$4 sm:$0xff]   ;;  %v2777_v12 = vld [vmem:[%s4083_s1 + $0x2ec] ss:$16 sps:$4 sm:$0xff]  }
   0xe   :  { %v2714_v25 = vld [vmem:[%s4083_s1 + $0x224] ss:$16 sps:$4 sm:$0xff]   ;;  %v2717_v27 = vld [vmem:[%s4083_s1 + $0x220] ss:$16 sps:$4 sm:$0xff]  }
   0xf   :  { %855 = vmatpush1.bf16.msra.mxu0 %v2698_v14  ;;  %v2718_v28 = vld [vmem:[%s4083_s1 + $0x4] ss:$16 sps:$4 sm:$0xff]   ;;  %v2722_v30 = vld [vmem:[%s4083_s1] ss:$16 sps:$4 sm:$0xff]   ;;  %v2772_v14 = vld [vmem:[%s4083_s1 + $0xe8] ss:$16 sps:$4 sm:$0xff]  }
  0x10   :  { %896 = vmatpush1.bf16.msra.mxu1 %v2699_v15  ;;  %856 = vmatprep.subr.bf16.mxu0 %v2700_v16  ;;  %v2720_v29 = vld [vmem:[%s4083_s1 + $0x204] ss:$16 sps:$4 sm:$0xff]   ;;  %v2723_v31 = vld [vmem:[%s4083_s1 + $0x200] ss:$16 sps:$4 sm:$0xff]   ;;  %v2775_v15 = vld [vmem:[%s4083_s1 + $0x2e8] ss:$16 sps:$4 sm:$0xff]  }
  0x11   :  { %897 = vmatprep.subr.bf16.mxu1 %v2702_v17  ;;  %v2724_v32 = vld [vmem:[%s4083_s1 + $0x1e4] ss:$16 sps:$4 sm:$0xff]   ;;  %v2728_v34 = vld [vmem:[%s4083_s1 + $0x1e0] ss:$16 sps:$4 sm:$0xff]   ;;  %v2780_v16 = vld [vmem:[%s4083_s1 + $0xcc] ss:$16 sps:$4 sm:$0xff]  }
  0x12   :  { %v2726_v33 = vld [vmem:[%s4083_s1 + $0x3e4] ss:$16 sps:$4 sm:$0xff]   ;;  %v2729_v35 = vld [vmem:[%s4083_s1 + $0x3e0] ss:$16 sps:$4 sm:$0xff]   ;;  %v2783_v17 = vld [vmem:[%s4083_s1 + $0x2cc] ss:$16 sps:$4 sm:$0xff]  }
  0x13   :  { %857 = vmatpush1.bf16.msra.mxu0 %v2704_v18  ;;  %v2730_v36 = vld [vmem:[%s4083_s1 + $0x1c4] ss:$16 sps:$4 sm:$0xff]   ;;  %v2734_v41 = vld [vmem:[%s4083_s1 + $0x1c0] ss:$16 sps:$4 sm:$0xff]   ;;  %v2778_v18 = vld [vmem:[%s4083_s1 + $0xc8] ss:$16 sps:$4 sm:$0xff]  }
  0x14   :  { %898 = vmatpush1.bf16.msra.mxu1 %v2705_v19  ;;  %858 = vmatprep.subr.bf16.mxu0 %v2706_v20  ;;  %v2732_v37 = vld [vmem:[%s4083_s1 + $0x3c4] ss:$16 sps:$4 sm:$0xff]   ;;  %v2735_v42 = vld [vmem:[%s4083_s1 + $0x3c0] ss:$16 sps:$4 sm:$0xff]   ;;  %v2781_v19 = vld [vmem:[%s4083_s1 + $0x2c8] ss:$16 sps:$4 sm:$0xff]  }
  0x15   :  { %899 = vmatprep.subr.bf16.mxu1 %v2708_v21  ;;  %v2736_v43 = vld [vmem:[%s4083_s1 + $0x1a4] ss:$16 sps:$4 sm:$0xff]   ;;  %v2740_v47 = vld [vmem:[%s4083_s1 + $0x1a0] ss:$16 sps:$4 sm:$0xff]   ;;  %v2786_v20 = vld [vmem:[%s4083_s1 + $0xac] ss:$16 sps:$4 sm:$0xff]  }
  0x16   :  { %v2738_v44 = vld [vmem:[%s4083_s1 + $0x3a4] ss:$16 sps:$4 sm:$0xff]   ;;  %v2741_v48 = vld [vmem:[%s4083_s1 + $0x3a0] ss:$16 sps:$4 sm:$0xff]   ;;  %v2789_v21 = vld [vmem:[%s4083_s1 + $0x2ac] ss:$16 sps:$4 sm:$0xff]  }
  0x17   :  { %859 = vmatpush1.bf16.msra.mxu0 %v2710_v22  ;;  %v2742_v49 = vld [vmem:[%s4083_s1 + $0x184] ss:$16 sps:$4 sm:$0xff]   ;;  %v2340_v52 = vld.sshfl [vmem:[%s4082_s0] sm:$0x33 pattern:$0x75316420] }
  0x18   :  { %900 = vmatpush1.bf16.msra.mxu1 %v2711_v23  ;;  %860 = vmatprep.subr.bf16.mxu0 %v2712_v24  ;;  %v2744_v50 = vld [vmem:[%s4083_s1 + $0x384] ss:$16 sps:$4 sm:$0xff]   ;;  %v2746_v53 = vld [vmem:[%s4083_s1 + $0x180] ss:$16 sps:$4 sm:$0xff]   ;;  %v187_v55 = vcombine.high %v2340_v52, %v2340_v52  ;;  %v3351_v9 = vrot.slane %v2340_v52, %v193_v51  ;;  %v2784_v22 = vld [vmem:[%s4083_s1 + $0xa8] ss:$16 sps:$4 sm:$0xff]  }
  0x19   :  { %901 = vmatprep.subr.bf16.mxu1 %v2714_v25  ;;  %v2747_v54 = vld [vmem:[%s4083_s1 + $0x380] ss:$16 sps:$4 sm:$0xff]   ;;  %v2748_v56 = vld [vmem:[%s4083_s1 + $0x164] ss:$16 sps:$4 sm:$0xff]   ;;  %v2787_v23 = vld [vmem:[%s4083_s1 + $0x2a8] ss:$16 sps:$4 sm:$0xff]  }
  0x1a   :  { %v2750_v57 = vld [vmem:[%s4083_s1 + $0x364] ss:$16 sps:$4 sm:$0xff]   ;;  %v201_v58 = vrot.slane %v187_v55, %v193_v51  ;;  %v2752_v59 = vld [vmem:[%s4083_s1 + $0x160] ss:$16 sps:$4 sm:$0xff]   ;;  %v3364_v13 = vcombine.high %v3351_v9, %v3351_v9  ;;  %v2792_v24 = vld [vmem:[%s4083_s1 + $0x8c] ss:$16 sps:$4 sm:$0xff]  }
  0x1b   :  { %861 = vmatpush1.bf16.msra.mxu0 %v2716_v26  ;;  %v2753_v60 = vld [vmem:[%s4083_s1 + $0x360] ss:$16 sps:$4 sm:$0xff]   ;;  %v2754_v62 = vld [vmem:[%s4083_s1 + $0x144] ss:$16 sps:$4 sm:$0xff]   ;;  %v2795_v25 = vld [vmem:[%s4083_s1 + $0x28c] ss:$16 sps:$4 sm:$0xff]  }
  0x1c   :  { %902 = vmatpush1.bf16.msra.mxu1 %v2717_v27  ;;  %862 = vmatprep.subr.bf16.mxu0 %v2718_v28  ;;  %v203_v61 = vcombine.high %v201_v58, %v201_v58  ;;  %v2756_v63 = vld [vmem:[%s4083_s1 + $0x344] ss:$16 sps:$4 sm:$0xff]   ;;  %v2758_v0 = vld [vmem:[%s4083_s1 + $0x140] ss:$16 sps:$4 sm:$0xff]   ;;  %v2790_v26 = vld [vmem:[%s4083_s1 + $0x88] ss:$16 sps:$4 sm:$0xff]  }
  0x1d   :  { %903 = vmatprep.subr.bf16.mxu1 %v2720_v29  ;;  %880 = vmatprep.mubr.bf16.mxu0 %v201_v58  ;;  %v2759_v1 = vld [vmem:[%s4083_s1 + $0x340] ss:$16 sps:$4 sm:$0xff]   ;;  %v2760_v2 = vld [vmem:[%s4083_s1 + $0x124] ss:$16 sps:$4 sm:$0xff]   ;;  %v2793_v27 = vld [vmem:[%s4083_s1 + $0x288] ss:$16 sps:$4 sm:$0xff]  }
  0x1e   :  { %921 = vmatprep.mubr.bf16.mxu1 %v203_v61  ;;  %v2762_v3 = vld [vmem:[%s4083_s1 + $0x324] ss:$16 sps:$4 sm:$0xff]   ;;  %v2764_v4 = vld [vmem:[%s4083_s1 + $0x120] ss:$16 sps:$4 sm:$0xff]   ;;  %v2798_v28 = vld [vmem:[%s4083_s1 + $0x6c] ss:$16 sps:$4 sm:$0xff]  }
  0x1f   :  { %863 = vmatpush1.bf16.msra.mxu0 %v2722_v30  ;;  %v2765_v5 = vld [vmem:[%s4083_s1 + $0x320] ss:$16 sps:$4 sm:$0xff]   ;;  %v2766_v6 = vld [vmem:[%s4083_s1 + $0x104] ss:$16 sps:$4 sm:$0xff]   ;;  %v2801_v29 = vld [vmem:[%s4083_s1 + $0x26c] ss:$16 sps:$4 sm:$0xff]  }
  0x20   :  { %904 = vmatpush1.bf16.msra.mxu1 %v2723_v31  ;;  %864 = vmatprep.subr.bf16.mxu0 %v2724_v32  ;;  %v2768_v7 = vld [vmem:[%s4083_s1 + $0x304] ss:$16 sps:$4 sm:$0xff]   ;;  %v2770_v8 = vld [vmem:[%s4083_s1 + $0x100] ss:$16 sps:$4 sm:$0xff]   ;;  %v2796_v30 = vld [vmem:[%s4083_s1 + $0x68] ss:$16 sps:$4 sm:$0xff]  }
  0x21   :  { %905 = vmatprep.subr.bf16.mxu1 %v2726_v33  ;;  %v2771_v10 = vld [vmem:[%s4083_s1 + $0x300] ss:$16 sps:$4 sm:$0xff]   ;;  %v2799_v31 = vld [vmem:[%s4083_s1 + $0x268] ss:$16 sps:$4 sm:$0xff]   ;;  %v2804_v32 = vld [vmem:[%s4083_s1 + $0x4c] ss:$16 sps:$4 sm:$0xff]  }
  0x22   :  { %v2807_v33 = vld [vmem:[%s4083_s1 + $0x24c] ss:$16 sps:$4 sm:$0xff]   ;;  %v2826_v51 = vld [vmem:[%s4083_s1 + $0x1c8] ss:$16 sps:$4 sm:$0xff]  }
  0x23   :  { %865 = vmatpush2.bf16.msra.mxu0 %v2728_v34  ;;  %v2802_v34 = vld [vmem:[%s4083_s1 + $0x48] ss:$16 sps:$4 sm:$0xff]  }
  0x24   :  { %906 = vmatpush2.bf16.msra.mxu1 %v2729_v35  ;;  %866 = vmatprep.subr.bf16.mxu0 %v2730_v36  ;;  %v2805_v35 = vld [vmem:[%s4083_s1 + $0x248] ss:$16 sps:$4 sm:$0xff]   ;;  %v2810_v36 = vld [vmem:[%s4083_s1 + $0x2c] ss:$16 sps:$4 sm:$0xff]  }
  0x25   :  { %907 = vmatprep.subr.bf16.mxu1 %v2732_v37  ;;  %v2813_v37 = vld [vmem:[%s4083_s1 + $0x22c] ss:$16 sps:$4 sm:$0xff]   ;;  %v2829_v52 = vld [vmem:[%s4083_s1 + $0x3c8] ss:$16 sps:$4 sm:$0xff]  }
  0x26   :  { %v2832_v55 = vld [vmem:[%s4083_s1 + $0x1a8] ss:$16 sps:$4 sm:$0xff]  }
  0x27   :  { %867 = vmatpush2.bf16.msra.mxu0 %v2734_v41  ;;  %v2819_v41 = vld [vmem:[%s4083_s1 + $0x20c] ss:$16 sps:$4 sm:$0xff]  }
  0x28   :  { %908 = vmatpush2.bf16.msra.mxu1 %v2735_v42  ;;  %868 = vmatprep.subr.bf16.mxu0 %v2736_v43  ;;  %v2814_v42 = vld [vmem:[%s4083_s1 + $0x8] ss:$16 sps:$4 sm:$0xff]  }
  0x29   :  { %909 = vmatprep.subr.bf16.mxu1 %v2738_v44  ;;  %v2817_v43 = vld [vmem:[%s4083_s1 + $0x208] ss:$16 sps:$4 sm:$0xff]   ;;  %v2822_v44 = vld [vmem:[%s4083_s1 + $0x1ec] ss:$16 sps:$4 sm:$0xff]  }
  0x2b   :  { %869 = vmatpush2.bf16.msra.mxu0 %v2740_v47  ;;  %v2820_v47 = vld [vmem:[%s4083_s1 + $0x1e8] ss:$16 sps:$4 sm:$0xff]  }
  0x2c   :  { %910 = vmatpush2.bf16.msra.mxu1 %v2741_v48  ;;  %870 = vmatprep.subr.bf16.mxu0 %v2742_v49  ;;  %v2823_v48 = vld [vmem:[%s4083_s1 + $0x3e8] ss:$16 sps:$4 sm:$0xff]   ;;  %v2828_v49 = vld [vmem:[%s4083_s1 + $0x1cc] ss:$16 sps:$4 sm:$0xff]  }
  0x2d   :  { %911 = vmatprep.subr.bf16.mxu1 %v2744_v50  ;;  %v2831_v50 = vld [vmem:[%s4083_s1 + $0x3cc] ss:$16 sps:$4 sm:$0xff]  }
  0x2f   :  { %871 = vmatpush2.bf16.msra.mxu0 %v2746_v53  ;;  %v2834_v53 = vld [vmem:[%s4083_s1 + $0x1ac] ss:$16 sps:$4 sm:$0xff]  }
  0x30   :  { %912 = vmatpush2.bf16.msra.mxu1 %v2747_v54  ;;  %872 = vmatprep.subr.bf16.mxu0 %v2748_v56  ;;  %v2837_v54 = vld [vmem:[%s4083_s1 + $0x3ac] ss:$16 sps:$4 sm:$0xff]   ;;  %v2835_v56 = vld [vmem:[%s4083_s1 + $0x3a8] ss:$16 sps:$4 sm:$0xff]  }
  0x31   :  { %913 = vmatprep.subr.bf16.mxu1 %v2750_v57  ;;  %v2840_v57 = vld [vmem:[%s4083_s1 + $0x18c] ss:$16 sps:$4 sm:$0xff]  }
  0x33   :  { %873 = vmatpush2.bf16.msra.mxu0 %v2752_v59  ;;  %v2838_v59 = vld [vmem:[%s4083_s1 + $0x188] ss:$16 sps:$4 sm:$0xff]  }
  0x34   :  { %914 = vmatpush2.bf16.msra.mxu1 %v2753_v60  ;;  %874 = vmatprep.subr.bf16.mxu0 %v2754_v62  ;;  %v2841_v60 = vld [vmem:[%s4083_s1 + $0x388] ss:$16 sps:$4 sm:$0xff]   ;;  %v2849_v62 = vld [vmem:[%s4083_s1 + $0x36c] ss:$16 sps:$4 sm:$0xff]  }
  0x35   :  { %915 = vmatprep.subr.bf16.mxu1 %v2756_v63  ;;  %v2844_v63 = vld [vmem:[%s4083_s1 + $0x168] ss:$16 sps:$4 sm:$0xff]  }
  0x37   :  { %875 = vmatpush2.bf16.msra.mxu0 %v2758_v0  ;;  %v2847_v0 = vld [vmem:[%s4083_s1 + $0x368] ss:$16 sps:$4 sm:$0xff]  }
  0x38   :  { %916 = vmatpush2.bf16.msra.mxu1 %v2759_v1  ;;  %876 = vmatprep.subr.bf16.mxu0 %v2760_v2  ;;  %v2852_v1 = vld [vmem:[%s4083_s1 + $0x14c] ss:$16 sps:$4 sm:$0xff]  }
  0x39   :  { %917 = vmatprep.subr.bf16.mxu1 %v2762_v3  ;;  %v2855_v2 = vld [vmem:[%s4083_s1 + $0x34c] ss:$16 sps:$4 sm:$0xff]   ;;  %v2850_v3 = vld [vmem:[%s4083_s1 + $0x148] ss:$16 sps:$4 sm:$0xff]  }
  0x3b   :  { %877 = vmatpush2.bf16.msra.mxu0 %v2764_v4  ;;  %v2853_v4 = vld [vmem:[%s4083_s1 + $0x348] ss:$16 sps:$4 sm:$0xff]  }
  0x3c   :  { %918 = vmatpush2.bf16.msra.mxu1 %v2765_v5  ;;  %878 = vmatprep.subr.bf16.mxu0 %v2766_v6  ;;  %v2858_v5 = vld [vmem:[%s4083_s1 + $0x12c] ss:$16 sps:$4 sm:$0xff]  }
  0x3d   :  { %919 = vmatprep.subr.bf16.mxu1 %v2768_v7  ;;  %v2861_v6 = vld [vmem:[%s4083_s1 + $0x32c] ss:$16 sps:$4 sm:$0xff]   ;;  %v2856_v7 = vld [vmem:[%s4083_s1 + $0x128] ss:$16 sps:$4 sm:$0xff]  }
  0x3f   :  { %879 = vmatpush2.bf16.msra.mxu0 %v2770_v8  ;;  %v2859_v8 = vld [vmem:[%s4083_s1 + $0x328] ss:$16 sps:$4 sm:$0xff]  }
  0x40   :  { %920 = vmatpush2.bf16.msra.mxu1 %v2771_v10  ;;  %930 = vmatprep.subr.bf16.mxu0 %v2774_v11  ;;  %v2864_v10 = vld [vmem:[%s4083_s1 + $0x10c] ss:$16 sps:$4 sm:$0xff]  }
  0x41   :  { %971 = vmatprep.subr.bf16.mxu1 %v2777_v12  ;;  %v2867_v11 = vld [vmem:[%s4083_s1 + $0x30c] ss:$16 sps:$4 sm:$0xff]   ;;  %v2862_v12 = vld [vmem:[%s4083_s1 + $0x108] ss:$16 sps:$4 sm:$0xff]  }
  0x42   :  { %881 = vmatmul.mubr.bf16.vlgmr.msra.gmra.mxu0 %v3351_v9 }
  0x43   :  { %922 = vmatmul.mubr.bf16.vlgmr.msra.gmra.mxu1 %v3364_v13  ;;  %931 = vmatpush1.bf16.msra.mxu0 %v2772_v14  ;;  %v2865_v14 = vld [vmem:[%s4083_s1 + $0x308] ss:$16 sps:$4 sm:$0xff]  }
  0x44   :  { %972 = vmatpush1.bf16.msra.mxu1 %v2775_v15  ;;  %932 = vmatprep.subr.bf16.mxu0 %v2780_v16  ;;  %v2870_v15 = vld [vmem:[%s4085_s3 + $0xe4] ss:$16 sps:$4 sm:$0xff]   ;;  %v2868_v16 = vld [vmem:[%s4085_s3 + $0xe0] ss:$16 sps:$4 sm:$0xff]  }
  0x45   :  { %973 = vmatprep.subr.bf16.mxu1 %v2783_v17  ;;  %962 = vmatprep.mubr.bf16.mxu0 %v201_v58  ;;  %v2843_v58 = vld [vmem:[%s4083_s1 + $0x38c] ss:$16 sps:$4 sm:$0xff]   ;;  %v2873_v17 = vld [vmem:[%s4085_s3 + $0xc4] ss:$16 sps:$4 sm:$0xff]  }
  0x46   :  { %1003 = vmatprep.mubr.bf16.mxu1 %v203_v61  ;;  %v2846_v61 = vld [vmem:[%s4083_s1 + $0x16c] ss:$16 sps:$4 sm:$0xff]  }
  0x47   :  { %933 = vmatpush1.bf16.msra.mxu0 %v2778_v18  ;;  %v2871_v18 = vld [vmem:[%s4085_s3 + $0xc0] ss:$16 sps:$4 sm:$0xff]  }
  0x48   :  { %974 = vmatpush1.bf16.msra.mxu1 %v2781_v19  ;;  %934 = vmatprep.subr.bf16.mxu0 %v2786_v20  ;;  %v2876_v19 = vld [vmem:[%s4085_s3 + $0xa4] ss:$16 sps:$4 sm:$0xff]   ;;  %v2874_v20 = vld [vmem:[%s4085_s3 + $0xa0] ss:$16 sps:$4 sm:$0xff]  }
  0x49   :  { %975 = vmatprep.subr.bf16.mxu1 %v2789_v21  ;;  %v2918_v21 = vld [vmem:[%s4085_s3 + $0x2e4] ss:$16 sps:$4 sm:$0xff]  }
  0x4b   :  { %935 = vmatpush1.bf16.msra.mxu0 %v2784_v22  ;;  %v2882_v22 = vld [vmem:[%s4085_s3 + $0x64] ss:$16 sps:$4 sm:$0xff]  }
  0x4c   :  { %976 = vmatpush1.bf16.msra.mxu1 %v2787_v23  ;;  %936 = vmatprep.subr.bf16.mxu0 %v2792_v24  ;;  %v2916_v23 = vld [vmem:[%s4085_s3 + $0x2e0] ss:$16 sps:$4 sm:$0xff]  }
  0x4d   :  { %977 = vmatprep.subr.bf16.mxu1 %v2795_v25  ;;  %v2880_v24 = vld [vmem:[%s4085_s3 + $0x60] ss:$16 sps:$4 sm:$0xff]  }
  0x4e   :  { %v2922_v25 = vld [vmem:[%s4085_s3 + $0x2c0] ss:$16 sps:$4 sm:$0xff]  }
  0x4f   :  { %937 = vmatpush1.bf16.msra.mxu0 %v2790_v26  ;;  %v2924_v26 = vld [vmem:[%s4085_s3 + $0x2c4] ss:$16 sps:$4 sm:$0xff]  }
  0x50   :  { %978 = vmatpush1.bf16.msra.mxu1 %v2793_v27  ;;  %938 = vmatprep.subr.bf16.mxu0 %v2798_v28  ;;  %v2885_v27 = vld [vmem:[%s4085_s3 + $0x44] ss:$16 sps:$4 sm:$0xff]   ;;  %v2883_v28 = vld [vmem:[%s4085_s3 + $0x40] ss:$16 sps:$4 sm:$0xff]  }
  0x51   :  { %979 = vmatprep.subr.bf16.mxu1 %v2801_v29  ;;  %v2928_v29 = vld [vmem:[%s4085_s3 + $0x2a0] ss:$16 sps:$4 sm:$0xff]  }
  0x53   :  { %939 = vmatpush1.bf16.msra.mxu0 %v2796_v30  ;;  %v2930_v30 = vld [vmem:[%s4085_s3 + $0x2a4] ss:$16 sps:$4 sm:$0xff]  }
  0x54   :  { %980 = vmatpush1.bf16.msra.mxu1 %v2799_v31  ;;  %940 = vmatprep.subr.bf16.mxu0 %v2804_v32  ;;  %v2888_v31 = vld [vmem:[%s4085_s3 + $0x24] ss:$16 sps:$4 sm:$0xff]   ;;  %v2886_v32 = vld [vmem:[%s4085_s3 + $0x20] ss:$16 sps:$4 sm:$0xff]  }
  0x55   :  { %981 = vmatprep.subr.bf16.mxu1 %v2807_v33  ;;  %v2934_v33 = vld [vmem:[%s4085_s3 + $0x280] ss:$16 sps:$4 sm:$0xff]  }
  0x57   :  { %941 = vmatpush1.bf16.msra.mxu0 %v2802_v34  ;;  %v2936_v34 = vld [vmem:[%s4085_s3 + $0x284] ss:$16 sps:$4 sm:$0xff]  }
  0x58   :  { %982 = vmatpush1.bf16.msra.mxu1 %v2805_v35  ;;  %942 = vmatprep.subr.bf16.mxu0 %v2810_v36  ;;  %v2891_v35 = vld [vmem:[%s4085_s3 + $0x4] ss:$16 sps:$4 sm:$0xff]   ;;  %v2889_v36 = vld [vmem:[%s4085_s3] ss:$16 sps:$4 sm:$0xff]  }
  0x59   :  { %983 = vmatprep.subr.bf16.mxu1 %v2813_v37  ;;  %v2940_v37 = vld [vmem:[%s4085_s3 + $0x260] ss:$16 sps:$4 sm:$0xff]  }
  0x5b   :  { %943 = vmatpush1.bf16.msra.mxu0 %v2808_v38  ;;  %v2942_v38 = vld [vmem:[%s4085_s3 + $0x264] ss:$16 sps:$4 sm:$0xff]  }
  0x5c   :  { %984 = vmatpush1.bf16.msra.mxu1 %v2811_v39  ;;  %944 = vmatprep.subr.bf16.mxu0 %v2816_v40  ;;  %v2894_v39 = vld [vmem:[%s4085_s3 + $0x1e4] ss:$16 sps:$4 sm:$0xff]   ;;  %v2892_v40 = vld [vmem:[%s4085_s3 + $0x1e0] ss:$16 sps:$4 sm:$0xff]  }
  0x5d   :  { %985 = vmatprep.subr.bf16.mxu1 %v2819_v41  ;;  %v2946_v41 = vld [vmem:[%s4085_s3 + $0x240] ss:$16 sps:$4 sm:$0xff]  }
  0x5f   :  { %945 = vmatpush1.bf16.msra.mxu0 %v2814_v42  ;;  %v2948_v42 = vld [vmem:[%s4085_s3 + $0x244] ss:$16 sps:$4 sm:$0xff]  }
  0x60   :  { %986 = vmatpush1.bf16.msra.mxu1 %v2817_v43  ;;  %946 = vmatprep.subr.bf16.mxu0 %v2822_v44  ;;  %v2897_v43 = vld [vmem:[%s4085_s3 + $0x1c4] ss:$16 sps:$4 sm:$0xff]   ;;  %v2895_v44 = vld [vmem:[%s4085_s3 + $0x1c0] ss:$16 sps:$4 sm:$0xff]  }
  0x61   :  { %987 = vmatprep.subr.bf16.mxu1 %v2825_v46  ;;  %v2952_v46 = vld [vmem:[%s4085_s3 + $0x220] ss:$16 sps:$4 sm:$0xff]  }
  0x63   :  { %947 = vmatpush2.bf16.msra.mxu0 %v2820_v47  ;;  %v2954_v47 = vld [vmem:[%s4085_s3 + $0x224] ss:$16 sps:$4 sm:$0xff]  }
  0x64   :  { %988 = vmatpush2.bf16.msra.mxu1 %v2823_v48  ;;  %948 = vmatprep.subr.bf16.mxu0 %v2828_v49  ;;  %v2900_v48 = vld [vmem:[%s4085_s3 + $0x1a4] ss:$16 sps:$4 sm:$0xff]   ;;  %v2898_v49 = vld [vmem:[%s4085_s3 + $0x1a0] ss:$16 sps:$4 sm:$0xff]  }
  0x65   :  { %989 = vmatprep.subr.bf16.mxu1 %v2831_v50  ;;  %v2958_v50 = vld [vmem:[%s4085_s3 + $0x200] ss:$16 sps:$4 sm:$0xff]  }
  0x67   :  { %949 = vmatpush2.bf16.msra.mxu0 %v2826_v51  ;;  %v2960_v51 = vld [vmem:[%s4085_s3 + $0x204] ss:$16 sps:$4 sm:$0xff]  }
  0x68   :  { %990 = vmatpush2.bf16.msra.mxu1 %v2829_v52  ;;  %950 = vmatprep.subr.bf16.mxu0 %v2834_v53  ;;  %v2903_v52 = vld [vmem:[%s4085_s3 + $0x184] ss:$16 sps:$4 sm:$0xff]  }
  0x69   :  { %991 = vmatprep.subr.bf16.mxu1 %v2837_v54 }
  0x6b   :  { %951 = vmatpush2.bf16.msra.mxu0 %v2832_v55 }
  0x6c   :  { %992 = vmatpush2.bf16.msra.mxu1 %v2835_v56  ;;  %952 = vmatprep.subr.bf16.mxu0 %v2840_v57 }
  0x6d   :  { %993 = vmatprep.subr.bf16.mxu1 %v2843_v58 }
  0x6f   :  { %953 = vmatpush2.bf16.msra.mxu0 %v2838_v59 }
  0x70   :  { %994 = vmatpush2.bf16.msra.mxu1 %v2841_v60  ;;  %954 = vmatprep.subr.bf16.mxu0 %v2846_v61 }
  0x71   :  { %995 = vmatprep.subr.bf16.mxu1 %v2849_v62 }
  0x73   :  { %955 = vmatpush2.bf16.msra.mxu0 %v2844_v63 }
  0x74   :  { %996 = vmatpush2.bf16.msra.mxu1 %v2847_v0  ;;  %956 = vmatprep.subr.bf16.mxu0 %v2852_v1 }
  0x75   :  { %997 = vmatprep.subr.bf16.mxu1 %v2855_v2 }
  0x77   :  { %957 = vmatpush2.bf16.msra.mxu0 %v2850_v3 }
  0x78   :  { %998 = vmatpush2.bf16.msra.mxu1 %v2853_v4  ;;  %958 = vmatprep.subr.bf16.mxu0 %v2858_v5 }
  0x79   :  { %999 = vmatprep.subr.bf16.mxu1 %v2861_v6 }
  0x7b   :  { %959 = vmatpush2.bf16.msra.mxu0 %v2856_v7 }
  0x7c   :  { %1000 = vmatpush2.bf16.msra.mxu1 %v2859_v8  ;;  %960 = vmatprep.subr.bf16.mxu0 %v2864_v10 }
  0x7d   :  { %1001 = vmatprep.subr.bf16.mxu1 %v2867_v11 }
  0x7f   :  { %961 = vmatpush2.bf16.msra.mxu0 %v2862_v12 }
  0x80   :  { %1002 = vmatpush2.bf16.msra.mxu1 %v2865_v14  ;;  %1810 = vmatprep.subr.bf16.mxu0 %v2870_v15 }
  0x81   :  { %1851 = vmatprep.subr.bf16.mxu1 %v2918_v21 }
  0x82   :  { %963 = vmatmul.mubr.bf16.vlgmr.msra.gmra.mxu0 %v3351_v9  ;;  %v2879_v9 = vld [vmem:[%s4085_s3 + $0x84] ss:$16 sps:$4 sm:$0xff]  }
  0x83   :  { %1004 = vmatmul.mubr.bf16.vlgmr.msra.gmra.mxu1 %v3364_v13  ;;  %1811 = vmatpush1.bf16.msra.mxu0 %v2868_v16  ;;  %v2877_v13 = vld [vmem:[%s4085_s3 + $0x80] ss:$16 sps:$4 sm:$0xff]  }
  0x84   :  { %1812 = vmatprep.subr.bf16.mxu0 %v2873_v17  ;;  %1852 = vmatpush1.bf16.msra.mxu1 %v2916_v23 }
  0x85   :  { %1853 = vmatprep.subr.bf16.mxu1 %v2924_v26 }
  0x87   :  { %1813 = vmatpush1.bf16.msra.mxu0 %v2871_v18 }
  0x88   :  { %1814 = vmatprep.subr.bf16.mxu0 %v2876_v19  ;;  %1854 = vmatpush1.bf16.msra.mxu1 %v2922_v25 }
  0x89   :  { %1855 = vmatprep.subr.bf16.mxu1 %v2930_v30 }
  0x8b   :  { %1815 = vmatpush1.bf16.msra.mxu0 %v2874_v20 }
  0x8c   :  { %1816 = vmatprep.subr.bf16.mxu0 %v2879_v9  ;;  %1856 = vmatpush1.bf16.msra.mxu1 %v2928_v29 }
  0x8d   :  { %1857 = vmatprep.subr.bf16.mxu1 %v2936_v34 }
  0x8f   :  { %1817 = vmatpush1.bf16.msra.mxu0 %v2877_v13 }
  0x90   :  { %1818 = vmatprep.subr.bf16.mxu0 %v2882_v22  ;;  %1858 = vmatpush1.bf16.msra.mxu1 %v2934_v33 }
  0x91   :  { %1859 = vmatprep.subr.bf16.mxu1 %v2942_v38 }
  0x93   :  { %1819 = vmatpush1.bf16.msra.mxu0 %v2880_v24 }
  0x94   :  { %1820 = vmatprep.subr.bf16.mxu0 %v2885_v27  ;;  %1860 = vmatpush1.bf16.msra.mxu1 %v2940_v37 }
  0x95   :  { %1861 = vmatprep.subr.bf16.mxu1 %v2948_v42 }
  0x97   :  { %1821 = vmatpush1.bf16.msra.mxu0 %v2883_v28 }
  0x98   :  { %1822 = vmatprep.subr.bf16.mxu0 %v2888_v31  ;;  %1862 = vmatpush1.bf16.msra.mxu1 %v2946_v41 }
  0x99   :  { %1863 = vmatprep.subr.bf16.mxu1 %v2954_v47 }
  0x9b   :  { %1823 = vmatpush1.bf16.msra.mxu0 %v2886_v32 }
  0x9c   :  { %1824 = vmatprep.subr.bf16.mxu0 %v2891_v35  ;;  %1864 = vmatpush1.bf16.msra.mxu1 %v2952_v46 }
  0x9d   :  { %1865 = vmatprep.subr.bf16.mxu1 %v2960_v51 }
  0x9f   :  { %1825 = vmatpush1.bf16.msra.mxu0 %v2889_v36 }
  0xa0   :  { %1826 = vmatprep.subr.bf16.mxu0 %v2894_v39  ;;  %1866 = vmatpush1.bf16.msra.mxu1 %v2958_v50 }
  0xa3   :  { %1827 = vmatpush2.bf16.msra.mxu0 %v2892_v40 }
  0xa4   :  { %1828 = vmatprep.subr.bf16.mxu0 %v2897_v43 }
  0xa7   :  { %1829 = vmatpush2.bf16.msra.mxu0 %v2895_v44 }
  0xa8   :  { %1830 = vmatprep.subr.bf16.mxu0 %v2900_v48 }
  0xa9   :  { %12 = vsyncpa [#allocation3], 0  ;;  %v2901_v53 = vld [vmem:[%s4085_s3 + $0x180] ss:$16 sps:$4 sm:$0xff]   ;;  %v2966_v55 = vld [vmem:[%s4085_s3 + $0x3e4] ss:$16 sps:$4 sm:$0xff]  }
  0xaa   :  { %v2964_v54 = vld [vmem:[%s4085_s3 + $0x3e0] ss:$16 sps:$4 sm:$0xff]   ;;  %v2906_v56 = vld [vmem:[%s4085_s3 + $0x164] ss:$16 sps:$4 sm:$0xff]   ;;  %1867 = vmatprep.subr.bf16.mxu1 %v2966_v55  ;;  %v2921_v8 = vld [vmem:[%s4085_s3 + $0xec] ss:$16 sps:$4 sm:$0xff]  }
  0xab   :  { %1831 = vmatpush2.bf16.msra.mxu0 %v2898_v49  ;;  %1868 = vmatpush2.bf16.msra.mxu1 %v2964_v54  ;;  %v2904_v57 = vld [vmem:[%s4085_s3 + $0x160] ss:$16 sps:$4 sm:$0xff]   ;;  %v2972_v59 = vld [vmem:[%s4085_s3 + $0x3c4] ss:$16 sps:$4 sm:$0xff]   ;;  %v3014_v17 = vld [vmem:[%s4085_s3 + $0x2ec] ss:$16 sps:$4 sm:$0xff]  }
  0xac   :  { %1832 = vmatprep.subr.bf16.mxu0 %v2903_v52  ;;  %v2970_v58 = vld [vmem:[%s4085_s3 + $0x3c0] ss:$16 sps:$4 sm:$0xff]   ;;  %v2909_v60 = vld [vmem:[%s4085_s3 + $0x144] ss:$16 sps:$4 sm:$0xff]   ;;  %1869 = vmatprep.subr.bf16.mxu1 %v2972_v59  ;;  %v161_v18 = vsub.s32 0, %v3282_v45  ;;  %v165_v20 = vsub.s32 1, %v3282_v45 }
  0xad   :  { %v2907_v61 = vld [vmem:[%s4085_s3 + $0x140] ss:$16 sps:$4 sm:$0xff]   ;;  %v2978_v63 = vld [vmem:[%s4085_s3 + $0x3a4] ss:$16 sps:$4 sm:$0xff]   ;;  %v2919_v36 = vld [vmem:[%s4085_s3 + $0xe8] ss:$16 sps:$4 sm:$0xff]  }
  0xae   :  { %v2976_v62 = vld [vmem:[%s4085_s3 + $0x3a0] ss:$16 sps:$4 sm:$0xff]   ;;  %v2912_v0 = vld [vmem:[%s4085_s3 + $0x124] ss:$16 sps:$4 sm:$0xff]   ;;  %v2927_v38 = vld [vmem:[%s4085_s3 + $0xcc] ss:$16 sps:$4 sm:$0xff]  }
  0xaf   :  { %1833 = vmatpush2.bf16.msra.mxu0 %v2901_v53  ;;  %1870 = vmatpush2.bf16.msra.mxu1 %v2970_v58  ;;  %v2910_v1 = vld [vmem:[%s4085_s3 + $0x120] ss:$16 sps:$4 sm:$0xff]   ;;  %v2984_v3 = vld [vmem:[%s4085_s3 + $0x384] ss:$16 sps:$4 sm:$0xff]   ;;  %v2925_v39 = vld [vmem:[%s4085_s3 + $0xc8] ss:$16 sps:$4 sm:$0xff]  }
  0xb0   :  { %1834 = vmatprep.subr.bf16.mxu0 %v2906_v56  ;;  %1871 = vmatprep.subr.bf16.mxu1 %v2978_v63  ;;  %v2982_v2 = vld [vmem:[%s4085_s3 + $0x380] ss:$16 sps:$4 sm:$0xff]   ;;  %v2915_v4 = vld [vmem:[%s4085_s3 + $0x104] ss:$16 sps:$4 sm:$0xff]   ;;  %v2933_v40 = vld [vmem:[%s4085_s3 + $0xac] ss:$16 sps:$4 sm:$0xff]  }
  0xb1   :  { %v2913_v5 = vld [vmem:[%s4085_s3 + $0x100] ss:$16 sps:$4 sm:$0xff]   ;;  %v2990_v7 = vld [vmem:[%s4085_s3 + $0x364] ss:$16 sps:$4 sm:$0xff]   ;;  %v2931_v41 = vld [vmem:[%s4085_s3 + $0xa8] ss:$16 sps:$4 sm:$0xff]  }
  0xb2   :  { %v2988_v6 = vld [vmem:[%s4085_s3 + $0x360] ss:$16 sps:$4 sm:$0xff]   ;;  %v2996_v11 = vld [vmem:[%s4085_s3 + $0x344] ss:$16 sps:$4 sm:$0xff]   ;;  %v2939_v42 = vld [vmem:[%s4085_s3 + $0x8c] ss:$16 sps:$4 sm:$0xff]  }
  0xb3   :  { %1835 = vmatpush2.bf16.msra.mxu0 %v2904_v57  ;;  %1872 = vmatpush2.bf16.msra.mxu1 %v2976_v62  ;;  %v2994_v10 = vld [vmem:[%s4085_s3 + $0x340] ss:$16 sps:$4 sm:$0xff]   ;;  %v3002_v12 = vld [vmem:[%s4085_s3 + $0x324] ss:$16 sps:$4 sm:$0xff]   ;;  %v2937_v43 = vld [vmem:[%s4085_s3 + $0x88] ss:$16 sps:$4 sm:$0xff]  }
  0xb4   :  { %1836 = vmatprep.subr.bf16.mxu0 %v2909_v60  ;;  %1873 = vmatprep.subr.bf16.mxu1 %v2984_v3  ;;  %v3000_v14 = vld [vmem:[%s4085_s3 + $0x320] ss:$16 sps:$4 sm:$0xff]   ;;  %v3008_v15 = vld [vmem:[%s4085_s3 + $0x304] ss:$16 sps:$4 sm:$0xff]   ;;  %v2945_v44 = vld [vmem:[%s4085_s3 + $0x6c] ss:$16 sps:$4 sm:$0xff]  }
  0xb5   :  { %v3006_v16 = vld [vmem:[%s4085_s3 + $0x300] ss:$16 sps:$4 sm:$0xff]   ;;  %v2943_v46 = vld [vmem:[%s4085_s3 + $0x68] ss:$16 sps:$4 sm:$0xff]   ;;  %v2951_v47 = vld [vmem:[%s4085_s3 + $0x4c] ss:$16 sps:$4 sm:$0xff]  }
  0xb6   :  { %v3758_v19 = vld [vmem:[%s4084_s2] sm:$0xf]  ;;  %v2949_v48 = vld [vmem:[%s4085_s3 + $0x48] ss:$16 sps:$4 sm:$0xff]   ;;  %v2957_v49 = vld [vmem:[%s4085_s3 + $0x2c] ss:$16 sps:$4 sm:$0xff]  }
  0xb7   :  { %1837 = vmatpush2.bf16.msra.mxu0 %v2907_v61  ;;  %1874 = vmatpush2.bf16.msra.mxu1 %v2982_v2  ;;  %v162_v9 = vrot.slane %v3758_v19, %v161_v18  ;;  %v166_v13 = vrot.slane %v3758_v19, %v165_v20  ;;  %v2955_v50 = vld [vmem:[%s4085_s3 + $0x28] ss:$16 sps:$4 sm:$0xff]   ;;  %v2963_v51 = vld [vmem:[%s4085_s3 + $0xc] ss:$16 sps:$4 sm:$0xff]   ;;  %v169_v63 = vsub.s32 2, %v3282_v45  ;;  %s3115_s11 = smov [#allocation2]  }
  0xb8   :  { %1838 = vmatprep.subr.bf16.mxu0 %v2912_v0  ;;  %1875 = vmatprep.subr.bf16.mxu1 %v2990_v7  ;;  %v2961_v52 = vld [vmem:[%s4085_s3 + $0x8] ss:$16 sps:$4 sm:$0xff]   ;;  %v2969_v53 = vld [vmem:[%s4085_s3 + $0x1ec] ss:$16 sps:$4 sm:$0xff]   ;;  %s2332_s12 = sshll.u32 %s3115_s11, 4  ;;  %s2333_s12 = int_to_ptr.vmem [resolvable:$true] %s2332_s12 }
  0xb9   :  { %v2967_v54 = vld [vmem:[%s4085_s3 + $0x1e8] ss:$16 sps:$4 sm:$0xff]   ;;  %v2975_v55 = vld [vmem:[%s4085_s3 + $0x1cc] ss:$16 sps:$4 sm:$0xff]   ;;  %v170_v3 = vrot.slane %v3758_v19, %v169_v63  ;;  %s3092_s13 = scalar_lea.vmem %s2333_s12, 32  ;;  %p3097_p1 = scmp.lt.s32.totalorder %s2333_s12, %s2333_s12 }
  0xba   :  { %v2973_v56 = vld [vmem:[%s4085_s3 + $0x1c8] ss:$16 sps:$4 sm:$0xff]   ;;  %v2981_v57 = vld [vmem:[%s4085_s3 + $0x1ac] ss:$16 sps:$4 sm:$0xff]   ;;  %p3093_p0 = scmp.ne.s32.totalorder %s2333_s12, %s3092_s13  ;;  %p3098_p2 = scmp.lt.s32.totalorder %s3092_s13, %s3092_s13 }
  0xbb   :  { %1839 = vmatpush2.bf16.msra.mxu0 %v2910_v1  ;;  %1876 = vmatpush2.bf16.msra.mxu1 %v2988_v6  ;;  %v2979_v58 = vld [vmem:[%s4085_s3 + $0x1a8] ss:$16 sps:$4 sm:$0xff]   ;;  %v2987_v59 = vld [vmem:[%s4085_s3 + $0x18c] ss:$16 sps:$4 sm:$0xff]   ;;  %v173_v1 = vsub.s32 3, %v3282_v45 }
  0xbc   :  { %1840 = vmatprep.subr.bf16.mxu0 %v2915_v4  ;;  %1877 = vmatprep.subr.bf16.mxu1 %v2996_v11  ;;  %v2985_v60 = vld [vmem:[%s4085_s3 + $0x188] ss:$16 sps:$4 sm:$0xff]   ;;  %v2993_v61 = vld [vmem:[%s4085_s3 + $0x16c] ss:$16 sps:$4 sm:$0xff]   ;;  %p3099_p3 = por %p3098_p2, %p3097_p1 }
  0xbd   :  { %v2991_v62 = vld [vmem:[%s4085_s3 + $0x168] ss:$16 sps:$4 sm:$0xff]   ;;  %v2999_v0 = vld [vmem:[%s4085_s3 + $0x14c] ss:$16 sps:$4 sm:$0xff]  }
  0xbe   :  { %v2997_v2 = vld [vmem:[%s4085_s3 + $0x148] ss:$16 sps:$4 sm:$0xff]   ;;  %v3005_v4 = vld [vmem:[%s4085_s3 + $0x12c] ss:$16 sps:$4 sm:$0xff]   ;;  %p3100_p4 = pnand %p3099_p3, %p3093_p0 }
  0xbf   :  { %1841 = vmatpush2.bf16.msra.mxu0 %v2913_v5  ;;  %1878 = vmatpush2.bf16.msra.mxu1 %v2994_v10  ;;  %v174_v5 = vrot.slane %v3758_v19, %v173_v1  ;;  %v3003_v10 = vld [vmem:[%s4085_s3 + $0x128] ss:$16 sps:$4 sm:$0xff]  }
  0xc0   :  { %1892 = vmatprep.subr.bf16.mxu0 %v2921_v8  ;;  %1879 = vmatprep.subr.bf16.mxu1 %v3002_v12 }
  0xc3   :  { %1880 = vmatpush2.bf16.msra.mxu1 %v3000_v14  ;;  %v3011_v14 = vld [vmem:[%s4085_s3 + $0x10c] ss:$16 sps:$4 sm:$0xff]  }
  0xc4   :  { %1881 = vmatprep.subr.bf16.mxu1 %v3008_v15 }
  0xc7   :  { %1882 = vmatpush2.bf16.msra.mxu1 %v3006_v16 }
  0xc8   :  { %1933 = vmatprep.subr.bf16.mxu1 %v3014_v17 }
 0x102   :  { %v882_v21 = vpop.f32.mrf.mxu0 }
 0x103   :  { %v923_v22 = vpop.f32.mrf.mxu1  ;;  %v883_v23 = vadd.f32 %v882_v21, %v162_v9 }
 0x104   :  { %v884_v24 = vpop.f32.mrf.mxu0 }
 0x105   :  { %v925_v25 = vpop.f32.mrf.mxu1  ;;  %v924_v26 = vadd.f32 %v923_v22, %v883_v23  ;;  %v885_v27 = vadd.f32 %v884_v24, %v166_v13  ;;  %v3009_v13 = vld [vmem:[%s4085_s3 + $0x108] ss:$16 sps:$4 sm:$0xff]  }
 0x106   :  { %v886_v28 = vpop.f32.mrf.mxu0 }
 0x107   :  { %v927_v29 = vpop.f32.mrf.mxu1  ;;  %v926_v30 = vadd.f32 %v925_v25, %v885_v27  ;;  %v1012_v31 = vmax.f32 %v924_v26, 0.0  ;;  %v3012_v26 = vld [vmem:[%s4085_s3 + $0x2e8] ss:$16 sps:$4 sm:$0xff]   ;;  %v3017_v28 = vld [vmem:[%s4085_s3 + $0x2cc] ss:$16 sps:$4 sm:$0xff]  }
 0x108   :  { %v887_v32 = vpop.f32.mrf.mxu0  ;;  %v3015_v29 = vld [vmem:[%s4085_s3 + $0x2c8] ss:$16 sps:$4 sm:$0xff]  }
 0x109   :  { %v928_v33 = vpop.f32.mrf.mxu1  ;;  %v1013_v34 = vmax.f32 %v926_v30, 0.0  ;;  %v3770_v37 = vpack.c.bf16 %v1012_v31, %v1012_v31  ;;  %v3020_v30 = vld [vmem:[%s4085_s3 + $0x2ac] ss:$16 sps:$4 sm:$0xff]   ;;  %v3018_v31 = vld [vmem:[%s4085_s3 + $0x2a8] ss:$16 sps:$4 sm:$0xff]  }
 0x10a   :  { %v3023_v32 = vld [vmem:[%s4085_s3 + $0x28c] ss:$16 sps:$4 sm:$0xff]  }
 0x10b   :  { %v1017_v35 = vpack.c.bf16 %v1013_v34, %v1013_v34  ;;  %v3060_v33 = vld [vmem:[%s4087_s5 + $0x78] sm:$0xff]  }
 0x10c   :  { %v3061_v34 = vld [vmem:[%s4087_s5 + $0x38] sm:$0xff]  }
 0x10d   :  { %1842 = vmatprep.mubr.bf16.mxu0 %v1017_v35 }
 0x10e   :  { %1843 = vmatmul.mubr.bf16.vlgmr.msra.gmra.mxu0 %v3770_v37 }
 0x10f   :  { %1893 = vmatpush1.bf16.msra.mxu0 %v2919_v36  ;;  %1924 = vmatprep.mubr.bf16.mxu0 %v1017_v35  ;;  %v3062_v35 = vld [vmem:[%s4087_s5 + $0x70] sm:$0xff]   ;;  %v3021_v36 = vld [vmem:[%s4085_s3 + $0x288] ss:$16 sps:$4 sm:$0xff]  }
 0x110   :  { %1894 = vmatprep.subr.bf16.mxu0 %v2927_v38  ;;  %v3026_v38 = vld [vmem:[%s4085_s3 + $0x26c] ss:$16 sps:$4 sm:$0xff]  }
 0x113   :  { %1895 = vmatpush1.bf16.msra.mxu0 %v2925_v39  ;;  %v3064_v39 = vld [vmem:[%s4087_s5 + $0x68] sm:$0xff]  }
 0x114   :  { %1896 = vmatprep.subr.bf16.mxu0 %v2933_v40  ;;  %v3024_v40 = vld [vmem:[%s4085_s3 + $0x268] ss:$16 sps:$4 sm:$0xff]  }
 0x117   :  { %1897 = vmatpush1.bf16.msra.mxu0 %v2931_v41  ;;  %v3065_v41 = vld [vmem:[%s4087_s5 + $0x28] sm:$0xff]  }
 0x118   :  { %1898 = vmatprep.subr.bf16.mxu0 %v2939_v42  ;;  %v3029_v42 = vld [vmem:[%s4085_s3 + $0x24c] ss:$16 sps:$4 sm:$0xff]  }
 0x11b   :  { %1899 = vmatpush1.bf16.msra.mxu0 %v2937_v43  ;;  %v3066_v43 = vld [vmem:[%s4087_s5 + $0x60] sm:$0xff]  }
 0x11c   :  { %1900 = vmatprep.subr.bf16.mxu0 %v2945_v44  ;;  %v3027_v44 = vld [vmem:[%s4085_s3 + $0x248] ss:$16 sps:$4 sm:$0xff]  }
 0x11f   :  { %1901 = vmatpush1.bf16.msra.mxu0 %v2943_v46  ;;  %v3067_v46 = vld [vmem:[%s4087_s5 + $0x20] sm:$0xff]  }
 0x120   :  { %1902 = vmatprep.subr.bf16.mxu0 %v2951_v47  ;;  %v3032_v47 = vld [vmem:[%s4085_s3 + $0x22c] ss:$16 sps:$4 sm:$0xff]  }
 0x123   :  { %1903 = vmatpush1.bf16.msra.mxu0 %v2949_v48  ;;  %v3068_v48 = vld [vmem:[%s4087_s5 + $0x58] sm:$0xff]  }
 0x124   :  { %1904 = vmatprep.subr.bf16.mxu0 %v2957_v49  ;;  %v3030_v49 = vld [vmem:[%s4085_s3 + $0x228] ss:$16 sps:$4 sm:$0xff]  }
 0x127   :  { %1905 = vmatpush1.bf16.msra.mxu0 %v2955_v50  ;;  %v3069_v50 = vld [vmem:[%s4087_s5 + $0x18] sm:$0xff]  }
 0x128   :  { %1906 = vmatprep.subr.bf16.mxu0 %v2963_v51  ;;  %v3035_v51 = vld [vmem:[%s4085_s3 + $0x20c] ss:$16 sps:$4 sm:$0xff]  }
 0x12b   :  { %1907 = vmatpush1.bf16.msra.mxu0 %v2961_v52  ;;  %v3070_v52 = vld [vmem:[%s4087_s5 + $0x50] sm:$0xff]  }
 0x12c   :  { %1908 = vmatprep.subr.bf16.mxu0 %v2969_v53  ;;  %v3033_v53 = vld [vmem:[%s4085_s3 + $0x208] ss:$16 sps:$4 sm:$0xff]  }
 0x12f   :  { %1909 = vmatpush2.bf16.msra.mxu0 %v2967_v54  ;;  %v3038_v54 = vld [vmem:[%s4085_s3 + $0x3ec] ss:$16 sps:$4 sm:$0xff]  }
 0x130   :  { %1910 = vmatprep.subr.bf16.mxu0 %v2975_v55  ;;  %v3036_v55 = vld [vmem:[%s4085_s3 + $0x3e8] ss:$16 sps:$4 sm:$0xff]  }
 0x133   :  { %1911 = vmatpush2.bf16.msra.mxu0 %v2973_v56  ;;  %v3041_v56 = vld [vmem:[%s4085_s3 + $0x3cc] ss:$16 sps:$4 sm:$0xff]  }
 0x134   :  { %1912 = vmatprep.subr.bf16.mxu0 %v2981_v57  ;;  %v3039_v57 = vld [vmem:[%s4085_s3 + $0x3c8] ss:$16 sps:$4 sm:$0xff]  }
 0x137   :  { %1913 = vmatpush2.bf16.msra.mxu0 %v2979_v58  ;;  %v3044_v58 = vld [vmem:[%s4085_s3 + $0x3ac] ss:$16 sps:$4 sm:$0xff]  }
 0x138   :  { %1914 = vmatprep.subr.bf16.mxu0 %v2987_v59  ;;  %v3042_v59 = vld [vmem:[%s4085_s3 + $0x3a8] ss:$16 sps:$4 sm:$0xff]  }
 0x13b   :  { %1915 = vmatpush2.bf16.msra.mxu0 %v2985_v60  ;;  %v3047_v60 = vld [vmem:[%s4085_s3 + $0x38c] ss:$16 sps:$4 sm:$0xff]  }
 0x13c   :  { %1916 = vmatprep.subr.bf16.mxu0 %v2993_v61  ;;  %v3045_v61 = vld [vmem:[%s4085_s3 + $0x388] ss:$16 sps:$4 sm:$0xff]  }
 0x13f   :  { %1917 = vmatpush2.bf16.msra.mxu0 %v2991_v62  ;;  %v3050_v62 = vld [vmem:[%s4085_s3 + $0x36c] ss:$16 sps:$4 sm:$0xff]  }
 0x140   :  { %1918 = vmatprep.subr.bf16.mxu0 %v2999_v0  ;;  %v3048_v0 = vld [vmem:[%s4085_s3 + $0x368] ss:$16 sps:$4 sm:$0xff]  }
 0x142   :  { %v964_v6 = vpop.f32.mrf.mxu0 }
 0x143   :  { %v1005_v7 = vpop.f32.mrf.mxu1  ;;  %v965_v8 = vadd.f32 %v964_v6, %v170_v3  ;;  %1919 = vmatpush2.bf16.msra.mxu0 %v2997_v2  ;;  %v3053_v2 = vld [vmem:[%s4085_s3 + $0x34c] ss:$16 sps:$4 sm:$0xff]   ;;  %v3051_v3 = vld [vmem:[%s4085_s3 + $0x348] ss:$16 sps:$4 sm:$0xff]  }
 0x144   :  { %v966_v11 = vpop.f32.mrf.mxu0  ;;  %1920 = vmatprep.subr.bf16.mxu0 %v3005_v4  ;;  %v3056_v4 = vld [vmem:[%s4085_s3 + $0x32c] ss:$16 sps:$4 sm:$0xff]  }
 0x145   :  { %v1007_v12 = vpop.f32.mrf.mxu1  ;;  %v1006_v15 = vadd.f32 %v1005_v7, %v965_v8  ;;  %v967_v16 = vadd.f32 %v966_v11, %v174_v5  ;;  %v3054_v5 = vld [vmem:[%s4085_s3 + $0x328] ss:$16 sps:$4 sm:$0xff]   ;;  %v3059_v6 = vld [vmem:[%s4085_s3 + $0x30c] ss:$16 sps:$4 sm:$0xff]   ;;  %v3071_v8 = vld [vmem:[%s4087_s5 + $0x10] sm:$0xff]  }
 0x146   :  { %v968_v17 = vpop.f32.mrf.mxu0  ;;  %v3057_v7 = vld [vmem:[%s4085_s3 + $0x308] ss:$16 sps:$4 sm:$0xff]  }
 0x147   :  { %v1009_v9 = vpop.f32.mrf.mxu1  ;;  %v1008_v19 = vadd.f32 %v1007_v12, %v967_v16  ;;  %1921 = vmatpush2.bf16.msra.mxu0 %v3003_v10  ;;  %v1014_v21 = vmax.f32 %v1006_v15, 0.0  ;;  %v3072_v10 = vld [vmem:[%s4087_s5 + $0x48] sm:$0xff]   ;;  %v3074_v12 = vld [vmem:[%s4087_s5 + $0x40] sm:$0xff]   ;;  %v3076_v15 = vld [vmem:[%s4087_s5 + $0xf8] sm:$0xff]  }
 0x148   :  { %v969_v22 = vpop.f32.mrf.mxu0  ;;  %1922 = vmatprep.subr.bf16.mxu0 %v3011_v14  ;;  %v3073_v11 = vld [vmem:[%s4087_s5 + $0x8] sm:$0xff]   ;;  %v3075_v14 = vld [vmem:[%s4087_s5] sm:$0xff]   ;;  %v3077_v16 = vld [vmem:[%s4087_s5 + $0xb8] sm:$0xff]  }
 0x149   :  { %v1010_v23 = vpop.f32.mrf.mxu1  ;;  %v1015_v24 = vmax.f32 %v1008_v19, 0.0  ;;  %v3874_v27 = vpack.c.bf16 %v1014_v21, %v1014_v21  ;;  %v3078_v17 = vld [vmem:[%s4087_s5 + $0xf0] sm:$0xff]   ;;  %v3080_v19 = vld [vmem:[%s4087_s5 + $0xe8] sm:$0xff]   ;;  %v3082_v21 = vld [vmem:[%s4087_s5 + $0xe0] sm:$0xff]  }
 0x14a   :  { %v3079_v9 = vld [vmem:[%s4087_s5 + $0xb0] sm:$0xff]   ;;  %v3083_v22 = vld [vmem:[%s4087_s5 + $0xa0] sm:$0xff]   ;;  %v3084_v23 = vld [vmem:[%s4087_s5 + $0xd8] sm:$0xff]  }
 0x14b   :  { %v1019_v25 = vpack.c.bf16 %v1015_v24, %v1015_v24  ;;  %1923 = vmatpush2.bf16.msra.mxu0 %v3009_v13  ;;  %v3081_v13 = vld [vmem:[%s4087_s5 + $0xa8] sm:$0xff]   ;;  %v3085_v24 = vld [vmem:[%s4087_s5 + $0x98] sm:$0xff]  }
 0x14c   :  { %2630 = vmatprep.subr.bf16.mxu0 %v3060_v33  ;;  %v3091_v33 = vld [vmem:[%s4087_s5 + $0x80] sm:$0xff]  }
 0x14d   :  { %1883 = vmatprep.mubr.bf16.mxu1 %v1019_v25 }
 0x14e   :  { %1925 = vmatmul.mubr.bf16.vlgmr.msra.gmra.mxu0 %v3770_v37  ;;  %1884 = vmatmul.mubr.bf16.vlgmr.msra.gmra.mxu1 %v3874_v27  ;;  %v3063_v37 = vld [vmem:[%s4087_s5 + $0x30] sm:$0xff]  }
 0x14f   :  { %1934 = vmatpush1.bf16.msra.mxu1 %v3012_v26  ;;  %1965 = vmatprep.mubr.bf16.mxu1 %v1019_v25  ;;  %v3086_v25 = vld [vmem:[%s4087_s5 + $0xd0] sm:$0xff]  }
 0x150   :  { %1935 = vmatprep.subr.bf16.mxu1 %v3017_v28  ;;  %2631 = vmatpush3.bf16.msra.mxu0 %v3061_v34  ;;  %v3087_v26 = vld [vmem:[%s4087_s5 + $0x90] sm:$0xff]   ;;  %v3088_v28 = vld [vmem:[%s4087_s5 + $0xc8] sm:$0xff]  }
 0x151   :  { %2632 = vmatprep.subr.bf16.mxu0 %v3062_v35  ;;  %v1148_v35 = vld [vmem:[%s4086_s4] sm:$0xf] }
 0x153   :  { %1936 = vmatpush1.bf16.msra.mxu1 %v3015_v29  ;;  %v3089_v29 = vld [vmem:[%s4087_s5 + $0x88] sm:$0xff]  }
 0x154   :  { %1937 = vmatprep.subr.bf16.mxu1 %v3020_v30  ;;  %2633 = vmatpush3.bf16.msra.mxu0 %v3063_v37  ;;  %v1157_v37 = vrot.slane %v1148_v35, %v165_v20  ;;  %v1165_v20 = vrot.slane %v1148_v35, %v173_v1  ;;  %v2597_v1 = vld [vmem:[%s4088_s6] ss:$0 sm:$0xff] }
 0x155   :  { %2634 = vmatprep.subr.bf16.mxu0 %v3064_v39 }
 0x157   :  { %1938 = vmatpush1.bf16.msra.mxu1 %v3018_v31 }
 0x158   :  { %1939 = vmatprep.subr.bf16.mxu1 %v3023_v32  ;;  %2635 = vmatpush3.bf16.msra.mxu0 %v3065_v41  ;;  %v3090_v32 = vld [vmem:[%s4087_s5 + $0xc0] sm:$0xff]  }
 0x159   :  { %2636 = vmatprep.subr.bf16.mxu0 %v3066_v43 }
 0x15b   :  { %1940 = vmatpush1.bf16.msra.mxu1 %v3021_v36  ;;  %v1153_v36 = vrot.slane %v1148_v35, %v161_v18  ;;  %v1161_v18 = vrot.slane %v1148_v35, %v169_v63 }
 0x15c   :  { %1941 = vmatprep.subr.bf16.mxu1 %v3026_v38  ;;  %2637 = vmatpush3.bf16.msra.mxu0 %v3067_v46 }
 0x15d   :  { %2638 = vmatprep.subr.bf16.mxu0 %v3068_v48 }
 0x15f   :  { %1942 = vmatpush1.bf16.msra.mxu1 %v3024_v40 }
 0x160   :  { %1943 = vmatprep.subr.bf16.mxu1 %v3029_v42  ;;  %2639 = vmatpush3.bf16.msra.mxu0 %v3069_v50 }
 0x161   :  { %2640 = vmatprep.subr.bf16.mxu0 %v3070_v52 }
 0x163   :  { %1944 = vmatpush1.bf16.msra.mxu1 %v3027_v44 }
 0x164   :  { %1945 = vmatprep.subr.bf16.mxu1 %v3032_v47  ;;  %2641 = vmatpush3.bf16.msra.mxu0 %v3071_v8 }
 0x165   :  { %2642 = vmatprep.subr.bf16.mxu0 %v3072_v10 }
 0x167   :  { %1946 = vmatpush1.bf16.msra.mxu1 %v3030_v49 }
 0x168   :  { %1947 = vmatprep.subr.bf16.mxu1 %v3035_v51  ;;  %2643 = vmatpush3.bf16.msra.mxu0 %v3073_v11 }
 0x169   :  { %2644 = vmatprep.subr.bf16.mxu0 %v3074_v12 }
 0x16b   :  { %1948 = vmatpush1.bf16.msra.mxu1 %v3033_v53 }
 0x16c   :  { %1949 = vmatprep.subr.bf16.mxu1 %v3038_v54  ;;  %2645 = vmatpush3.bf16.msra.mxu0 %v3075_v14 }
 0x16f   :  { %1950 = vmatpush2.bf16.msra.mxu1 %v3036_v55 }
 0x170   :  { %1951 = vmatprep.subr.bf16.mxu1 %v3041_v56 }
 0x173   :  { %1952 = vmatpush2.bf16.msra.mxu1 %v3039_v57 }
 0x174   :  { %1953 = vmatprep.subr.bf16.mxu1 %v3044_v58 }
 0x177   :  { %1954 = vmatpush2.bf16.msra.mxu1 %v3042_v59 }
 0x178   :  { %1955 = vmatprep.subr.bf16.mxu1 %v3047_v60 }
 0x17b   :  { %1956 = vmatpush2.bf16.msra.mxu1 %v3045_v61 }
 0x17c   :  { %1957 = vmatprep.subr.bf16.mxu1 %v3050_v62 }
 0x17f   :  { %1958 = vmatpush2.bf16.msra.mxu1 %v3048_v0 }
 0x180   :  { %1959 = vmatprep.subr.bf16.mxu1 %v3053_v2 }
 0x183   :  { %1960 = vmatpush2.bf16.msra.mxu1 %v3051_v3 }
 0x184   :  { %1961 = vmatprep.subr.bf16.mxu1 %v3056_v4 }
 0x187   :  { %1962 = vmatpush2.bf16.msra.mxu1 %v3054_v5 }
 0x188   :  { %1963 = vmatprep.subr.bf16.mxu1 %v3059_v6 }
 0x18b   :  { %1964 = vmatpush2.bf16.msra.mxu1 %v3057_v7 }
 0x18c   :  { %2652 = vmatprep.subr.bf16.mxu1 %v3076_v15 }
 0x18e   :  { %1966 = vmatmul.mubr.bf16.vlgmr.msra.gmra.mxu1 %v3874_v27 }
 0x18f   :  { %2653 = vmatpush3.bf16.msra.mxu1 %v3077_v16 }
 0x190   :  { %2654 = vmatprep.subr.bf16.mxu1 %v3078_v17 }
 0x193   :  { %2655 = vmatpush3.bf16.msra.mxu1 %v3079_v9 }
 0x194   :  { %2656 = vmatprep.subr.bf16.mxu1 %v3080_v19 }
 0x197   :  { %2657 = vmatpush3.bf16.msra.mxu1 %v3081_v13 }
 0x198   :  { %2658 = vmatprep.subr.bf16.mxu1 %v3082_v21 }
 0x19b   :  { %2659 = vmatpush3.bf16.msra.mxu1 %v3083_v22 }
 0x19c   :  { %2660 = vmatprep.subr.bf16.mxu1 %v3084_v23 }
 0x19f   :  { %2661 = vmatpush3.bf16.msra.mxu1 %v3085_v24 }
 0x1a0   :  { %2662 = vmatprep.subr.bf16.mxu1 %v3086_v25 }
 0x1a3   :  { %2663 = vmatpush3.bf16.msra.mxu1 %v3087_v26 }
 0x1a4   :  { %2664 = vmatprep.subr.bf16.mxu1 %v3088_v28 }
 0x1a7   :  { %2665 = vmatpush3.bf16.msra.mxu1 %v3089_v29 }
 0x1a8   :  { %2666 = vmatprep.subr.bf16.mxu1 %v3090_v32 }
 0x1ab   :  { %2667 = vmatpush3.bf16.msra.mxu1 %v3091_v33 }
 0x1ce   :  { %v1844_v27 = vpop.f32.mrf.mxu0 }
 0x1cf   :  { %v1845_v38 = vadd.f32 %v1844_v27, %v1153_v36 }
 0x1d0   :  { %v1846_v30 = vpop.f32.mrf.mxu0 }
 0x1d1   :  { %v1847_v41 = vadd.f32 %v1846_v30, %v1157_v37 }
 0x1d2   :  { %v1848_v31 = vpop.f32.mrf.mxu0 }
 0x1d4   :  { %v1849_v34 = vpop.f32.mrf.mxu0 }
 0x20e   :  { %v1926_v39 = vpop.f32.mrf.mxu0  ;;  %v1885_v40 = vpop.f32.mrf.mxu1 }
 0x20f   :  { %v1886_v42 = vadd.f32 %v1885_v40, %v1845_v38  ;;  %v1927_v55 = vadd.f32 %v1926_v39, %v1161_v18 }
 0x210   :  { %v1928_v43 = vpop.f32.mrf.mxu0  ;;  %v1887_v44 = vpop.f32.mrf.mxu1 }
 0x211   :  { %v1888_v46 = vadd.f32 %v1887_v44, %v1847_v41  ;;  %v1974_v47 = vmax.f32 %v1886_v42, 0.0  ;;  %v1929_v57 = vadd.f32 %v1928_v43, %v1165_v20 }
 0x212   :  { %v1930_v48 = vpop.f32.mrf.mxu0  ;;  %v1889_v49 = vpop.f32.mrf.mxu1 }
 0x213   :  { %v1975_v50 = vmax.f32 %v1888_v46, 0.0  ;;  %v1978_v54 = vpack.c.bf16 %v1974_v47, %v1974_v47 }
 0x214   :  { %v1931_v51 = vpop.f32.mrf.mxu0  ;;  %v1890_v52 = vpop.f32.mrf.mxu1 }
 0x215   :  { %v1979_v53 = vpack.c.bf16 %v1975_v50, %v1975_v50 }
 0x217   :  { %2277 = vmatprep.mubr.bf16.mxu0 %v1979_v53 }
 0x218   :  { %2278 = vmatmul.mubr.bf16.vlgmr.msra.gmra.mxu0 %v1978_v54 }
 0x24e   :  { %v1967_v56 = vpop.f32.mrf.mxu1 }
 0x24f   :  { %v1968_v58 = vadd.f32 %v1967_v56, %v1927_v55 }
 0x250   :  { %v1969_v59 = vpop.f32.mrf.mxu1 }
 0x251   :  { %v1970_v60 = vadd.f32 %v1969_v59, %v1929_v57  ;;  %v1976_v61 = vmax.f32 %v1968_v58, 0.0 }
 0x252   :  { %v1971_v62 = vpop.f32.mrf.mxu1 }
 0x253   :  { %v1977_v0 = vmax.f32 %v1970_v60, 0.0  ;;  %v1980_v4 = vpack.c.bf16 %v1976_v61, %v1976_v61 }
 0x254   :  { %v1972_v2 = vpop.f32.mrf.mxu1 }
 0x255   :  { %v1981_v3 = vpack.c.bf16 %v1977_v0, %v1977_v0 }
 0x257   :  { %2317 = vmatprep.mubr.bf16.mxu1 %v1981_v3 }
 0x258   :  { %2318 = vmatmul.mubr.bf16.vlgmr.msra.gmra.mxu1 %v1980_v4 }
 0x2d8   :  { %v2646_v5 = vpop.f32.mrf.mxu0 }
 0x2da   :  { %v2647_v6 = vpop.f32.mrf.mxu0 }
 0x2db   :  { %v2648_v45 = vadd.f32 %v2647_v6, %v2646_v5 }
 0x2dc   :  { %v2649_v63 = vpop.f32.mrf.mxu0 }
 0x2dd   :  { %v2280_v11 = vadd.f32 %v2648_v45, %v2597_v1 }
 0x2de   :  { %v2650_v7 = vpop.f32.mrf.mxu0 }
 0x318   :  { %v2668_v8 = vpop.f32.mrf.mxu1 }
 0x31a   :  { %v2669_v10 = vpop.f32.mrf.mxu1 }
 0x31b   :  { %v2670_v12 = vadd.f32 %v2669_v10, %v2668_v8 }
 0x31c   :  { %v2671_v14 = vpop.f32.mrf.mxu1 }
 0x31d   :  { %v2320_v15 = vadd.f32 %v2670_v12, %v2280_v11 }
 0x31e   :  { %v2672_v16 = vpop.f32.mrf.mxu1 }
 0x31f   :  { %2325 = vst [vmem:[#allocation2] sm:$0x3] %v2320_v15 }
 0x320   :  { %3103 = shalt.err (!%p3100_p4)
}
 0x321   :  { %2335 = dma.vmem_to_hbm [thread:$0]  %s2333_s12, 32, %s4089_s7, [#allocation3]  }
 0x322   :  { %3112 = dma.done.wait [#allocation3], 32  }
 0x323   :  { %3113 = vsyncadd [#allocation3], 4294967264 }
 0x324   :  { %2339 = vsyncpa [#allocation3], 1 }

// kernel: vgg_forward.6
= control target key start
LH: loop header
LB: loop body
LE: loop exit
PB: predicated region body
PF: predicated region fallthrough
CT: control target
= control target key end

     0   :  { %8 = vsyncpa [#allocation3], 0  ;;  %s6998_s0 = inlined_call_operand.vmem [shape: bf16[2,4,4,256], index: 0, kind: input, shape index: {}]   ;;  %s6999_s1 = inlined_call_operand.hbm [shape: bf16[9,256,512], index: 1, kind: input, shape index: {}]   ;;  %s7000_s2 = inlined_call_operand.hbm [shape: f32[1,512], index: 2, kind: input, shape index: {}]   ;;  %s7001_s3 = inlined_call_operand.vmem [shape: bf16[2,1,1,512], index: 3, kind: output, shape index: {}]  }
   0x1   :  { %9 = vsyncpa [#allocation5], 0  ;;  %s6731_s12 = smov 0  }
   0x2 LB: > { %s6737_s13 = sadd.s32 4294967295, %s6703_s12   ;;  %p5108_p0 = scmp.ge.s32.totalorder %s6703_s12, 1  ;;  %s6703_s12 = sphi %s6731_s12, %s15_s12  }
   0x3   : > { %p114_p1 = scmp.lt.s32.totalorder %s6703_s12, 3  ;;  %s6705_s14 = smov [#allocation2]  }
   0x4   : > { %s126_s15 = sshll.u32 %s6705_s14, 4  ;;  %p5755_p3 = scmp.eq.s32.totalorder %s6737_s13, 0  ;;  %s127_s15 = int_to_ptr.vmem [resolvable:$true] %s126_s15 }
   0x5   : > { %p6741_p2 = pnand %p5108_p0, %p114_p1  ;;  %s6706_s17 = smov [#allocation4]  }
   0x6   : > { %s140_s18 = sshll.u32 %s6706_s17, 4  ;;  %s6648_s20 = scalar_lea.vmem %s127_s15, 73728  ;;  %s141_s18 = int_to_ptr.vmem [resolvable:$true] %s140_s18 }
   0x7   : > { %p5748_p4 = pneg %p6741_p2  ;;  %p6649_p7 = scmp.ne.s32.totalorder %s127_s15, %s6648_s20 }
   0x8   : > { %p6656_p10 = scmp.lt.s32.totalorder %s127_s15, %s127_s15  ;;  %p6657_p11 = scmp.lt.s32.totalorder %s6648_s20, %s6648_s20 }
   0x9   : > { %p6750_p5 = pnand %p5755_p3, %p5748_p4 }
   0xa   : > { %p6658_p12 = por %p6657_p11, %p6656_p10 }
   0xb   : > { %p6639_p6 = pneg %p6750_p5 }
   0xd   : > { %p6651_p8 = pnand %p6649_p7, %p6639_p6 }
   0xf   : > { %p6652_p9 = pneg %p6651_p8 }
  0x11   : > { %p6659_p13 = pnand %p6658_p12, %p6652_p9 }
  0x13   : > { %6662 = shalt.err (!%p6659_p13)
}
  0x14   : > { %s6707_s21 = smov 256   ;;  %s6708_s22 = smov 16  }
  0x15   : > { %5751 = dma.hbm_to_vmem [thread:$0]  (!%p6750_p5), %s6999_s1, 73728, %s127_s15, [#allocation3], %s6707_s21, %s6707_s21, %s6708_s22  }
  0x16   : > { %s6674_s25 = scalar_lea.vmem %s141_s18, 64  ;;  %p6682_p7 = scmp.lt.s32.totalorder %s141_s18, %s141_s18 }
  0x17   : > { %p6675_p0 = scmp.ne.s32.totalorder %s141_s18, %s6674_s25  ;;  %p6683_p8 = scmp.lt.s32.totalorder %s6674_s25, %s6674_s25 }
  0x19   : > { %p6677_p1 = pnand %p6675_p0, %p6639_p6  ;;  %p6684_p10 = por %p6683_p8, %p6682_p7 }
  0x1b   : > { %p6678_p4 = pneg %p6677_p1 }
  0x1d   : > { %p6685_p9 = pnand %p6684_p10, %p6678_p4 }
  0x1f   : > { %6688 = shalt.err (!%p6685_p9)
}
  0x20   : > { %5754 = dma.hbm_to_vmem [thread:$0]  (!%p6750_p5), %s7000_s2, 64, %s141_s18, [#allocation5]  }
  0x21   : > { %161 = sbr.rel (%p6741_p2) target bundleno = 843 (0x34b), region = 32 }
  0x26   : > { %6694 = dma.done.wait (%p5755_p3), [#allocation3], 73728  }
  0x27   : > { %6696 = vsyncadd (%p5755_p3), [#allocation3], 4294893568 }
  0x28   : > { %6698 = dma.done.wait (%p5755_p3), [#allocation5], 64  }
  0x29   : > { %6700 = vsyncadd (%p5755_p3), [#allocation5], 4294967232  ;;  %v5773_v0 = vld [vmem:[#allocation2 + $0x2e4] ss:$16 sps:$4 sm:$0xff]   ;;  %v5775_v1 = vld [vmem:[#allocation2 + $0x2ec] ss:$16 sps:$4 sm:$0xff]   ;;  %v401_v44 = vlaneseq }
  0x2a   : > { %742 = vmatprep.subr.bf16.mxu0 %v5773_v0  ;;  %v5777_v2 = vld [vmem:[#allocation2 + $0x2e0] ss:$16 sps:$4 sm:$0xff]   ;;  %v5778_v3 = vld [vmem:[#allocation2 + $0x2e8] ss:$16 sps:$4 sm:$0xff]   ;;  %783 = vmatprep.subr.bf16.mxu1 %v5775_v1  ;;  %v5779_v4 = vld [vmem:[#allocation2 + $0x2c4] ss:$16 sps:$4 sm:$0xff]  }
  0x2b   : > { %743 = vmatpush1.bf16.msra.mxu0 %v5777_v2  ;;  %784 = vmatpush1.bf16.msra.mxu1 %v5778_v3  ;;  %v5781_v5 = vld [vmem:[#allocation2 + $0x2cc] ss:$16 sps:$4 sm:$0xff]   ;;  %v5783_v6 = vld [vmem:[#allocation2 + $0x2c0] ss:$16 sps:$4 sm:$0xff]   ;;  %v5784_v7 = vld [vmem:[#allocation2 + $0x2c8] ss:$16 sps:$4 sm:$0xff]  }
  0x2c   : > { %744 = vmatprep.subr.bf16.mxu0 %v5779_v4  ;;  %785 = vmatprep.subr.bf16.mxu1 %v5781_v5  ;;  %v5785_v8 = vld [vmem:[#allocation2 + $0x2a4] ss:$16 sps:$4 sm:$0xff]   ;;  %v5787_v9 = vld [vmem:[#allocation2 + $0x2ac] ss:$16 sps:$4 sm:$0xff]   ;;  %v5789_v10 = vld [vmem:[#allocation2 + $0x2a0] ss:$16 sps:$4 sm:$0xff]  }
  0x2d   : > { %v5790_v11 = vld [vmem:[#allocation2 + $0x2a8] ss:$16 sps:$4 sm:$0xff]   ;;  %v5791_v12 = vld [vmem:[#allocation2 + $0x284] ss:$16 sps:$4 sm:$0xff]   ;;  %v5793_v13 = vld [vmem:[#allocation2 + $0x28c] ss:$16 sps:$4 sm:$0xff]  }
  0x2e   : > { %v5795_v14 = vld [vmem:[#allocation2 + $0x280] ss:$16 sps:$4 sm:$0xff]   ;;  %v5796_v15 = vld [vmem:[#allocation2 + $0x288] ss:$16 sps:$4 sm:$0xff]   ;;  %v5797_v16 = vld [vmem:[#allocation2 + $0x264] ss:$16 sps:$4 sm:$0xff]  }
  0x2f   : > { %745 = vmatpush1.bf16.msra.mxu0 %v5783_v6  ;;  %786 = vmatpush1.bf16.msra.mxu1 %v5784_v7  ;;  %v5799_v17 = vld [vmem:[#allocation2 + $0x26c] ss:$16 sps:$4 sm:$0xff]   ;;  %v5801_v18 = vld [vmem:[#allocation2 + $0x260] ss:$16 sps:$4 sm:$0xff]   ;;  %v5802_v19 = vld [vmem:[#allocation2 + $0x268] ss:$16 sps:$4 sm:$0xff]  }
  0x30   : > { %746 = vmatprep.subr.bf16.mxu0 %v5785_v8  ;;  %787 = vmatprep.subr.bf16.mxu1 %v5787_v9  ;;  %v5803_v20 = vld [vmem:[#allocation2 + $0x244] ss:$16 sps:$4 sm:$0xff]   ;;  %v5805_v21 = vld [vmem:[#allocation2 + $0x24c] ss:$16 sps:$4 sm:$0xff]   ;;  %vm299_vm0 = vsmask.f32 256 }
  0x31   : > { %v5807_v22 = vld [vmem:[#allocation2 + $0x240] ss:$16 sps:$4 sm:$0xff]   ;;  %vm300_vm1 = vsmask.f32 1284  ;;  %v5808_v23 = vld [vmem:[#allocation2 + $0x248] ss:$16 sps:$4 sm:$0xff]  }
  0x32   : > { %v5809_v24 = vld [vmem:[#allocation2 + $0x224] ss:$16 sps:$4 sm:$0xff]   ;;  %v5811_v25 = vld [vmem:[#allocation2 + $0x22c] ss:$16 sps:$4 sm:$0xff]   ;;  %v5813_v26 = vld [vmem:[#allocation2 + $0x220] ss:$16 sps:$4 sm:$0xff]  }
  0x33   : > { %747 = vmatpush1.bf16.msra.mxu0 %v5789_v10  ;;  %788 = vmatpush1.bf16.msra.mxu1 %v5790_v11  ;;  %v5814_v27 = vld [vmem:[#allocation2 + $0x228] ss:$16 sps:$4 sm:$0xff]   ;;  %vm301_vm2 = vmor %vm299_vm0, %vm300_vm1  ;;  %vm302_vm3 = vsmask.f32 2312  ;;  %v5815_v28 = vld [vmem:[#allocation2 + $0x204] ss:$16 sps:$4 sm:$0xff]  }
  0x34   : > { %748 = vmatprep.subr.bf16.mxu0 %v5791_v12  ;;  %789 = vmatprep.subr.bf16.mxu1 %v5793_v13  ;;  %v5817_v29 = vld [vmem:[#allocation2 + $0x20c] ss:$16 sps:$4 sm:$0xff]   ;;  %vm303_vm4 = vmor %vm301_vm2, %vm302_vm3  ;;  %v5819_v30 = vld [vmem:[#allocation2 + $0x200] ss:$16 sps:$4 sm:$0xff]   ;;  %vm304_vm5 = vsmask.f32 3340 }
  0x35   : > { %v5820_v31 = vld [vmem:[#allocation2 + $0x208] ss:$16 sps:$4 sm:$0xff]   ;;  %v5821_v32 = vld [vmem:[#allocation2 + $0x3e4] ss:$16 sps:$4 sm:$0xff]   ;;  %v5823_v33 = vld [vmem:[#allocation2 + $0x3ec] ss:$16 sps:$4 sm:$0xff]  }
  0x36   : > { %p188_p2 = scmp.lt.s32.totalorder %s6737_s13, 1  ;;  %v5825_v34 = vld [vmem:[#allocation2 + $0x3e0] ss:$16 sps:$4 sm:$0xff]   ;;  %v5826_v35 = vld [vmem:[#allocation2 + $0x3e8] ss:$16 sps:$4 sm:$0xff]   ;;  %vm305_vm6 = vmor %vm303_vm4, %vm304_vm5  ;;  %v6798_v53 = vshrl.u32 %v401_v44, 7 }
  0x37   : > { %749 = vmatpush1.bf16.msra.mxu0 %v5795_v14  ;;  %790 = vmatpush1.bf16.msra.mxu1 %v5796_v15  ;;  %vm306_vm7 = vsmask.f32 4368  ;;  %v5827_v36 = vld [vmem:[#allocation2 + $0x3c4] ss:$16 sps:$4 sm:$0xff]   ;;  %v5829_v37 = vld [vmem:[#allocation2 + $0x3cc] ss:$16 sps:$4 sm:$0xff]  }
  0x38   : > { %750 = vmatprep.subr.bf16.mxu0 %v5797_v16  ;;  %791 = vmatprep.subr.bf16.mxu1 %v5799_v17  ;;  %s7013_s13 = smov (!%p188_p2, %s6737_s13), 1  ;;  %vm307_vm8 = vmor %vm305_vm6, %vm306_vm7  ;;  %vm308_vm9 = vsmask.f32 5396  ;;  %v5831_v38 = vld [vmem:[#allocation2 + $0x3c0] ss:$16 sps:$4 sm:$0xff]   ;;  %vm5014_vm15 = vcmask 1040384  }
  0x39   : > { %v5832_v39 = vld [vmem:[#allocation2 + $0x3c8] ss:$16 sps:$4 sm:$0xff]   ;;  %v5833_v40 = vld [vmem:[#allocation2 + $0x3a4] ss:$16 sps:$4 sm:$0xff]   ;;  %v5835_v41 = vld [vmem:[#allocation2 + $0x3ac] ss:$16 sps:$4 sm:$0xff]  }
  0x3a   : > { %s5739_s28 = sshll.u32 %s7013_s13, 4  ;;  %v5837_v42 = vld [vmem:[#allocation2 + $0x3a0] ss:$16 sps:$4 sm:$0xff]   ;;  %v5838_v43 = vld [vmem:[#allocation2 + $0x3a8] ss:$16 sps:$4 sm:$0xff]   ;;  %vm309_vm10 = vmor %vm307_vm8, %vm308_vm9  ;;  %vm5016_vm1 = vcmask 1041409  }
  0x3b   : > { %751 = vmatpush1.bf16.msra.mxu0 %v5801_v18  ;;  %792 = vmatpush1.bf16.msra.mxu1 %v5802_v19  ;;  %vm310_vm11 = vsmask.f32 6424  ;;  %v5839_v45 = vld [vmem:[#allocation2 + $0x384] ss:$16 sps:$4 sm:$0xff]   ;;  %s6791_s4 = scalar_lea.vmem %s6998_s0, %s5739_s28  ;;  %v6709_v46 = vmov 1966171168   ;;  %vm6974_vm3 = vmand %vm5014_vm15, %vm299_vm0 }
  0x3c   : > { %752 = vmatprep.subr.bf16.mxu0 %v5803_v20  ;;  %793 = vmatprep.subr.bf16.mxu1 %v5805_v21  ;;  %v399_v47 = vunpack.c.l.s4 %v6709_v46  ;;  %v5841_v48 = vld [vmem:[#allocation2 + $0x38c] ss:$16 sps:$4 sm:$0xff]   ;;  %v5843_v49 = vld [vmem:[#allocation2 + $0x380] ss:$16 sps:$4 sm:$0xff]   ;;  %v5844_v50 = vld [vmem:[#allocation2 + $0x388] ss:$16 sps:$4 sm:$0xff]  }
  0x3d   : > { %vm6793_vm12 = vmor %vm309_vm10, %vm310_vm11  ;;  %vm312_vm13 = vsmask.f32 7452  ;;  %v5120_v52 = vld.sshfl [vmem:[%s6791_s4] sm:$0x33 pattern:$0x75316420] }
  0x3e   : > { %v5121_v54 = vld.sshfl [vmem:[%s6791_s4 + $0x4] sm:$0x33 pattern:$0x75316420]  ;;  %v290_v55 = vcombine.high %v5120_v52, %v5120_v52  ;;  %v315_v56 = vshrl.u32 %v5120_v52, 16  ;;  %v400_v57 = vunpack.c.0.s8 %v399_v47  ;;  %vm6803_vm14 = vmor %vm6793_vm12, %vm312_vm13  ;;  %vm5020_vm5 = vcmask 1042434  }
  0x3f   : > { %753 = vmatpush1.bf16.msra.mxu0 %v5807_v22  ;;  %794 = vmatpush1.bf16.msra.mxu1 %v5808_v23  ;;  %v5845_v58 = vld [vmem:[#allocation2 + $0x364] ss:$16 sps:$4 sm:$0xff]   ;;  %v5847_v59 = vld [vmem:[#allocation2 + $0x36c] ss:$16 sps:$4 sm:$0xff]   ;;  %v298_v60 = vcombine.high %v5121_v54, %v5121_v54  ;;  %v324_v62 = vshrl.u32 %v5121_v54, 16  ;;  %vm5024_vm8 = vcmask 1043459  }
  0x40   : > { %754 = vmatprep.subr.bf16.mxu0 %v5809_v24  ;;  %795 = vmatprep.subr.bf16.mxu1 %v5811_v25  ;;  %v320_v63 = vshll.u32 %v290_v55, 16  ;;  %v5849_v0 = vld [vmem:[#allocation2 + $0x360] ss:$16 sps:$4 sm:$0xff]   ;;  %v5850_v2 = vld [vmem:[#allocation2 + $0x368] ss:$16 sps:$4 sm:$0xff]   ;;  %v6810_v4 = vsub.s32 %v400_v57, %v6798_v53  ;;  %s5117_s5 = sshll.u32 %s7013_s13, 2 }
  0x41   : > { %v329_v1 = vshll.u32 %v298_v60, 16  ;;  %v5851_v5 = vld [vmem:[#allocation2 + $0x344] ss:$16 sps:$4 sm:$0xff]   ;;  %v5853_v6 = vld [vmem:[#allocation2 + $0x34c] ss:$16 sps:$4 sm:$0xff]   ;;  %s196_s8 = scalar_lea.vmem %s7001_s3, %s5117_s5 }
  0x42   : > { %v322_v3 = vsel %vm6803_vm14, %v315_v56, %v320_v63  ;;  %v5855_v9 = vld [vmem:[#allocation2 + $0x340] ss:$16 sps:$4 sm:$0xff]   ;;  %v5856_v10 = vld [vmem:[#allocation2 + $0x348] ss:$16 sps:$4 sm:$0xff]   ;;  %v5857_v12 = vld [vmem:[#allocation2 + $0x324] ss:$16 sps:$4 sm:$0xff]  }
  0x43   : > { %755 = vmatpush1.bf16.msra.mxu0 %v5813_v26  ;;  %796 = vmatpush1.bf16.msra.mxu1 %v5814_v27  ;;  %v331_v7 = vsel %vm6803_vm14, %v324_v62, %v329_v1  ;;  %v5859_v13 = vld [vmem:[#allocation2 + $0x32c] ss:$16 sps:$4 sm:$0xff]   ;;  %v5861_v15 = vld [vmem:[#allocation2 + $0x320] ss:$16 sps:$4 sm:$0xff]   ;;  %v5862_v16 = vld [vmem:[#allocation2 + $0x328] ss:$16 sps:$4 sm:$0xff]  }
  0x44   : > { %756 = vmatprep.subr.bf16.mxu0 %v5815_v28  ;;  %797 = vmatprep.subr.bf16.mxu1 %v5817_v29  ;;  %v397_v8 = vcombine.low %v322_v3, %v331_v7  ;;  %v5863_v18 = vld [vmem:[#allocation2 + $0x304] ss:$16 sps:$4 sm:$0xff]   ;;  %v5865_v19 = vld [vmem:[#allocation2 + $0x30c] ss:$16 sps:$4 sm:$0xff]   ;;  %v5867_v20 = vld [vmem:[#allocation2 + $0x300] ss:$16 sps:$4 sm:$0xff]  }
  0x45   : > { %v5868_v21 = vld [vmem:[#allocation2 + $0x308] ss:$16 sps:$4 sm:$0xff]   ;;  %v5871_v22 = vld [vmem:[#allocation2 + $0xe4] ss:$16 sps:$4 sm:$0xff]   ;;  %v5874_v23 = vld [vmem:[#allocation2 + $0xec] ss:$16 sps:$4 sm:$0xff]  }
  0x46   : > { %v404_v11 = vrot.slane %v397_v8, %v6810_v4  ;;  %v5869_v25 = vld [vmem:[#allocation2 + $0xe0] ss:$16 sps:$4 sm:$0xff]   ;;  %v5872_v26 = vld [vmem:[#allocation2 + $0xe8] ss:$16 sps:$4 sm:$0xff]   ;;  %v5877_v27 = vld [vmem:[#allocation2 + $0xc4] ss:$16 sps:$4 sm:$0xff]  }
  0x47   : > { %757 = vmatpush1.bf16.msra.mxu0 %v5819_v30  ;;  %798 = vmatpush1.bf16.msra.mxu1 %v5820_v31  ;;  %v5880_v28 = vld [vmem:[#allocation2 + $0xcc] ss:$16 sps:$4 sm:$0xff]   ;;  %v5875_v29 = vld [vmem:[#allocation2 + $0xc0] ss:$16 sps:$4 sm:$0xff]   ;;  %v5878_v30 = vld [vmem:[#allocation2 + $0xc8] ss:$16 sps:$4 sm:$0xff]  }
  0x48   : > { %758 = vmatprep.subr.bf16.mxu0 %v5821_v32  ;;  %799 = vmatprep.subr.bf16.mxu1 %v5823_v33  ;;  %v405_v14 = vcombine.high %v404_v11, %v404_v11  ;;  %v412_v24 = vrot.slane %v404_v11, %v6810_v4  ;;  %v5883_v31 = vld [vmem:[#allocation2 + $0xa4] ss:$16 sps:$4 sm:$0xff]   ;;  %v5886_v32 = vld [vmem:[#allocation2 + $0xac] ss:$16 sps:$4 sm:$0xff]   ;;  %v5881_v33 = vld [vmem:[#allocation2 + $0xa0] ss:$16 sps:$4 sm:$0xff]  }
  0x49   : > { %v5904_v44 = vld [vmem:[#allocation2 + $0x4c] ss:$16 sps:$4 sm:$0xff]   ;;  %v5902_v46 = vld [vmem:[#allocation2 + $0x48] ss:$16 sps:$4 sm:$0xff]   ;;  %v5907_v47 = vld [vmem:[#allocation2 + $0x24] ss:$16 sps:$4 sm:$0xff]  }
  0x4a   : > { %v419_v17 = vrot.slane %v405_v14, %v6810_v4  ;;  %v5913_v51 = vld [vmem:[#allocation2 + $0x4] ss:$16 sps:$4 sm:$0xff]   ;;  %v5916_v52 = vld [vmem:[#allocation2 + $0xc] ss:$16 sps:$4 sm:$0xff]   ;;  %v5911_v56 = vld [vmem:[#allocation2] ss:$16 sps:$4 sm:$0xff]  }
  0x4b   : > { %759 = vmatpush2.bf16.msra.mxu0 %v5825_v34  ;;  %800 = vmatpush2.bf16.msra.mxu1 %v5826_v35  ;;  %v5884_v34 = vld [vmem:[#allocation2 + $0xa8] ss:$16 sps:$4 sm:$0xff]   ;;  %v5889_v35 = vld [vmem:[#allocation2 + $0x84] ss:$16 sps:$4 sm:$0xff]   ;;  %v5922_v60 = vld [vmem:[#allocation2 + $0x1ec] ss:$16 sps:$4 sm:$0xff]  }
  0x4c   : > { %760 = vmatprep.subr.bf16.mxu0 %v5827_v36  ;;  %801 = vmatprep.subr.bf16.mxu1 %v5829_v37  ;;  %v5892_v36 = vld [vmem:[#allocation2 + $0x8c] ss:$16 sps:$4 sm:$0xff]   ;;  %v5887_v37 = vld [vmem:[#allocation2 + $0x80] ss:$16 sps:$4 sm:$0xff]   ;;  %v5920_v1 = vld [vmem:[#allocation2 + $0x1e8] ss:$16 sps:$4 sm:$0xff]  }
  0x4d   : > { %774 = vmatprep.mubr.bf16.mxu0 %v419_v17  ;;  %815 = vmatprep.mubr.bf16.mxu1 %v419_v17  ;;  %v5118_v54 = vld.sshfl [vmem:[%s6791_s4] sm:$0x3 pattern:$0x75316420]  ;;  %v5928_v3 = vld [vmem:[#allocation2 + $0x1cc] ss:$16 sps:$4 sm:$0xff]  }
  0x4e   : > { %v6819_v55 = vld.sshfl [vmem:[%s6791_s4 + $0x4] sm:$0x3 pattern:$0x75316420]  ;;  %v5917_v63 = vld [vmem:[#allocation2 + $0x1e0] ss:$16 sps:$4 sm:$0xff]  }
  0x4f   : > { %761 = vmatpush2.bf16.msra.mxu0 %v5831_v38  ;;  %802 = vmatpush2.bf16.msra.mxu1 %v5832_v39  ;;  %v5890_v38 = vld [vmem:[#allocation2 + $0x88] ss:$16 sps:$4 sm:$0xff]   ;;  %v5895_v39 = vld [vmem:[#allocation2 + $0x64] ss:$16 sps:$4 sm:$0xff]   ;;  %v824_v57 = vcombine.low %v5118_v54, %v6819_v55  ;;  %v5935_v14 = vld [vmem:[#allocation2 + $0x180] ss:$16 sps:$4 sm:$0xff]  }
  0x50   : > { %762 = vmatprep.subr.bf16.mxu0 %v5833_v40  ;;  %803 = vmatprep.subr.bf16.mxu1 %v5835_v41  ;;  %v5898_v40 = vld [vmem:[#allocation2 + $0x6c] ss:$16 sps:$4 sm:$0xff]   ;;  %v5893_v41 = vld [vmem:[#allocation2 + $0x60] ss:$16 sps:$4 sm:$0xff]   ;;  %v5926_v7 = vld [vmem:[#allocation2 + $0x1c8] ss:$16 sps:$4 sm:$0xff]  }
  0x51   : > { %v6823_v62 = vrot.slane %v824_v57, %v6810_v4  ;;  %v5931_v8 = vld [vmem:[#allocation2 + $0x1a4] ss:$16 sps:$4 sm:$0xff]   ;;  %v5932_v11 = vld [vmem:[#allocation2 + $0x1a8] ss:$16 sps:$4 sm:$0xff]   ;;  %v5946_v17 = vld [vmem:[#allocation2 + $0x16c] ss:$16 sps:$4 sm:$0xff]  }
  0x52   : > { %v5986_v54 = vld [vmem:[#allocation2 + $0x488] ss:$16 sps:$4 sm:$0xff]   ;;  %vm5017_vm2 = vsmask.f32 1280  ;;  %vm5021_vm6 = vsmask.f32 2304 }
  0x53   : > { %763 = vmatpush2.bf16.msra.mxu0 %v5837_v42  ;;  %804 = vmatpush2.bf16.msra.mxu1 %v5838_v43  ;;  %v5896_v42 = vld [vmem:[#allocation2 + $0x68] ss:$16 sps:$4 sm:$0xff]   ;;  %v5901_v43 = vld [vmem:[#allocation2 + $0x44] ss:$16 sps:$4 sm:$0xff]   ;;  %vm6978_vm4 = vmand %vm5016_vm1, %vm5017_vm2  ;;  %vm5025_vm9 = vsmask.f32 3328 }
  0x54   : > { %764 = vmatprep.subr.bf16.mxu0 %v5839_v45  ;;  %805 = vmatprep.subr.bf16.mxu1 %v5841_v48  ;;  %v5899_v45 = vld [vmem:[#allocation2 + $0x40] ss:$16 sps:$4 sm:$0xff]   ;;  %v5910_v48 = vld [vmem:[#allocation2 + $0x2c] ss:$16 sps:$4 sm:$0xff]   ;;  %vm5019_vm0 = vmor %vm6978_vm4, %vm6974_vm3 }
  0x55   : > { %vm5022_vm7 = vmand %vm5020_vm5, %vm5021_vm6 }
  0x56   : > { %vm5023_vm10 = vmor %vm5022_vm7, %vm5019_vm0 }
  0x57   : > { %765 = vmatpush2.bf16.msra.mxu0 %v5843_v49  ;;  %806 = vmatpush2.bf16.msra.mxu1 %v5844_v50  ;;  %v5905_v49 = vld [vmem:[#allocation2 + $0x20] ss:$16 sps:$4 sm:$0xff]   ;;  %v5908_v50 = vld [vmem:[#allocation2 + $0x28] ss:$16 sps:$4 sm:$0xff]   ;;  %vm5026_vm11 = vmand %vm5024_vm8, %vm5025_vm9 }
  0x58   : > { %766 = vmatprep.subr.bf16.mxu0 %v5845_v58  ;;  %807 = vmatprep.subr.bf16.mxu1 %v5847_v59  ;;  %v5914_v58 = vld [vmem:[#allocation2 + $0x8] ss:$16 sps:$4 sm:$0xff]   ;;  %v5919_v59 = vld [vmem:[#allocation2 + $0x1e4] ss:$16 sps:$4 sm:$0xff]   ;;  %vm5027_vm12 = vmor %vm5026_vm11, %vm5023_vm10 }
  0x5b   : > { %767 = vmatpush2.bf16.msra.mxu0 %v5849_v0  ;;  %808 = vmatpush2.bf16.msra.mxu1 %v5850_v2  ;;  %v832_v0 = vcombine.high %v6823_v62, %v6823_v62  ;;  %v5925_v2 = vld [vmem:[#allocation2 + $0x1c4] ss:$16 sps:$4 sm:$0xff]  }
  0x5c   : > { %768 = vmatprep.subr.bf16.mxu0 %v5851_v5  ;;  %809 = vmatprep.subr.bf16.mxu1 %v5853_v6  ;;  %v5923_v6 = vld [vmem:[#allocation2 + $0x1c0] ss:$16 sps:$4 sm:$0xff]  }
  0x5d   : > { %v846_v5 = vrot.slane %v832_v0, %v6810_v4  ;;  %v5995_v0 = vld [vmem:[#allocation2 + $0x440] ss:$16 sps:$4 sm:$0xff]  }
  0x5f   : > { %769 = vmatpush2.bf16.msra.mxu0 %v5855_v9  ;;  %810 = vmatpush2.bf16.msra.mxu1 %v5856_v10  ;;  %v5934_v9 = vld [vmem:[#allocation2 + $0x1ac] ss:$16 sps:$4 sm:$0xff]   ;;  %v5929_v10 = vld [vmem:[#allocation2 + $0x1a0] ss:$16 sps:$4 sm:$0xff]  }
  0x60   : > { %770 = vmatprep.subr.bf16.mxu0 %v5857_v12  ;;  %811 = vmatprep.subr.bf16.mxu1 %v5859_v13  ;;  %v5937_v12 = vld [vmem:[#allocation2 + $0x184] ss:$16 sps:$4 sm:$0xff]   ;;  %v5940_v13 = vld [vmem:[#allocation2 + $0x18c] ss:$16 sps:$4 sm:$0xff]  }
  0x63   : > { %771 = vmatpush2.bf16.msra.mxu0 %v5861_v15  ;;  %812 = vmatpush2.bf16.msra.mxu1 %v5862_v16  ;;  %v5938_v15 = vld [vmem:[#allocation2 + $0x188] ss:$16 sps:$4 sm:$0xff]   ;;  %v5943_v16 = vld [vmem:[#allocation2 + $0x164] ss:$16 sps:$4 sm:$0xff]  }
  0x64   : > { %772 = vmatprep.subr.bf16.mxu0 %v5863_v18  ;;  %813 = vmatprep.subr.bf16.mxu1 %v5865_v19  ;;  %v5941_v18 = vld [vmem:[#allocation2 + $0x160] ss:$16 sps:$4 sm:$0xff]   ;;  %v5944_v19 = vld [vmem:[#allocation2 + $0x168] ss:$16 sps:$4 sm:$0xff]  }
  0x67   : > { %773 = vmatpush2.bf16.msra.mxu0 %v5867_v20  ;;  %814 = vmatpush2.bf16.msra.mxu1 %v5868_v21  ;;  %v5949_v20 = vld [vmem:[#allocation2 + $0x144] ss:$16 sps:$4 sm:$0xff]   ;;  %v5952_v21 = vld [vmem:[#allocation2 + $0x14c] ss:$16 sps:$4 sm:$0xff]  }
  0x68   : > { %1169 = vmatprep.subr.bf16.mxu0 %v5871_v22  ;;  %1210 = vmatprep.subr.bf16.mxu1 %v5874_v23  ;;  %v5947_v22 = vld [vmem:[#allocation2 + $0x140] ss:$16 sps:$4 sm:$0xff]   ;;  %v5950_v23 = vld [vmem:[#allocation2 + $0x148] ss:$16 sps:$4 sm:$0xff]  }
  0x6a   : > { %775 = vmatmul.mubr.bf16.vlgmr.msra.gmra.mxu0 %v412_v24  ;;  %816 = vmatmul.mubr.bf16.vlgmr.msra.gmra.mxu1 %v412_v24  ;;  %v5955_v24 = vld [vmem:[#allocation2 + $0x124] ss:$16 sps:$4 sm:$0xff]  }
  0x6b   : > { %1170 = vmatpush1.bf16.msra.mxu0 %v5869_v25  ;;  %1211 = vmatpush1.bf16.msra.mxu1 %v5872_v26  ;;  %v5958_v25 = vld [vmem:[#allocation2 + $0x12c] ss:$16 sps:$4 sm:$0xff]   ;;  %v5953_v26 = vld [vmem:[#allocation2 + $0x120] ss:$16 sps:$4 sm:$0xff]  }
  0x6c   : > { %1171 = vmatprep.subr.bf16.mxu0 %v5877_v27  ;;  %1212 = vmatprep.subr.bf16.mxu1 %v5880_v28  ;;  %v5956_v27 = vld [vmem:[#allocation2 + $0x128] ss:$16 sps:$4 sm:$0xff]   ;;  %v5961_v28 = vld [vmem:[#allocation2 + $0x104] ss:$16 sps:$4 sm:$0xff]  }
  0x6d   : > { %1201 = vmatprep.mubr.bf16.mxu0 %v846_v5  ;;  %1242 = vmatprep.mubr.bf16.mxu1 %v846_v5  ;;  %v6001_v5 = vld [vmem:[#allocation2 + $0x420] ss:$16 sps:$4 sm:$0xff]  }
  0x6f   : > { %1172 = vmatpush1.bf16.msra.mxu0 %v5875_v29  ;;  %1213 = vmatpush1.bf16.msra.mxu1 %v5878_v30  ;;  %v5964_v29 = vld [vmem:[#allocation2 + $0x10c] ss:$16 sps:$4 sm:$0xff]   ;;  %v5959_v30 = vld [vmem:[#allocation2 + $0x100] ss:$16 sps:$4 sm:$0xff]  }
  0x70   : > { %1173 = vmatprep.subr.bf16.mxu0 %v5883_v31  ;;  %1214 = vmatprep.subr.bf16.mxu1 %v5886_v32  ;;  %v5962_v31 = vld [vmem:[#allocation2 + $0x108] ss:$16 sps:$4 sm:$0xff]   ;;  %v5967_v32 = vld [vmem:[#allocation2 + $0x4e4] ss:$16 sps:$4 sm:$0xff]  }
  0x73   : > { %1174 = vmatpush1.bf16.msra.mxu0 %v5881_v33  ;;  %1215 = vmatpush1.bf16.msra.mxu1 %v5884_v34  ;;  %v5970_v33 = vld [vmem:[#allocation2 + $0x4ec] ss:$16 sps:$4 sm:$0xff]   ;;  %v839_v34 = vrot.slane %v6823_v62, %v6810_v4  ;;  %v5997_v62 = vld [vmem:[#allocation2 + $0x444] ss:$16 sps:$4 sm:$0xff]  }
  0x74   : > { %1175 = vmatprep.subr.bf16.mxu0 %v5889_v35  ;;  %1216 = vmatprep.subr.bf16.mxu1 %v5892_v36  ;;  %v5965_v35 = vld [vmem:[#allocation2 + $0x4e0] ss:$16 sps:$4 sm:$0xff]   ;;  %v5968_v36 = vld [vmem:[#allocation2 + $0x4e8] ss:$16 sps:$4 sm:$0xff]  }
  0x77   : > { %1176 = vmatpush1.bf16.msra.mxu0 %v5887_v37  ;;  %1217 = vmatpush1.bf16.msra.mxu1 %v5890_v38  ;;  %v5973_v37 = vld [vmem:[#allocation2 + $0x4c4] ss:$16 sps:$4 sm:$0xff]   ;;  %v5976_v38 = vld [vmem:[#allocation2 + $0x4cc] ss:$16 sps:$4 sm:$0xff]  }
  0x78   : > { %1177 = vmatprep.subr.bf16.mxu0 %v5895_v39  ;;  %1218 = vmatprep.subr.bf16.mxu1 %v5898_v40  ;;  %v5971_v39 = vld [vmem:[#allocation2 + $0x4c0] ss:$16 sps:$4 sm:$0xff]   ;;  %v5974_v40 = vld [vmem:[#allocation2 + $0x4c8] ss:$16 sps:$4 sm:$0xff]  }
  0x7b   : > { %1178 = vmatpush1.bf16.msra.mxu0 %v5893_v41  ;;  %1219 = vmatpush1.bf16.msra.mxu1 %v5896_v42  ;;  %v5979_v41 = vld [vmem:[#allocation2 + $0x4a4] ss:$16 sps:$4 sm:$0xff]   ;;  %v5982_v42 = vld [vmem:[#allocation2 + $0x4ac] ss:$16 sps:$4 sm:$0xff]  }
  0x7c   : > { %1179 = vmatprep.subr.bf16.mxu0 %v5901_v43  ;;  %1220 = vmatprep.subr.bf16.mxu1 %v5904_v44  ;;  %v5252_v43 = vld.sshfl [vmem:[%s6791_s4] sm:$0x30 pattern:$0x75316420] }
  0x7d   : > { %v5253_v44 = vld.sshfl [vmem:[%s6791_s4 + $0x4] sm:$0x30 pattern:$0x75316420] }
  0x7f   : > { %1180 = vmatpush1.bf16.msra.mxu0 %v5899_v45  ;;  %1221 = vmatpush1.bf16.msra.mxu1 %v5902_v46  ;;  %v5254_v45 = vcombine.high %v5252_v43, %v5253_v44  ;;  %v5977_v46 = vld [vmem:[#allocation2 + $0x4a0] ss:$16 sps:$4 sm:$0xff]  }
  0x80   : > { %1181 = vmatprep.subr.bf16.mxu0 %v5907_v47  ;;  %1222 = vmatprep.subr.bf16.mxu1 %v5910_v48  ;;  %v5980_v47 = vld [vmem:[#allocation2 + $0x4a8] ss:$16 sps:$4 sm:$0xff]   ;;  %v5985_v48 = vld [vmem:[#allocation2 + $0x484] ss:$16 sps:$4 sm:$0xff]   ;;  %v6055_v44 = vld [vmem:[#allocation2 + $0x500] ss:$16 sps:$4 sm:$0xff]  }
  0x83   : > { %1182 = vmatpush1.bf16.msra.mxu0 %v5905_v49  ;;  %1223 = vmatpush1.bf16.msra.mxu1 %v5908_v50  ;;  %v6833_v49 = vrot.slane %v5254_v45, %v6810_v4  ;;  %v5988_v50 = vld [vmem:[#allocation2 + $0x48c] ss:$16 sps:$4 sm:$0xff]   ;;  %v6058_v45 = vld [vmem:[#allocation2 + $0x508] ss:$16 sps:$4 sm:$0xff]  }
  0x84   : > { %1183 = vmatprep.subr.bf16.mxu0 %v5913_v51  ;;  %1224 = vmatprep.subr.bf16.mxu1 %v5916_v52  ;;  %v5983_v52 = vld [vmem:[#allocation2 + $0x480] ss:$16 sps:$4 sm:$0xff]  }
  0x85   : > { %v1344_v51 = vcombine.high %v6833_v49, %v6833_v49 }
  0x87   : > { %1184 = vmatpush1.bf16.msra.mxu0 %v5911_v56  ;;  %1225 = vmatpush1.bf16.msra.mxu1 %v5914_v58  ;;  %v5991_v56 = vld [vmem:[#allocation2 + $0x464] ss:$16 sps:$4 sm:$0xff]   ;;  %v1358_v57 = vrot.slane %v1344_v51, %v6810_v4  ;;  %v5994_v58 = vld [vmem:[#allocation2 + $0x46c] ss:$16 sps:$4 sm:$0xff]   ;;  %v6064_v51 = vld [vmem:[#allocation2 + $0x6e8] ss:$16 sps:$4 sm:$0xff]  }
  0x88   : > { %1185 = vmatprep.subr.bf16.mxu0 %v5919_v59  ;;  %1226 = vmatprep.subr.bf16.mxu1 %v5922_v60  ;;  %v5989_v59 = vld [vmem:[#allocation2 + $0x460] ss:$16 sps:$4 sm:$0xff]   ;;  %v5992_v60 = vld [vmem:[#allocation2 + $0x468] ss:$16 sps:$4 sm:$0xff]  }
  0x8b   : > { %1186 = vmatpush2.bf16.msra.mxu0 %v5917_v63  ;;  %1227 = vmatpush2.bf16.msra.mxu1 %v5920_v1  ;;  %v6000_v63 = vld [vmem:[#allocation2 + $0x44c] ss:$16 sps:$4 sm:$0xff]   ;;  %v5998_v1 = vld [vmem:[#allocation2 + $0x448] ss:$16 sps:$4 sm:$0xff]  }
  0x8c   : > { %1187 = vmatprep.subr.bf16.mxu0 %v5925_v2  ;;  %1228 = vmatprep.subr.bf16.mxu1 %v5928_v3  ;;  %v6003_v2 = vld [vmem:[#allocation2 + $0x424] ss:$16 sps:$4 sm:$0xff]   ;;  %v6006_v3 = vld [vmem:[#allocation2 + $0x42c] ss:$16 sps:$4 sm:$0xff]  }
  0x8f   : > { %1188 = vmatpush2.bf16.msra.mxu0 %v5923_v6  ;;  %1229 = vmatpush2.bf16.msra.mxu1 %v5926_v7  ;;  %v6004_v6 = vld [vmem:[#allocation2 + $0x428] ss:$16 sps:$4 sm:$0xff]   ;;  %v6009_v7 = vld [vmem:[#allocation2 + $0x404] ss:$16 sps:$4 sm:$0xff]  }
  0x90   : > { %1189 = vmatprep.subr.bf16.mxu0 %v5931_v8  ;;  %1230 = vmatprep.subr.bf16.mxu1 %v5934_v9  ;;  %v6012_v8 = vld [vmem:[#allocation2 + $0x40c] ss:$16 sps:$4 sm:$0xff]   ;;  %v6007_v9 = vld [vmem:[#allocation2 + $0x400] ss:$16 sps:$4 sm:$0xff]  }
  0x93   : > { %1190 = vmatpush2.bf16.msra.mxu0 %v5929_v10  ;;  %1231 = vmatpush2.bf16.msra.mxu1 %v5932_v11  ;;  %v6010_v10 = vld [vmem:[#allocation2 + $0x408] ss:$16 sps:$4 sm:$0xff]   ;;  %v6015_v11 = vld [vmem:[#allocation2 + $0x5e4] ss:$16 sps:$4 sm:$0xff]  }
  0x94   : > { %1191 = vmatprep.subr.bf16.mxu0 %v5937_v12  ;;  %1232 = vmatprep.subr.bf16.mxu1 %v5940_v13  ;;  %v6018_v12 = vld [vmem:[#allocation2 + $0x5ec] ss:$16 sps:$4 sm:$0xff]   ;;  %v6013_v13 = vld [vmem:[#allocation2 + $0x5e0] ss:$16 sps:$4 sm:$0xff]  }
  0x97   : > { %1192 = vmatpush2.bf16.msra.mxu0 %v5935_v14  ;;  %1233 = vmatpush2.bf16.msra.mxu1 %v5938_v15  ;;  %v6016_v14 = vld [vmem:[#allocation2 + $0x5e8] ss:$16 sps:$4 sm:$0xff]   ;;  %v6021_v15 = vld [vmem:[#allocation2 + $0x5c4] ss:$16 sps:$4 sm:$0xff]  }
  0x98   : > { %1193 = vmatprep.subr.bf16.mxu0 %v5943_v16  ;;  %1234 = vmatprep.subr.bf16.mxu1 %v5946_v17  ;;  %v6024_v16 = vld [vmem:[#allocation2 + $0x5cc] ss:$16 sps:$4 sm:$0xff]   ;;  %v6019_v17 = vld [vmem:[#allocation2 + $0x5c0] ss:$16 sps:$4 sm:$0xff]  }
  0x9b   : > { %1194 = vmatpush2.bf16.msra.mxu0 %v5941_v18  ;;  %1235 = vmatpush2.bf16.msra.mxu1 %v5944_v19  ;;  %v6022_v18 = vld [vmem:[#allocation2 + $0x5c8] ss:$16 sps:$4 sm:$0xff]   ;;  %v6027_v19 = vld [vmem:[#allocation2 + $0x5a4] ss:$16 sps:$4 sm:$0xff]  }
  0x9c   : > { %1195 = vmatprep.subr.bf16.mxu0 %v5949_v20  ;;  %1236 = vmatprep.subr.bf16.mxu1 %v5952_v21  ;;  %v6030_v20 = vld [vmem:[#allocation2 + $0x5ac] ss:$16 sps:$4 sm:$0xff]   ;;  %v6025_v21 = vld [vmem:[#allocation2 + $0x5a0] ss:$16 sps:$4 sm:$0xff]  }
  0x9f   : > { %1196 = vmatpush2.bf16.msra.mxu0 %v5947_v22  ;;  %1237 = vmatpush2.bf16.msra.mxu1 %v5950_v23  ;;  %v6028_v22 = vld [vmem:[#allocation2 + $0x5a8] ss:$16 sps:$4 sm:$0xff]   ;;  %v6033_v23 = vld [vmem:[#allocation2 + $0x584] ss:$16 sps:$4 sm:$0xff]  }
  0xa0   : > { %1197 = vmatprep.subr.bf16.mxu0 %v5955_v24  ;;  %1238 = vmatprep.subr.bf16.mxu1 %v5958_v25  ;;  %v6036_v24 = vld [vmem:[#allocation2 + $0x58c] ss:$16 sps:$4 sm:$0xff]   ;;  %v6031_v25 = vld [vmem:[#allocation2 + $0x580] ss:$16 sps:$4 sm:$0xff]  }
  0xa3   : > { %1198 = vmatpush2.bf16.msra.mxu0 %v5953_v26  ;;  %1239 = vmatpush2.bf16.msra.mxu1 %v5956_v27  ;;  %v6034_v26 = vld [vmem:[#allocation2 + $0x588] ss:$16 sps:$4 sm:$0xff]   ;;  %v6039_v27 = vld [vmem:[#allocation2 + $0x564] ss:$16 sps:$4 sm:$0xff]  }
  0xa4   : > { %1199 = vmatprep.subr.bf16.mxu0 %v5961_v28  ;;  %1240 = vmatprep.subr.bf16.mxu1 %v5964_v29  ;;  %v6042_v28 = vld [vmem:[#allocation2 + $0x56c] ss:$16 sps:$4 sm:$0xff]   ;;  %v6037_v29 = vld [vmem:[#allocation2 + $0x560] ss:$16 sps:$4 sm:$0xff]  }
  0xa7   : > { %1200 = vmatpush2.bf16.msra.mxu0 %v5959_v30  ;;  %1241 = vmatpush2.bf16.msra.mxu1 %v5962_v31  ;;  %v6040_v30 = vld [vmem:[#allocation2 + $0x568] ss:$16 sps:$4 sm:$0xff]   ;;  %v6045_v31 = vld [vmem:[#allocation2 + $0x544] ss:$16 sps:$4 sm:$0xff]  }
  0xa8   : > { %1681 = vmatprep.subr.bf16.mxu0 %v5967_v32  ;;  %1722 = vmatprep.subr.bf16.mxu1 %v5970_v33  ;;  %v6048_v32 = vld [vmem:[#allocation2 + $0x54c] ss:$16 sps:$4 sm:$0xff]   ;;  %v6043_v33 = vld [vmem:[#allocation2 + $0x540] ss:$16 sps:$4 sm:$0xff]  }
  0xaa   : > { %1202 = vmatmul.mubr.bf16.vlgmr.msra.gmra.mxu0 %v839_v34  ;;  %1243 = vmatmul.mubr.bf16.vlgmr.msra.gmra.mxu1 %v839_v34  ;;  %v5322_v34 = vld.sshfl [vmem:[%s6791_s4 + $0x8] sm:$0x3 pattern:$0x75316420] }
  0xab   : > { %1682 = vmatpush1.bf16.msra.mxu0 %v5965_v35  ;;  %1723 = vmatpush1.bf16.msra.mxu1 %v5968_v36  ;;  %v6046_v35 = vld [vmem:[#allocation2 + $0x548] ss:$16 sps:$4 sm:$0xff]   ;;  %v6051_v36 = vld [vmem:[#allocation2 + $0x524] ss:$16 sps:$4 sm:$0xff]  }
  0xac   : > { %1683 = vmatprep.subr.bf16.mxu0 %v5973_v37  ;;  %1724 = vmatprep.subr.bf16.mxu1 %v5976_v38  ;;  %v6054_v37 = vld [vmem:[#allocation2 + $0x52c] ss:$16 sps:$4 sm:$0xff]   ;;  %v1851_v38 = vcombine.low %v6819_v55, %v5322_v34  ;;  %v5390_v34 = vld.sshfl [vmem:[%s6791_s4 + $0x8] sm:$0x33 pattern:$0x75316420] }
  0xad   : > { %1713 = vmatprep.mubr.bf16.mxu0 %v1358_v57  ;;  %1754 = vmatprep.mubr.bf16.mxu1 %v1358_v57  ;;  %v6067_v57 = vld [vmem:[#allocation2 + $0x6c0] ss:$16 sps:$4 sm:$0xff]  }
  0xae   : > { %v6841_v43 = vrot.slane %v1851_v38, %v6810_v4 }
  0xaf   : > { %1684 = vmatpush1.bf16.msra.mxu0 %v5971_v39  ;;  %1725 = vmatpush1.bf16.msra.mxu1 %v5974_v40  ;;  %v6049_v39 = vld [vmem:[#allocation2 + $0x520] ss:$16 sps:$4 sm:$0xff]   ;;  %v6052_v40 = vld [vmem:[#allocation2 + $0x528] ss:$16 sps:$4 sm:$0xff]  }
  0xb0   : > { %1685 = vmatprep.subr.bf16.mxu0 %v5979_v41  ;;  %1726 = vmatprep.subr.bf16.mxu1 %v5982_v42  ;;  %v6057_v41 = vld [vmem:[#allocation2 + $0x504] ss:$16 sps:$4 sm:$0xff]   ;;  %v6060_v42 = vld [vmem:[#allocation2 + $0x50c] ss:$16 sps:$4 sm:$0xff]   ;;  %v1859_v55 = vcombine.high %v6841_v43, %v6841_v43 }
  0xb3   : > { %1686 = vmatpush1.bf16.msra.mxu0 %v5977_v46  ;;  %1727 = vmatpush1.bf16.msra.mxu1 %v5980_v47  ;;  %v6063_v46 = vld [vmem:[#allocation2 + $0x6e4] ss:$16 sps:$4 sm:$0xff]   ;;  %v6066_v47 = vld [vmem:[#allocation2 + $0x6ec] ss:$16 sps:$4 sm:$0xff]  }
  0xb4   : > { %1687 = vmatprep.subr.bf16.mxu0 %v5985_v48  ;;  %1728 = vmatprep.subr.bf16.mxu1 %v5988_v50  ;;  %v1351_v48 = vrot.slane %v6833_v49, %v6810_v4  ;;  %v6061_v50 = vld [vmem:[#allocation2 + $0x6e0] ss:$16 sps:$4 sm:$0xff]   ;;  %v6078_v49 = vld [vmem:[#allocation2 + $0x6ac] ss:$16 sps:$4 sm:$0xff]  }
  0xb7   : > { %1688 = vmatpush1.bf16.msra.mxu0 %v5983_v52  ;;  %1729 = vmatpush1.bf16.msra.mxu1 %v5986_v54  ;;  %v6069_v52 = vld [vmem:[#allocation2 + $0x6c4] ss:$16 sps:$4 sm:$0xff]   ;;  %v6072_v54 = vld [vmem:[#allocation2 + $0x6cc] ss:$16 sps:$4 sm:$0xff]  }
  0xb8   : > { %1689 = vmatprep.subr.bf16.mxu0 %v5991_v56  ;;  %1730 = vmatprep.subr.bf16.mxu1 %v5994_v58  ;;  %v1873_v56 = vrot.slane %v1859_v55, %v6810_v4  ;;  %v6070_v58 = vld [vmem:[#allocation2 + $0x6c8] ss:$16 sps:$4 sm:$0xff]  }
  0xbb   : > { %1690 = vmatpush1.bf16.msra.mxu0 %v5989_v59  ;;  %1731 = vmatpush1.bf16.msra.mxu1 %v5992_v60  ;;  %v6075_v59 = vld [vmem:[#allocation2 + $0x6a4] ss:$16 sps:$4 sm:$0xff]   ;;  %v6073_v60 = vld [vmem:[#allocation2 + $0x6a0] ss:$16 sps:$4 sm:$0xff]  }
  0xbc   : > { %1691 = vmatprep.subr.bf16.mxu0 %v5997_v62  ;;  %1732 = vmatprep.subr.bf16.mxu1 %v6000_v63  ;;  %v6076_v62 = vld [vmem:[#allocation2 + $0x6a8] ss:$16 sps:$4 sm:$0xff]   ;;  %v6081_v63 = vld [vmem:[#allocation2 + $0x684] ss:$16 sps:$4 sm:$0xff]  }
  0xbf   : > { %1692 = vmatpush1.bf16.msra.mxu0 %v5995_v0  ;;  %1733 = vmatpush1.bf16.msra.mxu1 %v5998_v1  ;;  %v6084_v0 = vld [vmem:[#allocation2 + $0x68c] ss:$16 sps:$4 sm:$0xff]   ;;  %v6079_v1 = vld [vmem:[#allocation2 + $0x680] ss:$16 sps:$4 sm:$0xff]  }
  0xc0   : > { %1693 = vmatprep.subr.bf16.mxu0 %v6003_v2  ;;  %1734 = vmatprep.subr.bf16.mxu1 %v6006_v3  ;;  %v6082_v2 = vld [vmem:[#allocation2 + $0x688] ss:$16 sps:$4 sm:$0xff]   ;;  %v6087_v3 = vld [vmem:[#allocation2 + $0x664] ss:$16 sps:$4 sm:$0xff]  }
  0xc3   : > { %1694 = vmatpush1.bf16.msra.mxu0 %v6001_v5  ;;  %1735 = vmatpush1.bf16.msra.mxu1 %v6004_v6  ;;  %v6090_v5 = vld [vmem:[#allocation2 + $0x66c] ss:$16 sps:$4 sm:$0xff]   ;;  %v6085_v6 = vld [vmem:[#allocation2 + $0x660] ss:$16 sps:$4 sm:$0xff]  }
  0xc4   : > { %1695 = vmatprep.subr.bf16.mxu0 %v6009_v7  ;;  %1736 = vmatprep.subr.bf16.mxu1 %v6012_v8  ;;  %v6088_v7 = vld [vmem:[#allocation2 + $0x668] ss:$16 sps:$4 sm:$0xff]   ;;  %v6093_v8 = vld [vmem:[#allocation2 + $0x644] ss:$16 sps:$4 sm:$0xff]  }
  0xc7   : > { %1696 = vmatpush1.bf16.msra.mxu0 %v6007_v9  ;;  %1737 = vmatpush1.bf16.msra.mxu1 %v6010_v10  ;;  %v6096_v9 = vld [vmem:[#allocation2 + $0x64c] ss:$16 sps:$4 sm:$0xff]   ;;  %v6091_v10 = vld [vmem:[#allocation2 + $0x640] ss:$16 sps:$4 sm:$0xff]  }
  0xc8   : > { %1697 = vmatprep.subr.bf16.mxu0 %v6015_v11  ;;  %1738 = vmatprep.subr.bf16.mxu1 %v6018_v12  ;;  %v6094_v11 = vld [vmem:[#allocation2 + $0x648] ss:$16 sps:$4 sm:$0xff]   ;;  %v6099_v12 = vld [vmem:[#allocation2 + $0x624] ss:$16 sps:$4 sm:$0xff]  }
  0xcb   : > { %1698 = vmatpush2.bf16.msra.mxu0 %v6013_v13  ;;  %1739 = vmatpush2.bf16.msra.mxu1 %v6016_v14  ;;  %v6102_v13 = vld [vmem:[#allocation2 + $0x62c] ss:$16 sps:$4 sm:$0xff]   ;;  %v6097_v14 = vld [vmem:[#allocation2 + $0x620] ss:$16 sps:$4 sm:$0xff]  }
  0xcc   : > { %1699 = vmatprep.subr.bf16.mxu0 %v6021_v15  ;;  %1740 = vmatprep.subr.bf16.mxu1 %v6024_v16  ;;  %v6100_v15 = vld [vmem:[#allocation2 + $0x628] ss:$16 sps:$4 sm:$0xff]   ;;  %v6105_v16 = vld [vmem:[#allocation2 + $0x604] ss:$16 sps:$4 sm:$0xff]  }
  0xcf   : > { %1700 = vmatpush2.bf16.msra.mxu0 %v6019_v17  ;;  %1741 = vmatpush2.bf16.msra.mxu1 %v6022_v18  ;;  %v6108_v17 = vld [vmem:[#allocation2 + $0x60c] ss:$16 sps:$4 sm:$0xff]   ;;  %v6103_v18 = vld [vmem:[#allocation2 + $0x600] ss:$16 sps:$4 sm:$0xff]  }
  0xd0   : > { %1701 = vmatprep.subr.bf16.mxu0 %v6027_v19  ;;  %1742 = vmatprep.subr.bf16.mxu1 %v6030_v20  ;;  %v6106_v19 = vld [vmem:[#allocation2 + $0x608] ss:$16 sps:$4 sm:$0xff]   ;;  %v6111_v20 = vld [vmem:[#allocation2 + $0x7e4] ss:$16 sps:$4 sm:$0xff]  }
  0xd3   : > { %1702 = vmatpush2.bf16.msra.mxu0 %v6025_v21  ;;  %1743 = vmatpush2.bf16.msra.mxu1 %v6028_v22  ;;  %v6114_v21 = vld [vmem:[#allocation2 + $0x7ec] ss:$16 sps:$4 sm:$0xff]   ;;  %v6109_v22 = vld [vmem:[#allocation2 + $0x7e0] ss:$16 sps:$4 sm:$0xff]  }
  0xd4   : > { %1703 = vmatprep.subr.bf16.mxu0 %v6033_v23  ;;  %1744 = vmatprep.subr.bf16.mxu1 %v6036_v24  ;;  %v6112_v23 = vld [vmem:[#allocation2 + $0x7e8] ss:$16 sps:$4 sm:$0xff]   ;;  %v6117_v24 = vld [vmem:[#allocation2 + $0x7c4] ss:$16 sps:$4 sm:$0xff]  }
  0xd7   : > { %1704 = vmatpush2.bf16.msra.mxu0 %v6031_v25  ;;  %1745 = vmatpush2.bf16.msra.mxu1 %v6034_v26  ;;  %v6120_v25 = vld [vmem:[#allocation2 + $0x7cc] ss:$16 sps:$4 sm:$0xff]   ;;  %v6115_v26 = vld [vmem:[#allocation2 + $0x7c0] ss:$16 sps:$4 sm:$0xff]  }
  0xd8   : > { %1705 = vmatprep.subr.bf16.mxu0 %v6039_v27  ;;  %1746 = vmatprep.subr.bf16.mxu1 %v6042_v28  ;;  %v6118_v27 = vld [vmem:[#allocation2 + $0x7c8] ss:$16 sps:$4 sm:$0xff]   ;;  %v6123_v28 = vld [vmem:[#allocation2 + $0x7a4] ss:$16 sps:$4 sm:$0xff]  }
  0xdb   : > { %1706 = vmatpush2.bf16.msra.mxu0 %v6037_v29  ;;  %1747 = vmatpush2.bf16.msra.mxu1 %v6040_v30  ;;  %v6126_v29 = vld [vmem:[#allocation2 + $0x7ac] ss:$16 sps:$4 sm:$0xff]   ;;  %v6121_v30 = vld [vmem:[#allocation2 + $0x7a0] ss:$16 sps:$4 sm:$0xff]  }
  0xdc   : > { %1707 = vmatprep.subr.bf16.mxu0 %v6045_v31  ;;  %1748 = vmatprep.subr.bf16.mxu1 %v6048_v32  ;;  %v6124_v31 = vld [vmem:[#allocation2 + $0x7a8] ss:$16 sps:$4 sm:$0xff]   ;;  %v6129_v32 = vld [vmem:[#allocation2 + $0x784] ss:$16 sps:$4 sm:$0xff]  }
  0xdf   : > { %1708 = vmatpush2.bf16.msra.mxu0 %v6043_v33  ;;  %1749 = vmatpush2.bf16.msra.mxu1 %v6046_v35  ;;  %v5389_v33 = vld.sshfl [vmem:[%s6791_s4 + $0x4] sm:$0x33 pattern:$0x75316420]  ;;  %v6132_v35 = vld [vmem:[#allocation2 + $0x78c] ss:$16 sps:$4 sm:$0xff]  }
  0xe0   : > { %1709 = vmatprep.subr.bf16.mxu0 %v6051_v36  ;;  %1750 = vmatprep.subr.bf16.mxu1 %v6054_v37  ;;  %v6127_v36 = vld [vmem:[#allocation2 + $0x780] ss:$16 sps:$4 sm:$0xff]   ;;  %v6130_v37 = vld [vmem:[#allocation2 + $0x788] ss:$16 sps:$4 sm:$0xff]   ;;  %v2293_v38 = vcombine.high %v5389_v33, %v5389_v33 }
  0xe3   : > { %1710 = vmatpush2.bf16.msra.mxu0 %v6049_v39  ;;  %1751 = vmatpush2.bf16.msra.mxu1 %v6052_v40  ;;  %v2301_v39 = vcombine.high %v5390_v34, %v5390_v34  ;;  %v6135_v40 = vld [vmem:[#allocation2 + $0x764] ss:$16 sps:$4 sm:$0xff]  }
  0xe4   : > { %1711 = vmatprep.subr.bf16.mxu0 %v6057_v41  ;;  %1752 = vmatprep.subr.bf16.mxu1 %v6060_v42  ;;  %v6138_v41 = vld [vmem:[#allocation2 + $0x76c] ss:$16 sps:$4 sm:$0xff]   ;;  %v6133_v42 = vld [vmem:[#allocation2 + $0x760] ss:$16 sps:$4 sm:$0xff]  }
  0xe5   : > { %v2317_v55 = vshll.u32 %v2301_v39, 16  ;;  %v6198_v39 = vld [vmem:[#allocation2 + $0x82c] ss:$16 sps:$4 sm:$0xff]  }
  0xe7   : > { %1712 = vmatpush2.bf16.msra.mxu0 %v6055_v44  ;;  %1753 = vmatpush2.bf16.msra.mxu1 %v6058_v45  ;;  %v6136_v44 = vld [vmem:[#allocation2 + $0x768] ss:$16 sps:$4 sm:$0xff]   ;;  %v2303_v45 = vshrl.u32 %v5389_v33, 16 }
  0xe8   : > { %2196 = vmatprep.subr.bf16.mxu0 %v6063_v46  ;;  %2237 = vmatprep.subr.bf16.mxu1 %v6066_v47  ;;  %v2308_v46 = vshll.u32 %v2293_v38, 16  ;;  %v2312_v47 = vshrl.u32 %v5390_v34, 16  ;;  %v6184_v33 = vld [vmem:[#allocation2 + $0x868] ss:$16 sps:$4 sm:$0xff]   ;;  %v6189_v34 = vld [vmem:[#allocation2 + $0x844] ss:$16 sps:$4 sm:$0xff]  }
  0xe9   : > { %v6195_v38 = vld [vmem:[#allocation2 + $0x824] ss:$16 sps:$4 sm:$0xff]  }
  0xea   : > { %1714 = vmatmul.mubr.bf16.vlgmr.msra.gmra.mxu0 %v1351_v48  ;;  %1755 = vmatmul.mubr.bf16.vlgmr.msra.gmra.mxu1 %v1351_v48  ;;  %v6141_v48 = vld [vmem:[#allocation2 + $0x744] ss:$16 sps:$4 sm:$0xff]  }
  0xeb   : > { %2197 = vmatpush1.bf16.msra.mxu0 %v6061_v50  ;;  %2238 = vmatpush1.bf16.msra.mxu1 %v6064_v51  ;;  %v6144_v50 = vld [vmem:[#allocation2 + $0x74c] ss:$16 sps:$4 sm:$0xff]   ;;  %v6139_v51 = vld [vmem:[#allocation2 + $0x740] ss:$16 sps:$4 sm:$0xff]  }
  0xec   : > { %2198 = vmatprep.subr.bf16.mxu0 %v6069_v52  ;;  %2239 = vmatprep.subr.bf16.mxu1 %v6072_v54  ;;  %v6142_v52 = vld [vmem:[#allocation2 + $0x748] ss:$16 sps:$4 sm:$0xff]   ;;  %v2310_v54 = vsel %vm6803_vm14, %v2303_v45, %v2308_v46  ;;  %v6199_v45 = vld [vmem:[#allocation2 + $0x800] ss:$16 sps:$4 sm:$0xff]  }
  0xed   : > { %2228 = vmatprep.mubr.bf16.mxu0 %v1873_v56  ;;  %2269 = vmatprep.mubr.bf16.mxu1 %v1873_v56  ;;  %v2319_v56 = vsel %vm6803_vm14, %v2312_v47, %v2317_v55  ;;  %v6202_v46 = vld [vmem:[#allocation2 + $0x808] ss:$16 sps:$4 sm:$0xff]   ;;  %v6207_v47 = vld [vmem:[#allocation2 + $0x9e4] ss:$16 sps:$4 sm:$0xff]   ;;  %v6210_v55 = vld [vmem:[#allocation2 + $0x9ec] ss:$16 sps:$4 sm:$0xff]  }
  0xef   : > { %2199 = vmatpush1.bf16.msra.mxu0 %v6067_v57  ;;  %2240 = vmatpush1.bf16.msra.mxu1 %v6070_v58  ;;  %v6147_v57 = vld [vmem:[#allocation2 + $0x724] ss:$16 sps:$4 sm:$0xff]   ;;  %v6150_v58 = vld [vmem:[#allocation2 + $0x72c] ss:$16 sps:$4 sm:$0xff]  }
  0xf0   : > { %2200 = vmatprep.subr.bf16.mxu0 %v6075_v59  ;;  %2241 = vmatprep.subr.bf16.mxu1 %v6078_v49  ;;  %v2385_v59 = vcombine.low %v2310_v54, %v2319_v56  ;;  %v6145_v49 = vld [vmem:[#allocation2 + $0x720] ss:$16 sps:$4 sm:$0xff]   ;;  %v6214_v56 = vld [vmem:[#allocation2 + $0x9c8] ss:$16 sps:$4 sm:$0xff]  }
  0xf1   : > { %v6211_v54 = vld [vmem:[#allocation2 + $0x9c0] ss:$16 sps:$4 sm:$0xff]  }
  0xf3   : > { %2201 = vmatpush1.bf16.msra.mxu0 %v6073_v60  ;;  %2242 = vmatpush1.bf16.msra.mxu1 %v6076_v62  ;;  %v6148_v60 = vld [vmem:[#allocation2 + $0x728] ss:$16 sps:$4 sm:$0xff]   ;;  %v6153_v62 = vld [vmem:[#allocation2 + $0x704] ss:$16 sps:$4 sm:$0xff]  }
  0xf4   : > { %2202 = vmatprep.subr.bf16.mxu0 %v6081_v63  ;;  %2243 = vmatprep.subr.bf16.mxu1 %v6084_v0  ;;  %v6156_v63 = vld [vmem:[#allocation2 + $0x70c] ss:$16 sps:$4 sm:$0xff]   ;;  %v6855_v0 = vrot.slane %v2385_v59, %v6810_v4  ;;  %v6217_v59 = vld [vmem:[#allocation2 + $0x9a0] ss:$16 sps:$4 sm:$0xff]  }
  0xf7   : > { %2203 = vmatpush1.bf16.msra.mxu0 %v6079_v1  ;;  %2244 = vmatpush1.bf16.msra.mxu1 %v6082_v2  ;;  %v6151_v1 = vld [vmem:[#allocation2 + $0x700] ss:$16 sps:$4 sm:$0xff]   ;;  %v6154_v2 = vld [vmem:[#allocation2 + $0x708] ss:$16 sps:$4 sm:$0xff]  }
  0xf8   : > { %2204 = vmatprep.subr.bf16.mxu0 %v6087_v3  ;;  %2245 = vmatprep.subr.bf16.mxu1 %v6090_v5  ;;  %v6159_v3 = vld [vmem:[#allocation2 + $0x8e4] ss:$16 sps:$4 sm:$0xff]   ;;  %v6162_v5 = vld [vmem:[#allocation2 + $0x8ec] ss:$16 sps:$4 sm:$0xff]  }
  0xfb   : > { %2205 = vmatpush1.bf16.msra.mxu0 %v6085_v6  ;;  %2246 = vmatpush1.bf16.msra.mxu1 %v6088_v7  ;;  %v2393_v6 = vcombine.high %v6855_v0, %v6855_v0  ;;  %v1866_v7 = vrot.slane %v6841_v43, %v6810_v4  ;;  %v6171_v43 = vld [vmem:[#allocation2 + $0x8a4] ss:$16 sps:$4 sm:$0xff]  }
  0xfc   : > { %2206 = vmatprep.subr.bf16.mxu0 %v6093_v8  ;;  %2247 = vmatprep.subr.bf16.mxu1 %v6096_v9  ;;  %v6157_v8 = vld [vmem:[#allocation2 + $0x8e0] ss:$16 sps:$4 sm:$0xff]   ;;  %v6160_v9 = vld [vmem:[#allocation2 + $0x8e8] ss:$16 sps:$4 sm:$0xff]  }
  0xff   : > { %2207 = vmatpush1.bf16.msra.mxu0 %v6091_v10  ;;  %2248 = vmatpush1.bf16.msra.mxu1 %v6094_v11  ;;  %v6165_v10 = vld [vmem:[#allocation2 + $0x8c4] ss:$16 sps:$4 sm:$0xff]   ;;  %v6168_v11 = vld [vmem:[#allocation2 + $0x8cc] ss:$16 sps:$4 sm:$0xff]  }
 0x100   : > { %2208 = vmatprep.subr.bf16.mxu0 %v6099_v12  ;;  %2249 = vmatprep.subr.bf16.mxu1 %v6102_v13  ;;  %v2407_v12 = vrot.slane %v2393_v6, %v6810_v4  ;;  %v6232_v6 = vld [vmem:[#allocation2 + $0x968] ss:$16 sps:$4 sm:$0xff]  }
 0x103   : > { %2209 = vmatpush1.bf16.msra.mxu0 %v6097_v14  ;;  %2250 = vmatpush1.bf16.msra.mxu1 %v6100_v15  ;;  %v6163_v15 = vld [vmem:[#allocation2 + $0x8c0] ss:$16 sps:$4 sm:$0xff]  }
 0x104   : > { %2210 = vmatprep.subr.bf16.mxu0 %v6105_v16  ;;  %2251 = vmatprep.subr.bf16.mxu1 %v6108_v17  ;;  %v6166_v16 = vld [vmem:[#allocation2 + $0x8c8] ss:$16 sps:$4 sm:$0xff]  }
 0x107   : > { %2211 = vmatpush1.bf16.msra.mxu0 %v6103_v18  ;;  %2252 = vmatpush1.bf16.msra.mxu1 %v6106_v19  ;;  %v6174_v19 = vld [vmem:[#allocation2 + $0x8ac] ss:$16 sps:$4 sm:$0xff]  }
 0x108   : > { %2212 = vmatprep.subr.bf16.mxu0 %v6111_v20  ;;  %2253 = vmatprep.subr.bf16.mxu1 %v6114_v21 }
 0x10b   : > { %2213 = vmatpush2.bf16.msra.mxu0 %v6109_v22  ;;  %2254 = vmatpush2.bf16.msra.mxu1 %v6112_v23  ;;  %v6169_v22 = vld [vmem:[#allocation2 + $0x8a0] ss:$16 sps:$4 sm:$0xff]   ;;  %v6172_v23 = vld [vmem:[#allocation2 + $0x8a8] ss:$16 sps:$4 sm:$0xff]  }
 0x10c   : > { %2214 = vmatprep.subr.bf16.mxu0 %v6117_v24  ;;  %2255 = vmatprep.subr.bf16.mxu1 %v6120_v25 }
 0x10f   : > { %2215 = vmatpush2.bf16.msra.mxu0 %v6115_v26  ;;  %2256 = vmatpush2.bf16.msra.mxu1 %v6118_v27  ;;  %v6177_v26 = vld [vmem:[#allocation2 + $0x884] ss:$16 sps:$4 sm:$0xff]   ;;  %v6180_v27 = vld [vmem:[#allocation2 + $0x88c] ss:$16 sps:$4 sm:$0xff]  }
 0x110   : > { %2216 = vmatprep.subr.bf16.mxu0 %v6123_v28  ;;  %2257 = vmatprep.subr.bf16.mxu1 %v6126_v29  ;;  %v6175_v28 = vld [vmem:[#allocation2 + $0x880] ss:$16 sps:$4 sm:$0xff]   ;;  %v6178_v29 = vld [vmem:[#allocation2 + $0x888] ss:$16 sps:$4 sm:$0xff]  }
 0x113   : > { %2217 = vmatpush2.bf16.msra.mxu0 %v6121_v30  ;;  %2258 = vmatpush2.bf16.msra.mxu1 %v6124_v31  ;;  %v6183_v30 = vld [vmem:[#allocation2 + $0x864] ss:$16 sps:$4 sm:$0xff]   ;;  %v6186_v31 = vld [vmem:[#allocation2 + $0x86c] ss:$16 sps:$4 sm:$0xff]  }
 0x114   : > { %2218 = vmatprep.subr.bf16.mxu0 %v6129_v32  ;;  %2259 = vmatprep.subr.bf16.mxu1 %v6132_v35  ;;  %v6181_v32 = vld [vmem:[#allocation2 + $0x860] ss:$16 sps:$4 sm:$0xff]   ;;  %v6192_v35 = vld [vmem:[#allocation2 + $0x84c] ss:$16 sps:$4 sm:$0xff]  }
 0x117   : > { %2219 = vmatpush2.bf16.msra.mxu0 %v6127_v36  ;;  %2260 = vmatpush2.bf16.msra.mxu1 %v6130_v37  ;;  %v6187_v36 = vld [vmem:[#allocation2 + $0x840] ss:$16 sps:$4 sm:$0xff]   ;;  %v6190_v37 = vld [vmem:[#allocation2 + $0x848] ss:$16 sps:$4 sm:$0xff]  }
 0x118   : > { %2220 = vmatprep.subr.bf16.mxu0 %v6135_v40  ;;  %2261 = vmatprep.subr.bf16.mxu1 %v6138_v41  ;;  %v6193_v40 = vld [vmem:[#allocation2 + $0x820] ss:$16 sps:$4 sm:$0xff]   ;;  %v6196_v41 = vld [vmem:[#allocation2 + $0x828] ss:$16 sps:$4 sm:$0xff]  }
 0x11b   : > { %2221 = vmatpush2.bf16.msra.mxu0 %v6133_v42  ;;  %2262 = vmatpush2.bf16.msra.mxu1 %v6136_v44  ;;  %v6201_v42 = vld [vmem:[#allocation2 + $0x804] ss:$16 sps:$4 sm:$0xff]   ;;  %v6204_v44 = vld [vmem:[#allocation2 + $0x80c] ss:$16 sps:$4 sm:$0xff]  }
 0x11c   : > { %2222 = vmatprep.subr.bf16.mxu0 %v6141_v48  ;;  %2263 = vmatprep.subr.bf16.mxu1 %v6144_v50  ;;  %v6205_v48 = vld [vmem:[#allocation2 + $0x9e0] ss:$16 sps:$4 sm:$0xff]   ;;  %v6208_v50 = vld [vmem:[#allocation2 + $0x9e8] ss:$16 sps:$4 sm:$0xff]  }
 0x11f   : > { %2223 = vmatpush2.bf16.msra.mxu0 %v6139_v51  ;;  %2264 = vmatpush2.bf16.msra.mxu1 %v6142_v52  ;;  %v6213_v51 = vld [vmem:[#allocation2 + $0x9c4] ss:$16 sps:$4 sm:$0xff]   ;;  %v6216_v52 = vld [vmem:[#allocation2 + $0x9cc] ss:$16 sps:$4 sm:$0xff]  }
 0x120   : > { %2224 = vmatprep.subr.bf16.mxu0 %v6147_v57  ;;  %2265 = vmatprep.subr.bf16.mxu1 %v6150_v58  ;;  %v6219_v57 = vld [vmem:[#allocation2 + $0x9a4] ss:$16 sps:$4 sm:$0xff]   ;;  %v6222_v58 = vld [vmem:[#allocation2 + $0x9ac] ss:$16 sps:$4 sm:$0xff]  }
 0x123   : > { %2225 = vmatpush2.bf16.msra.mxu0 %v6145_v49  ;;  %2266 = vmatpush2.bf16.msra.mxu1 %v6148_v60  ;;  %v6220_v49 = vld [vmem:[#allocation2 + $0x9a8] ss:$16 sps:$4 sm:$0xff]   ;;  %v6225_v60 = vld [vmem:[#allocation2 + $0x984] ss:$16 sps:$4 sm:$0xff]  }
 0x124   : > { %2226 = vmatprep.subr.bf16.mxu0 %v6153_v62  ;;  %2267 = vmatprep.subr.bf16.mxu1 %v6156_v63  ;;  %v6228_v62 = vld [vmem:[#allocation2 + $0x98c] ss:$16 sps:$4 sm:$0xff]   ;;  %v6223_v63 = vld [vmem:[#allocation2 + $0x980] ss:$16 sps:$4 sm:$0xff]  }
 0x127   : > { %2227 = vmatpush2.bf16.msra.mxu0 %v6151_v1  ;;  %2268 = vmatpush2.bf16.msra.mxu1 %v6154_v2  ;;  %v6226_v1 = vld [vmem:[#allocation2 + $0x988] ss:$16 sps:$4 sm:$0xff]   ;;  %v6231_v2 = vld [vmem:[#allocation2 + $0x964] ss:$16 sps:$4 sm:$0xff]  }
 0x128   : > { %2730 = vmatprep.subr.bf16.mxu0 %v6159_v3  ;;  %2771 = vmatprep.subr.bf16.mxu1 %v6162_v5  ;;  %v6234_v3 = vld [vmem:[#allocation2 + $0x96c] ss:$16 sps:$4 sm:$0xff]   ;;  %v6229_v5 = vld [vmem:[#allocation2 + $0x960] ss:$16 sps:$4 sm:$0xff]  }
 0x12a   : > { %v6862_v13 = vpop.f32.mrf.mxu0  ;;  %v6864_v14 = vpop.f32.mrf.mxu1  ;;  %2229 = vmatmul.mubr.bf16.vlgmr.msra.gmra.mxu0 %v1866_v7  ;;  %2270 = vmatmul.mubr.bf16.vlgmr.msra.gmra.mxu1 %v1866_v7  ;;  %v6237_v7 = vld [vmem:[#allocation2 + $0x944] ss:$16 sps:$4 sm:$0xff]  }
 0x12b   : > { %2731 = vmatpush1.bf16.msra.mxu0 %v6157_v8  ;;  %2772 = vmatpush1.bf16.msra.mxu1 %v6160_v9  ;;  %v6240_v8 = vld [vmem:[#allocation2 + $0x94c] ss:$16 sps:$4 sm:$0xff]   ;;  %v5459_v9 = vld.sshfl [vmem:[%s6791_s4 + $0x4] sm:$0x30 pattern:$0x75316420] }
 0x12c   : > { %v6866_v17 = vpop.f32.mrf.mxu0  ;;  %v6868_v18 = vpop.f32.mrf.mxu1  ;;  %2732 = vmatprep.subr.bf16.mxu0 %v6165_v10  ;;  %2773 = vmatprep.subr.bf16.mxu1 %v6168_v11  ;;  %v5460_v10 = vld.sshfl [vmem:[%s6791_s4 + $0x8] sm:$0x30 pattern:$0x75316420]  ;;  %v6235_v11 = vld [vmem:[#allocation2 + $0x940] ss:$16 sps:$4 sm:$0xff]  }
 0x12d   : > { %2762 = vmatprep.mubr.bf16.mxu0 %v2407_v12  ;;  %2803 = vmatprep.mubr.bf16.mxu1 %v2407_v12  ;;  %v6238_v12 = vld [vmem:[#allocation2 + $0x948] ss:$16 sps:$4 sm:$0xff]  }
 0x12e   : > { %v780_v20 = vpop.f32.mrf.mxu0  ;;  %v821_v21 = vpop.f32.mrf.mxu1 }
 0x12f   : > { %2733 = vmatpush1.bf16.msra.mxu0 %v6163_v15  ;;  %2774 = vmatpush1.bf16.msra.mxu1 %v6166_v16  ;;  %v6243_v15 = vld [vmem:[#allocation2 + $0x924] ss:$16 sps:$4 sm:$0xff]   ;;  %v6246_v16 = vld [vmem:[#allocation2 + $0x92c] ss:$16 sps:$4 sm:$0xff]   ;;  %v6244_v20 = vld [vmem:[#allocation2 + $0x928] ss:$16 sps:$4 sm:$0xff]  }
 0x130   : > { %v781_v24 = vpop.f32.mrf.mxu0  ;;  %v822_v25 = vpop.f32.mrf.mxu1  ;;  %2734 = vmatprep.subr.bf16.mxu0 %v6171_v43  ;;  %2775 = vmatprep.subr.bf16.mxu1 %v6174_v19  ;;  %v5461_v43 = vcombine.high %v5459_v9, %v5460_v10  ;;  %v6241_v19 = vld [vmem:[#allocation2 + $0x920] ss:$16 sps:$4 sm:$0xff]   ;;  %v6249_v21 = vld [vmem:[#allocation2 + $0x904] ss:$16 sps:$4 sm:$0xff]   ;;  %v6306_v10 = vld [vmem:[#allocation2 + $0xbec] ss:$16 sps:$4 sm:$0xff]  }
 0x131   : > { %v6247_v24 = vld [vmem:[#allocation2 + $0x900] ss:$16 sps:$4 sm:$0xff]   ;;  %v6250_v25 = vld [vmem:[#allocation2 + $0x908] ss:$16 sps:$4 sm:$0xff]   ;;  %v6303_v9 = vld [vmem:[#allocation2 + $0xbe4] ss:$16 sps:$4 sm:$0xff]  }
 0x133   : > { %2735 = vmatpush1.bf16.msra.mxu0 %v6169_v22  ;;  %2776 = vmatpush1.bf16.msra.mxu1 %v6172_v23  ;;  %v6252_v22 = vld [vmem:[#allocation2 + $0x90c] ss:$16 sps:$4 sm:$0xff]   ;;  %v6873_v23 = vrot.slane %v5461_v43, %v6810_v4  ;;  %v6307_v43 = vld [vmem:[#allocation2 + $0xbc0] ss:$16 sps:$4 sm:$0xff]  }
 0x134   : > { %2736 = vmatprep.subr.bf16.mxu0 %v6177_v26  ;;  %2777 = vmatprep.subr.bf16.mxu1 %v6180_v27  ;;  %v6255_v26 = vld [vmem:[#allocation2 + $0xae4] ss:$16 sps:$4 sm:$0xff]   ;;  %v6258_v27 = vld [vmem:[#allocation2 + $0xaec] ss:$16 sps:$4 sm:$0xff]  }
 0x137   : > { %2737 = vmatpush1.bf16.msra.mxu0 %v6175_v28  ;;  %2778 = vmatpush1.bf16.msra.mxu1 %v6178_v29  ;;  %v6253_v28 = vld [vmem:[#allocation2 + $0xae0] ss:$16 sps:$4 sm:$0xff]   ;;  %v6256_v29 = vld [vmem:[#allocation2 + $0xae8] ss:$16 sps:$4 sm:$0xff]  }
 0x138   : > { %2738 = vmatprep.subr.bf16.mxu0 %v6183_v30  ;;  %2779 = vmatprep.subr.bf16.mxu1 %v6186_v31  ;;  %v2909_v30 = vcombine.high %v6873_v23, %v6873_v23  ;;  %v2400_v31 = vrot.slane %v6855_v0, %v6810_v4 }
 0x13b   : > { %2739 = vmatpush1.bf16.msra.mxu0 %v6181_v32  ;;  %2780 = vmatpush1.bf16.msra.mxu1 %v6184_v33  ;;  %v6261_v32 = vld [vmem:[#allocation2 + $0xac4] ss:$16 sps:$4 sm:$0xff]   ;;  %v6264_v33 = vld [vmem:[#allocation2 + $0xacc] ss:$16 sps:$4 sm:$0xff]  }
 0x13c   : > { %2740 = vmatprep.subr.bf16.mxu0 %v6189_v34  ;;  %2781 = vmatprep.subr.bf16.mxu1 %v6192_v35  ;;  %v6259_v34 = vld [vmem:[#allocation2 + $0xac0] ss:$16 sps:$4 sm:$0xff]   ;;  %v6262_v35 = vld [vmem:[#allocation2 + $0xac8] ss:$16 sps:$4 sm:$0xff]  }
 0x13f   : > { %2741 = vmatpush1.bf16.msra.mxu0 %v6187_v36  ;;  %2782 = vmatpush1.bf16.msra.mxu1 %v6190_v37  ;;  %v2923_v36 = vrot.slane %v2909_v30, %v6810_v4  ;;  %v6330_v30 = vld [vmem:[#allocation2 + $0xb6c] ss:$16 sps:$4 sm:$0xff]  }
 0x140   : > { %2742 = vmatprep.subr.bf16.mxu0 %v6195_v38  ;;  %2783 = vmatprep.subr.bf16.mxu1 %v6198_v39 }
 0x143   : > { %2743 = vmatpush1.bf16.msra.mxu0 %v6193_v40  ;;  %2784 = vmatpush1.bf16.msra.mxu1 %v6196_v41 }
 0x144   : > { %2744 = vmatprep.subr.bf16.mxu0 %v6201_v42  ;;  %2785 = vmatprep.subr.bf16.mxu1 %v6204_v44  ;;  %v6267_v42 = vld [vmem:[#allocation2 + $0xaa4] ss:$16 sps:$4 sm:$0xff]   ;;  %v6270_v44 = vld [vmem:[#allocation2 + $0xaac] ss:$16 sps:$4 sm:$0xff]  }
 0x147   : > { %2745 = vmatpush1.bf16.msra.mxu0 %v6199_v45  ;;  %2786 = vmatpush1.bf16.msra.mxu1 %v6202_v46 }
 0x148   : > { %2746 = vmatprep.subr.bf16.mxu0 %v6207_v47  ;;  %2787 = vmatprep.subr.bf16.mxu1 %v6210_v55  ;;  %v6265_v47 = vld [vmem:[#allocation2 + $0xaa0] ss:$16 sps:$4 sm:$0xff]  }
 0x14b   : > { %2747 = vmatpush2.bf16.msra.mxu0 %v6205_v48  ;;  %2788 = vmatpush2.bf16.msra.mxu1 %v6208_v50 }
 0x14c   : > { %2748 = vmatprep.subr.bf16.mxu0 %v6213_v51  ;;  %2789 = vmatprep.subr.bf16.mxu1 %v6216_v52  ;;  %v6273_v51 = vld [vmem:[#allocation2 + $0xa84] ss:$16 sps:$4 sm:$0xff]   ;;  %v6276_v52 = vld [vmem:[#allocation2 + $0xa8c] ss:$16 sps:$4 sm:$0xff]  }
 0x14f   : > { %2749 = vmatpush2.bf16.msra.mxu0 %v6211_v54  ;;  %2790 = vmatpush2.bf16.msra.mxu1 %v6214_v56  ;;  %v6274_v54 = vld [vmem:[#allocation2 + $0xa88] ss:$16 sps:$4 sm:$0xff]   ;;  %v6282_v56 = vld [vmem:[#allocation2 + $0xa6c] ss:$16 sps:$4 sm:$0xff]  }
 0x150   : > { %2750 = vmatprep.subr.bf16.mxu0 %v6219_v57  ;;  %2791 = vmatprep.subr.bf16.mxu1 %v6222_v58  ;;  %v6277_v57 = vld [vmem:[#allocation2 + $0xa60] ss:$16 sps:$4 sm:$0xff]   ;;  %v6280_v58 = vld [vmem:[#allocation2 + $0xa68] ss:$16 sps:$4 sm:$0xff]  }
 0x153   : > { %2751 = vmatpush2.bf16.msra.mxu0 %v6217_v59  ;;  %2792 = vmatpush2.bf16.msra.mxu1 %v6220_v49  ;;  %v6285_v59 = vld [vmem:[#allocation2 + $0xa44] ss:$16 sps:$4 sm:$0xff]   ;;  %v6288_v49 = vld [vmem:[#allocation2 + $0xa4c] ss:$16 sps:$4 sm:$0xff]  }
 0x154   : > { %2752 = vmatprep.subr.bf16.mxu0 %v6225_v60  ;;  %2793 = vmatprep.subr.bf16.mxu1 %v6228_v62  ;;  %v6283_v60 = vld [vmem:[#allocation2 + $0xa40] ss:$16 sps:$4 sm:$0xff]   ;;  %v6286_v62 = vld [vmem:[#allocation2 + $0xa48] ss:$16 sps:$4 sm:$0xff]  }
 0x157   : > { %2753 = vmatpush2.bf16.msra.mxu0 %v6223_v63  ;;  %2794 = vmatpush2.bf16.msra.mxu1 %v6226_v1  ;;  %v6291_v63 = vld [vmem:[#allocation2 + $0xa24] ss:$16 sps:$4 sm:$0xff]   ;;  %v6294_v1 = vld [vmem:[#allocation2 + $0xa2c] ss:$16 sps:$4 sm:$0xff]  }
 0x158   : > { %2754 = vmatprep.subr.bf16.mxu0 %v6231_v2  ;;  %2795 = vmatprep.subr.bf16.mxu1 %v6234_v3  ;;  %v6289_v2 = vld [vmem:[#allocation2 + $0xa20] ss:$16 sps:$4 sm:$0xff]   ;;  %v6292_v3 = vld [vmem:[#allocation2 + $0xa28] ss:$16 sps:$4 sm:$0xff]  }
 0x15b   : > { %2755 = vmatpush2.bf16.msra.mxu0 %v6229_v5  ;;  %2796 = vmatpush2.bf16.msra.mxu1 %v6232_v6  ;;  %v6297_v5 = vld [vmem:[#allocation2 + $0xa04] ss:$16 sps:$4 sm:$0xff]   ;;  %v6300_v6 = vld [vmem:[#allocation2 + $0xa0c] ss:$16 sps:$4 sm:$0xff]  }
 0x15c   : > { %2756 = vmatprep.subr.bf16.mxu0 %v6237_v7  ;;  %2797 = vmatprep.subr.bf16.mxu1 %v6240_v8  ;;  %v6295_v7 = vld [vmem:[#allocation2 + $0xa00] ss:$16 sps:$4 sm:$0xff]   ;;  %v6298_v8 = vld [vmem:[#allocation2 + $0xa08] ss:$16 sps:$4 sm:$0xff]  }
 0x15f   : > { %2757 = vmatpush2.bf16.msra.mxu0 %v6235_v11  ;;  %2798 = vmatpush2.bf16.msra.mxu1 %v6238_v12  ;;  %v6301_v11 = vld [vmem:[#allocation2 + $0xbe0] ss:$16 sps:$4 sm:$0xff]   ;;  %v6304_v12 = vld [vmem:[#allocation2 + $0xbe8] ss:$16 sps:$4 sm:$0xff]  }
 0x160   : > { %2758 = vmatprep.subr.bf16.mxu0 %v6243_v15  ;;  %2799 = vmatprep.subr.bf16.mxu1 %v6246_v16  ;;  %v6309_v15 = vld [vmem:[#allocation2 + $0xbc4] ss:$16 sps:$4 sm:$0xff]   ;;  %v6312_v16 = vld [vmem:[#allocation2 + $0xbcc] ss:$16 sps:$4 sm:$0xff]  }
 0x163   : > { %2759 = vmatpush2.bf16.msra.mxu0 %v6241_v19  ;;  %2800 = vmatpush2.bf16.msra.mxu1 %v6244_v20  ;;  %v6310_v19 = vld [vmem:[#allocation2 + $0xbc8] ss:$16 sps:$4 sm:$0xff]   ;;  %v6315_v20 = vld [vmem:[#allocation2 + $0xba4] ss:$16 sps:$4 sm:$0xff]  }
 0x164   : > { %2760 = vmatprep.subr.bf16.mxu0 %v6249_v21  ;;  %2801 = vmatprep.subr.bf16.mxu1 %v6252_v22  ;;  %v6318_v21 = vld [vmem:[#allocation2 + $0xbac] ss:$16 sps:$4 sm:$0xff]   ;;  %v6313_v22 = vld [vmem:[#allocation2 + $0xba0] ss:$16 sps:$4 sm:$0xff]  }
 0x167   : > { %2761 = vmatpush2.bf16.msra.mxu0 %v6247_v24  ;;  %2802 = vmatpush2.bf16.msra.mxu1 %v6250_v25  ;;  %v6316_v24 = vld [vmem:[#allocation2 + $0xba8] ss:$16 sps:$4 sm:$0xff]   ;;  %v6321_v25 = vld [vmem:[#allocation2 + $0xb84] ss:$16 sps:$4 sm:$0xff]  }
 0x168   : > { %3246 = vmatprep.subr.bf16.mxu0 %v6255_v26  ;;  %3287 = vmatprep.subr.bf16.mxu1 %v6258_v27  ;;  %v6324_v26 = vld [vmem:[#allocation2 + $0xb8c] ss:$16 sps:$4 sm:$0xff]   ;;  %v6319_v27 = vld [vmem:[#allocation2 + $0xb80] ss:$16 sps:$4 sm:$0xff]  }
 0x16a   : > { %v1203_v37 = vpop.f32.mrf.mxu0  ;;  %v1244_v38 = vpop.f32.mrf.mxu1  ;;  %2763 = vmatmul.mubr.bf16.vlgmr.msra.gmra.mxu0 %v2400_v31  ;;  %2804 = vmatmul.mubr.bf16.vlgmr.msra.gmra.mxu1 %v2400_v31  ;;  %v6325_v31 = vld [vmem:[#allocation2 + $0xb60] ss:$16 sps:$4 sm:$0xff]  }
 0x16b   : > { %v6881_v39 = vadd.f32 %v1203_v37, %v6862_v13  ;;  %v6884_v40 = vadd.f32 %v1244_v38, %v6864_v14  ;;  %3247 = vmatpush1.bf16.msra.mxu0 %v6253_v28  ;;  %3288 = vmatpush1.bf16.msra.mxu1 %v6256_v29  ;;  %v6268_v13 = vld [vmem:[#allocation2 + $0xaa8] ss:$16 sps:$4 sm:$0xff]   ;;  %v6327_v29 = vld [vmem:[#allocation2 + $0xb64] ss:$16 sps:$4 sm:$0xff]   ;;  %v6331_v37 = vld [vmem:[#allocation2 + $0xb40] ss:$16 sps:$4 sm:$0xff]  }
 0x16c   : > { %v1205_v0 = vpop.f32.mrf.mxu0  ;;  %v1246_v41 = vpop.f32.mrf.mxu1  ;;  %3248 = vmatprep.subr.bf16.mxu0 %v6261_v32  ;;  %3289 = vmatprep.subr.bf16.mxu1 %v6264_v33  ;;  %v6322_v28 = vld [vmem:[#allocation2 + $0xb88] ss:$16 sps:$4 sm:$0xff]   ;;  %v6333_v33 = vld [vmem:[#allocation2 + $0xb44] ss:$16 sps:$4 sm:$0xff]  }
 0x16d   : > { %v6887_v45 = vadd.f32 %v1205_v0, %v6866_v17  ;;  %v6890_v46 = vadd.f32 %v1246_v41, %v6868_v18  ;;  %3278 = vmatprep.mubr.bf16.mxu0 %v2923_v36  ;;  %3319 = vmatprep.mubr.bf16.mxu1 %v2923_v36  ;;  %v6271_v17 = vld [vmem:[#allocation2 + $0xa80] ss:$16 sps:$4 sm:$0xff]   ;;  %v6279_v18 = vld [vmem:[#allocation2 + $0xa64] ss:$16 sps:$4 sm:$0xff]   ;;  %v6328_v32 = vld [vmem:[#allocation2 + $0xb68] ss:$16 sps:$4 sm:$0xff]  }
 0x16e   : > { %v1207_v14 = vpop.f32.mrf.mxu0  ;;  %v1248_v55 = vpop.f32.mrf.mxu1  ;;  %v5529_v36 = vld.sshfl [vmem:[%s6791_s4 + $0xc] sm:$0x3 pattern:$0x75316420]  ;;  %v6334_v38 = vld [vmem:[#allocation2 + $0xb48] ss:$16 sps:$4 sm:$0xff]  }
 0x16f   : > { %3249 = vmatpush1.bf16.msra.mxu0 %v6259_v34  ;;  %3290 = vmatpush1.bf16.msra.mxu1 %v6262_v35  ;;  %v6336_v34 = vld [vmem:[#allocation2 + $0xb4c] ss:$16 sps:$4 sm:$0xff]   ;;  %v5528_v35 = vld.sshfl [vmem:[%s6791_s4 + $0x8] sm:$0x3 pattern:$0x75316420] }
 0x170   : > { %v1208_v48 = vpop.f32.mrf.mxu0  ;;  %v1249_v50 = vpop.f32.mrf.mxu1  ;;  %3250 = vmatprep.subr.bf16.mxu0 %v6267_v42  ;;  %3291 = vmatprep.subr.bf16.mxu1 %v6270_v44  ;;  %v6339_v0 = vld [vmem:[#allocation2 + $0xb24] ss:$16 sps:$4 sm:$0xff]   ;;  %v6342_v41 = vld [vmem:[#allocation2 + $0xb2c] ss:$16 sps:$4 sm:$0xff]   ;;  %v3416_v42 = vcombine.low %v5528_v35, %v5529_v36  ;;  %v6337_v44 = vld [vmem:[#allocation2 + $0xb20] ss:$16 sps:$4 sm:$0xff]  }
 0x171   : > { %v6348_v14 = vld [vmem:[#allocation2 + $0xb0c] ss:$16 sps:$4 sm:$0xff]   ;;  %v6343_v48 = vld [vmem:[#allocation2 + $0xb00] ss:$16 sps:$4 sm:$0xff]   ;;  %v6346_v50 = vld [vmem:[#allocation2 + $0xb08] ss:$16 sps:$4 sm:$0xff]  }
 0x172   : > { %v6895_v55 = vrot.slane %v3416_v42, %v6810_v4  ;;  %v6399_v35 = vld [vmem:[#allocation2 + $0xde4] ss:$16 sps:$4 sm:$0xff]   ;;  %v6402_v36 = vld [vmem:[#allocation2 + $0xdec] ss:$16 sps:$4 sm:$0xff]   ;;  %v6403_v42 = vld [vmem:[#allocation2 + $0xdc0] ss:$16 sps:$4 sm:$0xff]  }
 0x173   : > { %3251 = vmatpush1.bf16.msra.mxu0 %v6265_v47  ;;  %3292 = vmatpush1.bf16.msra.mxu1 %v6268_v13  ;;  %v6340_v47 = vld [vmem:[#allocation2 + $0xb28] ss:$16 sps:$4 sm:$0xff]   ;;  %v6345_v13 = vld [vmem:[#allocation2 + $0xb04] ss:$16 sps:$4 sm:$0xff]  }
 0x174   : > { %3252 = vmatprep.subr.bf16.mxu0 %v6273_v51  ;;  %3293 = vmatprep.subr.bf16.mxu1 %v6276_v52  ;;  %v6351_v51 = vld [vmem:[#allocation2 + $0xce4] ss:$16 sps:$4 sm:$0xff]   ;;  %v6354_v52 = vld [vmem:[#allocation2 + $0xcec] ss:$16 sps:$4 sm:$0xff]  }
 0x177   : > { %3253 = vmatpush1.bf16.msra.mxu0 %v6271_v17  ;;  %3294 = vmatpush1.bf16.msra.mxu1 %v6274_v54  ;;  %v3424_v17 = vcombine.high %v6895_v55, %v6895_v55  ;;  %v2916_v54 = vrot.slane %v6873_v23, %v6810_v4  ;;  %v6355_v23 = vld [vmem:[#allocation2 + $0xcc0] ss:$16 sps:$4 sm:$0xff]  }
 0x178   : > { %3254 = vmatprep.subr.bf16.mxu0 %v6279_v18  ;;  %3295 = vmatprep.subr.bf16.mxu1 %v6282_v56  ;;  %v6349_v18 = vld [vmem:[#allocation2 + $0xce0] ss:$16 sps:$4 sm:$0xff]   ;;  %v6352_v56 = vld [vmem:[#allocation2 + $0xce8] ss:$16 sps:$4 sm:$0xff]  }
 0x17b   : > { %3255 = vmatpush1.bf16.msra.mxu0 %v6277_v57  ;;  %3296 = vmatpush1.bf16.msra.mxu1 %v6280_v58  ;;  %v6357_v57 = vld [vmem:[#allocation2 + $0xcc4] ss:$16 sps:$4 sm:$0xff]   ;;  %v6360_v58 = vld [vmem:[#allocation2 + $0xccc] ss:$16 sps:$4 sm:$0xff]  }
 0x17c   : > { %3256 = vmatprep.subr.bf16.mxu0 %v6285_v59  ;;  %3297 = vmatprep.subr.bf16.mxu1 %v6288_v49  ;;  %v3438_v59 = vrot.slane %v3424_v17, %v6810_v4  ;;  %v6420_v17 = vld [vmem:[#allocation2 + $0xd8c] ss:$16 sps:$4 sm:$0xff]  }
 0x17f   : > { %3257 = vmatpush1.bf16.msra.mxu0 %v6283_v60  ;;  %3298 = vmatpush1.bf16.msra.mxu1 %v6286_v62 }
 0x180   : > { %3258 = vmatprep.subr.bf16.mxu0 %v6291_v63  ;;  %3299 = vmatprep.subr.bf16.mxu1 %v6294_v1  ;;  %v6358_v1 = vld [vmem:[#allocation2 + $0xcc8] ss:$16 sps:$4 sm:$0xff]  }
 0x183   : > { %3259 = vmatpush1.bf16.msra.mxu0 %v6289_v2  ;;  %3300 = vmatpush1.bf16.msra.mxu1 %v6292_v3 }
 0x184   : > { %3260 = vmatprep.subr.bf16.mxu0 %v6297_v5  ;;  %3301 = vmatprep.subr.bf16.mxu1 %v6300_v6  ;;  %v6363_v5 = vld [vmem:[#allocation2 + $0xca4] ss:$16 sps:$4 sm:$0xff]   ;;  %v6366_v6 = vld [vmem:[#allocation2 + $0xcac] ss:$16 sps:$4 sm:$0xff]  }
 0x187   : > { %3261 = vmatpush1.bf16.msra.mxu0 %v6295_v7  ;;  %3302 = vmatpush1.bf16.msra.mxu1 %v6298_v8 }
 0x188   : > { %3262 = vmatprep.subr.bf16.mxu0 %v6303_v9  ;;  %3303 = vmatprep.subr.bf16.mxu1 %v6306_v10  ;;  %v6361_v9 = vld [vmem:[#allocation2 + $0xca0] ss:$16 sps:$4 sm:$0xff]   ;;  %v6364_v10 = vld [vmem:[#allocation2 + $0xca8] ss:$16 sps:$4 sm:$0xff]  }
 0x18b   : > { %3263 = vmatpush2.bf16.msra.mxu0 %v6301_v11  ;;  %3304 = vmatpush2.bf16.msra.mxu1 %v6304_v12 }
 0x18c   : > { %3264 = vmatprep.subr.bf16.mxu0 %v6309_v15  ;;  %3305 = vmatprep.subr.bf16.mxu1 %v6312_v16  ;;  %v6369_v15 = vld [vmem:[#allocation2 + $0xc84] ss:$16 sps:$4 sm:$0xff]   ;;  %v6372_v16 = vld [vmem:[#allocation2 + $0xc8c] ss:$16 sps:$4 sm:$0xff]  }
 0x18f   : > { %3265 = vmatpush2.bf16.msra.mxu0 %v6307_v43  ;;  %3306 = vmatpush2.bf16.msra.mxu1 %v6310_v19  ;;  %v6370_v43 = vld [vmem:[#allocation2 + $0xc88] ss:$16 sps:$4 sm:$0xff]   ;;  %v6378_v19 = vld [vmem:[#allocation2 + $0xc6c] ss:$16 sps:$4 sm:$0xff]  }
 0x190   : > { %3266 = vmatprep.subr.bf16.mxu0 %v6315_v20  ;;  %3307 = vmatprep.subr.bf16.mxu1 %v6318_v21  ;;  %v6373_v20 = vld [vmem:[#allocation2 + $0xc60] ss:$16 sps:$4 sm:$0xff]   ;;  %v6376_v21 = vld [vmem:[#allocation2 + $0xc68] ss:$16 sps:$4 sm:$0xff]  }
 0x193   : > { %3267 = vmatpush2.bf16.msra.mxu0 %v6313_v22  ;;  %3308 = vmatpush2.bf16.msra.mxu1 %v6316_v24  ;;  %v6381_v22 = vld [vmem:[#allocation2 + $0xc44] ss:$16 sps:$4 sm:$0xff]   ;;  %v6384_v24 = vld [vmem:[#allocation2 + $0xc4c] ss:$16 sps:$4 sm:$0xff]  }
 0x194   : > { %3268 = vmatprep.subr.bf16.mxu0 %v6321_v25  ;;  %3309 = vmatprep.subr.bf16.mxu1 %v6324_v26  ;;  %v6379_v25 = vld [vmem:[#allocation2 + $0xc40] ss:$16 sps:$4 sm:$0xff]   ;;  %v6382_v26 = vld [vmem:[#allocation2 + $0xc48] ss:$16 sps:$4 sm:$0xff]  }
 0x197   : > { %3269 = vmatpush2.bf16.msra.mxu0 %v6319_v27  ;;  %3310 = vmatpush2.bf16.msra.mxu1 %v6322_v28  ;;  %v6387_v27 = vld [vmem:[#allocation2 + $0xc24] ss:$16 sps:$4 sm:$0xff]   ;;  %v6390_v28 = vld [vmem:[#allocation2 + $0xc2c] ss:$16 sps:$4 sm:$0xff]  }
 0x198   : > { %3270 = vmatprep.subr.bf16.mxu0 %v6327_v29  ;;  %3311 = vmatprep.subr.bf16.mxu1 %v6330_v30  ;;  %v6385_v29 = vld [vmem:[#allocation2 + $0xc20] ss:$16 sps:$4 sm:$0xff]   ;;  %v6388_v30 = vld [vmem:[#allocation2 + $0xc28] ss:$16 sps:$4 sm:$0xff]  }
 0x19b   : > { %3271 = vmatpush2.bf16.msra.mxu0 %v6325_v31  ;;  %3312 = vmatpush2.bf16.msra.mxu1 %v6328_v32  ;;  %v6393_v31 = vld [vmem:[#allocation2 + $0xc04] ss:$16 sps:$4 sm:$0xff]   ;;  %v6396_v32 = vld [vmem:[#allocation2 + $0xc0c] ss:$16 sps:$4 sm:$0xff]  }
 0x19c   : > { %3272 = vmatprep.subr.bf16.mxu0 %v6333_v33  ;;  %3313 = vmatprep.subr.bf16.mxu1 %v6336_v34  ;;  %v6391_v33 = vld [vmem:[#allocation2 + $0xc00] ss:$16 sps:$4 sm:$0xff]   ;;  %v6394_v34 = vld [vmem:[#allocation2 + $0xc08] ss:$16 sps:$4 sm:$0xff]  }
 0x19f   : > { %3273 = vmatpush2.bf16.msra.mxu0 %v6331_v37  ;;  %3314 = vmatpush2.bf16.msra.mxu1 %v6334_v38  ;;  %v6397_v37 = vld [vmem:[#allocation2 + $0xde0] ss:$16 sps:$4 sm:$0xff]   ;;  %v6400_v38 = vld [vmem:[#allocation2 + $0xde8] ss:$16 sps:$4 sm:$0xff]  }
 0x1a0   : > { %3274 = vmatprep.subr.bf16.mxu0 %v6339_v0  ;;  %3315 = vmatprep.subr.bf16.mxu1 %v6342_v41  ;;  %v6405_v0 = vld [vmem:[#allocation2 + $0xdc4] ss:$16 sps:$4 sm:$0xff]   ;;  %v6408_v41 = vld [vmem:[#allocation2 + $0xdcc] ss:$16 sps:$4 sm:$0xff]  }
 0x1a3   : > { %3275 = vmatpush2.bf16.msra.mxu0 %v6337_v44  ;;  %3316 = vmatpush2.bf16.msra.mxu1 %v6340_v47  ;;  %v6406_v44 = vld [vmem:[#allocation2 + $0xdc8] ss:$16 sps:$4 sm:$0xff]   ;;  %v6411_v47 = vld [vmem:[#allocation2 + $0xda4] ss:$16 sps:$4 sm:$0xff]  }
 0x1a4   : > { %3276 = vmatprep.subr.bf16.mxu0 %v6345_v13  ;;  %3317 = vmatprep.subr.bf16.mxu1 %v6348_v14  ;;  %v6414_v13 = vld [vmem:[#allocation2 + $0xdac] ss:$16 sps:$4 sm:$0xff]   ;;  %v6409_v14 = vld [vmem:[#allocation2 + $0xda0] ss:$16 sps:$4 sm:$0xff]  }
 0x1a7   : > { %3277 = vmatpush2.bf16.msra.mxu0 %v6343_v48  ;;  %3318 = vmatpush2.bf16.msra.mxu1 %v6346_v50  ;;  %v5596_v48 = vld.sshfl [vmem:[%s6791_s4 + $0x8] sm:$0x33 pattern:$0x75316420] }
 0x1a8   : > { %3761 = vmatprep.subr.bf16.mxu0 %v6351_v51  ;;  %3802 = vmatprep.subr.bf16.mxu1 %v6354_v52  ;;  %v6412_v50 = vld [vmem:[#allocation2 + $0xda8] ss:$16 sps:$4 sm:$0xff]   ;;  %v5597_v51 = vld.sshfl [vmem:[%s6791_s4 + $0xc] sm:$0x33 pattern:$0x75316420] }
 0x1a9   : > { %v6417_v52 = vld [vmem:[#allocation2 + $0xd84] ss:$16 sps:$4 sm:$0xff]  }
 0x1aa   : > { %v1715_v49 = vpop.f32.mrf.mxu0  ;;  %v1756_v60 = vpop.f32.mrf.mxu1  ;;  %3279 = vmatmul.mubr.bf16.vlgmr.msra.gmra.mxu0 %v2916_v54  ;;  %3320 = vmatmul.mubr.bf16.vlgmr.msra.gmra.mxu1 %v2916_v54  ;;  %v3858_v54 = vcombine.high %v5596_v48, %v5596_v48 }
 0x1ab   : > { %v6903_v62 = vadd.f32 %v1715_v49, %v6881_v39  ;;  %v6906_v63 = vadd.f32 %v1756_v60, %v6884_v40  ;;  %3762 = vmatpush1.bf16.msra.mxu0 %v6349_v18  ;;  %3803 = vmatpush1.bf16.msra.mxu1 %v6352_v56  ;;  %v3866_v18 = vcombine.high %v5597_v51, %v5597_v51  ;;  %v6415_v56 = vld [vmem:[#allocation2 + $0xd80] ss:$16 sps:$4 sm:$0xff]   ;;  %v3868_v49 = vshrl.u32 %v5596_v48, 16  ;;  %v6465_v48 = vld [vmem:[#allocation2 + $0xe84] ss:$16 sps:$4 sm:$0xff]  }
 0x1ac   : > { %v1717_v2 = vpop.f32.mrf.mxu0  ;;  %v1758_v3 = vpop.f32.mrf.mxu1  ;;  %3763 = vmatprep.subr.bf16.mxu0 %v6357_v57  ;;  %3804 = vmatprep.subr.bf16.mxu1 %v6360_v58  ;;  %v6418_v57 = vld [vmem:[#allocation2 + $0xd88] ss:$16 sps:$4 sm:$0xff]   ;;  %v6423_v58 = vld [vmem:[#allocation2 + $0xd64] ss:$16 sps:$4 sm:$0xff]   ;;  %v3873_v60 = vshll.u32 %v3858_v54, 16 }
 0x1ad   : > { %v6909_v7 = vadd.f32 %v1717_v2, %v6887_v45  ;;  %v6912_v8 = vadd.f32 %v1758_v3, %v6890_v46  ;;  %3793 = vmatprep.mubr.bf16.mxu0 %v3438_v59  ;;  %3834 = vmatprep.mubr.bf16.mxu1 %v3438_v59  ;;  %v6367_v45 = vld [vmem:[#allocation2 + $0xc80] ss:$16 sps:$4 sm:$0xff]   ;;  %v6375_v46 = vld [vmem:[#allocation2 + $0xc64] ss:$16 sps:$4 sm:$0xff]   ;;  %v6426_v59 = vld [vmem:[#allocation2 + $0xd6c] ss:$16 sps:$4 sm:$0xff]  }
 0x1ae   : > { %v1719_v39 = vpop.f32.mrf.mxu0  ;;  %v1760_v40 = vpop.f32.mrf.mxu1  ;;  %v6421_v2 = vld [vmem:[#allocation2 + $0xd60] ss:$16 sps:$4 sm:$0xff]   ;;  %v6424_v3 = vld [vmem:[#allocation2 + $0xd68] ss:$16 sps:$4 sm:$0xff]  }
 0x1af   : > { %3764 = vmatpush1.bf16.msra.mxu0 %v6355_v23  ;;  %3805 = vmatpush1.bf16.msra.mxu1 %v6358_v1  ;;  %v3877_v23 = vshrl.u32 %v5597_v51, 16  ;;  %v3882_v1 = vshll.u32 %v3866_v18, 16  ;;  %v3875_v39 = vsel %vm6803_vm14, %v3868_v49, %v3873_v60  ;;  %v6466_v51 = vld [vmem:[#allocation2 + $0xe88] ss:$16 sps:$4 sm:$0xff]   ;;  %v6477_v18 = vld [vmem:[#allocation2 + $0xe44] ss:$16 sps:$4 sm:$0xff]  }
 0x1b0   : > { %v1720_v11 = vpop.f32.mrf.mxu0  ;;  %v1761_v12 = vpop.f32.mrf.mxu1  ;;  %3765 = vmatprep.subr.bf16.mxu0 %v6363_v5  ;;  %3806 = vmatprep.subr.bf16.mxu1 %v6366_v6  ;;  %v6429_v5 = vld [vmem:[#allocation2 + $0xd44] ss:$16 sps:$4 sm:$0xff]   ;;  %v6432_v6 = vld [vmem:[#allocation2 + $0xd4c] ss:$16 sps:$4 sm:$0xff]   ;;  %v6472_v54 = vld [vmem:[#allocation2 + $0xe68] ss:$16 sps:$4 sm:$0xff]  }
 0x1b1   : > { %v3884_v40 = vsel %vm6803_vm14, %v3877_v23, %v3882_v1  ;;  %v6435_v11 = vld [vmem:[#allocation2 + $0xd24] ss:$16 sps:$4 sm:$0xff]   ;;  %v6438_v12 = vld [vmem:[#allocation2 + $0xd2c] ss:$16 sps:$4 sm:$0xff]   ;;  %v6481_v60 = vld [vmem:[#allocation2 + $0xe20] ss:$16 sps:$4 sm:$0xff]  }
 0x1b2   : > { %v6486_v49 = vld [vmem:[#allocation2 + $0xe2c] ss:$16 sps:$4 sm:$0xff]   ;;  %v6484_v23 = vld [vmem:[#allocation2 + $0xe28] ss:$16 sps:$4 sm:$0xff]   ;;  %v6489_v1 = vld [vmem:[#allocation2 + $0xe04] ss:$16 sps:$4 sm:$0xff]  }
 0x1b3   : > { %3766 = vmatpush1.bf16.msra.mxu0 %v6361_v9  ;;  %3807 = vmatpush1.bf16.msra.mxu1 %v6364_v10  ;;  %v6427_v9 = vld [vmem:[#allocation2 + $0xd40] ss:$16 sps:$4 sm:$0xff]   ;;  %v6430_v10 = vld [vmem:[#allocation2 + $0xd48] ss:$16 sps:$4 sm:$0xff]  }
 0x1b4   : > { %3767 = vmatprep.subr.bf16.mxu0 %v6369_v15  ;;  %3808 = vmatprep.subr.bf16.mxu1 %v6372_v16  ;;  %v3950_v15 = vcombine.low %v3875_v39, %v3884_v40  ;;  %v6433_v16 = vld [vmem:[#allocation2 + $0xd20] ss:$16 sps:$4 sm:$0xff]   ;;  %v6498_v39 = vld [vmem:[#allocation2 + $0xfec] ss:$16 sps:$4 sm:$0xff]  }
 0x1b5   : > { %v6493_v40 = vld [vmem:[#allocation2 + $0xfe0] ss:$16 sps:$4 sm:$0xff]  }
 0x1b6   : > { %v6921_v61 = vrot.slane %v3950_v15, %v6810_v4  ;;  %v6502_v15 = vld [vmem:[#allocation2 + $0xfc8] ss:$16 sps:$4 sm:$0xff]  }
 0x1b7   : > { %3768 = vmatpush1.bf16.msra.mxu0 %v6367_v45  ;;  %3809 = vmatpush1.bf16.msra.mxu1 %v6370_v43  ;;  %v6436_v45 = vld [vmem:[#allocation2 + $0xd28] ss:$16 sps:$4 sm:$0xff]   ;;  %v6441_v43 = vld [vmem:[#allocation2 + $0xd04] ss:$16 sps:$4 sm:$0xff]  }
 0x1b8   : > { %3769 = vmatprep.subr.bf16.mxu0 %v6375_v46  ;;  %3810 = vmatprep.subr.bf16.mxu1 %v6378_v19  ;;  %v6444_v46 = vld [vmem:[#allocation2 + $0xd0c] ss:$16 sps:$4 sm:$0xff]   ;;  %v6439_v19 = vld [vmem:[#allocation2 + $0xd00] ss:$16 sps:$4 sm:$0xff]  }
 0x1bb   : > { %3770 = vmatpush1.bf16.msra.mxu0 %v6373_v20  ;;  %3811 = vmatpush1.bf16.msra.mxu1 %v6376_v21  ;;  %v6442_v20 = vld [vmem:[#allocation2 + $0xd08] ss:$16 sps:$4 sm:$0xff]   ;;  %v6447_v21 = vld [vmem:[#allocation2 + $0xee4] ss:$16 sps:$4 sm:$0xff]  }
 0x1bc   : > { %3771 = vmatprep.subr.bf16.mxu0 %v6381_v22  ;;  %3812 = vmatprep.subr.bf16.mxu1 %v6384_v24  ;;  %v6450_v22 = vld [vmem:[#allocation2 + $0xeec] ss:$16 sps:$4 sm:$0xff]   ;;  %v3958_v24 = vcombine.high %v6921_v61, %v6921_v61 }
 0x1bf   : > { %3772 = vmatpush1.bf16.msra.mxu0 %v6379_v25  ;;  %3813 = vmatpush1.bf16.msra.mxu1 %v6382_v26  ;;  %v3431_v25 = vrot.slane %v6895_v55, %v6810_v4  ;;  %v6445_v26 = vld [vmem:[#allocation2 + $0xee0] ss:$16 sps:$4 sm:$0xff]  }
 0x1c0   : > { %3773 = vmatprep.subr.bf16.mxu0 %v6387_v27  ;;  %3814 = vmatprep.subr.bf16.mxu1 %v6390_v28  ;;  %v6448_v27 = vld [vmem:[#allocation2 + $0xee8] ss:$16 sps:$4 sm:$0xff]   ;;  %v6453_v28 = vld [vmem:[#allocation2 + $0xec4] ss:$16 sps:$4 sm:$0xff]   ;;  %v6451_v55 = vld [vmem:[#allocation2 + $0xec0] ss:$16 sps:$4 sm:$0xff]  }
 0x1c3   : > { %3774 = vmatpush1.bf16.msra.mxu0 %v6385_v29  ;;  %3815 = vmatpush1.bf16.msra.mxu1 %v6388_v30  ;;  %v6456_v29 = vld [vmem:[#allocation2 + $0xecc] ss:$16 sps:$4 sm:$0xff]   ;;  %v3972_v30 = vrot.slane %v3958_v24, %v6810_v4  ;;  %v6519_v24 = vld [vmem:[#allocation2 + $0xf64] ss:$16 sps:$4 sm:$0xff]  }
 0x1c4   : > { %3775 = vmatprep.subr.bf16.mxu0 %v6393_v31  ;;  %3816 = vmatprep.subr.bf16.mxu1 %v6396_v32 }
 0x1c7   : > { %3776 = vmatpush1.bf16.msra.mxu0 %v6391_v33  ;;  %3817 = vmatpush1.bf16.msra.mxu1 %v6394_v34 }
 0x1c8   : > { %3777 = vmatprep.subr.bf16.mxu0 %v6399_v35  ;;  %3818 = vmatprep.subr.bf16.mxu1 %v6402_v36  ;;  %v6454_v35 = vld [vmem:[#allocation2 + $0xec8] ss:$16 sps:$4 sm:$0xff]  }
 0x1cb   : > { %3778 = vmatpush2.bf16.msra.mxu0 %v6397_v37  ;;  %3819 = vmatpush2.bf16.msra.mxu1 %v6400_v38  ;;  %v6459_v38 = vld [vmem:[#allocation2 + $0xea4] ss:$16 sps:$4 sm:$0xff]  }
 0x1cc   : > { %3779 = vmatprep.subr.bf16.mxu0 %v6405_v0  ;;  %3820 = vmatprep.subr.bf16.mxu1 %v6408_v41  ;;  %v6462_v0 = vld [vmem:[#allocation2 + $0xeac] ss:$16 sps:$4 sm:$0xff]  }
 0x1cf   : > { %3780 = vmatpush2.bf16.msra.mxu0 %v6403_v42  ;;  %3821 = vmatpush2.bf16.msra.mxu1 %v6406_v44  ;;  %v6457_v44 = vld [vmem:[#allocation2 + $0xea0] ss:$16 sps:$4 sm:$0xff]  }
 0x1d0   : > { %3781 = vmatprep.subr.bf16.mxu0 %v6411_v47  ;;  %3822 = vmatprep.subr.bf16.mxu1 %v6414_v13  ;;  %v6460_v47 = vld [vmem:[#allocation2 + $0xea8] ss:$16 sps:$4 sm:$0xff]  }
 0x1d3   : > { %3782 = vmatpush2.bf16.msra.mxu0 %v6409_v14  ;;  %3823 = vmatpush2.bf16.msra.mxu1 %v6412_v50  ;;  %v6468_v50 = vld [vmem:[#allocation2 + $0xe8c] ss:$16 sps:$4 sm:$0xff]  }
 0x1d4   : > { %3783 = vmatprep.subr.bf16.mxu0 %v6417_v52  ;;  %3824 = vmatprep.subr.bf16.mxu1 %v6420_v17  ;;  %v6474_v52 = vld [vmem:[#allocation2 + $0xe6c] ss:$16 sps:$4 sm:$0xff]   ;;  %v6469_v17 = vld [vmem:[#allocation2 + $0xe60] ss:$16 sps:$4 sm:$0xff]  }
 0x1d7   : > { %3784 = vmatpush2.bf16.msra.mxu0 %v6415_v56  ;;  %3825 = vmatpush2.bf16.msra.mxu1 %v6418_v57  ;;  %v6480_v56 = vld [vmem:[#allocation2 + $0xe4c] ss:$16 sps:$4 sm:$0xff]   ;;  %v6475_v57 = vld [vmem:[#allocation2 + $0xe40] ss:$16 sps:$4 sm:$0xff]  }
 0x1d8   : > { %3785 = vmatprep.subr.bf16.mxu0 %v6423_v58  ;;  %3826 = vmatprep.subr.bf16.mxu1 %v6426_v59  ;;  %v6478_v58 = vld [vmem:[#allocation2 + $0xe48] ss:$16 sps:$4 sm:$0xff]   ;;  %v6483_v59 = vld [vmem:[#allocation2 + $0xe24] ss:$16 sps:$4 sm:$0xff]  }
 0x1db   : > { %3786 = vmatpush2.bf16.msra.mxu0 %v6421_v2  ;;  %3827 = vmatpush2.bf16.msra.mxu1 %v6424_v3  ;;  %v6492_v2 = vld [vmem:[#allocation2 + $0xe0c] ss:$16 sps:$4 sm:$0xff]   ;;  %v6487_v3 = vld [vmem:[#allocation2 + $0xe00] ss:$16 sps:$4 sm:$0xff]  }
 0x1dc   : > { %3787 = vmatprep.subr.bf16.mxu0 %v6429_v5  ;;  %3828 = vmatprep.subr.bf16.mxu1 %v6432_v6  ;;  %v6490_v5 = vld [vmem:[#allocation2 + $0xe08] ss:$16 sps:$4 sm:$0xff]   ;;  %v6495_v6 = vld [vmem:[#allocation2 + $0xfe4] ss:$16 sps:$4 sm:$0xff]  }
 0x1df   : > { %3788 = vmatpush2.bf16.msra.mxu0 %v6427_v9  ;;  %3829 = vmatpush2.bf16.msra.mxu1 %v6430_v10  ;;  %v6496_v9 = vld [vmem:[#allocation2 + $0xfe8] ss:$16 sps:$4 sm:$0xff]   ;;  %v6501_v10 = vld [vmem:[#allocation2 + $0xfc4] ss:$16 sps:$4 sm:$0xff]  }
 0x1e0   : > { %3789 = vmatprep.subr.bf16.mxu0 %v6435_v11  ;;  %3830 = vmatprep.subr.bf16.mxu1 %v6438_v12  ;;  %v6504_v11 = vld [vmem:[#allocation2 + $0xfcc] ss:$16 sps:$4 sm:$0xff]   ;;  %v6499_v12 = vld [vmem:[#allocation2 + $0xfc0] ss:$16 sps:$4 sm:$0xff]  }
 0x1e3   : > { %3790 = vmatpush2.bf16.msra.mxu0 %v6433_v16  ;;  %3831 = vmatpush2.bf16.msra.mxu1 %v6436_v45  ;;  %v6507_v16 = vld [vmem:[#allocation2 + $0xfa4] ss:$16 sps:$4 sm:$0xff]   ;;  %v6510_v45 = vld [vmem:[#allocation2 + $0xfac] ss:$16 sps:$4 sm:$0xff]  }
 0x1e4   : > { %3791 = vmatprep.subr.bf16.mxu0 %v6441_v43  ;;  %3832 = vmatprep.subr.bf16.mxu1 %v6444_v46  ;;  %v6505_v43 = vld [vmem:[#allocation2 + $0xfa0] ss:$16 sps:$4 sm:$0xff]   ;;  %v6508_v46 = vld [vmem:[#allocation2 + $0xfa8] ss:$16 sps:$4 sm:$0xff]  }
 0x1e7   : > { %3792 = vmatpush2.bf16.msra.mxu0 %v6439_v19  ;;  %3833 = vmatpush2.bf16.msra.mxu1 %v6442_v20  ;;  %v6513_v19 = vld [vmem:[#allocation2 + $0xf84] ss:$16 sps:$4 sm:$0xff]   ;;  %v6516_v20 = vld [vmem:[#allocation2 + $0xf8c] ss:$16 sps:$4 sm:$0xff]  }
 0x1e8   : > { %4295 = vmatprep.subr.bf16.mxu0 %v6447_v21  ;;  %4336 = vmatprep.subr.bf16.mxu1 %v6450_v22  ;;  %v6511_v21 = vld [vmem:[#allocation2 + $0xf80] ss:$16 sps:$4 sm:$0xff]   ;;  %v6514_v22 = vld [vmem:[#allocation2 + $0xf88] ss:$16 sps:$4 sm:$0xff]  }
 0x1ea   : > { %v2230_v31 = vpop.f32.mrf.mxu0  ;;  %v2271_v32 = vpop.f32.mrf.mxu1  ;;  %3794 = vmatmul.mubr.bf16.vlgmr.msra.gmra.mxu0 %v3431_v25  ;;  %3835 = vmatmul.mubr.bf16.vlgmr.msra.gmra.mxu1 %v3431_v25  ;;  %v6522_v25 = vld [vmem:[#allocation2 + $0xf6c] ss:$16 sps:$4 sm:$0xff]  }
 0x1eb   : > { %v6929_v33 = vadd.f32 %v2230_v31, %v6903_v62  ;;  %v6932_v34 = vadd.f32 %v2271_v32, %v6906_v63  ;;  %4296 = vmatpush1.bf16.msra.mxu0 %v6445_v26  ;;  %4337 = vmatpush1.bf16.msra.mxu1 %v6448_v27  ;;  %v6517_v26 = vld [vmem:[#allocation2 + $0xf60] ss:$16 sps:$4 sm:$0xff]   ;;  %v6520_v27 = vld [vmem:[#allocation2 + $0xf68] ss:$16 sps:$4 sm:$0xff]  }
 0x1ec   : > { %v2232_v36 = vpop.f32.mrf.mxu0  ;;  %v2273_v37 = vpop.f32.mrf.mxu1  ;;  %4297 = vmatprep.subr.bf16.mxu0 %v6453_v28  ;;  %4338 = vmatprep.subr.bf16.mxu1 %v6456_v29  ;;  %v6525_v28 = vld [vmem:[#allocation2 + $0xf44] ss:$16 sps:$4 sm:$0xff]   ;;  %v6528_v29 = vld [vmem:[#allocation2 + $0xf4c] ss:$16 sps:$4 sm:$0xff]   ;;  %v6523_v32 = vld [vmem:[#allocation2 + $0xf40] ss:$16 sps:$4 sm:$0xff]  }
 0x1ed   : > { %v6935_v41 = vadd.f32 %v2232_v36, %v6909_v7  ;;  %v6938_v42 = vadd.f32 %v2273_v37, %v6912_v8  ;;  %4327 = vmatprep.mubr.bf16.mxu0 %v3972_v30  ;;  %4368 = vmatprep.mubr.bf16.mxu1 %v3972_v30  ;;  %v6463_v7 = vld [vmem:[#allocation2 + $0xe80] ss:$16 sps:$4 sm:$0xff]   ;;  %v6471_v8 = vld [vmem:[#allocation2 + $0xe64] ss:$16 sps:$4 sm:$0xff]   ;;  %v6534_v36 = vld [vmem:[#allocation2 + $0xf2c] ss:$16 sps:$4 sm:$0xff]  }
 0x1ee   : > { %v2234_v62 = vpop.f32.mrf.mxu0  ;;  %v2275_v63 = vpop.f32.mrf.mxu1  ;;  %v5666_v30 = vld.sshfl [vmem:[%s6791_s4 + $0x8] sm:$0x30 pattern:$0x75316420] }
 0x1ef   : > { %4298 = vmatpush1.bf16.msra.mxu0 %v6451_v55  ;;  %4339 = vmatpush1.bf16.msra.mxu1 %v6454_v35  ;;  %v5667_v31 = vld.sshfl [vmem:[%s6791_s4 + $0xc] sm:$0x30 pattern:$0x75316420]  ;;  %v6526_v55 = vld [vmem:[#allocation2 + $0xf48] ss:$16 sps:$4 sm:$0xff]  }
 0x1f0   : > { %v2235_v13 = vpop.f32.mrf.mxu0  ;;  %v2276_v14 = vpop.f32.mrf.mxu1  ;;  %4299 = vmatprep.subr.bf16.mxu0 %v6459_v38  ;;  %4340 = vmatprep.subr.bf16.mxu1 %v6462_v0  ;;  %v6531_v35 = vld [vmem:[#allocation2 + $0xf24] ss:$16 sps:$4 sm:$0xff]   ;;  %v5668_v37 = vcombine.high %v5666_v30, %v5667_v31  ;;  %v6529_v38 = vld [vmem:[#allocation2 + $0xf20] ss:$16 sps:$4 sm:$0xff]   ;;  %v6532_v0 = vld [vmem:[#allocation2 + $0xf28] ss:$16 sps:$4 sm:$0xff]  }
 0x1f1   : > { %v6537_v62 = vld [vmem:[#allocation2 + $0xf04] ss:$16 sps:$4 sm:$0xff]   ;;  %v6540_v63 = vld [vmem:[#allocation2 + $0xf0c] ss:$16 sps:$4 sm:$0xff]   ;;  %v6538_v13 = vld [vmem:[#allocation2 + $0xf08] ss:$16 sps:$4 sm:$0xff]  }
 0x1f2   : > { %v6543_v14 = vld [vmem:[#allocation2 + $0x10e4] ss:$16 sps:$4 sm:$0xff]   ;;  %v6594_v30 = vld [vmem:[#allocation2 + $0x11ec] ss:$16 sps:$4 sm:$0xff]   ;;  %v6589_v31 = vld [vmem:[#allocation2 + $0x11e0] ss:$16 sps:$4 sm:$0xff]  }
 0x1f3   : > { %4300 = vmatpush1.bf16.msra.mxu0 %v6457_v44  ;;  %4341 = vmatpush1.bf16.msra.mxu1 %v6460_v47  ;;  %v6943_v44 = vrot.slane %v5668_v37, %v6810_v4  ;;  %v6535_v47 = vld [vmem:[#allocation2 + $0xf00] ss:$16 sps:$4 sm:$0xff]   ;;  %v6598_v37 = vld [vmem:[#allocation2 + $0x11c8] ss:$16 sps:$4 sm:$0xff]  }
 0x1f4   : > { %4301 = vmatprep.subr.bf16.mxu0 %v6465_v48  ;;  %4342 = vmatprep.subr.bf16.mxu1 %v6468_v50  ;;  %v6546_v48 = vld [vmem:[#allocation2 + $0x10ec] ss:$16 sps:$4 sm:$0xff]  }
 0x1f5   : > { %v4474_v50 = vcombine.high %v6943_v44, %v6943_v44 }
 0x1f7   : > { %4302 = vmatpush1.bf16.msra.mxu0 %v6463_v7  ;;  %4343 = vmatpush1.bf16.msra.mxu1 %v6466_v51  ;;  %v3965_v7 = vrot.slane %v6921_v61, %v6810_v4  ;;  %v6541_v51 = vld [vmem:[#allocation2 + $0x10e0] ss:$16 sps:$4 sm:$0xff]  }
 0x1f8   : > { %4303 = vmatprep.subr.bf16.mxu0 %v6471_v8  ;;  %4344 = vmatprep.subr.bf16.mxu1 %v6474_v52  ;;  %v6544_v8 = vld [vmem:[#allocation2 + $0x10e8] ss:$16 sps:$4 sm:$0xff]   ;;  %v6549_v52 = vld [vmem:[#allocation2 + $0x10c4] ss:$16 sps:$4 sm:$0xff]   ;;  %v6547_v61 = vld [vmem:[#allocation2 + $0x10c0] ss:$16 sps:$4 sm:$0xff]  }
 0x1fb   : > { %4304 = vmatpush1.bf16.msra.mxu0 %v6469_v17  ;;  %4345 = vmatpush1.bf16.msra.mxu1 %v6472_v54  ;;  %v6552_v17 = vld [vmem:[#allocation2 + $0x10cc] ss:$16 sps:$4 sm:$0xff]   ;;  %v4488_v54 = vrot.slane %v4474_v50, %v6810_v4  ;;  %v6615_v50 = vld [vmem:[#allocation2 + $0x1164] ss:$16 sps:$4 sm:$0xff]  }
 0x1fc   : > { %4305 = vmatprep.subr.bf16.mxu0 %v6477_v18  ;;  %4346 = vmatprep.subr.bf16.mxu1 %v6480_v56 }
 0x1ff   : > { %4306 = vmatpush1.bf16.msra.mxu0 %v6475_v57  ;;  %4347 = vmatpush1.bf16.msra.mxu1 %v6478_v58 }
 0x200   : > { %4307 = vmatprep.subr.bf16.mxu0 %v6483_v59  ;;  %4348 = vmatprep.subr.bf16.mxu1 %v6486_v49  ;;  %v6550_v59 = vld [vmem:[#allocation2 + $0x10c8] ss:$16 sps:$4 sm:$0xff]  }
 0x203   : > { %4308 = vmatpush1.bf16.msra.mxu0 %v6481_v60  ;;  %4349 = vmatpush1.bf16.msra.mxu1 %v6484_v23  ;;  %v6555_v23 = vld [vmem:[#allocation2 + $0x10a4] ss:$16 sps:$4 sm:$0xff]  }
 0x204   : > { %4309 = vmatprep.subr.bf16.mxu0 %v6489_v1  ;;  %4350 = vmatprep.subr.bf16.mxu1 %v6492_v2  ;;  %v6558_v1 = vld [vmem:[#allocation2 + $0x10ac] ss:$16 sps:$4 sm:$0xff]  }
 0x207   : > { %4310 = vmatpush1.bf16.msra.mxu0 %v6487_v3  ;;  %4351 = vmatpush1.bf16.msra.mxu1 %v6490_v5  ;;  %v6553_v5 = vld [vmem:[#allocation2 + $0x10a0] ss:$16 sps:$4 sm:$0xff]  }
 0x208   : > { %4311 = vmatprep.subr.bf16.mxu0 %v6495_v6  ;;  %4352 = vmatprep.subr.bf16.mxu1 %v6498_v39  ;;  %v6556_v6 = vld [vmem:[#allocation2 + $0x10a8] ss:$16 sps:$4 sm:$0xff]  }
 0x20b   : > { %4312 = vmatpush2.bf16.msra.mxu0 %v6493_v40  ;;  %4353 = vmatpush2.bf16.msra.mxu1 %v6496_v9  ;;  %v6561_v9 = vld [vmem:[#allocation2 + $0x1084] ss:$16 sps:$4 sm:$0xff]  }
 0x20c   : > { %4313 = vmatprep.subr.bf16.mxu0 %v6501_v10  ;;  %4354 = vmatprep.subr.bf16.mxu1 %v6504_v11  ;;  %v6564_v10 = vld [vmem:[#allocation2 + $0x108c] ss:$16 sps:$4 sm:$0xff]   ;;  %v6562_v11 = vld [vmem:[#allocation2 + $0x1088] ss:$16 sps:$4 sm:$0xff]  }
 0x20f   : > { %4314 = vmatpush2.bf16.msra.mxu0 %v6499_v12  ;;  %4355 = vmatpush2.bf16.msra.mxu1 %v6502_v15  ;;  %v6570_v12 = vld [vmem:[#allocation2 + $0x106c] ss:$16 sps:$4 sm:$0xff]   ;;  %v6565_v15 = vld [vmem:[#allocation2 + $0x1060] ss:$16 sps:$4 sm:$0xff]  }
 0x210   : > { %4315 = vmatprep.subr.bf16.mxu0 %v6507_v16  ;;  %4356 = vmatprep.subr.bf16.mxu1 %v6510_v45  ;;  %v6568_v16 = vld [vmem:[#allocation2 + $0x1068] ss:$16 sps:$4 sm:$0xff]   ;;  %v6573_v45 = vld [vmem:[#allocation2 + $0x1044] ss:$16 sps:$4 sm:$0xff]  }
 0x213   : > { %4316 = vmatpush2.bf16.msra.mxu0 %v6505_v43  ;;  %4357 = vmatpush2.bf16.msra.mxu1 %v6508_v46  ;;  %v6576_v43 = vld [vmem:[#allocation2 + $0x104c] ss:$16 sps:$4 sm:$0xff]   ;;  %v6571_v46 = vld [vmem:[#allocation2 + $0x1040] ss:$16 sps:$4 sm:$0xff]  }
 0x214   : > { %4317 = vmatprep.subr.bf16.mxu0 %v6513_v19  ;;  %4358 = vmatprep.subr.bf16.mxu1 %v6516_v20  ;;  %v6574_v19 = vld [vmem:[#allocation2 + $0x1048] ss:$16 sps:$4 sm:$0xff]   ;;  %v6579_v20 = vld [vmem:[#allocation2 + $0x1024] ss:$16 sps:$4 sm:$0xff]  }
 0x217   : > { %4318 = vmatpush2.bf16.msra.mxu0 %v6511_v21  ;;  %4359 = vmatpush2.bf16.msra.mxu1 %v6514_v22  ;;  %v6582_v21 = vld [vmem:[#allocation2 + $0x102c] ss:$16 sps:$4 sm:$0xff]   ;;  %v6577_v22 = vld [vmem:[#allocation2 + $0x1020] ss:$16 sps:$4 sm:$0xff]  }
 0x218   : > { %4319 = vmatprep.subr.bf16.mxu0 %v6519_v24  ;;  %4360 = vmatprep.subr.bf16.mxu1 %v6522_v25  ;;  %v6580_v24 = vld [vmem:[#allocation2 + $0x1028] ss:$16 sps:$4 sm:$0xff]   ;;  %v6585_v25 = vld [vmem:[#allocation2 + $0x1004] ss:$16 sps:$4 sm:$0xff]  }
 0x21b   : > { %4320 = vmatpush2.bf16.msra.mxu0 %v6517_v26  ;;  %4361 = vmatpush2.bf16.msra.mxu1 %v6520_v27  ;;  %v6588_v26 = vld [vmem:[#allocation2 + $0x100c] ss:$16 sps:$4 sm:$0xff]   ;;  %v6583_v27 = vld [vmem:[#allocation2 + $0x1000] ss:$16 sps:$4 sm:$0xff]  }
 0x21c   : > { %4321 = vmatprep.subr.bf16.mxu0 %v6525_v28  ;;  %4362 = vmatprep.subr.bf16.mxu1 %v6528_v29  ;;  %v6586_v28 = vld [vmem:[#allocation2 + $0x1008] ss:$16 sps:$4 sm:$0xff]   ;;  %v6591_v29 = vld [vmem:[#allocation2 + $0x11e4] ss:$16 sps:$4 sm:$0xff]  }
 0x21f   : > { %4322 = vmatpush2.bf16.msra.mxu0 %v6523_v32  ;;  %4363 = vmatpush2.bf16.msra.mxu1 %v6526_v55  ;;  %v6592_v32 = vld [vmem:[#allocation2 + $0x11e8] ss:$16 sps:$4 sm:$0xff]   ;;  %v6597_v55 = vld [vmem:[#allocation2 + $0x11c4] ss:$16 sps:$4 sm:$0xff]  }
 0x220   : > { %4323 = vmatprep.subr.bf16.mxu0 %v6531_v35  ;;  %4364 = vmatprep.subr.bf16.mxu1 %v6534_v36  ;;  %v6600_v35 = vld [vmem:[#allocation2 + $0x11cc] ss:$16 sps:$4 sm:$0xff]   ;;  %v6595_v36 = vld [vmem:[#allocation2 + $0x11c0] ss:$16 sps:$4 sm:$0xff]  }
 0x223   : > { %4324 = vmatpush2.bf16.msra.mxu0 %v6529_v38  ;;  %4365 = vmatpush2.bf16.msra.mxu1 %v6532_v0  ;;  %v6603_v38 = vld [vmem:[#allocation2 + $0x11a4] ss:$16 sps:$4 sm:$0xff]   ;;  %v6606_v0 = vld [vmem:[#allocation2 + $0x11ac] ss:$16 sps:$4 sm:$0xff]  }
 0x224   : > { %4325 = vmatprep.subr.bf16.mxu0 %v6537_v62  ;;  %4366 = vmatprep.subr.bf16.mxu1 %v6540_v63  ;;  %v6601_v62 = vld [vmem:[#allocation2 + $0x11a0] ss:$16 sps:$4 sm:$0xff]   ;;  %v6604_v63 = vld [vmem:[#allocation2 + $0x11a8] ss:$16 sps:$4 sm:$0xff]  }
 0x227   : > { %4326 = vmatpush2.bf16.msra.mxu0 %v6535_v47  ;;  %4367 = vmatpush2.bf16.msra.mxu1 %v6538_v13  ;;  %v6609_v47 = vld [vmem:[#allocation2 + $0x1184] ss:$16 sps:$4 sm:$0xff]   ;;  %v6612_v13 = vld [vmem:[#allocation2 + $0x118c] ss:$16 sps:$4 sm:$0xff]  }
 0x228   : > { %4811 = vmatprep.subr.bf16.mxu0 %v6543_v14  ;;  %4852 = vmatprep.subr.bf16.mxu1 %v6546_v48  ;;  %v6607_v14 = vld [vmem:[#allocation2 + $0x1180] ss:$16 sps:$4 sm:$0xff]   ;;  %v6610_v48 = vld [vmem:[#allocation2 + $0x1188] ss:$16 sps:$4 sm:$0xff]  }
 0x22a   : > { %v2764_v18 = vpop.f32.mrf.mxu0  ;;  %v2805_v56 = vpop.f32.mrf.mxu1  ;;  %4328 = vmatmul.mubr.bf16.vlgmr.msra.gmra.mxu0 %v3965_v7  ;;  %4369 = vmatmul.mubr.bf16.vlgmr.msra.gmra.mxu1 %v3965_v7  ;;  %v6618_v7 = vld [vmem:[#allocation2 + $0x116c] ss:$16 sps:$4 sm:$0xff]  }
 0x22b   : > { %v6951_v57 = vadd.f32 %v2764_v18, %v6929_v33  ;;  %v6954_v58 = vadd.f32 %v2805_v56, %v6932_v34  ;;  %4812 = vmatpush1.bf16.msra.mxu0 %v6541_v51  ;;  %4853 = vmatpush1.bf16.msra.mxu1 %v6544_v8  ;;  %v6613_v51 = vld [vmem:[#allocation2 + $0x1160] ss:$16 sps:$4 sm:$0xff]   ;;  %v6616_v8 = vld [vmem:[#allocation2 + $0x1168] ss:$16 sps:$4 sm:$0xff]   ;;  %v6627_v56 = vld [vmem:[#allocation2 + $0x1124] ss:$16 sps:$4 sm:$0xff]  }
 0x22c   : > { %v2766_v49 = vpop.f32.mrf.mxu0  ;;  %v2807_v60 = vpop.f32.mrf.mxu1  ;;  %4813 = vmatprep.subr.bf16.mxu0 %v6549_v52  ;;  %4854 = vmatprep.subr.bf16.mxu1 %v6552_v17  ;;  %v6621_v52 = vld [vmem:[#allocation2 + $0x1144] ss:$16 sps:$4 sm:$0xff]   ;;  %v6624_v17 = vld [vmem:[#allocation2 + $0x114c] ss:$16 sps:$4 sm:$0xff]   ;;  %v6622_v18 = vld [vmem:[#allocation2 + $0x1148] ss:$16 sps:$4 sm:$0xff]  }
 0x22d   : > { %v6957_v2 = vadd.f32 %v2766_v49, %v6935_v41  ;;  %v6960_v3 = vadd.f32 %v2807_v60, %v6938_v42  ;;  %4843 = vmatprep.mubr.bf16.mxu0 %v4488_v54  ;;  %4884 = vmatprep.mubr.bf16.mxu1 %v4488_v54  ;;  %v6559_v41 = vld [vmem:[#allocation2 + $0x1080] ss:$16 sps:$4 sm:$0xff]   ;;  %v6567_v42 = vld [vmem:[#allocation2 + $0x1064] ss:$16 sps:$4 sm:$0xff]   ;;  %v6628_v49 = vld [vmem:[#allocation2 + $0x1128] ss:$16 sps:$4 sm:$0xff]  }
 0x22e   : > { %v2768_v33 = vpop.f32.mrf.mxu0  ;;  %v2809_v34 = vpop.f32.mrf.mxu1  ;;  %v6619_v54 = vld [vmem:[#allocation2 + $0x1140] ss:$16 sps:$4 sm:$0xff]   ;;  %v6633_v60 = vld [vmem:[#allocation2 + $0x1104] ss:$16 sps:$4 sm:$0xff]  }
 0x22f   : > { %4814 = vmatpush1.bf16.msra.mxu0 %v6547_v61  ;;  %4855 = vmatpush1.bf16.msra.mxu1 %v6550_v59  ;;  %v6630_v61 = vld [vmem:[#allocation2 + $0x112c] ss:$16 sps:$4 sm:$0xff]   ;;  %v6625_v59 = vld [vmem:[#allocation2 + $0x1120] ss:$16 sps:$4 sm:$0xff]   ;;  %v6634_v33 = vld [vmem:[#allocation2 + $0x1108] ss:$16 sps:$4 sm:$0xff]   ;;  %v4481_v34 = vrot.slane %v6943_v44, %v6810_v4 }
 0x230   : > { %v2769_v39 = vpop.f32.mrf.mxu0  ;;  %v2810_v40 = vpop.f32.mrf.mxu1  ;;  %4815 = vmatprep.subr.bf16.mxu0 %v6555_v23  ;;  %4856 = vmatprep.subr.bf16.mxu1 %v6558_v1  ;;  %v6636_v23 = vld [vmem:[#allocation2 + $0x110c] ss:$16 sps:$4 sm:$0xff]   ;;  %v6631_v1 = vld [vmem:[#allocation2 + $0x1100] ss:$16 sps:$4 sm:$0xff]  }
 0x233   : > { %4816 = vmatpush1.bf16.msra.mxu0 %v6553_v5  ;;  %4857 = vmatpush1.bf16.msra.mxu1 %v6556_v6 }
 0x234   : > { %4817 = vmatprep.subr.bf16.mxu0 %v6561_v9  ;;  %4858 = vmatprep.subr.bf16.mxu1 %v6564_v10 }
 0x237   : > { %4818 = vmatpush1.bf16.msra.mxu0 %v6559_v41  ;;  %4859 = vmatpush1.bf16.msra.mxu1 %v6562_v11 }
 0x238   : > { %4819 = vmatprep.subr.bf16.mxu0 %v6567_v42  ;;  %4860 = vmatprep.subr.bf16.mxu1 %v6570_v12 }
 0x23b   : > { %4820 = vmatpush1.bf16.msra.mxu0 %v6565_v15  ;;  %4861 = vmatpush1.bf16.msra.mxu1 %v6568_v16 }
 0x23c   : > { %4821 = vmatprep.subr.bf16.mxu0 %v6573_v45  ;;  %4862 = vmatprep.subr.bf16.mxu1 %v6576_v43 }
 0x23f   : > { %4822 = vmatpush1.bf16.msra.mxu0 %v6571_v46  ;;  %4863 = vmatpush1.bf16.msra.mxu1 %v6574_v19 }
 0x240   : > { %4823 = vmatprep.subr.bf16.mxu0 %v6579_v20  ;;  %4864 = vmatprep.subr.bf16.mxu1 %v6582_v21 }
 0x243   : > { %4824 = vmatpush1.bf16.msra.mxu0 %v6577_v22  ;;  %4865 = vmatpush1.bf16.msra.mxu1 %v6580_v24 }
 0x244   : > { %4825 = vmatprep.subr.bf16.mxu0 %v6585_v25  ;;  %4866 = vmatprep.subr.bf16.mxu1 %v6588_v26 }
 0x247   : > { %4826 = vmatpush1.bf16.msra.mxu0 %v6583_v27  ;;  %4867 = vmatpush1.bf16.msra.mxu1 %v6586_v28 }
 0x248   : > { %4827 = vmatprep.subr.bf16.mxu0 %v6591_v29  ;;  %4868 = vmatprep.subr.bf16.mxu1 %v6594_v30 }
 0x24b   : > { %4828 = vmatpush2.bf16.msra.mxu0 %v6589_v31  ;;  %4869 = vmatpush2.bf16.msra.mxu1 %v6592_v32 }
 0x24c   : > { %4829 = vmatprep.subr.bf16.mxu0 %v6597_v55  ;;  %4870 = vmatprep.subr.bf16.mxu1 %v6600_v35  ;;  %v4901_v35 = vsub.s32 0, %v6798_v53 }
 0x24f   : > { %4830 = vmatpush2.bf16.msra.mxu0 %v6595_v36  ;;  %4871 = vmatpush2.bf16.msra.mxu1 %v6598_v37  ;;  %v4909_v36 = vsub.s32 2, %v6798_v53  ;;  %v4897_v37 = vld [vmem:[#allocation4] sm:$0xf] }
 0x250   : > { %4831 = vmatprep.subr.bf16.mxu0 %v6603_v38  ;;  %4872 = vmatprep.subr.bf16.mxu1 %v6606_v0  ;;  %v4905_v38 = vsub.s32 1, %v6798_v53  ;;  %v4913_v0 = vsub.s32 3, %v6798_v53 }
 0x253   : > { %4832 = vmatpush2.bf16.msra.mxu0 %v6601_v62  ;;  %4873 = vmatpush2.bf16.msra.mxu1 %v6604_v63  ;;  %v6710_v62 = vmov 1983009808  }
 0x254   : > { %4833 = vmatprep.subr.bf16.mxu0 %v6609_v47  ;;  %4874 = vmatprep.subr.bf16.mxu1 %v6612_v13  ;;  %v4934_v63 = vunpack.c.l.s4 %v6710_v62  ;;  %v4902_v47 = vrot.slane %v4897_v37, %v4901_v35  ;;  %v4910_v13 = vrot.slane %v4897_v37, %v4909_v36 }
 0x257   : > { %4834 = vmatpush2.bf16.msra.mxu0 %v6607_v14  ;;  %4875 = vmatpush2.bf16.msra.mxu1 %v6610_v48 }
 0x258   : > { %4835 = vmatprep.subr.bf16.mxu0 %v6615_v50  ;;  %4876 = vmatprep.subr.bf16.mxu1 %v6618_v7  ;;  %v4906_v50 = vrot.slane %v4897_v37, %v4905_v38  ;;  %v4914_v7 = vrot.slane %v4897_v37, %v4913_v0 }
 0x25b   : > { %4836 = vmatpush2.bf16.msra.mxu0 %v6613_v51  ;;  %4877 = vmatpush2.bf16.msra.mxu1 %v6616_v8 }
 0x25c   : > { %4837 = vmatprep.subr.bf16.mxu0 %v6621_v52  ;;  %4878 = vmatprep.subr.bf16.mxu1 %v6624_v17 }
 0x25f   : > { %4838 = vmatpush2.bf16.msra.mxu0 %v6619_v54  ;;  %4879 = vmatpush2.bf16.msra.mxu1 %v6622_v18  ;;  %v4935_v18 = vunpack.c.0.s8 %v4934_v63 }
 0x260   : > { %4839 = vmatprep.subr.bf16.mxu0 %v6627_v56  ;;  %4880 = vmatprep.subr.bf16.mxu1 %v6630_v61 }
 0x263   : > { %4840 = vmatpush2.bf16.msra.mxu0 %v6625_v59  ;;  %4881 = vmatpush2.bf16.msra.mxu1 %v6628_v49 }
 0x264   : > { %4841 = vmatprep.subr.bf16.mxu0 %v6633_v60  ;;  %4882 = vmatprep.subr.bf16.mxu1 %v6636_v23 }
 0x267   : > { %4842 = vmatpush2.bf16.msra.mxu0 %v6631_v1  ;;  %4883 = vmatpush2.bf16.msra.mxu1 %v6634_v33 }
 0x26a   : > { %v3280_v5 = vpop.f32.mrf.mxu0  ;;  %v3321_v6 = vpop.f32.mrf.mxu1  ;;  %4844 = vmatmul.mubr.bf16.vlgmr.msra.gmra.mxu0 %v4481_v34  ;;  %4885 = vmatmul.mubr.bf16.vlgmr.msra.gmra.mxu1 %v4481_v34 }
 0x26b   : > { %v3328_v39 = vadd.f32 %v3280_v5, %v6951_v57  ;;  %v3330_v40 = vadd.f32 %v3321_v6, %v6954_v58  ;;  %v4938_v5 = vsub.s32 %v4935_v18, %v6798_v53 }
 0x26c   : > { %v3282_v9 = vpop.f32.mrf.mxu0  ;;  %v3323_v10 = vpop.f32.mrf.mxu1 }
 0x26d   : > { %v3329_v41 = vadd.f32 %v3282_v9, %v6957_v2  ;;  %v3331_v11 = vadd.f32 %v3323_v10, %v6960_v3 }
 0x26e   : > { %v3284_v42 = vpop.f32.mrf.mxu0  ;;  %v3325_v12 = vpop.f32.mrf.mxu1 }
 0x270   : > { %v3285_v15 = vpop.f32.mrf.mxu0  ;;  %v3326_v44 = vpop.f32.mrf.mxu1 }
 0x2aa   : > { %v3795_v16 = vpop.f32.mrf.mxu0  ;;  %v3836_v45 = vpop.f32.mrf.mxu1 }
 0x2ab   : > { %v3843_v43 = vadd.f32 %v3795_v16, %v3328_v39  ;;  %v3845_v46 = vadd.f32 %v3836_v45, %v3330_v40 }
 0x2ac   : > { %v3797_v19 = vpop.f32.mrf.mxu0  ;;  %v3838_v20 = vpop.f32.mrf.mxu1 }
 0x2ad   : > { %v3844_v21 = vadd.f32 %v3797_v19, %v3329_v41  ;;  %v3846_v57 = vadd.f32 %v3838_v20, %v3331_v11 }
 0x2ae   : > { %v3799_v22 = vpop.f32.mrf.mxu0  ;;  %v3840_v58 = vpop.f32.mrf.mxu1 }
 0x2af   : > { %v4975_v22 = vsub.s32 6, %v6798_v53 }
 0x2b0   : > { %v3800_v24 = vpop.f32.mrf.mxu0  ;;  %v3841_v25 = vpop.f32.mrf.mxu1 }
 0x2ea   : > { %v4329_v26 = vpop.f32.mrf.mxu0  ;;  %v4370_v2 = vpop.f32.mrf.mxu1 }
 0x2eb   : > { %v4377_v27 = vadd.f32 %v4329_v26, %v3843_v43  ;;  %v4379_v3 = vadd.f32 %v4370_v2, %v3845_v46 }
 0x2ec   : > { %v4331_v28 = vpop.f32.mrf.mxu0  ;;  %v4372_v29 = vpop.f32.mrf.mxu1 }
 0x2ed   : > { %v4378_v51 = vadd.f32 %v4331_v28, %v3844_v21  ;;  %v4380_v8 = vadd.f32 %v4372_v29, %v3846_v57  ;;  %v4971_v57 = vsub.s32 4, %v6798_v53 }
 0x2ee   : > { %v4333_v30 = vpop.f32.mrf.mxu0  ;;  %v4374_v31 = vpop.f32.mrf.mxu1 }
 0x2ef   : > { %v5028_v30 = vld [vmem:[%s196_s8] sm:$0xf] }
 0x2f0   : > { %v4334_v32 = vpop.f32.mrf.mxu0  ;;  %v4375_v55 = vpop.f32.mrf.mxu1 }
 0x32a   : > { %v4845_v14 = vpop.f32.mrf.mxu0  ;;  %v4886_v48 = vpop.f32.mrf.mxu1 }
 0x32b   : > { %v4893_v52 = vadd.f32 %v4845_v14, %v4377_v27  ;;  %v4895_v17 = vadd.f32 %v4886_v48, %v4379_v3 }
 0x32c   : > { %v4847_v54 = vpop.f32.mrf.mxu0  ;;  %v4888_v56 = vpop.f32.mrf.mxu1 }
 0x32d   : > { %v4919_v61 = vadd.f32 %v4902_v47, %v4893_v52  ;;  %v4921_v59 = vadd.f32 %v4910_v13, %v4895_v17  ;;  %v4894_v49 = vadd.f32 %v4847_v54, %v4378_v51  ;;  %v4896_v60 = vadd.f32 %v4888_v56, %v4380_v8 }
 0x32e   : > { %v4849_v23 = vpop.f32.mrf.mxu0  ;;  %v4890_v1 = vpop.f32.mrf.mxu1 }
 0x32f   : > { %v4920_v33 = vadd.f32 %v4906_v50, %v4894_v49  ;;  %v4922_v34 = vadd.f32 %v4914_v7, %v4896_v60  ;;  %v4923_v40 = vmax.f32 %v4919_v61, 0.0  ;;  %v4925_v9 = vmax.f32 %v4921_v59, 0.0 }
 0x330   : > { %v4850_v6 = vpop.f32.mrf.mxu0  ;;  %v4891_v39 = vpop.f32.mrf.mxu1 }
 0x331   : > { %v4924_v10 = vmax.f32 %v4920_v33, 0.0  ;;  %v4926_v41 = vmax.f32 %v4922_v34, 0.0 }
 0x333   : > { %v4931_v11 = vcombine.low %v4923_v40, %v4924_v10  ;;  %v4932_v42 = vcombine.low %v4925_v9, %v4926_v41 }
 0x335   : > { %v4939_v12 = vrot.slane %v4931_v11, %v4938_v5  ;;  %v4946_v15 = vrot.slane %v4932_v42, %v4938_v5 }
 0x337   : > { %v4947_v44 = vcombine.low %v4939_v12, %v4946_v15  ;;  %v4948_v16 = vcombine.high %v4939_v12, %v4946_v15 }
 0x339   : > { %v5733_v45 = vrot.slane %v4947_v44, 9  ;;  %v5734_v43 = vrot.slane %v4948_v16, 9 }
 0x33b   : > { %v4957_v20 = vmax.f32 %v4947_v44, %v5733_v45  ;;  %v4958_v21 = vmax.f32 %v4948_v16, %v5734_v43 }
 0x33d   : > { %v4959_v58 = vmax.f32 %v4957_v20, %v4958_v21 }
 0x33f   : > { %v4964_v24 = vrot.slane %v4959_v58, %v4901_v35  ;;  %v4968_v25 = vrot.slane %v4959_v58, %v4909_v36  ;;  %v4972_v26 = vrot.slane %v4959_v58, %v4971_v57  ;;  %v4976_v2 = vrot.slane %v4959_v58, %v4975_v22 }
 0x341   : > { %v5735_v27 = vpack.c.bf16 %v4968_v25, %v4964_v24  ;;  %v5736_v3 = vpack.c.bf16 %v4976_v2, %v4972_v26 }
 0x343   : > { %v4997_v53 = vrot.slane %v5735_v27, %v6810_v4  ;;  %v5004_v28 = vrot.slane %v5736_v3, %v6810_v4 }
 0x345   : > { %v5005_v29 = vcombine.low %v4997_v53, %v5004_v28 }
 0x347   : > { %v5012_v31 = vrot.slane %v5005_v29, %v6810_v4 }
 0x349   : > { %v5029_v32 = vsel %vm5027_vm12, %v5012_v31, %v5028_v30 }
 0x34a   : > { %5030 = vst [vmem:[%s196_s8] sm:$0xf] %v5029_v32 }
 0x34b PF: > { %s15_s12 = sadd.s32 1, %s6703_s12  }
 0x34c   : > { %p12_p3 = scmp.ge.s32.totalorder %s15_s12, 4  }
 0x34e   :  { %14 = sbr.rel (!%p12_p3) target bundleno = 2 (0x2), region = 81 }
 0x353   :  { %5050 = vsyncpa [#allocation3], 1 }
 0x354   :  { %5052 = vsyncpa [#allocation3 + $0x1], 1 }
 0x355   :  { %5053 = vsyncpa [#allocation5], 1 }

</bundles_post_ra>
